<compile_context>
chip_gen: v6e
topology: v6e:2x2x1
jax: 0.10.0
libtpu: 0.0.40
codegen_flags: <defaults>
</compile_context>

<pallas_src>
import functools

import jax
import jax.numpy as jnp
from jax import lax
from jax.experimental import pallas as pl
from jax.experimental.pallas import tpu as pltpu


def _full_spec(shape):
    # whole-array block, single kernel invocation (grid = ())
    return pl.BlockSpec(shape, lambda: (0,) * len(shape))


# ---------------------------------------------------------------------------
# Kernel A: conv1 + pool + relu  ->  conv2 + pool + relu   (all in VMEM)
# ---------------------------------------------------------------------------
def _conv_stack_kernel(p1_ref, w1_ref, b1_ref, w2_ref, b2_ref, o_ref,
                       a1_ref, y2_ref, *, B):
    M1 = B * 196  # rows of the pooled 14x14 grid (b, h, w)

    # conv1: one long MXU matmul over all 4 pooling phases (phase-major rows),
    # then pooling = max over 4 contiguous row blocks, + bias, relu.
    y1 = jnp.dot(p1_ref[...], w1_ref[...], preferred_element_type=jnp.float32)
    m = jnp.maximum(jnp.maximum(y1[0:M1], y1[M1:2 * M1]),
                    jnp.maximum(y1[2 * M1:3 * M1], y1[3 * M1:4 * M1]))
    a1_ref[0:M1, :] = jnp.maximum(m + b1_ref[...], 0.0)      # (B*196, 32) f32
    # zero pad rows so shifted reads below never touch uninitialized VMEM
    a1_ref[M1:M1 + 32, :] = jnp.zeros((32, 32), jnp.float32)

    # conv2 computed on the full 14x14 grid as 9 shifted matmuls (K=32 each),
    # accumulated into a VMEM scratch.  Positions with h or w >= 12 contain
    # garbage but are never read by the pooling stage below.
    y2_ref[...] = jnp.dot(a1_ref[0:M1, :].astype(jnp.bfloat16), w2_ref[0:32, :],
                          preferred_element_type=jnp.float32) + b2_ref[...]
    for t in range(1, 9):
        ki, kj = t // 3, t % 3
        sh = ki * 14 + kj
        a_sh = a1_ref[sh:sh + M1, :].astype(jnp.bfloat16)
        y2_ref[...] += jnp.dot(a_sh, w2_ref[t * 32:(t + 1) * 32, :],
                               preferred_element_type=jnp.float32)

    # 2x2 maxpool + relu over the valid 12x12 region via stride-2 row reads.
    # Output rows are ordered (b, ph, pw).
    for b in range(B):
        for ph in range(6):
            base = b * 196 + 2 * ph * 14
            r00 = y2_ref[pl.ds(base, 6, stride=2), :]
            r01 = y2_ref[pl.ds(base + 1, 6, stride=2), :]
            r10 = y2_ref[pl.ds(base + 14, 6, stride=2), :]
            r11 = y2_ref[pl.ds(base + 15, 6, stride=2), :]
            r0 = (b * 6 + ph) * 6
            o_ref[r0:r0 + 6, :] = jnp.maximum(
                jnp.maximum(jnp.maximum(r00, r01), jnp.maximum(r10, r11)), 0.0)


def conv_stack(p1, w1c, b1c, w2c, b2c, B):
    kern = functools.partial(_conv_stack_kernel, B=B)
    return pl.pallas_call(
        kern,
        out_shape=jax.ShapeDtypeStruct((B * 36, 64), jnp.float32),
        in_specs=[_full_spec((4 * B * 196, 128)),
                  _full_spec((128, 32)), _full_spec((1, 32)),
                  _full_spec((288, 64)), _full_spec((1, 64))],
        out_specs=_full_spec((B * 36, 64)),
        scratch_shapes=[pltpu.VMEM((B * 196 + 32, 32), jnp.float32),  # a1 (padded)
                        pltpu.VMEM((B * 196, 64), jnp.float32)],      # conv2 pre-pool
    )(p1, w1c, b1c, w2c, b2c)


# ---------------------------------------------------------------------------
# Kernel B: fc1 + relu + fc2
# ---------------------------------------------------------------------------
def _fc_kernel(x_ref, w1_ref, b1_ref, w2_ref, b2_ref, o_ref):
    x = x_ref[...].astype(jnp.bfloat16)
    h = jnp.dot(x, w1_ref[...], preferred_element_type=jnp.float32) + b1_ref[...]
    h = jnp.maximum(h, 0.0).astype(jnp.bfloat16)
    o_ref[...] = jnp.dot(h, w2_ref[...], preferred_element_type=jnp.float32) + b2_ref[...]


def fc_head(x_flat, w1f, b1f, w2f, b2f):
    B, D = x_flat.shape
    H = w1f.shape[1]
    O = w2f.shape[1]
    return pl.pallas_call(
        _fc_kernel,
        out_shape=jax.ShapeDtypeStruct((B, O), jnp.float32),
        in_specs=[_full_spec((B, D)), _full_spec((D, H)), _full_spec((1, H)),
                  _full_spec((H, O)), _full_spec((1, O))],
        out_specs=_full_spec((B, O)),
    )(x_flat, w1f, b1f, w2f, b2f)


# ---------------------------------------------------------------------------
# Host-side glue
# ---------------------------------------------------------------------------
def _conv1_patches(x_nhwc):
    """Phase-major im2col rows for the 5x5 conv; K padded 75 -> 128, bf16."""
    B = x_nhwc.shape[0]
    cols = jnp.concatenate(
        [x_nhwc[:, ki:ki + 28, kj:kj + 28, :] for ki in range(5) for kj in range(5)],
        axis=-1)                                                   # (B, 28, 28, 75)
    phases = jnp.stack([cols[:, dy::2, dx::2, :] for dy in (0, 1) for dx in (0, 1)],
                       axis=0)                                     # (4, B, 14, 14, 75)
    p = phases.reshape(4 * B * 196, 75)
    p = jnp.pad(p, ((0, 0), (0, 53)))                              # K: 75 -> 128
    return p.astype(jnp.bfloat16)


def net_forward(x_nchw, w):
    B = x_nchw.shape[0]
    x = jnp.transpose(x_nchw, (0, 2, 3, 1))                        # NCHW -> NHWC
    p1 = _conv1_patches(x)
    a2 = conv_stack(p1, w['w1c'], w['b1c'], w['w2c'], w['b2c'], B)  # (B*36, 64)
    x_flat = a2.reshape(B, 2304)                                   # lane order (h, w, c)
    return fc_head(x_flat, w['w1f'], w['b1f'], w['w2f'], w['b2f'])  # (B, 2)


def prepare_params(p):
    """One-time weight re-layout (outside the per-forward path)."""
    w1c = jnp.transpose(p['conv1_w'], (2, 3, 1, 0)).reshape(75, 32)    # (kh,kw,c,O)
    w1c = jnp.pad(w1c, ((0, 53), (0, 0))).astype(jnp.bfloat16)         # (128, 32)
    w2c = jnp.transpose(p['conv2_w'], (2, 3, 1, 0)).reshape(288, 64).astype(jnp.bfloat16)
    # fc1: PyTorch flatten order is (c,h,w); our activation flatten is (h,w,c).
    w1f = jnp.transpose(p['fc1_w'].reshape(512, 64, 6, 6), (2, 3, 1, 0)).reshape(2304, 512)
    return {
        'w1c': w1c, 'b1c': p['conv1_b'].reshape(1, 32),
        'w2c': w2c, 'b2c': p['conv2_b'].reshape(1, 64),
        'w1f': w1f.astype(jnp.bfloat16), 'b1f': p['fc1_b'].reshape(1, 512),
        'w2f': p['fc2_w'].T.astype(jnp.bfloat16), 'b2f': p['fc2_b'].reshape(1, 2),
    }


def init_params(key):
    """Deterministic synthetic params; PyTorch-layout shapes, uniform(+-1/sqrt(fan_in))."""
    ks = jax.random.split(key, 8)

    def u(k, shape, fan_in):
        bound = 1.0 / jnp.sqrt(jnp.float32(fan_in))
        return jax.random.uniform(k, shape, jnp.float32, -bound, bound)

    return {
        'conv1_w': u(ks[0], (32, 3, 5, 5), 3 * 5 * 5),
        'conv1_b': u(ks[1], (32,), 3 * 5 * 5),
        'conv2_w': u(ks[2], (64, 32, 3, 3), 32 * 3 * 3),
        'conv2_b': u(ks[3], (64,), 32 * 3 * 3),
        'fc1_w': u(ks[4], (512, 2304), 2304),
        'fc1_b': u(ks[5], (512,), 2304),
        'fc2_w': u(ks[6], (2, 512), 512),
        'fc2_b': u(ks[7], (2,), 512),
    }


def reference_forward(x, p, use_bf16):
    """Pure-JAX reference mirroring the PyTorch forward (optionally with the
    same bf16 operand casts as the kernels, f32 accumulation)."""
    dn = ('NCHW', 'OIHW', 'NCHW')
    cast = (lambda a: a.astype(jnp.bfloat16)) if use_bf16 else (lambda a: a)

    def conv(x, w, b):
        y = lax.conv_general_dilated(cast(x), cast(w), (1, 1), 'VALID',
                                     dimension_numbers=dn,
                                     preferred_element_type=jnp.float32)
        return y + b.reshape(1, -1, 1, 1)

    def pool(x):
        return lax.reduce_window(x, -jnp.inf, lax.max, (1, 1, 2, 2), (1, 1, 2, 2), 'VALID')

    x = jax.nn.relu(pool(conv(x, p['conv1_w'], p['conv1_b'])))
    x = jax.nn.relu(pool(conv(x, p['conv2_w'], p['conv2_b'])))
    x = x.reshape(x.shape[0], -1)
    h = jnp.dot(cast(x), cast(p['fc1_w'].T), preferred_element_type=jnp.float32) + p['fc1_b']
    h = jax.nn.relu(h)
    return jnp.dot(cast(h), cast(p['fc2_w'].T), preferred_element_type=jnp.float32) + p['fc2_b']


if __name__ == "__main__":
    key = jax.random.PRNGKey(0)
    kx, kp = jax.random.split(key)
    # Input spatial size 32 is implied by fc1 in_features = 2304 = 64 * 6 * 6.
    x = jax.random.normal(kx, (2, 3, 32, 32), jnp.float32)   # NCHW, like PyTorch
    params = init_params(kp)
    prepped = prepare_params(params)                         # one-time weight layout

    fwd = jax.jit(net_forward)
    out = jax.block_until_ready(fwd(x, prepped))

    ref_bf16 = jax.block_until_ready(reference_forward(x, params, True))
    ref_f32 = jax.block_until_ready(reference_forward(x, params, False))

    assert out.shape == (2, 2) and out.dtype == jnp.float32
    # tight check vs a reference using the same bf16 operand precision
    assert jnp.allclose(out, ref_bf16, rtol=1e-2, atol=1e-2)
    # loose sanity check vs the full-f32 reference
    assert jnp.allclose(out, ref_f32, rtol=5e-2, atol=5e-2)
    print("KERNEL_OK")
</pallas_src>

<mosaic_0001>
module attributes {stable_mosaic.version = 11 : i64} {
  func.func @_conv_stack_kernel(%arg0: memref<1568x128xbf16, #tpu.memory_space<vmem>>, %arg1: memref<128x32xbf16, #tpu.memory_space<vmem>>, %arg2: memref<1x32xf32, #tpu.memory_space<vmem>>, %arg3: memref<288x64xbf16, #tpu.memory_space<vmem>>, %arg4: memref<1x64xf32, #tpu.memory_space<vmem>>, %arg5: memref<72x64xf32, #tpu.memory_space<vmem>>, %arg6: memref<424x32xf32, #tpu.memory_space<vmem>>, %arg7: memref<392x64xf32, #tpu.memory_space<vmem>>) attributes {dimension_semantics = [], scalar_prefetch = 0 : i64, scratch_operands = 2 : i64, tpu.core_type = #tpu.core_type<tc>} {
    %c0 = arith.constant 0 : index
    %c0_0 = arith.constant 0 : index
    %0 = vector.load %arg0[%c0, %c0_0] : memref<1568x128xbf16, #tpu.memory_space<vmem>>, vector<1568x128xbf16>
    %c0_1 = arith.constant 0 : index
    %c0_2 = arith.constant 0 : index
    %1 = vector.load %arg1[%c0_1, %c0_2] : memref<128x32xbf16, #tpu.memory_space<vmem>>, vector<128x32xbf16>
    %cst = arith.constant dense<0.000000e+00> : vector<1568x32xf32>
    %2 = tpu.matmul %0, %1, %cst {dimension_numbers = #tpu.dot_dimension_numbers<[1], [0], [0], [1], [0, 0, 1, 1], [], []>} : vector<1568x128xbf16>, vector<128x32xbf16>, vector<1568x32xf32> -> vector<1568x32xf32>
    %3 = vector.extract_strided_slice %2 {offsets = [0, 0], sizes = [392, 32], strides = [1, 1]} : vector<1568x32xf32> to vector<392x32xf32>
    %4 = vector.extract_strided_slice %2 {offsets = [392, 0], sizes = [392, 32], strides = [1, 1]} : vector<1568x32xf32> to vector<392x32xf32>
    %5 = arith.maximumf %3, %4 : vector<392x32xf32>
    %6 = vector.extract_strided_slice %2 {offsets = [784, 0], sizes = [392, 32], strides = [1, 1]} : vector<1568x32xf32> to vector<392x32xf32>
    %7 = vector.extract_strided_slice %2 {offsets = [1176, 0], sizes = [392, 32], strides = [1, 1]} : vector<1568x32xf32> to vector<392x32xf32>
    %8 = arith.maximumf %6, %7 : vector<392x32xf32>
    %9 = arith.maximumf %5, %8 : vector<392x32xf32>
    %c0_3 = arith.constant 0 : index
    %c0_4 = arith.constant 0 : index
    %10 = vector.load %arg2[%c0_3, %c0_4] : memref<1x32xf32, #tpu.memory_space<vmem>>, vector<1x32xf32>
    %11 = vector.broadcast %10 : vector<1x32xf32> to vector<392x32xf32>
    %12 = arith.addf %9, %11 : vector<392x32xf32>
    %cst_5 = arith.constant 0.000000e+00 : f32
    %13 = vector.broadcast %cst_5 : f32 to vector<392x32xf32>
    %14 = arith.maximumf %12, %13 : vector<392x32xf32>
    %c0_6 = arith.constant 0 : index
    %c0_7 = arith.constant 0 : index
    %15 = vector.load %arg6[%c0_6, %c0_7] : memref<424x32xf32, #tpu.memory_space<vmem>>, vector<392x32xf32>
    tpu.vector_store %arg6[%c0_6, %c0_7], %14 {strides = array<i32>} : memref<424x32xf32, #tpu.memory_space<vmem>>, vector<392x32xf32>,
    %cst_8 = arith.constant 0.000000e+00 : f32
    %16 = vector.broadcast %cst_8 : f32 to vector<32x32xf32>
    %c392 = arith.constant 392 : index
    %c0_9 = arith.constant 0 : index
    %17 = vector.load %arg6[%c392, %c0_9] : memref<424x32xf32, #tpu.memory_space<vmem>>, vector<32x32xf32>
    tpu.vector_store %arg6[%c392, %c0_9], %16 {strides = array<i32>} : memref<424x32xf32, #tpu.memory_space<vmem>>, vector<32x32xf32>,
    %c0_10 = arith.constant 0 : index
    %c0_11 = arith.constant 0 : index
    %18 = vector.load %arg6[%c0_10, %c0_11] : memref<424x32xf32, #tpu.memory_space<vmem>>, vector<392x32xf32>
    %19 = arith.truncf %18 : vector<392x32xf32> to vector<392x32xbf16>
    %c0_12 = arith.constant 0 : index
    %c0_13 = arith.constant 0 : index
    %20 = vector.load %arg3[%c0_12, %c0_13] : memref<288x64xbf16, #tpu.memory_space<vmem>>, vector<32x64xbf16>
    %cst_14 = arith.constant dense<0.000000e+00> : vector<392x64xf32>
    %21 = tpu.matmul %19, %20, %cst_14 {dimension_numbers = #tpu.dot_dimension_numbers<[1], [0], [0], [1], [0, 0, 1, 1], [], []>} : vector<392x32xbf16>, vector<32x64xbf16>, vector<392x64xf32> -> vector<392x64xf32>
    %c0_15 = arith.constant 0 : index
    %c0_16 = arith.constant 0 : index
    %22 = vector.load %arg4[%c0_15, %c0_16] : memref<1x64xf32, #tpu.memory_space<vmem>>, vector<1x64xf32>
    %23 = vector.broadcast %22 : vector<1x64xf32> to vector<392x64xf32>
    %24 = arith.addf %21, %23 : vector<392x64xf32>
    %c0_17 = arith.constant 0 : index
    %c0_18 = arith.constant 0 : index
    %25 = vector.load %arg7[%c0_17, %c0_18] : memref<392x64xf32, #tpu.memory_space<vmem>>, vector<392x64xf32>
    tpu.vector_store %arg7[%c0_17, %c0_18], %24 {strides = array<i32>} : memref<392x64xf32, #tpu.memory_space<vmem>>, vector<392x64xf32>,
    %c1 = arith.constant 1 : index
    %c0_19 = arith.constant 0 : index
    %26 = vector.load %arg6[%c1, %c0_19] : memref<424x32xf32, #tpu.memory_space<vmem>>, vector<392x32xf32>
    %27 = arith.truncf %26 : vector<392x32xf32> to vector<392x32xbf16>
    %c0_20 = arith.constant 0 : index
    %c0_21 = arith.constant 0 : index
    %28 = vector.load %arg7[%c0_20, %c0_21] : memref<392x64xf32, #tpu.memory_space<vmem>>, vector<392x64xf32>
    %c32 = arith.constant 32 : index
    %c0_22 = arith.constant 0 : index
    %29 = vector.load %arg3[%c32, %c0_22] : memref<288x64xbf16, #tpu.memory_space<vmem>>, vector<32x64xbf16>
    %cst_23 = arith.constant dense<0.000000e+00> : vector<392x64xf32>
    %30 = tpu.matmul %27, %29, %cst_23 {dimension_numbers = #tpu.dot_dimension_numbers<[1], [0], [0], [1], [0, 0, 1, 1], [], []>} : vector<392x32xbf16>, vector<32x64xbf16>, vector<392x64xf32> -> vector<392x64xf32>
    %31 = arith.addf %28, %30 : vector<392x64xf32>
    %c0_24 = arith.constant 0 : index
    %c0_25 = arith.constant 0 : index
    %32 = vector.load %arg7[%c0_24, %c0_25] : memref<392x64xf32, #tpu.memory_space<vmem>>, vector<392x64xf32>
    tpu.vector_store %arg7[%c0_24, %c0_25], %31 {strides = array<i32>} : memref<392x64xf32, #tpu.memory_space<vmem>>, vector<392x64xf32>,
    %c2 = arith.constant 2 : index
    %c0_26 = arith.constant 0 : index
    %33 = vector.load %arg6[%c2, %c0_26] : memref<424x32xf32, #tpu.memory_space<vmem>>, vector<392x32xf32>
    %34 = arith.truncf %33 : vector<392x32xf32> to vector<392x32xbf16>
    %c0_27 = arith.constant 0 : index
    %c0_28 = arith.constant 0 : index
    %35 = vector.load %arg7[%c0_27, %c0_28] : memref<392x64xf32, #tpu.memory_space<vmem>>, vector<392x64xf32>
    %c64 = arith.constant 64 : index
    %c0_29 = arith.constant 0 : index
    %36 = vector.load %arg3[%c64, %c0_29] : memref<288x64xbf16, #tpu.memory_space<vmem>>, vector<32x64xbf16>
    %cst_30 = arith.constant dense<0.000000e+00> : vector<392x64xf32>
    %37 = tpu.matmul %34, %36, %cst_30 {dimension_numbers = #tpu.dot_dimension_numbers<[1], [0], [0], [1], [0, 0, 1, 1], [], []>} : vector<392x32xbf16>, vector<32x64xbf16>, vector<392x64xf32> -> vector<392x64xf32>
    %38 = arith.addf %35, %37 : vector<392x64xf32>
    %c0_31 = arith.constant 0 : index
    %c0_32 = arith.constant 0 : index
    %39 = vector.load %arg7[%c0_31, %c0_32] : memref<392x64xf32, #tpu.memory_space<vmem>>, vector<392x64xf32>
    tpu.vector_store %arg7[%c0_31, %c0_32], %38 {strides = array<i32>} : memref<392x64xf32, #tpu.memory_space<vmem>>, vector<392x64xf32>,
    %c14 = arith.constant 14 : index
    %c0_33 = arith.constant 0 : index
    %40 = vector.load %arg6[%c14, %c0_33] : memref<424x32xf32, #tpu.memory_space<vmem>>, vector<392x32xf32>
    %41 = arith.truncf %40 : vector<392x32xf32> to vector<392x32xbf16>
    %c0_34 = arith.constant 0 : index
    %c0_35 = arith.constant 0 : index
    %42 = vector.load %arg7[%c0_34, %c0_35] : memref<392x64xf32, #tpu.memory_space<vmem>>, vector<392x64xf32>
    %c96 = arith.constant 96 : index
    %c0_36 = arith.constant 0 : index
    %43 = vector.load %arg3[%c96, %c0_36] : memref<288x64xbf16, #tpu.memory_space<vmem>>, vector<32x64xbf16>
    %cst_37 = arith.constant dense<0.000000e+00> : vector<392x64xf32>
    %44 = tpu.matmul %41, %43, %cst_37 {dimension_numbers = #tpu.dot_dimension_numbers<[1], [0], [0], [1], [0, 0, 1, 1], [], []>} : vector<392x32xbf16>, vector<32x64xbf16>, vector<392x64xf32> -> vector<392x64xf32>
    %45 = arith.addf %42, %44 : vector<392x64xf32>
    %c0_38 = arith.constant 0 : index
    %c0_39 = arith.constant 0 : index
    %46 = vector.load %arg7[%c0_38, %c0_39] : memref<392x64xf32, #tpu.memory_space<vmem>>, vector<392x64xf32>
    tpu.vector_store %arg7[%c0_38, %c0_39], %45 {strides = array<i32>} : memref<392x64xf32, #tpu.memory_space<vmem>>, vector<392x64xf32>,
    %c15 = arith.constant 15 : index
    %c0_40 = arith.constant 0 : index
    %47 = vector.load %arg6[%c15, %c0_40] : memref<424x32xf32, #tpu.memory_space<vmem>>, vector<392x32xf32>
    %48 = arith.truncf %47 : vector<392x32xf32> to vector<392x32xbf16>
    %c0_41 = arith.constant 0 : index
    %c0_42 = arith.constant 0 : index
    %49 = vector.load %arg7[%c0_41, %c0_42] : memref<392x64xf32, #tpu.memory_space<vmem>>, vector<392x64xf32>
    %c128 = arith.constant 128 : index
    %c0_43 = arith.constant 0 : index
    %50 = vector.load %arg3[%c128, %c0_43] : memref<288x64xbf16, #tpu.memory_space<vmem>>, vector<32x64xbf16>
    %cst_44 = arith.constant dense<0.000000e+00> : vector<392x64xf32>
    %51 = tpu.matmul %48, %50, %cst_44 {dimension_numbers = #tpu.dot_dimension_numbers<[1], [0], [0], [1], [0, 0, 1, 1], [], []>} : vector<392x32xbf16>, vector<32x64xbf16>, vector<392x64xf32> -> vector<392x64xf32>
    %52 = arith.addf %49, %51 : vector<392x64xf32>
    %c0_45 = arith.constant 0 : index
    %c0_46 = arith.constant 0 : index
    %53 = vector.load %arg7[%c0_45, %c0_46] : memref<392x64xf32, #tpu.memory_space<vmem>>, vector<392x64xf32>
    tpu.vector_store %arg7[%c0_45, %c0_46], %52 {strides = array<i32>} : memref<392x64xf32, #tpu.memory_space<vmem>>, vector<392x64xf32>,
    %c16 = arith.constant 16 : index
    %c0_47 = arith.constant 0 : index
    %54 = vector.load %arg6[%c16, %c0_47] : memref<424x32xf32, #tpu.memory_space<vmem>>, vector<392x32xf32>
    %55 = arith.truncf %54 : vector<392x32xf32> to vector<392x32xbf16>
    %c0_48 = arith.constant 0 : index
    %c0_49 = arith.constant 0 : index
    %56 = vector.load %arg7[%c0_48, %c0_49] : memref<392x64xf32, #tpu.memory_space<vmem>>, vector<392x64xf32>
    %c160 = arith.constant 160 : index
    %c0_50 = arith.constant 0 : index
    %57 = vector.load %arg3[%c160, %c0_50] : memref<288x64xbf16, #tpu.memory_space<vmem>>, vector<32x64xbf16>
    %cst_51 = arith.constant dense<0.000000e+00> : vector<392x64xf32>
    %58 = tpu.matmul %55, %57, %cst_51 {dimension_numbers = #tpu.dot_dimension_numbers<[1], [0], [0], [1], [0, 0, 1, 1], [], []>} : vector<392x32xbf16>, vector<32x64xbf16>, vector<392x64xf32> -> vector<392x64xf32>
    %59 = arith.addf %56, %58 : vector<392x64xf32>
    %c0_52 = arith.constant 0 : index
    %c0_53 = arith.constant 0 : index
    %60 = vector.load %arg7[%c0_52, %c0_53] : memref<392x64xf32, #tpu.memory_space<vmem>>, vector<392x64xf32>
    tpu.vector_store %arg7[%c0_52, %c0_53], %59 {strides = array<i32>} : memref<392x64xf32, #tpu.memory_space<vmem>>, vector<392x64xf32>,
    %c28 = arith.constant 28 : index
    %c0_54 = arith.constant 0 : index
    %61 = vector.load %arg6[%c28, %c0_54] : memref<424x32xf32, #tpu.memory_space<vmem>>, vector<392x32xf32>
    %62 = arith.truncf %61 : vector<392x32xf32> to vector<392x32xbf16>
    %c0_55 = arith.constant 0 : index
    %c0_56 = arith.constant 0 : index
    %63 = vector.load %arg7[%c0_55, %c0_56] : memref<392x64xf32, #tpu.memory_space<vmem>>, vector<392x64xf32>
    %c192 = arith.constant 192 : index
    %c0_57 = arith.constant 0 : index
    %64 = vector.load %arg3[%c192, %c0_57] : memref<288x64xbf16, #tpu.memory_space<vmem>>, vector<32x64xbf16>
    %cst_58 = arith.constant dense<0.000000e+00> : vector<392x64xf32>
    %65 = tpu.matmul %62, %64, %cst_58 {dimension_numbers = #tpu.dot_dimension_numbers<[1], [0], [0], [1], [0, 0, 1, 1], [], []>} : vector<392x32xbf16>, vector<32x64xbf16>, vector<392x64xf32> -> vector<392x64xf32>
    %66 = arith.addf %63, %65 : vector<392x64xf32>
    %c0_59 = arith.constant 0 : index
    %c0_60 = arith.constant 0 : index
    %67 = vector.load %arg7[%c0_59, %c0_60] : memref<392x64xf32, #tpu.memory_space<vmem>>, vector<392x64xf32>
    tpu.vector_store %arg7[%c0_59, %c0_60], %66 {strides = array<i32>} : memref<392x64xf32, #tpu.memory_space<vmem>>, vector<392x64xf32>,
    %c29 = arith.constant 29 : index
    %c0_61 = arith.constant 0 : index
    %68 = vector.load %arg6[%c29, %c0_61] : memref<424x32xf32, #tpu.memory_space<vmem>>, vector<392x32xf32>
    %69 = arith.truncf %68 : vector<392x32xf32> to vector<392x32xbf16>
    %c0_62 = arith.constant 0 : index
    %c0_63 = arith.constant 0 : index
    %70 = vector.load %arg7[%c0_62, %c0_63] : memref<392x64xf32, #tpu.memory_space<vmem>>, vector<392x64xf32>
    %c224 = arith.constant 224 : index
    %c0_64 = arith.constant 0 : index
    %71 = vector.load %arg3[%c224, %c0_64] : memref<288x64xbf16, #tpu.memory_space<vmem>>, vector<32x64xbf16>
    %cst_65 = arith.constant dense<0.000000e+00> : vector<392x64xf32>
    %72 = tpu.matmul %69, %71, %cst_65 {dimension_numbers = #tpu.dot_dimension_numbers<[1], [0], [0], [1], [0, 0, 1, 1], [], []>} : vector<392x32xbf16>, vector<32x64xbf16>, vector<392x64xf32> -> vector<392x64xf32>
    %73 = arith.addf %70, %72 : vector<392x64xf32>
    %c0_66 = arith.constant 0 : index
    %c0_67 = arith.constant 0 : index
    %74 = vector.load %arg7[%c0_66, %c0_67] : memref<392x64xf32, #tpu.memory_space<vmem>>, vector<392x64xf32>
    tpu.vector_store %arg7[%c0_66, %c0_67], %73 {strides = array<i32>} : memref<392x64xf32, #tpu.memory_space<vmem>>, vector<392x64xf32>,
    %c30 = arith.constant 30 : index
    %c0_68 = arith.constant 0 : index
    %75 = vector.load %arg6[%c30, %c0_68] : memref<424x32xf32, #tpu.memory_space<vmem>>, vector<392x32xf32>
    %76 = arith.truncf %75 : vector<392x32xf32> to vector<392x32xbf16>
    %c0_69 = arith.constant 0 : index
    %c0_70 = arith.constant 0 : index
    %77 = vector.load %arg7[%c0_69, %c0_70] : memref<392x64xf32, #tpu.memory_space<vmem>>, vector<392x64xf32>
    %c256 = arith.constant 256 : index
    %c0_71 = arith.constant 0 : index
    %78 = vector.load %arg3[%c256, %c0_71] : memref<288x64xbf16, #tpu.memory_space<vmem>>, vector<32x64xbf16>
    %cst_72 = arith.constant dense<0.000000e+00> : vector<392x64xf32>
    %79 = tpu.matmul %76, %78, %cst_72 {dimension_numbers = #tpu.dot_dimension_numbers<[1], [0], [0], [1], [0, 0, 1, 1], [], []>} : vector<392x32xbf16>, vector<32x64xbf16>, vector<392x64xf32> -> vector<392x64xf32>
    %80 = arith.addf %77, %79 : vector<392x64xf32>
    %c0_73 = arith.constant 0 : index
    %c0_74 = arith.constant 0 : index
    %81 = vector.load %arg7[%c0_73, %c0_74] : memref<392x64xf32, #tpu.memory_space<vmem>>, vector<392x64xf32>
    tpu.vector_store %arg7[%c0_73, %c0_74], %80 {strides = array<i32>} : memref<392x64xf32, #tpu.memory_space<vmem>>, vector<392x64xf32>,
    %c0_75 = arith.constant 0 : index
    %c0_76 = arith.constant 0 : index
    %82 = tpu.strided_load %arg7[%c0_75, %c0_76] {strides = array<i32: 2, 1>} : memref<392x64xf32, #tpu.memory_space<vmem>>, vector<6x64xf32>
    %c1_77 = arith.constant 1 : index
    %c0_78 = arith.constant 0 : index
    %83 = tpu.strided_load %arg7[%c1_77, %c0_78] {strides = array<i32: 2, 1>} : memref<392x64xf32, #tpu.memory_space<vmem>>, vector<6x64xf32>
    %c14_79 = arith.constant 14 : index
    %c0_80 = arith.constant 0 : index
    %84 = tpu.strided_load %arg7[%c14_79, %c0_80] {strides = array<i32: 2, 1>} : memref<392x64xf32, #tpu.memory_space<vmem>>, vector<6x64xf32>
    %c15_81 = arith.constant 15 : index
    %c0_82 = arith.constant 0 : index
    %85 = tpu.strided_load %arg7[%c15_81, %c0_82] {strides = array<i32: 2, 1>} : memref<392x64xf32, #tpu.memory_space<vmem>>, vector<6x64xf32>
    %86 = arith.maximumf %82, %83 : vector<6x64xf32>
    %87 = arith.maximumf %84, %85 : vector<6x64xf32>
    %88 = arith.maximumf %86, %87 : vector<6x64xf32>
    %cst_83 = arith.constant 0.000000e+00 : f32
    %89 = vector.broadcast %cst_83 : f32 to vector<6x64xf32>
    %90 = arith.maximumf %88, %89 : vector<6x64xf32>
    %c0_84 = arith.constant 0 : index
    %c0_85 = arith.constant 0 : index
    %91 = vector.load %arg5[%c0_84, %c0_85] : memref<72x64xf32, #tpu.memory_space<vmem>>, vector<6x64xf32>
    tpu.vector_store %arg5[%c0_84, %c0_85], %90 {strides = array<i32>} : memref<72x64xf32, #tpu.memory_space<vmem>>, vector<6x64xf32>,
    %c28_86 = arith.constant 28 : index
    %c0_87 = arith.constant 0 : index
    %92 = tpu.strided_load %arg7[%c28_86, %c0_87] {strides = array<i32: 2, 1>} : memref<392x64xf32, #tpu.memory_space<vmem>>, vector<6x64xf32>
    %c29_88 = arith.constant 29 : index
    %c0_89 = arith.constant 0 : index
    %93 = tpu.strided_load %arg7[%c29_88, %c0_89] {strides = array<i32: 2, 1>} : memref<392x64xf32, #tpu.memory_space<vmem>>, vector<6x64xf32>
    %c42 = arith.constant 42 : index
    %c0_90 = arith.constant 0 : index
    %94 = tpu.strided_load %arg7[%c42, %c0_90] {strides = array<i32: 2, 1>} : memref<392x64xf32, #tpu.memory_space<vmem>>, vector<6x64xf32>
    %c43 = arith.constant 43 : index
    %c0_91 = arith.constant 0 : index
    %95 = tpu.strided_load %arg7[%c43, %c0_91] {strides = array<i32: 2, 1>} : memref<392x64xf32, #tpu.memory_space<vmem>>, vector<6x64xf32>
    %96 = arith.maximumf %92, %93 : vector<6x64xf32>
    %97 = arith.maximumf %94, %95 : vector<6x64xf32>
    %98 = arith.maximumf %96, %97 : vector<6x64xf32>
    %cst_92 = arith.constant 0.000000e+00 : f32
    %99 = vector.broadcast %cst_92 : f32 to vector<6x64xf32>
    %100 = arith.maximumf %98, %99 : vector<6x64xf32>
    %c6 = arith.constant 6 : index
    %c0_93 = arith.constant 0 : index
    %101 = vector.load %arg5[%c6, %c0_93] : memref<72x64xf32, #tpu.memory_space<vmem>>, vector<6x64xf32>
    tpu.vector_store %arg5[%c6, %c0_93], %100 {strides = array<i32>} : memref<72x64xf32, #tpu.memory_space<vmem>>, vector<6x64xf32>,
    %c56 = arith.constant 56 : index
    %c0_94 = arith.constant 0 : index
    %102 = tpu.strided_load %arg7[%c56, %c0_94] {strides = array<i32: 2, 1>} : memref<392x64xf32, #tpu.memory_space<vmem>>, vector<6x64xf32>
    %c57 = arith.constant 57 : index
    %c0_95 = arith.constant 0 : index
    %103 = tpu.strided_load %arg7[%c57, %c0_95] {strides = array<i32: 2, 1>} : memref<392x64xf32, #tpu.memory_space<vmem>>, vector<6x64xf32>
    %c70 = arith.constant 70 : index
    %c0_96 = arith.constant 0 : index
    %104 = tpu.strided_load %arg7[%c70, %c0_96] {strides = array<i32: 2, 1>} : memref<392x64xf32, #tpu.memory_space<vmem>>, vector<6x64xf32>
    %c71 = arith.constant 71 : index
    %c0_97 = arith.constant 0 : index
    %105 = tpu.strided_load %arg7[%c71, %c0_97] {strides = array<i32: 2, 1>} : memref<392x64xf32, #tpu.memory_space<vmem>>, vector<6x64xf32>
    %106 = arith.maximumf %102, %103 : vector<6x64xf32>
    %107 = arith.maximumf %104, %105 : vector<6x64xf32>
    %108 = arith.maximumf %106, %107 : vector<6x64xf32>
    %cst_98 = arith.constant 0.000000e+00 : f32
    %109 = vector.broadcast %cst_98 : f32 to vector<6x64xf32>
    %110 = arith.maximumf %108, %109 : vector<6x64xf32>
    %c12 = arith.constant 12 : index
    %c0_99 = arith.constant 0 : index
    %111 = vector.load %arg5[%c12, %c0_99] : memref<72x64xf32, #tpu.memory_space<vmem>>, vector<6x64xf32>
    tpu.vector_store %arg5[%c12, %c0_99], %110 {strides = array<i32>} : memref<72x64xf32, #tpu.memory_space<vmem>>, vector<6x64xf32>,
    %c84 = arith.constant 84 : index
    %c0_100 = arith.constant 0 : index
    %112 = tpu.strided_load %arg7[%c84, %c0_100] {strides = array<i32: 2, 1>} : memref<392x64xf32, #tpu.memory_space<vmem>>, vector<6x64xf32>
    %c85 = arith.constant 85 : index
    %c0_101 = arith.constant 0 : index
    %113 = tpu.strided_load %arg7[%c85, %c0_101] {strides = array<i32: 2, 1>} : memref<392x64xf32, #tpu.memory_space<vmem>>, vector<6x64xf32>
    %c98 = arith.constant 98 : index
    %c0_102 = arith.constant 0 : index
    %114 = tpu.strided_load %arg7[%c98, %c0_102] {strides = array<i32: 2, 1>} : memref<392x64xf32, #tpu.memory_space<vmem>>, vector<6x64xf32>
    %c99 = arith.constant 99 : index
    %c0_103 = arith.constant 0 : index
    %115 = tpu.strided_load %arg7[%c99, %c0_103] {strides = array<i32: 2, 1>} : memref<392x64xf32, #tpu.memory_space<vmem>>, vector<6x64xf32>
    %116 = arith.maximumf %112, %113 : vector<6x64xf32>
    %117 = arith.maximumf %114, %115 : vector<6x64xf32>
    %118 = arith.maximumf %116, %117 : vector<6x64xf32>
    %cst_104 = arith.constant 0.000000e+00 : f32
    %119 = vector.broadcast %cst_104 : f32 to vector<6x64xf32>
    %120 = arith.maximumf %118, %119 : vector<6x64xf32>
    %c18 = arith.constant 18 : index
    %c0_105 = arith.constant 0 : index
    %121 = vector.load %arg5[%c18, %c0_105] : memref<72x64xf32, #tpu.memory_space<vmem>>, vector<6x64xf32>
    tpu.vector_store %arg5[%c18, %c0_105], %120 {strides = array<i32>} : memref<72x64xf32, #tpu.memory_space<vmem>>, vector<6x64xf32>,
    %c112 = arith.constant 112 : index
    %c0_106 = arith.constant 0 : index
    %122 = tpu.strided_load %arg7[%c112, %c0_106] {strides = array<i32: 2, 1>} : memref<392x64xf32, #tpu.memory_space<vmem>>, vector<6x64xf32>
    %c113 = arith.constant 113 : index
    %c0_107 = arith.constant 0 : index
    %123 = tpu.strided_load %arg7[%c113, %c0_107] {strides = array<i32: 2, 1>} : memref<392x64xf32, #tpu.memory_space<vmem>>, vector<6x64xf32>
    %c126 = arith.constant 126 : index
    %c0_108 = arith.constant 0 : index
    %124 = tpu.strided_load %arg7[%c126, %c0_108] {strides = array<i32: 2, 1>} : memref<392x64xf32, #tpu.memory_space<vmem>>, vector<6x64xf32>
    %c127 = arith.constant 127 : index
    %c0_109 = arith.constant 0 : index
    %125 = tpu.strided_load %arg7[%c127, %c0_109] {strides = array<i32: 2, 1>} : memref<392x64xf32, #tpu.memory_space<vmem>>, vector<6x64xf32>
    %126 = arith.maximumf %122, %123 : vector<6x64xf32>
    %127 = arith.maximumf %124, %125 : vector<6x64xf32>
    %128 = arith.maximumf %126, %127 : vector<6x64xf32>
    %cst_110 = arith.constant 0.000000e+00 : f32
    %129 = vector.broadcast %cst_110 : f32 to vector<6x64xf32>
    %130 = arith.maximumf %128, %129 : vector<6x64xf32>
    %c24 = arith.constant 24 : index
    %c0_111 = arith.constant 0 : index
    %131 = vector.load %arg5[%c24, %c0_111] : memref<72x64xf32, #tpu.memory_space<vmem>>, vector<6x64xf32>
    tpu.vector_store %arg5[%c24, %c0_111], %130 {strides = array<i32>} : memref<72x64xf32, #tpu.memory_space<vmem>>, vector<6x64xf32>,
    %c140 = arith.constant 140 : index
    %c0_112 = arith.constant 0 : index
    %132 = tpu.strided_load %arg7[%c140, %c0_112] {strides = array<i32: 2, 1>} : memref<392x64xf32, #tpu.memory_space<vmem>>, vector<6x64xf32>
    %c141 = arith.constant 141 : index
    %c0_113 = arith.constant 0 : index
    %133 = tpu.strided_load %arg7[%c141, %c0_113] {strides = array<i32: 2, 1>} : memref<392x64xf32, #tpu.memory_space<vmem>>, vector<6x64xf32>
    %c154 = arith.constant 154 : index
    %c0_114 = arith.constant 0 : index
    %134 = tpu.strided_load %arg7[%c154, %c0_114] {strides = array<i32: 2, 1>} : memref<392x64xf32, #tpu.memory_space<vmem>>, vector<6x64xf32>
    %c155 = arith.constant 155 : index
    %c0_115 = arith.constant 0 : index
    %135 = tpu.strided_load %arg7[%c155, %c0_115] {strides = array<i32: 2, 1>} : memref<392x64xf32, #tpu.memory_space<vmem>>, vector<6x64xf32>
    %136 = arith.maximumf %132, %133 : vector<6x64xf32>
    %137 = arith.maximumf %134, %135 : vector<6x64xf32>
    %138 = arith.maximumf %136, %137 : vector<6x64xf32>
    %cst_116 = arith.constant 0.000000e+00 : f32
    %139 = vector.broadcast %cst_116 : f32 to vector<6x64xf32>
    %140 = arith.maximumf %138, %139 : vector<6x64xf32>
    %c30_117 = arith.constant 30 : index
    %c0_118 = arith.constant 0 : index
    %141 = vector.load %arg5[%c30_117, %c0_118] : memref<72x64xf32, #tpu.memory_space<vmem>>, vector<6x64xf32>
    tpu.vector_store %arg5[%c30_117, %c0_118], %140 {strides = array<i32>} : memref<72x64xf32, #tpu.memory_space<vmem>>, vector<6x64xf32>,
    %c196 = arith.constant 196 : index
    %c0_119 = arith.constant 0 : index
    %142 = tpu.strided_load %arg7[%c196, %c0_119] {strides = array<i32: 2, 1>} : memref<392x64xf32, #tpu.memory_space<vmem>>, vector<6x64xf32>
    %c197 = arith.constant 197 : index
    %c0_120 = arith.constant 0 : index
    %143 = tpu.strided_load %arg7[%c197, %c0_120] {strides = array<i32: 2, 1>} : memref<392x64xf32, #tpu.memory_space<vmem>>, vector<6x64xf32>
    %c210 = arith.constant 210 : index
    %c0_121 = arith.constant 0 : index
    %144 = tpu.strided_load %arg7[%c210, %c0_121] {strides = array<i32: 2, 1>} : memref<392x64xf32, #tpu.memory_space<vmem>>, vector<6x64xf32>
    %c211 = arith.constant 211 : index
    %c0_122 = arith.constant 0 : index
    %145 = tpu.strided_load %arg7[%c211, %c0_122] {strides = array<i32: 2, 1>} : memref<392x64xf32, #tpu.memory_space<vmem>>, vector<6x64xf32>
    %146 = arith.maximumf %142, %143 : vector<6x64xf32>
    %147 = arith.maximumf %144, %145 : vector<6x64xf32>
    %148 = arith.maximumf %146, %147 : vector<6x64xf32>
    %cst_123 = arith.constant 0.000000e+00 : f32
    %149 = vector.broadcast %cst_123 : f32 to vector<6x64xf32>
    %150 = arith.maximumf %148, %149 : vector<6x64xf32>
    %c36 = arith.constant 36 : index
    %c0_124 = arith.constant 0 : index
    %151 = vector.load %arg5[%c36, %c0_124] : memref<72x64xf32, #tpu.memory_space<vmem>>, vector<6x64xf32>
    tpu.vector_store %arg5[%c36, %c0_124], %150 {strides = array<i32>} : memref<72x64xf32, #tpu.memory_space<vmem>>, vector<6x64xf32>,
    %c224_125 = arith.constant 224 : index
    %c0_126 = arith.constant 0 : index
    %152 = tpu.strided_load %arg7[%c224_125, %c0_126] {strides = array<i32: 2, 1>} : memref<392x64xf32, #tpu.memory_space<vmem>>, vector<6x64xf32>
    %c225 = arith.constant 225 : index
    %c0_127 = arith.constant 0 : index
    %153 = tpu.strided_load %arg7[%c225, %c0_127] {strides = array<i32: 2, 1>} : memref<392x64xf32, #tpu.memory_space<vmem>>, vector<6x64xf32>
    %c238 = arith.constant 238 : index
    %c0_128 = arith.constant 0 : index
    %154 = tpu.strided_load %arg7[%c238, %c0_128] {strides = array<i32: 2, 1>} : memref<392x64xf32, #tpu.memory_space<vmem>>, vector<6x64xf32>
    %c239 = arith.constant 239 : index
    %c0_129 = arith.constant 0 : index
    %155 = tpu.strided_load %arg7[%c239, %c0_129] {strides = array<i32: 2, 1>} : memref<392x64xf32, #tpu.memory_space<vmem>>, vector<6x64xf32>
    %156 = arith.maximumf %152, %153 : vector<6x64xf32>
    %157 = arith.maximumf %154, %155 : vector<6x64xf32>
    %158 = arith.maximumf %156, %157 : vector<6x64xf32>
    %cst_130 = arith.constant 0.000000e+00 : f32
    %159 = vector.broadcast %cst_130 : f32 to vector<6x64xf32>
    %160 = arith.maximumf %158, %159 : vector<6x64xf32>
    %c42_131 = arith.constant 42 : index
    %c0_132 = arith.constant 0 : index
    %161 = vector.load %arg5[%c42_131, %c0_132] : memref<72x64xf32, #tpu.memory_space<vmem>>, vector<6x64xf32>
    tpu.vector_store %arg5[%c42_131, %c0_132], %160 {strides = array<i32>} : memref<72x64xf32, #tpu.memory_space<vmem>>, vector<6x64xf32>,
    %c252 = arith.constant 252 : index
    %c0_133 = arith.constant 0 : index
    %162 = tpu.strided_load %arg7[%c252, %c0_133] {strides = array<i32: 2, 1>} : memref<392x64xf32, #tpu.memory_space<vmem>>, vector<6x64xf32>
    %c253 = arith.constant 253 : index
    %c0_134 = arith.constant 0 : index
    %163 = tpu.strided_load %arg7[%c253, %c0_134] {strides = array<i32: 2, 1>} : memref<392x64xf32, #tpu.memory_space<vmem>>, vector<6x64xf32>
    %c266 = arith.constant 266 : index
    %c0_135 = arith.constant 0 : index
    %164 = tpu.strided_load %arg7[%c266, %c0_135] {strides = array<i32: 2, 1>} : memref<392x64xf32, #tpu.memory_space<vmem>>, vector<6x64xf32>
    %c267 = arith.constant 267 : index
    %c0_136 = arith.constant 0 : index
    %165 = tpu.strided_load %arg7[%c267, %c0_136] {strides = array<i32: 2, 1>} : memref<392x64xf32, #tpu.memory_space<vmem>>, vector<6x64xf32>
    %166 = arith.maximumf %162, %163 : vector<6x64xf32>
    %167 = arith.maximumf %164, %165 : vector<6x64xf32>
    %168 = arith.maximumf %166, %167 : vector<6x64xf32>
    %cst_137 = arith.constant 0.000000e+00 : f32
    %169 = vector.broadcast %cst_137 : f32 to vector<6x64xf32>
    %170 = arith.maximumf %168, %169 : vector<6x64xf32>
    %c48 = arith.constant 48 : index
    %c0_138 = arith.constant 0 : index
    %171 = vector.load %arg5[%c48, %c0_138] : memref<72x64xf32, #tpu.memory_space<vmem>>, vector<6x64xf32>
    tpu.vector_store %arg5[%c48, %c0_138], %170 {strides = array<i32>} : memref<72x64xf32, #tpu.memory_space<vmem>>, vector<6x64xf32>,
    %c280 = arith.constant 280 : index
    %c0_139 = arith.constant 0 : index
    %172 = tpu.strided_load %arg7[%c280, %c0_139] {strides = array<i32: 2, 1>} : memref<392x64xf32, #tpu.memory_space<vmem>>, vector<6x64xf32>
    %c281 = arith.constant 281 : index
    %c0_140 = arith.constant 0 : index
    %173 = tpu.strided_load %arg7[%c281, %c0_140] {strides = array<i32: 2, 1>} : memref<392x64xf32, #tpu.memory_space<vmem>>, vector<6x64xf32>
    %c294 = arith.constant 294 : index
    %c0_141 = arith.constant 0 : index
    %174 = tpu.strided_load %arg7[%c294, %c0_141] {strides = array<i32: 2, 1>} : memref<392x64xf32, #tpu.memory_space<vmem>>, vector<6x64xf32>
    %c295 = arith.constant 295 : index
    %c0_142 = arith.constant 0 : index
    %175 = tpu.strided_load %arg7[%c295, %c0_142] {strides = array<i32: 2, 1>} : memref<392x64xf32, #tpu.memory_space<vmem>>, vector<6x64xf32>
    %176 = arith.maximumf %172, %173 : vector<6x64xf32>
    %177 = arith.maximumf %174, %175 : vector<6x64xf32>
    %178 = arith.maximumf %176, %177 : vector<6x64xf32>
    %cst_143 = arith.constant 0.000000e+00 : f32
    %179 = vector.broadcast %cst_143 : f32 to vector<6x64xf32>
    %180 = arith.maximumf %178, %179 : vector<6x64xf32>
    %c54 = arith.constant 54 : index
    %c0_144 = arith.constant 0 : index
    %181 = vector.load %arg5[%c54, %c0_144] : memref<72x64xf32, #tpu.memory_space<vmem>>, vector<6x64xf32>
    tpu.vector_store %arg5[%c54, %c0_144], %180 {strides = array<i32>} : memref<72x64xf32, #tpu.memory_space<vmem>>, vector<6x64xf32>,
    %c308 = arith.constant 308 : index
    %c0_145 = arith.constant 0 : index
    %182 = tpu.strided_load %arg7[%c308, %c0_145] {strides = array<i32: 2, 1>} : memref<392x64xf32, #tpu.memory_space<vmem>>, vector<6x64xf32>
    %c309 = arith.constant 309 : index
    %c0_146 = arith.constant 0 : index
    %183 = tpu.strided_load %arg7[%c309, %c0_146] {strides = array<i32: 2, 1>} : memref<392x64xf32, #tpu.memory_space<vmem>>, vector<6x64xf32>
    %c322 = arith.constant 322 : index
    %c0_147 = arith.constant 0 : index
    %184 = tpu.strided_load %arg7[%c322, %c0_147] {strides = array<i32: 2, 1>} : memref<392x64xf32, #tpu.memory_space<vmem>>, vector<6x64xf32>
    %c323 = arith.constant 323 : index
    %c0_148 = arith.constant 0 : index
    %185 = tpu.strided_load %arg7[%c323, %c0_148] {strides = array<i32: 2, 1>} : memref<392x64xf32, #tpu.memory_space<vmem>>, vector<6x64xf32>
    %186 = arith.maximumf %182, %183 : vector<6x64xf32>
    %187 = arith.maximumf %184, %185 : vector<6x64xf32>
    %188 = arith.maximumf %186, %187 : vector<6x64xf32>
    %cst_149 = arith.constant 0.000000e+00 : f32
    %189 = vector.broadcast %cst_149 : f32 to vector<6x64xf32>
    %190 = arith.maximumf %188, %189 : vector<6x64xf32>
    %c60 = arith.constant 60 : index
    %c0_150 = arith.constant 0 : index
    %191 = vector.load %arg5[%c60, %c0_150] : memref<72x64xf32, #tpu.memory_space<vmem>>, vector<6x64xf32>
    tpu.vector_store %arg5[%c60, %c0_150], %190 {strides = array<i32>} : memref<72x64xf32, #tpu.memory_space<vmem>>, vector<6x64xf32>,
    %c336 = arith.constant 336 : index
    %c0_151 = arith.constant 0 : index
    %192 = tpu.strided_load %arg7[%c336, %c0_151] {strides = array<i32: 2, 1>} : memref<392x64xf32, #tpu.memory_space<vmem>>, vector<6x64xf32>
    %c337 = arith.constant 337 : index
    %c0_152 = arith.constant 0 : index
    %193 = tpu.strided_load %arg7[%c337, %c0_152] {strides = array<i32: 2, 1>} : memref<392x64xf32, #tpu.memory_space<vmem>>, vector<6x64xf32>
    %c350 = arith.constant 350 : index
    %c0_153 = arith.constant 0 : index
    %194 = tpu.strided_load %arg7[%c350, %c0_153] {strides = array<i32: 2, 1>} : memref<392x64xf32, #tpu.memory_space<vmem>>, vector<6x64xf32>
    %c351 = arith.constant 351 : index
    %c0_154 = arith.constant 0 : index
    %195 = tpu.strided_load %arg7[%c351, %c0_154] {strides = array<i32: 2, 1>} : memref<392x64xf32, #tpu.memory_space<vmem>>, vector<6x64xf32>
    %196 = arith.maximumf %192, %193 : vector<6x64xf32>
    %197 = arith.maximumf %194, %195 : vector<6x64xf32>
    %198 = arith.maximumf %196, %197 : vector<6x64xf32>
    %cst_155 = arith.constant 0.000000e+00 : f32
    %199 = vector.broadcast %cst_155 : f32 to vector<6x64xf32>
    %200 = arith.maximumf %198, %199 : vector<6x64xf32>
    %c66 = arith.constant 66 : index
    %c0_156 = arith.constant 0 : index
    %201 = vector.load %arg5[%c66, %c0_156] : memref<72x64xf32, #tpu.memory_space<vmem>>, vector<6x64xf32>
    tpu.vector_store %arg5[%c66, %c0_156], %200 {strides = array<i32>} : memref<72x64xf32, #tpu.memory_space<vmem>>, vector<6x64xf32>,
    return
  }
}

module attributes {stable_mosaic.version = 11 : i64} {
  func.func @_fc_kernel(%arg0: memref<2x2304xf32, #tpu.memory_space<vmem>>, %arg1: memref<2304x512xbf16, #tpu.memory_space<vmem>>, %arg2: memref<1x512xf32, #tpu.memory_space<vmem>>, %arg3: memref<512x2xbf16, #tpu.memory_space<vmem>>, %arg4: memref<1x2xf32, #tpu.memory_space<vmem>>, %arg5: memref<2x2xf32, #tpu.memory_space<vmem>>) attributes {dimension_semantics = [], scalar_prefetch = 0 : i64, scratch_operands = 0 : i64, tpu.core_type = #tpu.core_type<tc>} {
    %c0 = arith.constant 0 : index
    %c0_0 = arith.constant 0 : index
    %0 = vector.load %arg0[%c0, %c0_0] : memref<2x2304xf32, #tpu.memory_space<vmem>>, vector<2x2304xf32>
    %1 = arith.truncf %0 : vector<2x2304xf32> to vector<2x2304xbf16>
    %c0_1 = arith.constant 0 : index
    %c0_2 = arith.constant 0 : index
    %2 = vector.load %arg1[%c0_1, %c0_2] : memref<2304x512xbf16, #tpu.memory_space<vmem>>, vector<2304x512xbf16>
    %cst = arith.constant dense<0.000000e+00> : vector<2x512xf32>
    %3 = tpu.matmul %1, %2, %cst {dimension_numbers = #tpu.dot_dimension_numbers<[1], [0], [0], [1], [0, 0, 1, 1], [], []>} : vector<2x2304xbf16>, vector<2304x512xbf16>, vector<2x512xf32> -> vector<2x512xf32>
    %c0_3 = arith.constant 0 : index
    %c0_4 = arith.constant 0 : index
    %4 = vector.load %arg2[%c0_3, %c0_4] : memref<1x512xf32, #tpu.memory_space<vmem>>, vector<1x512xf32>
    %5 = vector.broadcast %4 : vector<1x512xf32> to vector<2x512xf32>
    %6 = arith.addf %3, %5 : vector<2x512xf32>
    %cst_5 = arith.constant 0.000000e+00 : f32
    %7 = vector.broadcast %cst_5 : f32 to vector<2x512xf32>
    %8 = arith.maximumf %6, %7 : vector<2x512xf32>
    %9 = arith.truncf %8 : vector<2x512xf32> to vector<2x512xbf16>
    %c0_6 = arith.constant 0 : index
    %c0_7 = arith.constant 0 : index
    %10 = vector.load %arg3[%c0_6, %c0_7] : memref<512x2xbf16, #tpu.memory_space<vmem>>, vector<512x2xbf16>
    %cst_8 = arith.constant dense<0.000000e+00> : vector<2x2xf32>
    %11 = tpu.matmul %9, %10, %cst_8 {dimension_numbers = #tpu.dot_dimension_numbers<[1], [0], [0], [1], [0, 0, 1, 1], [], []>} : vector<2x512xbf16>, vector<512x2xbf16>, vector<2x2xf32> -> vector<2x2xf32>
    %c0_9 = arith.constant 0 : index
    %c0_10 = arith.constant 0 : index
    %12 = vector.load %arg4[%c0_9, %c0_10] : memref<1x2xf32, #tpu.memory_space<vmem>>, vector<1x2xf32>
    %13 = vector.broadcast %12 : vector<1x2xf32> to vector<2x2xf32>
    %14 = arith.addf %11, %13 : vector<2x2xf32>
    %c0_11 = arith.constant 0 : index
    %c0_12 = arith.constant 0 : index
    %15 = vector.load %arg5[%c0_11, %c0_12] : memref<2x2xf32, #tpu.memory_space<vmem>>, vector<2x2xf32>
    tpu.vector_store %arg5[%c0_11, %c0_12], %14 {strides = array<i32>} : memref<2x2xf32, #tpu.memory_space<vmem>>, vector<2x2xf32>,
    return
  }
}

</mosaic_0001>

<bundles_post_ra>
// kernel: net_forward.3
= control target key start
LH: loop header
LB: loop body
LE: loop exit
PB: predicated region body
PF: predicated region fallthrough
CT: control target
= control target key end

     0   :  { %v6306_v36 = vmov 1983009808   ;;  %v36_v38 = vlaneseq  ;;  %s8356_s0 = inlined_call_operand.vmem [shape: f32[2,2304], index: 0, kind: input, shape index: {}]   ;;  %s8357_s1 = inlined_call_operand.vmem [shape: bf16[2304,512], index: 1, kind: input, shape index: {}]   ;;  %s8358_s2 = inlined_call_operand.vmem [shape: f32[1,512], index: 2, kind: input, shape index: {}]   ;;  %s8359_s3 = inlined_call_operand.vmem [shape: bf16[512,2], index: 3, kind: input, shape index: {}]   ;;  %s8360_s4 = inlined_call_operand.vmem [shape: f32[1,2], index: 4, kind: input, shape index: {}]   ;;  %s8361_s5 = inlined_call_operand.hbm [shape: f32[2,2], index: 5, kind: output, shape index: {}]  }
   0x1   :  { %v5383_v0 = vld [vmem:[%s8357_s1 + $0xe4] ss:$16 sps:$4 sm:$0xff]   ;;  %v5387_v2 = vld [vmem:[%s8357_s1 + $0xe0] ss:$16 sps:$4 sm:$0xff]   ;;  %v34_v37 = vunpack.c.l.s4 %v6306_v36 }
   0x2   :  { %v5385_v1 = vld [vmem:[%s8357_s1 + $0x2e4] ss:$16 sps:$4 sm:$0xff]   ;;  %3622 = vmatprep.subr.bf16.mxu0 %v5383_v0  ;;  %v5388_v3 = vld [vmem:[%s8357_s1 + $0x2e0] ss:$16 sps:$4 sm:$0xff]   ;;  %v6455_v43 = vshrl.u32 %v36_v38, 7 }
   0x3   :  { %3663 = vmatprep.subr.bf16.mxu1 %v5385_v1  ;;  %v5389_v4 = vld [vmem:[%s8357_s1 + $0xc4] ss:$16 sps:$4 sm:$0xff]   ;;  %3623 = vmatpush1.bf16.msra.mxu0 %v5387_v2  ;;  %v5393_v6 = vld [vmem:[%s8357_s1 + $0xc0] ss:$16 sps:$4 sm:$0xff]   ;;  %v35_v42 = vunpack.c.0.s8 %v34_v37 }
   0x4   :  { %3664 = vmatpush1.bf16.msra.mxu1 %v5388_v3  ;;  %v5391_v5 = vld [vmem:[%s8357_s1 + $0x2c4] ss:$16 sps:$4 sm:$0xff]   ;;  %3624 = vmatprep.subr.bf16.mxu0 %v5389_v4  ;;  %v5394_v7 = vld [vmem:[%s8357_s1 + $0x2c0] ss:$16 sps:$4 sm:$0xff]  }
   0x5   :  { %3665 = vmatprep.subr.bf16.mxu1 %v5391_v5  ;;  %v5395_v8 = vld [vmem:[%s8357_s1 + $0xa4] ss:$16 sps:$4 sm:$0xff]   ;;  %v5399_v10 = vld [vmem:[%s8357_s1 + $0xa0] ss:$16 sps:$4 sm:$0xff]   ;;  %v6473_v49 = vsub.s32 %v35_v42, %v6455_v43  ;;  %v23_v42 = vld [vmem:[%s8356_s0 + $0x8] sm:$0xff] }
   0x6   :  { %v5397_v9 = vld [vmem:[%s8357_s1 + $0x2a4] ss:$16 sps:$4 sm:$0xff]   ;;  %v5400_v11 = vld [vmem:[%s8357_s1 + $0x2a0] ss:$16 sps:$4 sm:$0xff]  }
   0x7   :  { %3625 = vmatpush1.bf16.msra.mxu0 %v5393_v6  ;;  %v5401_v12 = vld [vmem:[%s8357_s1 + $0x84] ss:$16 sps:$4 sm:$0xff]   ;;  %v5405_v14 = vld [vmem:[%s8357_s1 + $0x80] ss:$16 sps:$4 sm:$0xff]  }
   0x8   :  { %3666 = vmatpush1.bf16.msra.mxu1 %v5394_v7  ;;  %3626 = vmatprep.subr.bf16.mxu0 %v5395_v8  ;;  %v5403_v13 = vld [vmem:[%s8357_s1 + $0x284] ss:$16 sps:$4 sm:$0xff]   ;;  %v5406_v15 = vld [vmem:[%s8357_s1 + $0x280] ss:$16 sps:$4 sm:$0xff]  }
   0x9   :  { %3667 = vmatprep.subr.bf16.mxu1 %v5397_v9  ;;  %v5407_v16 = vld [vmem:[%s8357_s1 + $0x64] ss:$16 sps:$4 sm:$0xff]   ;;  %v5411_v18 = vld [vmem:[%s8357_s1 + $0x60] ss:$16 sps:$4 sm:$0xff]  }
   0xa   :  { %v5409_v17 = vld [vmem:[%s8357_s1 + $0x264] ss:$16 sps:$4 sm:$0xff]   ;;  %v5412_v19 = vld [vmem:[%s8357_s1 + $0x260] ss:$16 sps:$4 sm:$0xff]  }
   0xb   :  { %3627 = vmatpush1.bf16.msra.mxu0 %v5399_v10  ;;  %v5413_v20 = vld [vmem:[%s8357_s1 + $0x44] ss:$16 sps:$4 sm:$0xff]   ;;  %v5417_v22 = vld [vmem:[%s8357_s1 + $0x40] ss:$16 sps:$4 sm:$0xff]  }
   0xc   :  { %3668 = vmatpush1.bf16.msra.mxu1 %v5400_v11  ;;  %3628 = vmatprep.subr.bf16.mxu0 %v5401_v12  ;;  %v5415_v21 = vld [vmem:[%s8357_s1 + $0x244] ss:$16 sps:$4 sm:$0xff]   ;;  %v5418_v23 = vld [vmem:[%s8357_s1 + $0x240] ss:$16 sps:$4 sm:$0xff]  }
   0xd   :  { %3669 = vmatprep.subr.bf16.mxu1 %v5403_v13  ;;  %v5419_v24 = vld [vmem:[%s8357_s1 + $0x24] ss:$16 sps:$4 sm:$0xff]   ;;  %v5423_v26 = vld [vmem:[%s8357_s1 + $0x20] ss:$16 sps:$4 sm:$0xff]  }
   0xe   :  { %v5421_v25 = vld [vmem:[%s8357_s1 + $0x224] ss:$16 sps:$4 sm:$0xff]   ;;  %v5424_v27 = vld [vmem:[%s8357_s1 + $0x220] ss:$16 sps:$4 sm:$0xff]  }
   0xf   :  { %3629 = vmatpush1.bf16.msra.mxu0 %v5405_v14  ;;  %v5425_v28 = vld [vmem:[%s8357_s1 + $0x4] ss:$16 sps:$4 sm:$0xff]   ;;  %v5429_v30 = vld [vmem:[%s8357_s1] ss:$16 sps:$4 sm:$0xff]  }
  0x10   :  { %3670 = vmatpush1.bf16.msra.mxu1 %v5406_v15  ;;  %3630 = vmatprep.subr.bf16.mxu0 %v5407_v16  ;;  %v5427_v29 = vld [vmem:[%s8357_s1 + $0x204] ss:$16 sps:$4 sm:$0xff]   ;;  %v5430_v31 = vld [vmem:[%s8357_s1 + $0x200] ss:$16 sps:$4 sm:$0xff]  }
  0x11   :  { %3671 = vmatprep.subr.bf16.mxu1 %v5409_v17  ;;  %v5431_v32 = vld [vmem:[%s8357_s1 + $0x1e4] ss:$16 sps:$4 sm:$0xff]   ;;  %v5435_v34 = vld [vmem:[%s8357_s1 + $0x1e0] ss:$16 sps:$4 sm:$0xff]  }
  0x12   :  { %v5433_v33 = vld [vmem:[%s8357_s1 + $0x3e4] ss:$16 sps:$4 sm:$0xff]   ;;  %v5436_v35 = vld [vmem:[%s8357_s1 + $0x3e0] ss:$16 sps:$4 sm:$0xff]  }
  0x13   :  { %3631 = vmatpush1.bf16.msra.mxu0 %v5411_v18  ;;  %v5437_v39 = vld [vmem:[%s8357_s1 + $0x1c4] ss:$16 sps:$4 sm:$0xff]   ;;  %v5441_v41 = vld [vmem:[%s8357_s1 + $0x1c0] ss:$16 sps:$4 sm:$0xff]  }
  0x14   :  { %3672 = vmatpush1.bf16.msra.mxu1 %v5412_v19  ;;  %3632 = vmatprep.subr.bf16.mxu0 %v5413_v20  ;;  %v5439_v40 = vld [vmem:[%s8357_s1 + $0x3c4] ss:$16 sps:$4 sm:$0xff]   ;;  %v5442_v44 = vld [vmem:[%s8357_s1 + $0x3c0] ss:$16 sps:$4 sm:$0xff]  }
  0x15   :  { %3673 = vmatprep.subr.bf16.mxu1 %v5415_v21  ;;  %v5443_v45 = vld [vmem:[%s8357_s1 + $0x1a4] ss:$16 sps:$4 sm:$0xff]   ;;  %v5447_v47 = vld [vmem:[%s8357_s1 + $0x1a0] ss:$16 sps:$4 sm:$0xff]  }
  0x16   :  { %v5445_v46 = vld [vmem:[%s8357_s1 + $0x3a4] ss:$16 sps:$4 sm:$0xff]   ;;  %v5448_v48 = vld [vmem:[%s8357_s1 + $0x3a0] ss:$16 sps:$4 sm:$0xff]  }
  0x17   :  { %3633 = vmatpush1.bf16.msra.mxu0 %v5417_v22  ;;  %v5449_v50 = vld [vmem:[%s8357_s1 + $0x184] ss:$16 sps:$4 sm:$0xff]   ;;  %v5453_v53 = vld [vmem:[%s8357_s1 + $0x180] ss:$16 sps:$4 sm:$0xff]  }
  0x18   :  { %3674 = vmatpush1.bf16.msra.mxu1 %v5418_v23  ;;  %3634 = vmatprep.subr.bf16.mxu0 %v5419_v24  ;;  %v5451_v51 = vld [vmem:[%s8357_s1 + $0x384] ss:$16 sps:$4 sm:$0xff]   ;;  %v5454_v56 = vld [vmem:[%s8357_s1 + $0x380] ss:$16 sps:$4 sm:$0xff]  }
  0x19   :  { %3675 = vmatprep.subr.bf16.mxu1 %v5421_v25  ;;  %v22_v52 = vld [vmem:[%s8356_s0] sm:$0xff] }
  0x1a   :  { %v39_v54 = vrot.slane %v22_v52, %v6473_v49  ;;  %v32_v55 = vcombine.high %v22_v52, %v22_v52  ;;  %v5455_v57 = vld [vmem:[%s8357_s1 + $0x164] ss:$16 sps:$4 sm:$0xff]   ;;  %v5459_v61 = vld [vmem:[%s8357_s1 + $0x160] ss:$16 sps:$4 sm:$0xff]  }
  0x1b   :  { %3635 = vmatpush1.bf16.msra.mxu0 %v5423_v26  ;;  %v5457_v58 = vld [vmem:[%s8357_s1 + $0x364] ss:$16 sps:$4 sm:$0xff]   ;;  %v5460_v0 = vld [vmem:[%s8357_s1 + $0x360] ss:$16 sps:$4 sm:$0xff]  }
  0x1c   :  { %3676 = vmatpush1.bf16.msra.mxu1 %v5424_v27  ;;  %3636 = vmatprep.subr.bf16.mxu0 %v5425_v28  ;;  %v47_v59 = vcombine.high %v39_v54, %v39_v54  ;;  %v46_v60 = vrot.slane %v32_v55, %v6473_v49  ;;  %v5461_v1 = vld [vmem:[%s8357_s1 + $0x144] ss:$16 sps:$4 sm:$0xff]   ;;  %v5465_v4 = vld [vmem:[%s8357_s1 + $0x140] ss:$16 sps:$4 sm:$0xff]   ;;  %v6552_v16 = vpack.c.bf16 %v39_v54, %v39_v54 }
  0x1d   :  { %3677 = vmatprep.subr.bf16.mxu1 %v5427_v29  ;;  %v5463_v2 = vld [vmem:[%s8357_s1 + $0x344] ss:$16 sps:$4 sm:$0xff]   ;;  %v5466_v5 = vld [vmem:[%s8357_s1 + $0x340] ss:$16 sps:$4 sm:$0xff]  }
  0x1e   :  { %v6501_v62 = vpack.c.bf16 %v47_v59, %v47_v59  ;;  %v48_v63 = vcombine.high %v46_v60, %v46_v60  ;;  %v5467_v6 = vld [vmem:[%s8357_s1 + $0x124] ss:$16 sps:$4 sm:$0xff]   ;;  %v5471_v8 = vld [vmem:[%s8357_s1 + $0x120] ss:$16 sps:$4 sm:$0xff]   ;;  %v6554_v17 = vpack.c.bf16 %v46_v60, %v46_v60 }
  0x1f   :  { %3637 = vmatpush1.bf16.msra.mxu0 %v5429_v30  ;;  %v5469_v7 = vld [vmem:[%s8357_s1 + $0x324] ss:$16 sps:$4 sm:$0xff]   ;;  %v5472_v9 = vld [vmem:[%s8357_s1 + $0x320] ss:$16 sps:$4 sm:$0xff]  }
  0x20   :  { %3678 = vmatpush1.bf16.msra.mxu1 %v5430_v31  ;;  %3638 = vmatprep.subr.bf16.mxu0 %v5431_v32  ;;  %v6512_v3 = vpack.c.bf16 %v48_v63, %v48_v63  ;;  %v5473_v10 = vld [vmem:[%s8357_s1 + $0x104] ss:$16 sps:$4 sm:$0xff]   ;;  %v5477_v12 = vld [vmem:[%s8357_s1 + $0x100] ss:$16 sps:$4 sm:$0xff]  }
  0x21   :  { %3679 = vmatprep.subr.bf16.mxu1 %v5433_v33  ;;  %3654 = vmatprep.mubr.bf16.mxu0 %v6501_v62  ;;  %v5475_v11 = vld [vmem:[%s8357_s1 + $0x304] ss:$16 sps:$4 sm:$0xff]   ;;  %v5478_v13 = vld [vmem:[%s8357_s1 + $0x300] ss:$16 sps:$4 sm:$0xff]  }
  0x22   :  { %3695 = vmatprep.mubr.bf16.mxu1 %v6512_v3  ;;  %v5482_v14 = vld [vmem:[%s8357_s1 + $0x4e4] ss:$16 sps:$4 sm:$0xff]   ;;  %v5480_v18 = vld [vmem:[%s8357_s1 + $0x4e0] ss:$16 sps:$4 sm:$0xff]  }
  0x23   :  { %3639 = vmatpush2.bf16.msra.mxu0 %v5435_v34  ;;  %v5485_v15 = vld [vmem:[%s8357_s1 + $0x6e4] ss:$16 sps:$4 sm:$0xff]   ;;  %v5483_v19 = vld [vmem:[%s8357_s1 + $0x6e0] ss:$16 sps:$4 sm:$0xff]  }
  0x24   :  { %3680 = vmatpush2.bf16.msra.mxu1 %v5436_v35  ;;  %3640 = vmatprep.subr.bf16.mxu0 %v5437_v39  ;;  %v5488_v20 = vld [vmem:[%s8357_s1 + $0x4c4] ss:$16 sps:$4 sm:$0xff]   ;;  %v5486_v22 = vld [vmem:[%s8357_s1 + $0x4c0] ss:$16 sps:$4 sm:$0xff]  }
  0x25   :  { %3681 = vmatprep.subr.bf16.mxu1 %v5439_v40  ;;  %v5491_v21 = vld [vmem:[%s8357_s1 + $0x6c4] ss:$16 sps:$4 sm:$0xff]   ;;  %v5489_v23 = vld [vmem:[%s8357_s1 + $0x6c0] ss:$16 sps:$4 sm:$0xff]  }
  0x26   :  { %v5494_v24 = vld [vmem:[%s8357_s1 + $0x4a4] ss:$16 sps:$4 sm:$0xff]   ;;  %v5492_v26 = vld [vmem:[%s8357_s1 + $0x4a0] ss:$16 sps:$4 sm:$0xff]  }
  0x27   :  { %3641 = vmatpush2.bf16.msra.mxu0 %v5441_v41  ;;  %v5497_v25 = vld [vmem:[%s8357_s1 + $0x6a4] ss:$16 sps:$4 sm:$0xff]   ;;  %v5495_v27 = vld [vmem:[%s8357_s1 + $0x6a0] ss:$16 sps:$4 sm:$0xff]  }
  0x28   :  { %3682 = vmatpush2.bf16.msra.mxu1 %v5442_v44  ;;  %3642 = vmatprep.subr.bf16.mxu0 %v5443_v45  ;;  %v5500_v28 = vld [vmem:[%s8357_s1 + $0x484] ss:$16 sps:$4 sm:$0xff]   ;;  %v5498_v30 = vld [vmem:[%s8357_s1 + $0x480] ss:$16 sps:$4 sm:$0xff]   ;;  %v6634_v44 = vrot.slane %v23_v42, %v6473_v49  ;;  %v49_v45 = vcombine.high %v23_v42, %v23_v42 }
  0x29   :  { %3683 = vmatprep.subr.bf16.mxu1 %v5445_v46  ;;  %v5503_v29 = vld [vmem:[%s8357_s1 + $0x684] ss:$16 sps:$4 sm:$0xff]   ;;  %v5501_v31 = vld [vmem:[%s8357_s1 + $0x680] ss:$16 sps:$4 sm:$0xff]  }
  0x2a   :  { %v5506_v32 = vld [vmem:[%s8357_s1 + $0x464] ss:$16 sps:$4 sm:$0xff]   ;;  %v5504_v34 = vld [vmem:[%s8357_s1 + $0x460] ss:$16 sps:$4 sm:$0xff]  }
  0x2b   :  { %3643 = vmatpush2.bf16.msra.mxu0 %v5447_v47  ;;  %v5509_v33 = vld [vmem:[%s8357_s1 + $0x664] ss:$16 sps:$4 sm:$0xff]   ;;  %v5507_v35 = vld [vmem:[%s8357_s1 + $0x660] ss:$16 sps:$4 sm:$0xff]  }
  0x2c   :  { %3684 = vmatpush2.bf16.msra.mxu1 %v5448_v48  ;;  %3644 = vmatprep.subr.bf16.mxu0 %v5449_v50  ;;  %v5512_v36 = vld [vmem:[%s8357_s1 + $0x444] ss:$16 sps:$4 sm:$0xff]   ;;  %v5510_v38 = vld [vmem:[%s8357_s1 + $0x440] ss:$16 sps:$4 sm:$0xff]   ;;  %v64_v48 = vcombine.high %v6634_v44, %v6634_v44  ;;  %v6645_v50 = vrot.slane %v49_v45, %v6473_v49 }
  0x2d   :  { %3685 = vmatprep.subr.bf16.mxu1 %v5451_v51  ;;  %v5515_v37 = vld [vmem:[%s8357_s1 + $0x644] ss:$16 sps:$4 sm:$0xff]   ;;  %v5513_v39 = vld [vmem:[%s8357_s1 + $0x640] ss:$16 sps:$4 sm:$0xff]  }
  0x2e   :  { %v5518_v40 = vld [vmem:[%s8357_s1 + $0x424] ss:$16 sps:$4 sm:$0xff]   ;;  %v5516_v46 = vld [vmem:[%s8357_s1 + $0x420] ss:$16 sps:$4 sm:$0xff]   ;;  %v65_v54 = vcombine.high %v6645_v50, %v6645_v50 }
  0x2f   :  { %3645 = vmatpush2.bf16.msra.mxu0 %v5453_v53  ;;  %v5521_v41 = vld [vmem:[%s8357_s1 + $0x624] ss:$16 sps:$4 sm:$0xff]   ;;  %v5519_v47 = vld [vmem:[%s8357_s1 + $0x620] ss:$16 sps:$4 sm:$0xff]   ;;  %v6653_v53 = vpack.c.bf16 %v64_v48, %v64_v48 }
  0x30   :  { %3686 = vmatpush2.bf16.msra.mxu1 %v5454_v56  ;;  %3646 = vmatprep.subr.bf16.mxu0 %v5455_v57  ;;  %v5524_v51 = vld [vmem:[%s8357_s1 + $0x404] ss:$16 sps:$4 sm:$0xff]   ;;  %v5522_v55 = vld [vmem:[%s8357_s1 + $0x400] ss:$16 sps:$4 sm:$0xff]   ;;  %v6663_v57 = vpack.c.bf16 %v65_v54, %v65_v54 }
  0x31   :  { %3687 = vmatprep.subr.bf16.mxu1 %v5457_v58  ;;  %v5527_v52 = vld [vmem:[%s8357_s1 + $0x604] ss:$16 sps:$4 sm:$0xff]   ;;  %v5525_v56 = vld [vmem:[%s8357_s1 + $0x600] ss:$16 sps:$4 sm:$0xff]  }
  0x32   :  { %v5530_v58 = vld [vmem:[%s8357_s1 + $0x5e4] ss:$16 sps:$4 sm:$0xff]   ;;  %v5528_v60 = vld [vmem:[%s8357_s1 + $0x5e0] ss:$16 sps:$4 sm:$0xff]  }
  0x33   :  { %3647 = vmatpush2.bf16.msra.mxu0 %v5459_v61  ;;  %v5533_v59 = vld [vmem:[%s8357_s1 + $0x7e4] ss:$16 sps:$4 sm:$0xff]   ;;  %v5531_v61 = vld [vmem:[%s8357_s1 + $0x7e0] ss:$16 sps:$4 sm:$0xff]  }
  0x34   :  { %3688 = vmatpush2.bf16.msra.mxu1 %v5460_v0  ;;  %3648 = vmatprep.subr.bf16.mxu0 %v5461_v1  ;;  %v5536_v63 = vld [vmem:[%s8357_s1 + $0x5c4] ss:$16 sps:$4 sm:$0xff]   ;;  %v5534_v1 = vld [vmem:[%s8357_s1 + $0x5c0] ss:$16 sps:$4 sm:$0xff]  }
  0x35   :  { %3689 = vmatprep.subr.bf16.mxu1 %v5463_v2  ;;  %v5539_v0 = vld [vmem:[%s8357_s1 + $0x7c4] ss:$16 sps:$4 sm:$0xff]   ;;  %v5537_v2 = vld [vmem:[%s8357_s1 + $0x7c0] ss:$16 sps:$4 sm:$0xff]  }
  0x36   :  { %v5586_v45 = vld [vmem:[%s8357_s1 + $0xac0] ss:$16 sps:$4 sm:$0xff]  }
  0x37   :  { %3649 = vmatpush2.bf16.msra.mxu0 %v5465_v4  ;;  %v5542_v4 = vld [vmem:[%s8357_s1 + $0x5a4] ss:$16 sps:$4 sm:$0xff]   ;;  %v5592_v54 = vld [vmem:[%s8357_s1 + $0xaa0] ss:$16 sps:$4 sm:$0xff]  }
  0x38   :  { %3690 = vmatpush2.bf16.msra.mxu1 %v5466_v5  ;;  %3650 = vmatprep.subr.bf16.mxu0 %v5467_v6  ;;  %v5545_v5 = vld [vmem:[%s8357_s1 + $0x7a4] ss:$16 sps:$4 sm:$0xff]   ;;  %v5540_v6 = vld [vmem:[%s8357_s1 + $0x5a0] ss:$16 sps:$4 sm:$0xff]  }
  0x39   :  { %3691 = vmatprep.subr.bf16.mxu1 %v5469_v7  ;;  %v5543_v7 = vld [vmem:[%s8357_s1 + $0x7a0] ss:$16 sps:$4 sm:$0xff]  }
  0x3b   :  { %3651 = vmatpush2.bf16.msra.mxu0 %v5471_v8  ;;  %v5548_v8 = vld [vmem:[%s8357_s1 + $0x584] ss:$16 sps:$4 sm:$0xff]  }
  0x3c   :  { %3692 = vmatpush2.bf16.msra.mxu1 %v5472_v9  ;;  %3652 = vmatprep.subr.bf16.mxu0 %v5473_v10  ;;  %v5551_v9 = vld [vmem:[%s8357_s1 + $0x784] ss:$16 sps:$4 sm:$0xff]   ;;  %v5546_v10 = vld [vmem:[%s8357_s1 + $0x580] ss:$16 sps:$4 sm:$0xff]  }
  0x3d   :  { %3693 = vmatprep.subr.bf16.mxu1 %v5475_v11  ;;  %v5549_v11 = vld [vmem:[%s8357_s1 + $0x780] ss:$16 sps:$4 sm:$0xff]  }
  0x3f   :  { %3653 = vmatpush2.bf16.msra.mxu0 %v5477_v12  ;;  %v5554_v12 = vld [vmem:[%s8357_s1 + $0x564] ss:$16 sps:$4 sm:$0xff]  }
  0x40   :  { %3694 = vmatpush2.bf16.msra.mxu1 %v5478_v13  ;;  %3704 = vmatprep.subr.bf16.mxu0 %v5482_v14  ;;  %v5557_v13 = vld [vmem:[%s8357_s1 + $0x764] ss:$16 sps:$4 sm:$0xff]   ;;  %v5552_v14 = vld [vmem:[%s8357_s1 + $0x560] ss:$16 sps:$4 sm:$0xff]  }
  0x41   :  { %3745 = vmatprep.subr.bf16.mxu1 %v5485_v15  ;;  %v5555_v15 = vld [vmem:[%s8357_s1 + $0x760] ss:$16 sps:$4 sm:$0xff]  }
  0x42   :  { %3655 = vmatmul.mubr.bf16.vlgmr.msra.gmra.mxu0 %v6552_v16 }
  0x43   :  { %3696 = vmatmul.mubr.bf16.vlgmr.msra.gmra.mxu1 %v6554_v17  ;;  %3705 = vmatpush1.bf16.msra.mxu0 %v5480_v18  ;;  %v5560_v18 = vld [vmem:[%s8357_s1 + $0x544] ss:$16 sps:$4 sm:$0xff]  }
  0x44   :  { %3746 = vmatpush1.bf16.msra.mxu1 %v5483_v19  ;;  %3706 = vmatprep.subr.bf16.mxu0 %v5488_v20  ;;  %v5563_v19 = vld [vmem:[%s8357_s1 + $0x744] ss:$16 sps:$4 sm:$0xff]   ;;  %v5558_v20 = vld [vmem:[%s8357_s1 + $0x540] ss:$16 sps:$4 sm:$0xff]  }
  0x45   :  { %3747 = vmatprep.subr.bf16.mxu1 %v5491_v21  ;;  %3736 = vmatprep.mubr.bf16.mxu0 %v6653_v53  ;;  %v5561_v21 = vld [vmem:[%s8357_s1 + $0x740] ss:$16 sps:$4 sm:$0xff]  }
  0x46   :  { %3777 = vmatprep.mubr.bf16.mxu1 %v6663_v57 }
  0x47   :  { %3707 = vmatpush1.bf16.msra.mxu0 %v5486_v22  ;;  %v5566_v22 = vld [vmem:[%s8357_s1 + $0x524] ss:$16 sps:$4 sm:$0xff]  }
  0x48   :  { %3748 = vmatpush1.bf16.msra.mxu1 %v5489_v23  ;;  %3708 = vmatprep.subr.bf16.mxu0 %v5494_v24  ;;  %v5569_v23 = vld [vmem:[%s8357_s1 + $0x724] ss:$16 sps:$4 sm:$0xff]   ;;  %v5564_v24 = vld [vmem:[%s8357_s1 + $0x520] ss:$16 sps:$4 sm:$0xff]  }
  0x49   :  { %3749 = vmatprep.subr.bf16.mxu1 %v5497_v25  ;;  %v5567_v25 = vld [vmem:[%s8357_s1 + $0x720] ss:$16 sps:$4 sm:$0xff]  }
  0x4b   :  { %3709 = vmatpush1.bf16.msra.mxu0 %v5492_v26  ;;  %v5572_v26 = vld [vmem:[%s8357_s1 + $0x504] ss:$16 sps:$4 sm:$0xff]  }
  0x4c   :  { %3750 = vmatpush1.bf16.msra.mxu1 %v5495_v27  ;;  %3710 = vmatprep.subr.bf16.mxu0 %v5500_v28  ;;  %v5575_v27 = vld [vmem:[%s8357_s1 + $0x704] ss:$16 sps:$4 sm:$0xff]   ;;  %v5570_v28 = vld [vmem:[%s8357_s1 + $0x500] ss:$16 sps:$4 sm:$0xff]  }
  0x4d   :  { %3751 = vmatprep.subr.bf16.mxu1 %v5503_v29  ;;  %v5573_v29 = vld [vmem:[%s8357_s1 + $0x700] ss:$16 sps:$4 sm:$0xff]  }
  0x4f   :  { %3711 = vmatpush1.bf16.msra.mxu0 %v5498_v30  ;;  %v5579_v30 = vld [vmem:[%s8357_s1 + $0x8e4] ss:$16 sps:$4 sm:$0xff]  }
  0x50   :  { %3752 = vmatpush1.bf16.msra.mxu1 %v5501_v31  ;;  %3712 = vmatprep.subr.bf16.mxu0 %v5506_v32  ;;  %v5582_v31 = vld [vmem:[%s8357_s1 + $0xae4] ss:$16 sps:$4 sm:$0xff]   ;;  %v6771_v32 = vpack.c.bf16 %v6634_v44, %v6634_v44 }
  0x51   :  { %3753 = vmatprep.subr.bf16.mxu1 %v5509_v33  ;;  %v6775_v33 = vpack.c.bf16 %v6645_v50, %v6645_v50 }
  0x53   :  { %3713 = vmatpush1.bf16.msra.mxu0 %v5504_v34  ;;  %v5577_v34 = vld [vmem:[%s8357_s1 + $0x8e0] ss:$16 sps:$4 sm:$0xff]  }
  0x54   :  { %3754 = vmatpush1.bf16.msra.mxu1 %v5507_v35  ;;  %3714 = vmatprep.subr.bf16.mxu0 %v5512_v36  ;;  %v5580_v35 = vld [vmem:[%s8357_s1 + $0xae0] ss:$16 sps:$4 sm:$0xff]   ;;  %v5585_v36 = vld [vmem:[%s8357_s1 + $0x8c4] ss:$16 sps:$4 sm:$0xff]  }
  0x55   :  { %3755 = vmatprep.subr.bf16.mxu1 %v5515_v37  ;;  %v24_v37 = vld [vmem:[%s8356_s0 + $0x10] sm:$0xff] }
  0x57   :  { %3715 = vmatpush1.bf16.msra.mxu0 %v5510_v38  ;;  %v5588_v38 = vld [vmem:[%s8357_s1 + $0xac4] ss:$16 sps:$4 sm:$0xff]  }
  0x58   :  { %3756 = vmatpush1.bf16.msra.mxu1 %v5513_v39  ;;  %3716 = vmatprep.subr.bf16.mxu0 %v5518_v40  ;;  %v6793_v39 = vrot.slane %v24_v37, %v6473_v49  ;;  %v66_v40 = vcombine.high %v24_v37, %v24_v37  ;;  %v5652_v37 = vld [vmem:[%s8357_s1 + $0xb60] ss:$16 sps:$4 sm:$0xff]  }
  0x59   :  { %3757 = vmatprep.subr.bf16.mxu1 %v5521_v41  ;;  %v5583_v41 = vld [vmem:[%s8357_s1 + $0x8c0] ss:$16 sps:$4 sm:$0xff]  }
  0x5a   :  { %v81_v42 = vcombine.high %v6793_v39, %v6793_v39  ;;  %v6803_v44 = vrot.slane %v66_v40, %v6473_v49  ;;  %v5660_v40 = vld [vmem:[%s8357_s1 + $0xb44] ss:$16 sps:$4 sm:$0xff]  }
  0x5b   :  { %3717 = vmatpush1.bf16.msra.mxu0 %v5516_v46  ;;  %v5591_v46 = vld [vmem:[%s8357_s1 + $0x8a4] ss:$16 sps:$4 sm:$0xff]  }
  0x5c   :  { %3758 = vmatpush1.bf16.msra.mxu1 %v5519_v47  ;;  %3718 = vmatprep.subr.bf16.mxu0 %v5524_v51  ;;  %v5594_v47 = vld [vmem:[%s8357_s1 + $0xaa4] ss:$16 sps:$4 sm:$0xff]   ;;  %v6814_v48 = vpack.c.bf16 %v81_v42, %v81_v42  ;;  %v82_v50 = vcombine.high %v6803_v44, %v6803_v44  ;;  %v5589_v51 = vld [vmem:[%s8357_s1 + $0x8a0] ss:$16 sps:$4 sm:$0xff]   ;;  %v25_v42 = vld [vmem:[%s8356_s0 + $0x18] sm:$0xff] }
  0x5d   :  { %3759 = vmatprep.subr.bf16.mxu1 %v5527_v52 }
  0x5e   :  { %v6822_v52 = vpack.c.bf16 %v82_v50, %v82_v50  ;;  %v83_v50 = vcombine.high %v25_v42, %v25_v42 }
  0x5f   :  { %3719 = vmatpush1.bf16.msra.mxu0 %v5522_v55  ;;  %v5597_v55 = vld [vmem:[%s8357_s1 + $0x884] ss:$16 sps:$4 sm:$0xff]  }
  0x60   :  { %3760 = vmatpush1.bf16.msra.mxu1 %v5525_v56  ;;  %3720 = vmatprep.subr.bf16.mxu0 %v5530_v58  ;;  %v5600_v56 = vld [vmem:[%s8357_s1 + $0xa84] ss:$16 sps:$4 sm:$0xff]   ;;  %v5595_v58 = vld [vmem:[%s8357_s1 + $0x880] ss:$16 sps:$4 sm:$0xff]  }
  0x61   :  { %3761 = vmatprep.subr.bf16.mxu1 %v5533_v59  ;;  %v5598_v59 = vld [vmem:[%s8357_s1 + $0xa80] ss:$16 sps:$4 sm:$0xff]  }
  0x63   :  { %3721 = vmatpush2.bf16.msra.mxu0 %v5528_v60  ;;  %v5603_v60 = vld [vmem:[%s8357_s1 + $0x864] ss:$16 sps:$4 sm:$0xff]  }
  0x64   :  { %3762 = vmatpush2.bf16.msra.mxu1 %v5531_v61  ;;  %3722 = vmatprep.subr.bf16.mxu0 %v5536_v63  ;;  %v5606_v61 = vld [vmem:[%s8357_s1 + $0xa64] ss:$16 sps:$4 sm:$0xff]   ;;  %v5601_v63 = vld [vmem:[%s8357_s1 + $0x860] ss:$16 sps:$4 sm:$0xff]  }
  0x65   :  { %3763 = vmatprep.subr.bf16.mxu1 %v5539_v0  ;;  %v5604_v0 = vld [vmem:[%s8357_s1 + $0xa60] ss:$16 sps:$4 sm:$0xff]  }
  0x67   :  { %3723 = vmatpush2.bf16.msra.mxu0 %v5534_v1  ;;  %v5609_v1 = vld [vmem:[%s8357_s1 + $0x844] ss:$16 sps:$4 sm:$0xff]  }
  0x68   :  { %3764 = vmatpush2.bf16.msra.mxu1 %v5537_v2  ;;  %3724 = vmatprep.subr.bf16.mxu0 %v5542_v4  ;;  %v5612_v2 = vld [vmem:[%s8357_s1 + $0xa44] ss:$16 sps:$4 sm:$0xff]   ;;  %v5607_v4 = vld [vmem:[%s8357_s1 + $0x840] ss:$16 sps:$4 sm:$0xff]  }
  0x69   :  { %3765 = vmatprep.subr.bf16.mxu1 %v5545_v5  ;;  %v5610_v5 = vld [vmem:[%s8357_s1 + $0xa40] ss:$16 sps:$4 sm:$0xff]  }
  0x6b   :  { %3725 = vmatpush2.bf16.msra.mxu0 %v5540_v6  ;;  %v5615_v6 = vld [vmem:[%s8357_s1 + $0x824] ss:$16 sps:$4 sm:$0xff]  }
  0x6c   :  { %3766 = vmatpush2.bf16.msra.mxu1 %v5543_v7  ;;  %3726 = vmatprep.subr.bf16.mxu0 %v5548_v8  ;;  %v5618_v7 = vld [vmem:[%s8357_s1 + $0xa24] ss:$16 sps:$4 sm:$0xff]   ;;  %v5613_v8 = vld [vmem:[%s8357_s1 + $0x820] ss:$16 sps:$4 sm:$0xff]  }
  0x6d   :  { %3767 = vmatprep.subr.bf16.mxu1 %v5551_v9  ;;  %v5616_v9 = vld [vmem:[%s8357_s1 + $0xa20] ss:$16 sps:$4 sm:$0xff]  }
  0x6f   :  { %3727 = vmatpush2.bf16.msra.mxu0 %v5546_v10  ;;  %v5621_v10 = vld [vmem:[%s8357_s1 + $0x804] ss:$16 sps:$4 sm:$0xff]  }
  0x70   :  { %3768 = vmatpush2.bf16.msra.mxu1 %v5549_v11  ;;  %3728 = vmatprep.subr.bf16.mxu0 %v5554_v12  ;;  %v5624_v11 = vld [vmem:[%s8357_s1 + $0xa04] ss:$16 sps:$4 sm:$0xff]   ;;  %v5619_v12 = vld [vmem:[%s8357_s1 + $0x800] ss:$16 sps:$4 sm:$0xff]  }
  0x71   :  { %3769 = vmatprep.subr.bf16.mxu1 %v5557_v13  ;;  %v5622_v13 = vld [vmem:[%s8357_s1 + $0xa00] ss:$16 sps:$4 sm:$0xff]  }
  0x73   :  { %3729 = vmatpush2.bf16.msra.mxu0 %v5552_v14  ;;  %v5627_v14 = vld [vmem:[%s8357_s1 + $0x9e4] ss:$16 sps:$4 sm:$0xff]  }
  0x74   :  { %3770 = vmatpush2.bf16.msra.mxu1 %v5555_v15  ;;  %3730 = vmatprep.subr.bf16.mxu0 %v5560_v18  ;;  %v5630_v15 = vld [vmem:[%s8357_s1 + $0xbe4] ss:$16 sps:$4 sm:$0xff]   ;;  %v5625_v18 = vld [vmem:[%s8357_s1 + $0x9e0] ss:$16 sps:$4 sm:$0xff]  }
  0x75   :  { %3771 = vmatprep.subr.bf16.mxu1 %v5563_v19  ;;  %v5628_v19 = vld [vmem:[%s8357_s1 + $0xbe0] ss:$16 sps:$4 sm:$0xff]  }
  0x77   :  { %3731 = vmatpush2.bf16.msra.mxu0 %v5558_v20  ;;  %v5633_v20 = vld [vmem:[%s8357_s1 + $0x9c4] ss:$16 sps:$4 sm:$0xff]  }
  0x78   :  { %3772 = vmatpush2.bf16.msra.mxu1 %v5561_v21  ;;  %3732 = vmatprep.subr.bf16.mxu0 %v5566_v22  ;;  %v5636_v21 = vld [vmem:[%s8357_s1 + $0xbc4] ss:$16 sps:$4 sm:$0xff]   ;;  %v5631_v22 = vld [vmem:[%s8357_s1 + $0x9c0] ss:$16 sps:$4 sm:$0xff]  }
  0x79   :  { %3773 = vmatprep.subr.bf16.mxu1 %v5569_v23  ;;  %v5634_v23 = vld [vmem:[%s8357_s1 + $0xbc0] ss:$16 sps:$4 sm:$0xff]  }
  0x7b   :  { %3733 = vmatpush2.bf16.msra.mxu0 %v5564_v24  ;;  %v5639_v24 = vld [vmem:[%s8357_s1 + $0x9a4] ss:$16 sps:$4 sm:$0xff]  }
  0x7c   :  { %3774 = vmatpush2.bf16.msra.mxu1 %v5567_v25  ;;  %3734 = vmatprep.subr.bf16.mxu0 %v5572_v26  ;;  %v5642_v25 = vld [vmem:[%s8357_s1 + $0xba4] ss:$16 sps:$4 sm:$0xff]   ;;  %v5637_v26 = vld [vmem:[%s8357_s1 + $0x9a0] ss:$16 sps:$4 sm:$0xff]  }
  0x7d   :  { %3775 = vmatprep.subr.bf16.mxu1 %v5575_v27  ;;  %v5640_v27 = vld [vmem:[%s8357_s1 + $0xba0] ss:$16 sps:$4 sm:$0xff]  }
  0x7f   :  { %3735 = vmatpush2.bf16.msra.mxu0 %v5570_v28  ;;  %v5645_v28 = vld [vmem:[%s8357_s1 + $0x984] ss:$16 sps:$4 sm:$0xff]  }
  0x80   :  { %3776 = vmatpush2.bf16.msra.mxu1 %v5573_v29  ;;  %3786 = vmatprep.subr.bf16.mxu0 %v5579_v30  ;;  %v5648_v29 = vld [vmem:[%s8357_s1 + $0xb84] ss:$16 sps:$4 sm:$0xff]   ;;  %v5643_v30 = vld [vmem:[%s8357_s1 + $0x980] ss:$16 sps:$4 sm:$0xff]  }
  0x81   :  { %3827 = vmatprep.subr.bf16.mxu1 %v5582_v31  ;;  %v5646_v31 = vld [vmem:[%s8357_s1 + $0xb80] ss:$16 sps:$4 sm:$0xff]  }
  0x82   :  { %3737 = vmatmul.mubr.bf16.vlgmr.msra.gmra.mxu0 %v6771_v32 }
  0x83   :  { %3778 = vmatmul.mubr.bf16.vlgmr.msra.gmra.mxu1 %v6775_v33  ;;  %3787 = vmatpush1.bf16.msra.mxu0 %v5577_v34  ;;  %v5651_v34 = vld [vmem:[%s8357_s1 + $0x964] ss:$16 sps:$4 sm:$0xff]  }
  0x84   :  { %3828 = vmatpush1.bf16.msra.mxu1 %v5580_v35  ;;  %3788 = vmatprep.subr.bf16.mxu0 %v5585_v36  ;;  %v5654_v35 = vld [vmem:[%s8357_s1 + $0xb64] ss:$16 sps:$4 sm:$0xff]   ;;  %v5649_v36 = vld [vmem:[%s8357_s1 + $0x960] ss:$16 sps:$4 sm:$0xff]  }
  0x85   :  { %3829 = vmatprep.subr.bf16.mxu1 %v5588_v38  ;;  %3818 = vmatprep.mubr.bf16.mxu0 %v6814_v48  ;;  %v5657_v38 = vld [vmem:[%s8357_s1 + $0x944] ss:$16 sps:$4 sm:$0xff]  }
  0x86   :  { %3859 = vmatprep.mubr.bf16.mxu1 %v6822_v52 }
  0x87   :  { %3789 = vmatpush1.bf16.msra.mxu0 %v5583_v41  ;;  %v5655_v41 = vld [vmem:[%s8357_s1 + $0x940] ss:$16 sps:$4 sm:$0xff]  }
  0x88   :  { %3830 = vmatpush1.bf16.msra.mxu1 %v5586_v45  ;;  %3790 = vmatprep.subr.bf16.mxu0 %v5591_v46  ;;  %v5658_v45 = vld [vmem:[%s8357_s1 + $0xb40] ss:$16 sps:$4 sm:$0xff]   ;;  %v5663_v46 = vld [vmem:[%s8357_s1 + $0x924] ss:$16 sps:$4 sm:$0xff]  }
  0x89   :  { %3831 = vmatprep.subr.bf16.mxu1 %v5594_v47  ;;  %v5666_v47 = vld [vmem:[%s8357_s1 + $0xb24] ss:$16 sps:$4 sm:$0xff]  }
  0x8b   :  { %3791 = vmatpush1.bf16.msra.mxu0 %v5589_v51  ;;  %v5661_v51 = vld [vmem:[%s8357_s1 + $0x920] ss:$16 sps:$4 sm:$0xff]  }
  0x8c   :  { %3832 = vmatpush1.bf16.msra.mxu1 %v5592_v54  ;;  %3792 = vmatprep.subr.bf16.mxu0 %v5597_v55  ;;  %v5664_v54 = vld [vmem:[%s8357_s1 + $0xb20] ss:$16 sps:$4 sm:$0xff]   ;;  %v5669_v55 = vld [vmem:[%s8357_s1 + $0x904] ss:$16 sps:$4 sm:$0xff]  }
  0x8d   :  { %3833 = vmatprep.subr.bf16.mxu1 %v5600_v56  ;;  %v5672_v56 = vld [vmem:[%s8357_s1 + $0xb04] ss:$16 sps:$4 sm:$0xff]  }
  0x8f   :  { %3793 = vmatpush1.bf16.msra.mxu0 %v5595_v58  ;;  %v6982_v58 = vrot.slane %v25_v42, %v6473_v49  ;;  %v5722_v42 = vld [vmem:[%s8357_s1 + $0xde0] ss:$16 sps:$4 sm:$0xff]  }
  0x90   :  { %3834 = vmatpush1.bf16.msra.mxu1 %v5598_v59  ;;  %3794 = vmatprep.subr.bf16.mxu0 %v5603_v60  ;;  %v6985_v59 = vrot.slane %v83_v50, %v6473_v49  ;;  %v5667_v60 = vld [vmem:[%s8357_s1 + $0x900] ss:$16 sps:$4 sm:$0xff]   ;;  %v5679_v49 = vld [vmem:[%s8357_s1 + $0xee4] ss:$16 sps:$4 sm:$0xff]  }
  0x91   :  { %3835 = vmatprep.subr.bf16.mxu1 %v5606_v61  ;;  %v5670_v61 = vld [vmem:[%s8357_s1 + $0xb00] ss:$16 sps:$4 sm:$0xff]  }
  0x92   :  { %v5728_v50 = vld [vmem:[%s8357_s1 + $0xdc0] ss:$16 sps:$4 sm:$0xff]  }
  0x93   :  { %3795 = vmatpush1.bf16.msra.mxu0 %v5601_v63  ;;  %v5676_v63 = vld [vmem:[%s8357_s1 + $0xce4] ss:$16 sps:$4 sm:$0xff]  }
  0x94   :  { %3836 = vmatpush1.bf16.msra.mxu1 %v5604_v0  ;;  %3796 = vmatprep.subr.bf16.mxu0 %v5609_v1  ;;  %v98_v0 = vcombine.high %v6982_v58, %v6982_v58  ;;  %v99_v1 = vcombine.high %v6985_v59, %v6985_v59 }
  0x95   :  { %3837 = vmatprep.subr.bf16.mxu1 %v5612_v2  ;;  %v7005_v2 = vpack.c.bf16 %v6793_v39, %v6793_v39  ;;  %v5682_v39 = vld [vmem:[%s8357_s1 + $0xcc4] ss:$16 sps:$4 sm:$0xff]  }
  0x97   :  { %3797 = vmatpush1.bf16.msra.mxu0 %v5607_v4  ;;  %v7009_v4 = vpack.c.bf16 %v6803_v44, %v6803_v44  ;;  %v5685_v44 = vld [vmem:[%s8357_s1 + $0xec4] ss:$16 sps:$4 sm:$0xff]  }
  0x98   :  { %3838 = vmatpush1.bf16.msra.mxu1 %v5610_v5  ;;  %3798 = vmatprep.subr.bf16.mxu0 %v5615_v6  ;;  %v5674_v5 = vld [vmem:[%s8357_s1 + $0xce0] ss:$16 sps:$4 sm:$0xff]  }
  0x99   :  { %3839 = vmatprep.subr.bf16.mxu1 %v5618_v7  ;;  %v5677_v6 = vld [vmem:[%s8357_s1 + $0xee0] ss:$16 sps:$4 sm:$0xff]   ;;  %v7023_v7 = vpack.c.bf16 %v98_v0, %v98_v0 }
  0x9a   :  { %v5743_v0 = vld [vmem:[%s8357_s1 + $0xf80] ss:$16 sps:$4 sm:$0xff]  }
  0x9b   :  { %3799 = vmatpush1.bf16.msra.mxu0 %v5613_v8  ;;  %v7025_v8 = vpack.c.bf16 %v99_v1, %v99_v1  ;;  %v5748_v1 = vld [vmem:[%s8357_s1 + $0xd64] ss:$16 sps:$4 sm:$0xff]  }
  0x9c   :  { %3840 = vmatpush1.bf16.msra.mxu1 %v5616_v9  ;;  %3800 = vmatprep.subr.bf16.mxu0 %v5621_v10  ;;  %v5680_v9 = vld [vmem:[%s8357_s1 + $0xcc0] ss:$16 sps:$4 sm:$0xff]  }
  0x9d   :  { %3841 = vmatprep.subr.bf16.mxu1 %v5624_v11  ;;  %v5683_v10 = vld [vmem:[%s8357_s1 + $0xec0] ss:$16 sps:$4 sm:$0xff]   ;;  %v5688_v11 = vld [vmem:[%s8357_s1 + $0xca4] ss:$16 sps:$4 sm:$0xff]  }
  0x9f   :  { %3801 = vmatpush1.bf16.msra.mxu0 %v5619_v12  ;;  %v5691_v12 = vld [vmem:[%s8357_s1 + $0xea4] ss:$16 sps:$4 sm:$0xff]  }
  0xa0   :  { %3842 = vmatpush1.bf16.msra.mxu1 %v5622_v13  ;;  %3802 = vmatprep.subr.bf16.mxu0 %v5627_v14  ;;  %v5686_v13 = vld [vmem:[%s8357_s1 + $0xca0] ss:$16 sps:$4 sm:$0xff]  }
  0xa1   :  { %3843 = vmatprep.subr.bf16.mxu1 %v5630_v15  ;;  %v5689_v14 = vld [vmem:[%s8357_s1 + $0xea0] ss:$16 sps:$4 sm:$0xff]   ;;  %v5694_v15 = vld [vmem:[%s8357_s1 + $0xc84] ss:$16 sps:$4 sm:$0xff]  }
  0xa3   :  { %3803 = vmatpush2.bf16.msra.mxu0 %v5625_v18  ;;  %v5697_v18 = vld [vmem:[%s8357_s1 + $0xe84] ss:$16 sps:$4 sm:$0xff]  }
  0xa4   :  { %3844 = vmatpush2.bf16.msra.mxu1 %v5628_v19  ;;  %3804 = vmatprep.subr.bf16.mxu0 %v5633_v20  ;;  %v5692_v19 = vld [vmem:[%s8357_s1 + $0xc80] ss:$16 sps:$4 sm:$0xff]  }
  0xa5   :  { %3845 = vmatprep.subr.bf16.mxu1 %v5636_v21  ;;  %v5695_v20 = vld [vmem:[%s8357_s1 + $0xe80] ss:$16 sps:$4 sm:$0xff]   ;;  %v5700_v21 = vld [vmem:[%s8357_s1 + $0xc64] ss:$16 sps:$4 sm:$0xff]  }
  0xa7   :  { %3805 = vmatpush2.bf16.msra.mxu0 %v5631_v22  ;;  %v5703_v22 = vld [vmem:[%s8357_s1 + $0xe64] ss:$16 sps:$4 sm:$0xff]  }
  0xa8   :  { %3846 = vmatpush2.bf16.msra.mxu1 %v5634_v23  ;;  %3806 = vmatprep.subr.bf16.mxu0 %v5639_v24  ;;  %v5698_v23 = vld [vmem:[%s8357_s1 + $0xc60] ss:$16 sps:$4 sm:$0xff]  }
  0xa9   :  { %3847 = vmatprep.subr.bf16.mxu1 %v5642_v25  ;;  %v5701_v24 = vld [vmem:[%s8357_s1 + $0xe60] ss:$16 sps:$4 sm:$0xff]   ;;  %v5706_v25 = vld [vmem:[%s8357_s1 + $0xc44] ss:$16 sps:$4 sm:$0xff]  }
  0xab   :  { %3807 = vmatpush2.bf16.msra.mxu0 %v5637_v26  ;;  %v5709_v26 = vld [vmem:[%s8357_s1 + $0xe44] ss:$16 sps:$4 sm:$0xff]  }
  0xac   :  { %3848 = vmatpush2.bf16.msra.mxu1 %v5640_v27  ;;  %3808 = vmatprep.subr.bf16.mxu0 %v5645_v28  ;;  %v5704_v27 = vld [vmem:[%s8357_s1 + $0xc40] ss:$16 sps:$4 sm:$0xff]  }
  0xad   :  { %3849 = vmatprep.subr.bf16.mxu1 %v5648_v29  ;;  %v5707_v28 = vld [vmem:[%s8357_s1 + $0xe40] ss:$16 sps:$4 sm:$0xff]   ;;  %v5712_v29 = vld [vmem:[%s8357_s1 + $0xc24] ss:$16 sps:$4 sm:$0xff]  }
  0xaf   :  { %3809 = vmatpush2.bf16.msra.mxu0 %v5643_v30  ;;  %v5715_v30 = vld [vmem:[%s8357_s1 + $0xe24] ss:$16 sps:$4 sm:$0xff]  }
  0xb0   :  { %3850 = vmatpush2.bf16.msra.mxu1 %v5646_v31  ;;  %3810 = vmatprep.subr.bf16.mxu0 %v5651_v34  ;;  %v5710_v31 = vld [vmem:[%s8357_s1 + $0xc20] ss:$16 sps:$4 sm:$0xff]  }
  0xb1   :  { %3851 = vmatprep.subr.bf16.mxu1 %v5654_v35  ;;  %v5713_v34 = vld [vmem:[%s8357_s1 + $0xe20] ss:$16 sps:$4 sm:$0xff]   ;;  %v5718_v35 = vld [vmem:[%s8357_s1 + $0xc04] ss:$16 sps:$4 sm:$0xff]  }
  0xb3   :  { %3811 = vmatpush2.bf16.msra.mxu0 %v5649_v36  ;;  %v5721_v36 = vld [vmem:[%s8357_s1 + $0xe04] ss:$16 sps:$4 sm:$0xff]  }
  0xb4   :  { %3852 = vmatpush2.bf16.msra.mxu1 %v5652_v37  ;;  %3812 = vmatprep.subr.bf16.mxu0 %v5657_v38  ;;  %v5716_v37 = vld [vmem:[%s8357_s1 + $0xc00] ss:$16 sps:$4 sm:$0xff]  }
  0xb5   :  { %3853 = vmatprep.subr.bf16.mxu1 %v5660_v40  ;;  %v5719_v38 = vld [vmem:[%s8357_s1 + $0xe00] ss:$16 sps:$4 sm:$0xff]   ;;  %v5724_v40 = vld [vmem:[%s8357_s1 + $0xde4] ss:$16 sps:$4 sm:$0xff]  }
  0xb7   :  { %3813 = vmatpush2.bf16.msra.mxu0 %v5655_v41  ;;  %v5727_v41 = vld [vmem:[%s8357_s1 + $0xfe4] ss:$16 sps:$4 sm:$0xff]  }
  0xb8   :  { %3854 = vmatpush2.bf16.msra.mxu1 %v5658_v45  ;;  %3814 = vmatprep.subr.bf16.mxu0 %v5663_v46  ;;  %v5725_v45 = vld [vmem:[%s8357_s1 + $0xfe0] ss:$16 sps:$4 sm:$0xff]   ;;  %v5730_v46 = vld [vmem:[%s8357_s1 + $0xdc4] ss:$16 sps:$4 sm:$0xff]  }
  0xb9   :  { %3855 = vmatprep.subr.bf16.mxu1 %v5666_v47  ;;  %v5733_v47 = vld [vmem:[%s8357_s1 + $0xfc4] ss:$16 sps:$4 sm:$0xff]  }
  0xbb   :  { %3815 = vmatpush2.bf16.msra.mxu0 %v5661_v51  ;;  %v5731_v51 = vld [vmem:[%s8357_s1 + $0xfc0] ss:$16 sps:$4 sm:$0xff]  }
  0xbc   :  { %3856 = vmatpush2.bf16.msra.mxu1 %v5664_v54  ;;  %3816 = vmatprep.subr.bf16.mxu0 %v5669_v55  ;;  %v5736_v54 = vld [vmem:[%s8357_s1 + $0xda4] ss:$16 sps:$4 sm:$0xff]  }
  0xbd   :  { %3857 = vmatprep.subr.bf16.mxu1 %v5672_v56  ;;  %v5739_v55 = vld [vmem:[%s8357_s1 + $0xfa4] ss:$16 sps:$4 sm:$0xff]   ;;  %v5734_v56 = vld [vmem:[%s8357_s1 + $0xda0] ss:$16 sps:$4 sm:$0xff]  }
  0xbf   :  { %3817 = vmatpush2.bf16.msra.mxu0 %v5667_v60  ;;  %v5737_v60 = vld [vmem:[%s8357_s1 + $0xfa0] ss:$16 sps:$4 sm:$0xff]  }
  0xc0   :  { %3858 = vmatpush2.bf16.msra.mxu1 %v5670_v61  ;;  %3868 = vmatprep.subr.bf16.mxu0 %v5676_v63  ;;  %v5742_v61 = vld [vmem:[%s8357_s1 + $0xd84] ss:$16 sps:$4 sm:$0xff]  }
  0xc1   :  { %3909 = vmatprep.subr.bf16.mxu1 %v5679_v49  ;;  %v5745_v63 = vld [vmem:[%s8357_s1 + $0xf84] ss:$16 sps:$4 sm:$0xff]   ;;  %v5740_v49 = vld [vmem:[%s8357_s1 + $0xd80] ss:$16 sps:$4 sm:$0xff]  }
  0xc2   :  { %3819 = vmatmul.mubr.bf16.vlgmr.msra.gmra.mxu0 %v7005_v2 }
  0xc3   :  { %3860 = vmatmul.mubr.bf16.vlgmr.msra.gmra.mxu1 %v7009_v4  ;;  %3869 = vmatpush1.bf16.msra.mxu0 %v5674_v5  ;;  %v5751_v5 = vld [vmem:[%s8357_s1 + $0xf64] ss:$16 sps:$4 sm:$0xff]  }
  0xc4   :  { %3910 = vmatpush1.bf16.msra.mxu1 %v5677_v6  ;;  %3870 = vmatprep.subr.bf16.mxu0 %v5682_v39  ;;  %v5746_v6 = vld [vmem:[%s8357_s1 + $0xd60] ss:$16 sps:$4 sm:$0xff]  }
  0xc5   :  { %3911 = vmatprep.subr.bf16.mxu1 %v5685_v44  ;;  %3900 = vmatprep.mubr.bf16.mxu0 %v7023_v7  ;;  %v5749_v39 = vld [vmem:[%s8357_s1 + $0xf60] ss:$16 sps:$4 sm:$0xff]   ;;  %v5754_v44 = vld [vmem:[%s8357_s1 + $0xd44] ss:$16 sps:$4 sm:$0xff]  }
  0xc6   :  { %3941 = vmatprep.mubr.bf16.mxu1 %v7025_v8 }
  0xc7   :  { %3871 = vmatpush1.bf16.msra.mxu0 %v5680_v9  ;;  %v5757_v9 = vld [vmem:[%s8357_s1 + $0xf44] ss:$16 sps:$4 sm:$0xff]  }
  0xc8   :  { %3912 = vmatpush1.bf16.msra.mxu1 %v5683_v10  ;;  %3872 = vmatprep.subr.bf16.mxu0 %v5688_v11  ;;  %v5752_v10 = vld [vmem:[%s8357_s1 + $0xd40] ss:$16 sps:$4 sm:$0xff]  }
  0xc9   :  { %3913 = vmatprep.subr.bf16.mxu1 %v5691_v12  ;;  %v5755_v11 = vld [vmem:[%s8357_s1 + $0xf40] ss:$16 sps:$4 sm:$0xff]   ;;  %v5760_v12 = vld [vmem:[%s8357_s1 + $0xd24] ss:$16 sps:$4 sm:$0xff]  }
  0xcb   :  { %3873 = vmatpush1.bf16.msra.mxu0 %v5686_v13  ;;  %v5763_v13 = vld [vmem:[%s8357_s1 + $0xf24] ss:$16 sps:$4 sm:$0xff]  }
  0xcc   :  { %3914 = vmatpush1.bf16.msra.mxu1 %v5689_v14  ;;  %3874 = vmatprep.subr.bf16.mxu0 %v5694_v15  ;;  %v5758_v14 = vld [vmem:[%s8357_s1 + $0xd20] ss:$16 sps:$4 sm:$0xff]  }
  0xcd   :  { %3915 = vmatprep.subr.bf16.mxu1 %v5697_v18  ;;  %v5761_v15 = vld [vmem:[%s8357_s1 + $0xf20] ss:$16 sps:$4 sm:$0xff]   ;;  %v5766_v18 = vld [vmem:[%s8357_s1 + $0xd04] ss:$16 sps:$4 sm:$0xff]  }
  0xcf   :  { %3875 = vmatpush1.bf16.msra.mxu0 %v5692_v19  ;;  %v5769_v19 = vld [vmem:[%s8357_s1 + $0xf04] ss:$16 sps:$4 sm:$0xff]  }
  0xd0   :  { %3916 = vmatpush1.bf16.msra.mxu1 %v5695_v20  ;;  %3876 = vmatprep.subr.bf16.mxu0 %v5700_v21  ;;  %v5764_v20 = vld [vmem:[%s8357_s1 + $0xd00] ss:$16 sps:$4 sm:$0xff]  }
  0xd1   :  { %3917 = vmatprep.subr.bf16.mxu1 %v5703_v22  ;;  %v7205_v21 = vld.sshfl [vmem:[%s8356_s0 + $0x20] sm:$0x33 pattern:$0x76325410] }
  0xd2   :  { %v5767_v22 = vld [vmem:[%s8357_s1 + $0xf00] ss:$16 sps:$4 sm:$0xff]  }
  0xd3   :  { %3877 = vmatpush1.bf16.msra.mxu0 %v5698_v23  ;;  %v720_v23 = vld [vmem:[%s8358_s2] sm:$0xf] }
  0xd4   :  { %3918 = vmatpush1.bf16.msra.mxu1 %v5701_v24  ;;  %3878 = vmatprep.subr.bf16.mxu0 %v5706_v25  ;;  %v724_v24 = vsub.s32 0, %v6455_v43  ;;  %v5773_v25 = vld [vmem:[%s8357_s1 + $0x10e4] ss:$16 sps:$4 sm:$0xff]  }
  0xd5   :  { %3919 = vmatprep.subr.bf16.mxu1 %v5709_v26  ;;  %v5776_v26 = vld [vmem:[%s8357_s1 + $0xec] ss:$16 sps:$4 sm:$0xff]  }
  0xd7   :  { %3879 = vmatpush1.bf16.msra.mxu0 %v5704_v27  ;;  %v728_v27 = vsub.s32 1, %v6455_v43 }
  0xd8   :  { %3920 = vmatpush1.bf16.msra.mxu1 %v5707_v28  ;;  %3880 = vmatprep.subr.bf16.mxu0 %v5712_v29  ;;  %v107_v28 = vcombine.high %v7205_v21, %v7205_v21  ;;  %v7225_v29 = vpack.c.bf16 %v6982_v58, %v6982_v58  ;;  %v5779_v58 = vld [vmem:[%s8357_s1 + $0x10c4] ss:$16 sps:$4 sm:$0xff]  }
  0xd9   :  { %3921 = vmatprep.subr.bf16.mxu1 %v5715_v30  ;;  %v7229_v30 = vpack.c.bf16 %v6985_v59, %v6985_v59  ;;  %v5782_v59 = vld [vmem:[%s8357_s1 + $0xcc] ss:$16 sps:$4 sm:$0xff]  }
  0xdb   :  { %3881 = vmatpush1.bf16.msra.mxu0 %v5710_v31  ;;  %v725_v31 = vrot.slane %v720_v23, %v724_v24  ;;  %v5818_v24 = vld [vmem:[%s8357_s1 + $0xc] ss:$16 sps:$4 sm:$0xff]  }
  0xdc   :  { %3922 = vmatpush1.bf16.msra.mxu1 %v5713_v34  ;;  %3882 = vmatprep.subr.bf16.mxu0 %v5718_v35  ;;  %v5771_v34 = vld [vmem:[%s8357_s1 + $0x10e0] ss:$16 sps:$4 sm:$0xff]   ;;  %v5774_v35 = vld [vmem:[%s8357_s1 + $0xe8] ss:$16 sps:$4 sm:$0xff]  }
  0xdd   :  { %3923 = vmatprep.subr.bf16.mxu1 %v5721_v36  ;;  %v729_v36 = vrot.slane %v720_v23, %v728_v27  ;;  %v5815_v23 = vld [vmem:[%s8357_s1 + $0x1004] ss:$16 sps:$4 sm:$0xff]  }
  0xde   :  { %v5821_v27 = vld [vmem:[%s8357_s1 + $0x11e4] ss:$16 sps:$4 sm:$0xff]  }
  0xdf   :  { %3883 = vmatpush1.bf16.msra.mxu0 %v5716_v37  ;;  %v7243_v37 = vpack.c.bf16 %v107_v28, %v107_v28  ;;  %v5824_v28 = vld [vmem:[%s8357_s1 + $0x1ec] ss:$16 sps:$4 sm:$0xff]  }
  0xe0   :  { %3924 = vmatpush1.bf16.msra.mxu1 %v5719_v38  ;;  %3884 = vmatprep.subr.bf16.mxu0 %v5724_v40 }
  0xe1   :  { %3925 = vmatprep.subr.bf16.mxu1 %v5727_v41  ;;  %v5777_v41 = vld [vmem:[%s8357_s1 + $0x10c0] ss:$16 sps:$4 sm:$0xff]  }
  0xe3   :  { %3885 = vmatpush2.bf16.msra.mxu0 %v5722_v42 }
  0xe4   :  { %3926 = vmatpush2.bf16.msra.mxu1 %v5725_v45  ;;  %3886 = vmatprep.subr.bf16.mxu0 %v5730_v46  ;;  %v5780_v45 = vld [vmem:[%s8357_s1 + $0xc8] ss:$16 sps:$4 sm:$0xff]   ;;  %v5785_v46 = vld [vmem:[%s8357_s1 + $0x10a4] ss:$16 sps:$4 sm:$0xff]  }
  0xe5   :  { %3927 = vmatprep.subr.bf16.mxu1 %v5733_v47 }
  0xe7   :  { %3887 = vmatpush2.bf16.msra.mxu0 %v5728_v50 }
  0xe8   :  { %3928 = vmatpush2.bf16.msra.mxu1 %v5731_v51  ;;  %3888 = vmatprep.subr.bf16.mxu0 %v5736_v54  ;;  %v5788_v51 = vld [vmem:[%s8357_s1 + $0xac] ss:$16 sps:$4 sm:$0xff]  }
  0xe9   :  { %3929 = vmatprep.subr.bf16.mxu1 %v5739_v55 }
  0xeb   :  { %3889 = vmatpush2.bf16.msra.mxu0 %v5734_v56  ;;  %v5783_v56 = vld [vmem:[%s8357_s1 + $0x10a0] ss:$16 sps:$4 sm:$0xff]  }
  0xec   :  { %3930 = vmatpush2.bf16.msra.mxu1 %v5737_v60  ;;  %3890 = vmatprep.subr.bf16.mxu0 %v5742_v61 }
  0xed   :  { %3931 = vmatprep.subr.bf16.mxu1 %v5745_v63  ;;  %v5786_v63 = vld [vmem:[%s8357_s1 + $0xa8] ss:$16 sps:$4 sm:$0xff]  }
  0xef   :  { %3891 = vmatpush2.bf16.msra.mxu0 %v5740_v49 }
  0xf0   :  { %3932 = vmatpush2.bf16.msra.mxu1 %v5743_v0  ;;  %3892 = vmatprep.subr.bf16.mxu0 %v5748_v1 }
  0xf1   :  { %3933 = vmatprep.subr.bf16.mxu1 %v5751_v5  ;;  %v5791_v5 = vld [vmem:[%s8357_s1 + $0x1084] ss:$16 sps:$4 sm:$0xff]  }
  0xf3   :  { %3893 = vmatpush2.bf16.msra.mxu0 %v5746_v6  ;;  %v5789_v6 = vld [vmem:[%s8357_s1 + $0x1080] ss:$16 sps:$4 sm:$0xff]  }
  0xf4   :  { %3934 = vmatpush2.bf16.msra.mxu1 %v5749_v39  ;;  %3894 = vmatprep.subr.bf16.mxu0 %v5754_v44  ;;  %v5792_v39 = vld [vmem:[%s8357_s1 + $0x88] ss:$16 sps:$4 sm:$0xff]   ;;  %v5797_v44 = vld [vmem:[%s8357_s1 + $0x1064] ss:$16 sps:$4 sm:$0xff]  }
  0xf5   :  { %3935 = vmatprep.subr.bf16.mxu1 %v5757_v9  ;;  %v5800_v9 = vld [vmem:[%s8357_s1 + $0x6c] ss:$16 sps:$4 sm:$0xff]  }
  0xf7   :  { %3895 = vmatpush2.bf16.msra.mxu0 %v5752_v10  ;;  %v5795_v10 = vld [vmem:[%s8357_s1 + $0x1060] ss:$16 sps:$4 sm:$0xff]  }
  0xf8   :  { %3936 = vmatpush2.bf16.msra.mxu1 %v5755_v11  ;;  %3896 = vmatprep.subr.bf16.mxu0 %v5760_v12  ;;  %v5798_v11 = vld [vmem:[%s8357_s1 + $0x68] ss:$16 sps:$4 sm:$0xff]   ;;  %v5803_v12 = vld [vmem:[%s8357_s1 + $0x1044] ss:$16 sps:$4 sm:$0xff]  }
  0xf9   :  { %3937 = vmatprep.subr.bf16.mxu1 %v5763_v13  ;;  %v5806_v13 = vld [vmem:[%s8357_s1 + $0x4c] ss:$16 sps:$4 sm:$0xff]  }
  0xfb   :  { %3897 = vmatpush2.bf16.msra.mxu0 %v5758_v14  ;;  %v5801_v14 = vld [vmem:[%s8357_s1 + $0x1040] ss:$16 sps:$4 sm:$0xff]  }
  0xfc   :  { %3938 = vmatpush2.bf16.msra.mxu1 %v5761_v15  ;;  %3898 = vmatprep.subr.bf16.mxu0 %v5766_v18  ;;  %v5804_v15 = vld [vmem:[%s8357_s1 + $0x48] ss:$16 sps:$4 sm:$0xff]   ;;  %v5809_v18 = vld [vmem:[%s8357_s1 + $0x1024] ss:$16 sps:$4 sm:$0xff]  }
  0xfd   :  { %3939 = vmatprep.subr.bf16.mxu1 %v5769_v19  ;;  %v5812_v19 = vld [vmem:[%s8357_s1 + $0x2c] ss:$16 sps:$4 sm:$0xff]  }
  0xff   :  { %3899 = vmatpush2.bf16.msra.mxu0 %v5764_v20  ;;  %v5807_v20 = vld [vmem:[%s8357_s1 + $0x1020] ss:$16 sps:$4 sm:$0xff]  }
 0x100   :  { %3940 = vmatpush2.bf16.msra.mxu1 %v5767_v22  ;;  %3950 = vmatprep.subr.bf16.mxu0 %v5773_v25  ;;  %v5810_v22 = vld [vmem:[%s8357_s1 + $0x28] ss:$16 sps:$4 sm:$0xff]   ;;  %v5813_v25 = vld [vmem:[%s8357_s1 + $0x1000] ss:$16 sps:$4 sm:$0xff]  }
 0x101   :  { %3991 = vmatprep.subr.bf16.mxu1 %v5776_v26  ;;  %v5816_v26 = vld [vmem:[%s8357_s1 + $0x8] ss:$16 sps:$4 sm:$0xff]  }
 0x102   :  { %v3656_v38 = vpop.f32.mrf.mxu0  ;;  %3901 = vmatmul.mubr.bf16.vlgmr.msra.gmra.mxu0 %v7225_v29 }
 0x103   :  { %v3697_v40 = vpop.f32.mrf.mxu1  ;;  %3942 = vmatmul.mubr.bf16.vlgmr.msra.gmra.mxu1 %v7229_v30  ;;  %v3657_v42 = vadd.f32 %v3656_v38, %v725_v31  ;;  %3951 = vmatpush1.bf16.msra.mxu0 %v5771_v34  ;;  %v5819_v31 = vld [vmem:[%s8357_s1 + $0x11e0] ss:$16 sps:$4 sm:$0xff]   ;;  %v5822_v34 = vld [vmem:[%s8357_s1 + $0x1e8] ss:$16 sps:$4 sm:$0xff]   ;;  %v5833_v38 = vld [vmem:[%s8357_s1 + $0x11a4] ss:$16 sps:$4 sm:$0xff]  }
 0x104   :  { %3992 = vmatpush1.bf16.msra.mxu1 %v5774_v35  ;;  %v3658_v47 = vpop.f32.mrf.mxu0  ;;  %3952 = vmatprep.subr.bf16.mxu0 %v5779_v58  ;;  %v5827_v35 = vld [vmem:[%s8357_s1 + $0x11c4] ss:$16 sps:$4 sm:$0xff]   ;;  %v5830_v58 = vld [vmem:[%s8357_s1 + $0x1cc] ss:$16 sps:$4 sm:$0xff]  }
 0x105   :  { %v3699_v50 = vpop.f32.mrf.mxu1  ;;  %3993 = vmatprep.subr.bf16.mxu1 %v5782_v59  ;;  %v7259_v54 = vadd.f32 %v3697_v40, %v3657_v42  ;;  %v3659_v55 = vadd.f32 %v3658_v47, %v729_v36  ;;  %3982 = vmatprep.mubr.bf16.mxu0 %v7243_v37  ;;  %v5825_v59 = vld [vmem:[%s8357_s1 + $0x11c0] ss:$16 sps:$4 sm:$0xff]   ;;  %v5828_v36 = vld [vmem:[%s8357_s1 + $0x1c8] ss:$16 sps:$4 sm:$0xff]   ;;  %v5836_v40 = vld [vmem:[%s8357_s1 + $0x1ac] ss:$16 sps:$4 sm:$0xff]  }
 0x106   :  { %4023 = vmatprep.mubr.bf16.mxu1 %v6501_v62  ;;  %v3660_v60 = vpop.f32.mrf.mxu0  ;;  %v5794_v62 = vld [vmem:[%s8357_s1 + $0x8c] ss:$16 sps:$4 sm:$0xff]   ;;  %v5834_v42 = vld [vmem:[%s8357_s1 + $0x1a8] ss:$16 sps:$4 sm:$0xff]   ;;  %v5837_v47 = vld [vmem:[%s8357_s1 + $0x1180] ss:$16 sps:$4 sm:$0xff]  }
 0x107   :  { %v3701_v61 = vpop.f32.mrf.mxu1  ;;  %v7269_v49 = vadd.f32 %v3699_v50, %v3659_v55  ;;  %3953 = vmatpush1.bf16.msra.mxu0 %v5777_v41  ;;  %v5831_v41 = vld [vmem:[%s8357_s1 + $0x11a0] ss:$16 sps:$4 sm:$0xff]   ;;  %v5840_v50 = vld [vmem:[%s8357_s1 + $0x188] ss:$16 sps:$4 sm:$0xff]   ;;  %v5848_v55 = vld [vmem:[%s8357_s1 + $0x16c] ss:$16 sps:$4 sm:$0xff]  }
 0x108   :  { %3994 = vmatpush1.bf16.msra.mxu1 %v5780_v45  ;;  %v3661_v0 = vpop.f32.mrf.mxu0  ;;  %3954 = vmatprep.subr.bf16.mxu0 %v5785_v46  ;;  %v5839_v45 = vld [vmem:[%s8357_s1 + $0x1184] ss:$16 sps:$4 sm:$0xff]   ;;  %v5842_v46 = vld [vmem:[%s8357_s1 + $0x18c] ss:$16 sps:$4 sm:$0xff]   ;;  %v5846_v60 = vld [vmem:[%s8357_s1 + $0x168] ss:$16 sps:$4 sm:$0xff]  }
 0x109   :  { %v3702_v1 = vpop.f32.mrf.mxu1  ;;  %3995 = vmatprep.subr.bf16.mxu1 %v5788_v51  ;;  %v5845_v51 = vld [vmem:[%s8357_s1 + $0x1164] ss:$16 sps:$4 sm:$0xff]   ;;  %v5849_v0 = vld [vmem:[%s8357_s1 + $0x1140] ss:$16 sps:$4 sm:$0xff]  }
 0x10a   :  { %v5851_v61 = vld [vmem:[%s8357_s1 + $0x1144] ss:$16 sps:$4 sm:$0xff]   ;;  %v5852_v1 = vld [vmem:[%s8357_s1 + $0x148] ss:$16 sps:$4 sm:$0xff]  }
 0x10b   :  { %3955 = vmatpush1.bf16.msra.mxu0 %v5783_v56  ;;  %v5843_v56 = vld [vmem:[%s8357_s1 + $0x1160] ss:$16 sps:$4 sm:$0xff]  }
 0x10c   :  { %3996 = vmatpush1.bf16.msra.mxu1 %v5786_v63  ;;  %3956 = vmatprep.subr.bf16.mxu0 %v5791_v5  ;;  %v5854_v63 = vld [vmem:[%s8357_s1 + $0x14c] ss:$16 sps:$4 sm:$0xff]   ;;  %v5857_v5 = vld [vmem:[%s8357_s1 + $0x1124] ss:$16 sps:$4 sm:$0xff]  }
 0x10d   :  { %3997 = vmatprep.subr.bf16.mxu1 %v5794_v62  ;;  %v5860_v62 = vld [vmem:[%s8357_s1 + $0x12c] ss:$16 sps:$4 sm:$0xff]  }
 0x10f   :  { %3957 = vmatpush1.bf16.msra.mxu0 %v5789_v6  ;;  %v5855_v6 = vld [vmem:[%s8357_s1 + $0x1120] ss:$16 sps:$4 sm:$0xff]  }
 0x110   :  { %3998 = vmatpush1.bf16.msra.mxu1 %v5792_v39  ;;  %3958 = vmatprep.subr.bf16.mxu0 %v5797_v44  ;;  %v5858_v39 = vld [vmem:[%s8357_s1 + $0x128] ss:$16 sps:$4 sm:$0xff]   ;;  %v5863_v44 = vld [vmem:[%s8357_s1 + $0x1104] ss:$16 sps:$4 sm:$0xff]  }
 0x111   :  { %3999 = vmatprep.subr.bf16.mxu1 %v5800_v9  ;;  %v5866_v9 = vld [vmem:[%s8357_s1 + $0x10c] ss:$16 sps:$4 sm:$0xff]  }
 0x113   :  { %3959 = vmatpush1.bf16.msra.mxu0 %v5795_v10  ;;  %v5861_v10 = vld [vmem:[%s8357_s1 + $0x1100] ss:$16 sps:$4 sm:$0xff]  }
 0x114   :  { %4000 = vmatpush1.bf16.msra.mxu1 %v5798_v11  ;;  %3960 = vmatprep.subr.bf16.mxu0 %v5803_v12  ;;  %v5864_v11 = vld [vmem:[%s8357_s1 + $0x108] ss:$16 sps:$4 sm:$0xff]   ;;  %v5869_v12 = vld [vmem:[%s8357_s1 + $0x2ec] ss:$16 sps:$4 sm:$0xff]  }
 0x115   :  { %4001 = vmatprep.subr.bf16.mxu1 %v5806_v13  ;;  %v5872_v13 = vld [vmem:[%s8357_s1 + $0x4ec] ss:$16 sps:$4 sm:$0xff]  }
 0x117   :  { %3961 = vmatpush1.bf16.msra.mxu0 %v5801_v14  ;;  %v5867_v14 = vld [vmem:[%s8357_s1 + $0x2e8] ss:$16 sps:$4 sm:$0xff]  }
 0x118   :  { %4002 = vmatpush1.bf16.msra.mxu1 %v5804_v15  ;;  %3962 = vmatprep.subr.bf16.mxu0 %v5809_v18  ;;  %v5870_v15 = vld [vmem:[%s8357_s1 + $0x4e8] ss:$16 sps:$4 sm:$0xff]   ;;  %v7441_v18 = vpack.c.bf16 %v7205_v21, %v7205_v21 }
 0x119   :  { %4003 = vmatprep.subr.bf16.mxu1 %v5812_v19  ;;  %v5875_v19 = vld [vmem:[%s8357_s1 + $0x2cc] ss:$16 sps:$4 sm:$0xff]   ;;  %v5876_v21 = vld [vmem:[%s8357_s1 + $0x4c8] ss:$16 sps:$4 sm:$0xff]  }
 0x11b   :  { %3963 = vmatpush1.bf16.msra.mxu0 %v5807_v20  ;;  %v5878_v20 = vld [vmem:[%s8357_s1 + $0x4cc] ss:$16 sps:$4 sm:$0xff]  }
 0x11c   :  { %4004 = vmatpush1.bf16.msra.mxu1 %v5810_v22  ;;  %3964 = vmatprep.subr.bf16.mxu0 %v5815_v23  ;;  %v5873_v22 = vld [vmem:[%s8357_s1 + $0x2c8] ss:$16 sps:$4 sm:$0xff]  }
 0x11d   :  { %4005 = vmatprep.subr.bf16.mxu1 %v5818_v24 }
 0x11f   :  { %3965 = vmatpush1.bf16.msra.mxu0 %v5813_v25 }
 0x120   :  { %4006 = vmatpush1.bf16.msra.mxu1 %v5816_v26  ;;  %3966 = vmatprep.subr.bf16.mxu0 %v5821_v27 }
 0x121   :  { %4007 = vmatprep.subr.bf16.mxu1 %v5824_v28  ;;  %v5881_v28 = vld [vmem:[%s8357_s1 + $0x2ac] ss:$16 sps:$4 sm:$0xff]  }
 0x123   :  { %3967 = vmatpush2.bf16.msra.mxu0 %v5819_v31  ;;  %v5884_v31 = vld [vmem:[%s8357_s1 + $0x4ac] ss:$16 sps:$4 sm:$0xff]  }
 0x124   :  { %4008 = vmatpush2.bf16.msra.mxu1 %v5822_v34  ;;  %3968 = vmatprep.subr.bf16.mxu0 %v5827_v35  ;;  %v5882_v35 = vld [vmem:[%s8357_s1 + $0x4a8] ss:$16 sps:$4 sm:$0xff]  }
 0x125   :  { %4009 = vmatprep.subr.bf16.mxu1 %v5830_v58 }
 0x127   :  { %3969 = vmatpush2.bf16.msra.mxu0 %v5825_v59 }
 0x128   :  { %4010 = vmatpush2.bf16.msra.mxu1 %v5828_v36  ;;  %3970 = vmatprep.subr.bf16.mxu0 %v5833_v38 }
 0x129   :  { %4011 = vmatprep.subr.bf16.mxu1 %v5836_v40  ;;  %v5887_v40 = vld [vmem:[%s8357_s1 + $0x28c] ss:$16 sps:$4 sm:$0xff]  }
 0x12b   :  { %3971 = vmatpush2.bf16.msra.mxu0 %v5831_v41  ;;  %v5888_v41 = vld [vmem:[%s8357_s1 + $0x488] ss:$16 sps:$4 sm:$0xff]  }
 0x12c   :  { %4012 = vmatpush2.bf16.msra.mxu1 %v5834_v42  ;;  %3972 = vmatprep.subr.bf16.mxu0 %v5839_v45  ;;  %v5893_v42 = vld [vmem:[%s8357_s1 + $0x26c] ss:$16 sps:$4 sm:$0xff]  }
 0x12d   :  { %4013 = vmatprep.subr.bf16.mxu1 %v5842_v46  ;;  %v5896_v45 = vld [vmem:[%s8357_s1 + $0x46c] ss:$16 sps:$4 sm:$0xff]   ;;  %v5891_v46 = vld [vmem:[%s8357_s1 + $0x268] ss:$16 sps:$4 sm:$0xff]  }
 0x12f   :  { %3973 = vmatpush2.bf16.msra.mxu0 %v5837_v47  ;;  %v5894_v47 = vld [vmem:[%s8357_s1 + $0x468] ss:$16 sps:$4 sm:$0xff]  }
 0x130   :  { %4014 = vmatpush2.bf16.msra.mxu1 %v5840_v50  ;;  %3974 = vmatprep.subr.bf16.mxu0 %v5845_v51  ;;  %v5899_v50 = vld [vmem:[%s8357_s1 + $0x24c] ss:$16 sps:$4 sm:$0xff]  }
 0x131   :  { %4015 = vmatprep.subr.bf16.mxu1 %v5848_v55  ;;  %v5902_v51 = vld [vmem:[%s8357_s1 + $0x44c] ss:$16 sps:$4 sm:$0xff]   ;;  %v5897_v55 = vld [vmem:[%s8357_s1 + $0x248] ss:$16 sps:$4 sm:$0xff]  }
 0x133   :  { %3975 = vmatpush2.bf16.msra.mxu0 %v5843_v56  ;;  %v5900_v56 = vld [vmem:[%s8357_s1 + $0x448] ss:$16 sps:$4 sm:$0xff]  }
 0x134   :  { %4016 = vmatpush2.bf16.msra.mxu1 %v5846_v60  ;;  %3976 = vmatprep.subr.bf16.mxu0 %v5851_v61  ;;  %v5905_v60 = vld [vmem:[%s8357_s1 + $0x22c] ss:$16 sps:$4 sm:$0xff]  }
 0x135   :  { %4017 = vmatprep.subr.bf16.mxu1 %v5854_v63  ;;  %v5908_v61 = vld [vmem:[%s8357_s1 + $0x42c] ss:$16 sps:$4 sm:$0xff]   ;;  %v5903_v63 = vld [vmem:[%s8357_s1 + $0x228] ss:$16 sps:$4 sm:$0xff]  }
 0x137   :  { %3977 = vmatpush2.bf16.msra.mxu0 %v5849_v0  ;;  %v5906_v0 = vld [vmem:[%s8357_s1 + $0x428] ss:$16 sps:$4 sm:$0xff]  }
 0x138   :  { %4018 = vmatpush2.bf16.msra.mxu1 %v5852_v1  ;;  %3978 = vmatprep.subr.bf16.mxu0 %v5857_v5  ;;  %v5911_v1 = vld [vmem:[%s8357_s1 + $0x20c] ss:$16 sps:$4 sm:$0xff]  }
 0x139   :  { %4019 = vmatprep.subr.bf16.mxu1 %v5860_v62  ;;  %v5914_v5 = vld [vmem:[%s8357_s1 + $0x40c] ss:$16 sps:$4 sm:$0xff]   ;;  %v5909_v62 = vld [vmem:[%s8357_s1 + $0x208] ss:$16 sps:$4 sm:$0xff]  }
 0x13b   :  { %3979 = vmatpush2.bf16.msra.mxu0 %v5855_v6  ;;  %v5912_v6 = vld [vmem:[%s8357_s1 + $0x408] ss:$16 sps:$4 sm:$0xff]  }
 0x13c   :  { %4020 = vmatpush2.bf16.msra.mxu1 %v5858_v39  ;;  %3980 = vmatprep.subr.bf16.mxu0 %v5863_v44  ;;  %v5917_v39 = vld [vmem:[%s8357_s1 + $0x3ec] ss:$16 sps:$4 sm:$0xff]  }
 0x13d   :  { %4021 = vmatprep.subr.bf16.mxu1 %v5866_v9  ;;  %v5920_v44 = vld [vmem:[%s8357_s1 + $0x5ec] ss:$16 sps:$4 sm:$0xff]   ;;  %v5915_v9 = vld [vmem:[%s8357_s1 + $0x3e8] ss:$16 sps:$4 sm:$0xff]  }
 0x13f   :  { %3981 = vmatpush2.bf16.msra.mxu0 %v5861_v10  ;;  %v5918_v10 = vld [vmem:[%s8357_s1 + $0x5e8] ss:$16 sps:$4 sm:$0xff]  }
 0x140   :  { %4022 = vmatpush2.bf16.msra.mxu1 %v5864_v11  ;;  %4032 = vmatprep.subr.bf16.mxu0 %v5869_v12  ;;  %v5923_v11 = vld [vmem:[%s8357_s1 + $0x3cc] ss:$16 sps:$4 sm:$0xff]  }
 0x141   :  { %4073 = vmatprep.subr.bf16.mxu1 %v5872_v13  ;;  %v5926_v12 = vld [vmem:[%s8357_s1 + $0x5cc] ss:$16 sps:$4 sm:$0xff]   ;;  %v5921_v13 = vld [vmem:[%s8357_s1 + $0x3c8] ss:$16 sps:$4 sm:$0xff]  }
 0x142   :  { %v3738_v23 = vpop.f32.mrf.mxu0  ;;  %3983 = vmatmul.mubr.bf16.vlgmr.msra.gmra.mxu0 %v7441_v18 }
 0x143   :  { %v3779_v24 = vpop.f32.mrf.mxu1  ;;  %4024 = vmatmul.mubr.bf16.vlgmr.msra.gmra.mxu1 %v6552_v16  ;;  %v3739_v25 = vadd.f32 %v3738_v23, %v7259_v54  ;;  %4033 = vmatpush1.bf16.msra.mxu0 %v5867_v14  ;;  %v5879_v54 = vld [vmem:[%s8357_s1 + $0x2a8] ss:$16 sps:$4 sm:$0xff]   ;;  %v5938_v23 = vld [vmem:[%s8357_s1 + $0x58c] ss:$16 sps:$4 sm:$0xff]  }
 0x144   :  { %4074 = vmatpush1.bf16.msra.mxu1 %v5870_v15  ;;  %v3740_v26 = vpop.f32.mrf.mxu0  ;;  %4034 = vmatprep.subr.bf16.mxu0 %v5875_v19  ;;  %v5924_v14 = vld [vmem:[%s8357_s1 + $0x5c8] ss:$16 sps:$4 sm:$0xff]   ;;  %v5929_v15 = vld [vmem:[%s8357_s1 + $0x3ac] ss:$16 sps:$4 sm:$0xff]  }
 0x145   :  { %v3781_v27 = vpop.f32.mrf.mxu1  ;;  %4075 = vmatprep.subr.bf16.mxu1 %v5878_v20  ;;  %v7464_v34 = vadd.f32 %v3779_v24, %v3739_v25  ;;  %v3741_v16 = vadd.f32 %v3740_v26, %v7269_v49  ;;  %4064 = vmatprep.mubr.bf16.mxu0 %v6512_v3  ;;  %v5890_v3 = vld [vmem:[%s8357_s1 + $0x48c] ss:$16 sps:$4 sm:$0xff]   ;;  %v5927_v20 = vld [vmem:[%s8357_s1 + $0x3a8] ss:$16 sps:$4 sm:$0xff]  }
 0x146   :  { %4105 = vmatprep.mubr.bf16.mxu1 %v6653_v53  ;;  %v3742_v58 = vpop.f32.mrf.mxu0  ;;  %v5885_v53 = vld [vmem:[%s8357_s1 + $0x288] ss:$16 sps:$4 sm:$0xff]   ;;  %v5932_v19 = vld [vmem:[%s8357_s1 + $0x5ac] ss:$16 sps:$4 sm:$0xff]  }
 0x147   :  { %v3783_v59 = vpop.f32.mrf.mxu1  ;;  %v7475_v36 = vadd.f32 %v3781_v27, %v3741_v16  ;;  %4035 = vmatpush1.bf16.msra.mxu0 %v5873_v22  ;;  %v5930_v22 = vld [vmem:[%s8357_s1 + $0x5a8] ss:$16 sps:$4 sm:$0xff]   ;;  %v5941_v26 = vld [vmem:[%s8357_s1 + $0x36c] ss:$16 sps:$4 sm:$0xff]  }
 0x148   :  { %4076 = vmatpush1.bf16.msra.mxu1 %v5876_v21  ;;  %v3743_v38 = vpop.f32.mrf.mxu0  ;;  %4036 = vmatprep.subr.bf16.mxu0 %v5881_v28  ;;  %v5935_v21 = vld [vmem:[%s8357_s1 + $0x38c] ss:$16 sps:$4 sm:$0xff]   ;;  %v5933_v24 = vld [vmem:[%s8357_s1 + $0x388] ss:$16 sps:$4 sm:$0xff]  }
 0x149   :  { %v3784_v49 = vpop.f32.mrf.mxu1  ;;  %4077 = vmatprep.subr.bf16.mxu1 %v5884_v31  ;;  %v5936_v25 = vld [vmem:[%s8357_s1 + $0x588] ss:$16 sps:$4 sm:$0xff]   ;;  %v5944_v27 = vld [vmem:[%s8357_s1 + $0x56c] ss:$16 sps:$4 sm:$0xff]  }
 0x14a   :  { %v5939_v28 = vld [vmem:[%s8357_s1 + $0x368] ss:$16 sps:$4 sm:$0xff]   ;;  %v5947_v16 = vld [vmem:[%s8357_s1 + $0x34c] ss:$16 sps:$4 sm:$0xff]  }
 0x14b   :  { %4037 = vmatpush1.bf16.msra.mxu0 %v5879_v54  ;;  %v5942_v31 = vld [vmem:[%s8357_s1 + $0x568] ss:$16 sps:$4 sm:$0xff]   ;;  %v5950_v54 = vld [vmem:[%s8357_s1 + $0x54c] ss:$16 sps:$4 sm:$0xff]  }
 0x14c   :  { %4078 = vmatpush1.bf16.msra.mxu1 %v5882_v35  ;;  %4038 = vmatprep.subr.bf16.mxu0 %v5887_v40  ;;  %v5945_v35 = vld [vmem:[%s8357_s1 + $0x348] ss:$16 sps:$4 sm:$0xff]   ;;  %v5953_v59 = vld [vmem:[%s8357_s1 + $0x32c] ss:$16 sps:$4 sm:$0xff]  }
 0x14d   :  { %4079 = vmatprep.subr.bf16.mxu1 %v5890_v3  ;;  %v5948_v58 = vld [vmem:[%s8357_s1 + $0x548] ss:$16 sps:$4 sm:$0xff]   ;;  %v5956_v38 = vld [vmem:[%s8357_s1 + $0x52c] ss:$16 sps:$4 sm:$0xff]  }
 0x14e   :  { %v5951_v49 = vld [vmem:[%s8357_s1 + $0x328] ss:$16 sps:$4 sm:$0xff]   ;;  %v5959_v3 = vld [vmem:[%s8357_s1 + $0x30c] ss:$16 sps:$4 sm:$0xff]  }
 0x14f   :  { %4039 = vmatpush1.bf16.msra.mxu0 %v5885_v53  ;;  %v5954_v40 = vld [vmem:[%s8357_s1 + $0x528] ss:$16 sps:$4 sm:$0xff]   ;;  %v5962_v53 = vld [vmem:[%s8357_s1 + $0x50c] ss:$16 sps:$4 sm:$0xff]  }
 0x150   :  { %4080 = vmatpush1.bf16.msra.mxu1 %v5888_v41  ;;  %4040 = vmatprep.subr.bf16.mxu0 %v5893_v42  ;;  %v5957_v41 = vld [vmem:[%s8357_s1 + $0x308] ss:$16 sps:$4 sm:$0xff]  }
 0x151   :  { %4081 = vmatprep.subr.bf16.mxu1 %v5896_v45  ;;  %v5960_v42 = vld [vmem:[%s8357_s1 + $0x508] ss:$16 sps:$4 sm:$0xff]   ;;  %v5965_v45 = vld [vmem:[%s8357_s1 + $0x6ec] ss:$16 sps:$4 sm:$0xff]  }
 0x153   :  { %4041 = vmatpush1.bf16.msra.mxu0 %v5891_v46  ;;  %v5968_v46 = vld [vmem:[%s8357_s1 + $0x8ec] ss:$16 sps:$4 sm:$0xff]  }
 0x154   :  { %4082 = vmatpush1.bf16.msra.mxu1 %v5894_v47  ;;  %4042 = vmatprep.subr.bf16.mxu0 %v5899_v50  ;;  %v5963_v47 = vld [vmem:[%s8357_s1 + $0x6e8] ss:$16 sps:$4 sm:$0xff]  }
 0x155   :  { %4083 = vmatprep.subr.bf16.mxu1 %v5902_v51  ;;  %v5966_v50 = vld [vmem:[%s8357_s1 + $0x8e8] ss:$16 sps:$4 sm:$0xff]   ;;  %v5971_v51 = vld [vmem:[%s8357_s1 + $0x6cc] ss:$16 sps:$4 sm:$0xff]  }
 0x157   :  { %4043 = vmatpush1.bf16.msra.mxu0 %v5897_v55  ;;  %v5974_v55 = vld [vmem:[%s8357_s1 + $0x8cc] ss:$16 sps:$4 sm:$0xff]  }
 0x158   :  { %4084 = vmatpush1.bf16.msra.mxu1 %v5900_v56  ;;  %4044 = vmatprep.subr.bf16.mxu0 %v5905_v60 }
 0x159   :  { %4085 = vmatprep.subr.bf16.mxu1 %v5908_v61 }
 0x15b   :  { %4045 = vmatpush1.bf16.msra.mxu0 %v5903_v63 }
 0x15c   :  { %4086 = vmatpush1.bf16.msra.mxu1 %v5906_v0  ;;  %4046 = vmatprep.subr.bf16.mxu0 %v5911_v1 }
 0x15d   :  { %4087 = vmatprep.subr.bf16.mxu1 %v5914_v5 }
 0x15f   :  { %4047 = vmatpush1.bf16.msra.mxu0 %v5909_v62 }
 0x160   :  { %4088 = vmatpush1.bf16.msra.mxu1 %v5912_v6  ;;  %4048 = vmatprep.subr.bf16.mxu0 %v5917_v39 }
 0x161   :  { %4089 = vmatprep.subr.bf16.mxu1 %v5920_v44 }
 0x163   :  { %4049 = vmatpush2.bf16.msra.mxu0 %v5915_v9 }
 0x164   :  { %4090 = vmatpush2.bf16.msra.mxu1 %v5918_v10  ;;  %4050 = vmatprep.subr.bf16.mxu0 %v5923_v11 }
 0x165   :  { %4091 = vmatprep.subr.bf16.mxu1 %v5926_v12 }
 0x167   :  { %4051 = vmatpush2.bf16.msra.mxu0 %v5921_v13 }
 0x168   :  { %4092 = vmatpush2.bf16.msra.mxu1 %v5924_v14  ;;  %4052 = vmatprep.subr.bf16.mxu0 %v5929_v15 }
 0x169   :  { %4093 = vmatprep.subr.bf16.mxu1 %v5932_v19 }
 0x16b   :  { %4053 = vmatpush2.bf16.msra.mxu0 %v5927_v20 }
 0x16c   :  { %4094 = vmatpush2.bf16.msra.mxu1 %v5930_v22  ;;  %4054 = vmatprep.subr.bf16.mxu0 %v5935_v21 }
 0x16d   :  { %4095 = vmatprep.subr.bf16.mxu1 %v5938_v23 }
 0x16f   :  { %4055 = vmatpush2.bf16.msra.mxu0 %v5933_v24 }
 0x170   :  { %4096 = vmatpush2.bf16.msra.mxu1 %v5936_v25  ;;  %4056 = vmatprep.subr.bf16.mxu0 %v5941_v26 }
 0x171   :  { %4097 = vmatprep.subr.bf16.mxu1 %v5944_v27 }
 0x173   :  { %4057 = vmatpush2.bf16.msra.mxu0 %v5939_v28 }
 0x174   :  { %4098 = vmatpush2.bf16.msra.mxu1 %v5942_v31  ;;  %4058 = vmatprep.subr.bf16.mxu0 %v5947_v16 }
 0x175   :  { %4099 = vmatprep.subr.bf16.mxu1 %v5950_v54 }
 0x177   :  { %4059 = vmatpush2.bf16.msra.mxu0 %v5945_v35 }
 0x178   :  { %4100 = vmatpush2.bf16.msra.mxu1 %v5948_v58  ;;  %4060 = vmatprep.subr.bf16.mxu0 %v5953_v59 }
 0x179   :  { %4101 = vmatprep.subr.bf16.mxu1 %v5956_v38 }
 0x17b   :  { %4061 = vmatpush2.bf16.msra.mxu0 %v5951_v49 }
 0x17c   :  { %4102 = vmatpush2.bf16.msra.mxu1 %v5954_v40  ;;  %4062 = vmatprep.subr.bf16.mxu0 %v5959_v3 }
 0x17d   :  { %4103 = vmatprep.subr.bf16.mxu1 %v5962_v53 }
 0x17f   :  { %4063 = vmatpush2.bf16.msra.mxu0 %v5957_v41 }
 0x180   :  { %4104 = vmatpush2.bf16.msra.mxu1 %v5960_v42  ;;  %4114 = vmatprep.subr.bf16.mxu0 %v5965_v45 }
 0x181   :  { %4155 = vmatprep.subr.bf16.mxu1 %v5968_v46 }
 0x182   :  { %v3820_v56 = vpop.f32.mrf.mxu0  ;;  %4065 = vmatmul.mubr.bf16.vlgmr.msra.gmra.mxu0 %v6554_v17 }
 0x183   :  { %v3861_v60 = vpop.f32.mrf.mxu1  ;;  %4106 = vmatmul.mubr.bf16.vlgmr.msra.gmra.mxu1 %v6771_v32 }
 0x184   :  { %10 = vsyncpa [#allocation3], 0  ;;  %v3821_v61 = vadd.f32 %v3820_v56, %v7464_v34  ;;  %4115 = vmatpush1.bf16.msra.mxu0 %v5963_v47  ;;  %4156 = vmatpush1.bf16.msra.mxu1 %v5966_v50  ;;  %v5969_v63 = vld [vmem:[%s8357_s1 + $0x6c8] ss:$16 sps:$4 sm:$0xff]   ;;  %v3822_v1 = vpop.f32.mrf.mxu0  ;;  %v5977_v17 = vld [vmem:[%s8357_s1 + $0x6ac] ss:$16 sps:$4 sm:$0xff]  }
 0x185   :  { %v5972_v0 = vld [vmem:[%s8357_s1 + $0x8c8] ss:$16 sps:$4 sm:$0xff]   ;;  %v3863_v5 = vpop.f32.mrf.mxu1  ;;  %4116 = vmatprep.subr.bf16.mxu0 %v5971_v51  ;;  %4157 = vmatprep.subr.bf16.mxu1 %v5974_v55  ;;  %v5980_v32 = vld [vmem:[%s8357_s1 + $0x8ac] ss:$16 sps:$4 sm:$0xff]   ;;  %v3823_v62 = vadd.f32 %v3822_v1, %v7475_v36  ;;  %s6307_s16 = smov [#allocation2]   ;;  %vm4711_vm0 = vcmask 9216  }
 0x186   :  { %v7666_v34 = vadd.f32 %v3861_v60, %v3821_v61  ;;  %4146 = vmatprep.mubr.bf16.mxu0 %v6663_v57  ;;  %4187 = vmatprep.mubr.bf16.mxu1 %v6814_v48  ;;  %v3824_v6 = vpop.f32.mrf.mxu0  ;;  %v5975_v9 = vld [vmem:[%s8357_s1 + $0x6a8] ss:$16 sps:$4 sm:$0xff]   ;;  %v5983_v57 = vld [vmem:[%s8357_s1 + $0x68c] ss:$16 sps:$4 sm:$0xff]   ;;  %s4719_s17 = sshll.u32 %s6307_s16, 4  ;;  %s4720_s17 = int_to_ptr.vmem [resolvable:$true] %s4719_s17 }
 0x187   :  { %v3865_v39 = vpop.f32.mrf.mxu1  ;;  %v7671_v44 = vadd.f32 %v3863_v5, %v3823_v62  ;;  %v5978_v10 = vld [vmem:[%s8357_s1 + $0x8a8] ss:$16 sps:$4 sm:$0xff]   ;;  %v5986_v48 = vld [vmem:[%s8357_s1 + $0x88c] ss:$16 sps:$4 sm:$0xff]   ;;  %s6284_s18 = scalar_lea.vmem %s4720_s17, 32  ;;  %p6289_p1 = scmp.lt.s32.totalorder %s4720_s17, %s4720_s17 }
 0x188   :  { %4117 = vmatpush1.bf16.msra.mxu0 %v5969_v63  ;;  %4158 = vmatpush1.bf16.msra.mxu1 %v5972_v0  ;;  %v3825_v11 = vpop.f32.mrf.mxu0  ;;  %v5981_v12 = vld [vmem:[%s8357_s1 + $0x688] ss:$16 sps:$4 sm:$0xff]   ;;  %v5989_v14 = vld [vmem:[%s8357_s1 + $0x66c] ss:$16 sps:$4 sm:$0xff]   ;;  %p6285_p0 = scmp.ne.s32.totalorder %s4720_s17, %s6284_s18  ;;  %p6290_p2 = scmp.lt.s32.totalorder %s6284_s18, %s6284_s18 }
 0x189   :  { %v3866_v36 = vpop.f32.mrf.mxu1  ;;  %4118 = vmatprep.subr.bf16.mxu0 %v5977_v17  ;;  %4159 = vmatprep.subr.bf16.mxu1 %v5980_v32  ;;  %v5984_v13 = vld [vmem:[%s8357_s1 + $0x888] ss:$16 sps:$4 sm:$0xff]   ;;  %v5992_v15 = vld [vmem:[%s8357_s1 + $0x86c] ss:$16 sps:$4 sm:$0xff]  }
 0x18a   :  { %v5987_v19 = vld [vmem:[%s8357_s1 + $0x668] ss:$16 sps:$4 sm:$0xff]   ;;  %v5995_v22 = vld [vmem:[%s8357_s1 + $0x64c] ss:$16 sps:$4 sm:$0xff]   ;;  %p6291_p3 = por %p6290_p2, %p6289_p1 }
 0x18b   :  { %v5990_v20 = vld [vmem:[%s8357_s1 + $0x868] ss:$16 sps:$4 sm:$0xff]   ;;  %v5998_v21 = vld [vmem:[%s8357_s1 + $0x84c] ss:$16 sps:$4 sm:$0xff]  }
 0x18c   :  { %4119 = vmatpush1.bf16.msra.mxu0 %v5975_v9  ;;  %4160 = vmatpush1.bf16.msra.mxu1 %v5978_v10  ;;  %v5993_v23 = vld [vmem:[%s8357_s1 + $0x648] ss:$16 sps:$4 sm:$0xff]   ;;  %v6001_v25 = vld [vmem:[%s8357_s1 + $0x62c] ss:$16 sps:$4 sm:$0xff]   ;;  %p6292_p4 = pnand %p6291_p3, %p6285_p0 }
 0x18d   :  { %4120 = vmatprep.subr.bf16.mxu0 %v5983_v57  ;;  %4161 = vmatprep.subr.bf16.mxu1 %v5986_v48  ;;  %v5996_v24 = vld [vmem:[%s8357_s1 + $0x848] ss:$16 sps:$4 sm:$0xff]   ;;  %v6004_v26 = vld [vmem:[%s8357_s1 + $0x82c] ss:$16 sps:$4 sm:$0xff]  }
 0x18e   :  { %v5999_v27 = vld [vmem:[%s8357_s1 + $0x628] ss:$16 sps:$4 sm:$0xff]   ;;  %v6007_v31 = vld [vmem:[%s8357_s1 + $0x60c] ss:$16 sps:$4 sm:$0xff]  }
 0x18f   :  { %v6002_v28 = vld [vmem:[%s8357_s1 + $0x828] ss:$16 sps:$4 sm:$0xff]   ;;  %v6010_v16 = vld [vmem:[%s8357_s1 + $0x80c] ss:$16 sps:$4 sm:$0xff]  }
 0x190   :  { %4121 = vmatpush1.bf16.msra.mxu0 %v5981_v12  ;;  %4162 = vmatpush1.bf16.msra.mxu1 %v5984_v13  ;;  %v6005_v54 = vld [vmem:[%s8357_s1 + $0x608] ss:$16 sps:$4 sm:$0xff]   ;;  %v6013_v58 = vld [vmem:[%s8357_s1 + $0x7ec] ss:$16 sps:$4 sm:$0xff]  }
 0x191   :  { %4122 = vmatprep.subr.bf16.mxu0 %v5989_v14  ;;  %4163 = vmatprep.subr.bf16.mxu1 %v5992_v15  ;;  %v6008_v35 = vld [vmem:[%s8357_s1 + $0x808] ss:$16 sps:$4 sm:$0xff]   ;;  %v6016_v59 = vld [vmem:[%s8357_s1 + $0x9ec] ss:$16 sps:$4 sm:$0xff]  }
 0x192   :  { %v6011_v38 = vld [vmem:[%s8357_s1 + $0x7e8] ss:$16 sps:$4 sm:$0xff]   ;;  %v6019_v40 = vld [vmem:[%s8357_s1 + $0x7cc] ss:$16 sps:$4 sm:$0xff]  }
 0x193   :  { %v6014_v49 = vld [vmem:[%s8357_s1 + $0x9e8] ss:$16 sps:$4 sm:$0xff]   ;;  %v6022_v3 = vld [vmem:[%s8357_s1 + $0x9cc] ss:$16 sps:$4 sm:$0xff]  }
 0x194   :  { %4123 = vmatpush1.bf16.msra.mxu0 %v5987_v19  ;;  %4164 = vmatpush1.bf16.msra.mxu1 %v5990_v20  ;;  %v6017_v53 = vld [vmem:[%s8357_s1 + $0x7c8] ss:$16 sps:$4 sm:$0xff]   ;;  %v6025_v42 = vld [vmem:[%s8357_s1 + $0x7ac] ss:$16 sps:$4 sm:$0xff]  }
 0x195   :  { %4124 = vmatprep.subr.bf16.mxu0 %v5995_v22  ;;  %4165 = vmatprep.subr.bf16.mxu1 %v5998_v21  ;;  %v6020_v41 = vld [vmem:[%s8357_s1 + $0x9c8] ss:$16 sps:$4 sm:$0xff]   ;;  %v6028_v45 = vld [vmem:[%s8357_s1 + $0x9ac] ss:$16 sps:$4 sm:$0xff]  }
 0x196   :  { %v6023_v46 = vld [vmem:[%s8357_s1 + $0x7a8] ss:$16 sps:$4 sm:$0xff]   ;;  %v6031_v50 = vld [vmem:[%s8357_s1 + $0x78c] ss:$16 sps:$4 sm:$0xff]  }
 0x197   :  { %v6026_v47 = vld [vmem:[%s8357_s1 + $0x9a8] ss:$16 sps:$4 sm:$0xff]   ;;  %v6034_v51 = vld [vmem:[%s8357_s1 + $0x98c] ss:$16 sps:$4 sm:$0xff]  }
 0x198   :  { %4125 = vmatpush1.bf16.msra.mxu0 %v5993_v23  ;;  %4166 = vmatpush1.bf16.msra.mxu1 %v5996_v24  ;;  %v6029_v55 = vld [vmem:[%s8357_s1 + $0x788] ss:$16 sps:$4 sm:$0xff]   ;;  %v6037_v60 = vld [vmem:[%s8357_s1 + $0x76c] ss:$16 sps:$4 sm:$0xff]  }
 0x199   :  { %4126 = vmatprep.subr.bf16.mxu0 %v6001_v25  ;;  %4167 = vmatprep.subr.bf16.mxu1 %v6004_v26  ;;  %v6032_v56 = vld [vmem:[%s8357_s1 + $0x988] ss:$16 sps:$4 sm:$0xff]   ;;  %v6040_v61 = vld [vmem:[%s8357_s1 + $0x96c] ss:$16 sps:$4 sm:$0xff]  }
 0x19a   :  { %v6035_v63 = vld [vmem:[%s8357_s1 + $0x768] ss:$16 sps:$4 sm:$0xff]   ;;  %v6043_v1 = vld [vmem:[%s8357_s1 + $0x74c] ss:$16 sps:$4 sm:$0xff]  }
 0x19b   :  { %v6038_v0 = vld [vmem:[%s8357_s1 + $0x968] ss:$16 sps:$4 sm:$0xff]   ;;  %v6046_v5 = vld [vmem:[%s8357_s1 + $0x94c] ss:$16 sps:$4 sm:$0xff]  }
 0x19c   :  { %4127 = vmatpush1.bf16.msra.mxu0 %v5999_v27  ;;  %4168 = vmatpush1.bf16.msra.mxu1 %v6002_v28  ;;  %v6041_v17 = vld [vmem:[%s8357_s1 + $0x748] ss:$16 sps:$4 sm:$0xff]   ;;  %v6049_v62 = vld [vmem:[%s8357_s1 + $0x72c] ss:$16 sps:$4 sm:$0xff]  }
 0x19d   :  { %4128 = vmatprep.subr.bf16.mxu0 %v6007_v31  ;;  %4169 = vmatprep.subr.bf16.mxu1 %v6010_v16  ;;  %v6044_v32 = vld [vmem:[%s8357_s1 + $0x948] ss:$16 sps:$4 sm:$0xff]   ;;  %v6052_v6 = vld [vmem:[%s8357_s1 + $0x92c] ss:$16 sps:$4 sm:$0xff]  }
 0x19e   :  { %v6047_v39 = vld [vmem:[%s8357_s1 + $0x728] ss:$16 sps:$4 sm:$0xff]   ;;  %v6055_v10 = vld [vmem:[%s8357_s1 + $0x70c] ss:$16 sps:$4 sm:$0xff]  }
 0x19f   :  { %v6050_v9 = vld [vmem:[%s8357_s1 + $0x928] ss:$16 sps:$4 sm:$0xff]   ;;  %v6058_v11 = vld [vmem:[%s8357_s1 + $0x90c] ss:$16 sps:$4 sm:$0xff]  }
 0x1a0   :  { %4129 = vmatpush1.bf16.msra.mxu0 %v6005_v54  ;;  %4170 = vmatpush1.bf16.msra.mxu1 %v6008_v35  ;;  %v6053_v36 = vld [vmem:[%s8357_s1 + $0x708] ss:$16 sps:$4 sm:$0xff]   ;;  %v6061_v48 = vld [vmem:[%s8357_s1 + $0xaec] ss:$16 sps:$4 sm:$0xff]  }
 0x1a1   :  { %4130 = vmatprep.subr.bf16.mxu0 %v6013_v58  ;;  %4171 = vmatprep.subr.bf16.mxu1 %v6016_v59  ;;  %v6056_v57 = vld [vmem:[%s8357_s1 + $0x908] ss:$16 sps:$4 sm:$0xff]   ;;  %v6064_v12 = vld [vmem:[%s8357_s1 + $0xcec] ss:$16 sps:$4 sm:$0xff]  }
 0x1a2   :  { %v6059_v13 = vld [vmem:[%s8357_s1 + $0xae8] ss:$16 sps:$4 sm:$0xff]   ;;  %v6067_v15 = vld [vmem:[%s8357_s1 + $0xacc] ss:$16 sps:$4 sm:$0xff]  }
 0x1a3   :  { %v6062_v14 = vld [vmem:[%s8357_s1 + $0xce8] ss:$16 sps:$4 sm:$0xff]   ;;  %v6070_v19 = vld [vmem:[%s8357_s1 + $0xccc] ss:$16 sps:$4 sm:$0xff]  }
 0x1a4   :  { %4131 = vmatpush2.bf16.msra.mxu0 %v6011_v38  ;;  %4172 = vmatpush2.bf16.msra.mxu1 %v6014_v49  ;;  %v6065_v23 = vld [vmem:[%s8357_s1 + $0xac8] ss:$16 sps:$4 sm:$0xff]   ;;  %v6085_v49 = vld [vmem:[%s8357_s1 + $0xa6c] ss:$16 sps:$4 sm:$0xff]  }
 0x1a5   :  { %4132 = vmatprep.subr.bf16.mxu0 %v6019_v40  ;;  %4173 = vmatprep.subr.bf16.mxu1 %v6022_v3  ;;  %v6068_v24 = vld [vmem:[%s8357_s1 + $0xcc8] ss:$16 sps:$4 sm:$0xff]   ;;  %v6088_v40 = vld [vmem:[%s8357_s1 + $0xc6c] ss:$16 sps:$4 sm:$0xff]  }
 0x1a6   :  { %v6071_v54 = vld [vmem:[%s8357_s1 + $0xaa8] ss:$16 sps:$4 sm:$0xff]  }
 0x1a7   :  { %v6074_v35 = vld [vmem:[%s8357_s1 + $0xca8] ss:$16 sps:$4 sm:$0xff]  }
 0x1a8   :  { %4133 = vmatpush2.bf16.msra.mxu0 %v6017_v53  ;;  %4174 = vmatpush2.bf16.msra.mxu1 %v6020_v41  ;;  %v6077_v59 = vld [vmem:[%s8357_s1 + $0xa88] ss:$16 sps:$4 sm:$0xff]   ;;  %v6091_v41 = vld [vmem:[%s8357_s1 + $0xa4c] ss:$16 sps:$4 sm:$0xff]  }
 0x1a9   :  { %4134 = vmatprep.subr.bf16.mxu0 %v6025_v42  ;;  %4175 = vmatprep.subr.bf16.mxu1 %v6028_v45  ;;  %v6080_v38 = vld [vmem:[%s8357_s1 + $0xc88] ss:$16 sps:$4 sm:$0xff]   ;;  %v6094_v42 = vld [vmem:[%s8357_s1 + $0xc4c] ss:$16 sps:$4 sm:$0xff]  }
 0x1aa   :  { %v6083_v3 = vld [vmem:[%s8357_s1 + $0xa68] ss:$16 sps:$4 sm:$0xff]  }
 0x1ab   :  { %v6086_v53 = vld [vmem:[%s8357_s1 + $0xc68] ss:$16 sps:$4 sm:$0xff]  }
 0x1ac   :  { %4135 = vmatpush2.bf16.msra.mxu0 %v6023_v46  ;;  %4176 = vmatpush2.bf16.msra.mxu1 %v6026_v47  ;;  %v6089_v45 = vld [vmem:[%s8357_s1 + $0xa48] ss:$16 sps:$4 sm:$0xff]   ;;  %v6097_v47 = vld [vmem:[%s8357_s1 + $0xa2c] ss:$16 sps:$4 sm:$0xff]  }
 0x1ad   :  { %4136 = vmatprep.subr.bf16.mxu0 %v6031_v50  ;;  %4177 = vmatprep.subr.bf16.mxu1 %v6034_v51  ;;  %v6092_v46 = vld [vmem:[%s8357_s1 + $0xc48] ss:$16 sps:$4 sm:$0xff]   ;;  %v6100_v50 = vld [vmem:[%s8357_s1 + $0xc2c] ss:$16 sps:$4 sm:$0xff]  }
 0x1ae   :  { %v6095_v51 = vld [vmem:[%s8357_s1 + $0xa28] ss:$16 sps:$4 sm:$0xff]  }
 0x1b0   :  { %4137 = vmatpush2.bf16.msra.mxu0 %v6029_v55  ;;  %4178 = vmatpush2.bf16.msra.mxu1 %v6032_v56  ;;  %v6098_v55 = vld [vmem:[%s8357_s1 + $0xc28] ss:$16 sps:$4 sm:$0xff]   ;;  %v6103_v56 = vld [vmem:[%s8357_s1 + $0xa0c] ss:$16 sps:$4 sm:$0xff]  }
 0x1b1   :  { %4138 = vmatprep.subr.bf16.mxu0 %v6037_v60  ;;  %4179 = vmatprep.subr.bf16.mxu1 %v6040_v61  ;;  %v6106_v60 = vld [vmem:[%s8357_s1 + $0xc0c] ss:$16 sps:$4 sm:$0xff]   ;;  %v6101_v61 = vld [vmem:[%s8357_s1 + $0xa08] ss:$16 sps:$4 sm:$0xff]  }
 0x1b4   :  { %4139 = vmatpush2.bf16.msra.mxu0 %v6035_v63  ;;  %4180 = vmatpush2.bf16.msra.mxu1 %v6038_v0  ;;  %v6104_v63 = vld [vmem:[%s8357_s1 + $0xc08] ss:$16 sps:$4 sm:$0xff]   ;;  %v6109_v0 = vld [vmem:[%s8357_s1 + $0xbec] ss:$16 sps:$4 sm:$0xff]  }
 0x1b5   :  { %4140 = vmatprep.subr.bf16.mxu0 %v6043_v1  ;;  %4181 = vmatprep.subr.bf16.mxu1 %v6046_v5  ;;  %v6112_v1 = vld [vmem:[%s8357_s1 + $0xdec] ss:$16 sps:$4 sm:$0xff]   ;;  %v6107_v5 = vld [vmem:[%s8357_s1 + $0xbe8] ss:$16 sps:$4 sm:$0xff]  }
 0x1b8   :  { %4141 = vmatpush2.bf16.msra.mxu0 %v6041_v17  ;;  %4182 = vmatpush2.bf16.msra.mxu1 %v6044_v32  ;;  %v6110_v17 = vld [vmem:[%s8357_s1 + $0xde8] ss:$16 sps:$4 sm:$0xff]   ;;  %v6115_v32 = vld [vmem:[%s8357_s1 + $0xbcc] ss:$16 sps:$4 sm:$0xff]  }
 0x1b9   :  { %4142 = vmatprep.subr.bf16.mxu0 %v6049_v62  ;;  %4183 = vmatprep.subr.bf16.mxu1 %v6052_v6  ;;  %v6118_v62 = vld [vmem:[%s8357_s1 + $0xdcc] ss:$16 sps:$4 sm:$0xff]   ;;  %v6113_v6 = vld [vmem:[%s8357_s1 + $0xbc8] ss:$16 sps:$4 sm:$0xff]  }
 0x1bc   :  { %4143 = vmatpush2.bf16.msra.mxu0 %v6047_v39  ;;  %4184 = vmatpush2.bf16.msra.mxu1 %v6050_v9  ;;  %v6116_v39 = vld [vmem:[%s8357_s1 + $0xdc8] ss:$16 sps:$4 sm:$0xff]   ;;  %v6121_v9 = vld [vmem:[%s8357_s1 + $0xbac] ss:$16 sps:$4 sm:$0xff]  }
 0x1bd   :  { %4144 = vmatprep.subr.bf16.mxu0 %v6055_v10  ;;  %4185 = vmatprep.subr.bf16.mxu1 %v6058_v11  ;;  %v6124_v10 = vld [vmem:[%s8357_s1 + $0xdac] ss:$16 sps:$4 sm:$0xff]   ;;  %v6119_v11 = vld [vmem:[%s8357_s1 + $0xba8] ss:$16 sps:$4 sm:$0xff]  }
 0x1c0   :  { %4145 = vmatpush2.bf16.msra.mxu0 %v6053_v36  ;;  %4186 = vmatpush2.bf16.msra.mxu1 %v6056_v57  ;;  %v6122_v36 = vld [vmem:[%s8357_s1 + $0xda8] ss:$16 sps:$4 sm:$0xff]   ;;  %v6127_v57 = vld [vmem:[%s8357_s1 + $0xb8c] ss:$16 sps:$4 sm:$0xff]  }
 0x1c1   :  { %4196 = vmatprep.subr.bf16.mxu0 %v6061_v48  ;;  %4237 = vmatprep.subr.bf16.mxu1 %v6064_v12  ;;  %v6130_v48 = vld [vmem:[%s8357_s1 + $0xd8c] ss:$16 sps:$4 sm:$0xff]   ;;  %v6125_v12 = vld [vmem:[%s8357_s1 + $0xb88] ss:$16 sps:$4 sm:$0xff]  }
 0x1c2   :  { %v3902_v20 = vpop.f32.mrf.mxu0 }
 0x1c3   :  { %v3943_v22 = vpop.f32.mrf.mxu1  ;;  %4147 = vmatmul.mubr.bf16.vlgmr.msra.gmra.mxu0 %v6775_v33  ;;  %4188 = vmatmul.mubr.bf16.vlgmr.msra.gmra.mxu1 %v7005_v2  ;;  %v3903_v21 = vadd.f32 %v3902_v20, %v7666_v34  ;;  %v6073_v33 = vld [vmem:[%s8357_s1 + $0xaac] ss:$16 sps:$4 sm:$0xff]   ;;  %v6134_v20 = vld [vmem:[%s8357_s1 + $0xd68] ss:$16 sps:$4 sm:$0xff]  }
 0x1c4   :  { %4197 = vmatpush1.bf16.msra.mxu0 %v6059_v13  ;;  %4238 = vmatpush1.bf16.msra.mxu1 %v6062_v14  ;;  %v3904_v25 = vpop.f32.mrf.mxu0  ;;  %v6076_v2 = vld [vmem:[%s8357_s1 + $0xcac] ss:$16 sps:$4 sm:$0xff]   ;;  %v6128_v13 = vld [vmem:[%s8357_s1 + $0xd88] ss:$16 sps:$4 sm:$0xff]  }
 0x1c5   :  { %v3945_v26 = vpop.f32.mrf.mxu1  ;;  %4198 = vmatprep.subr.bf16.mxu0 %v6067_v15  ;;  %4239 = vmatprep.subr.bf16.mxu1 %v6070_v19  ;;  %v7868_v34 = vadd.f32 %v3943_v22, %v3903_v21  ;;  %v3905_v27 = vadd.f32 %v3904_v25, %v7671_v44  ;;  %v6133_v14 = vld [vmem:[%s8357_s1 + $0xb6c] ss:$16 sps:$4 sm:$0xff]   ;;  %v6131_v19 = vld [vmem:[%s8357_s1 + $0xb68] ss:$16 sps:$4 sm:$0xff]  }
 0x1c6   :  { %4228 = vmatprep.mubr.bf16.mxu0 %v6822_v52  ;;  %4269 = vmatprep.mubr.bf16.mxu1 %v7023_v7  ;;  %v3906_v28 = vpop.f32.mrf.mxu0  ;;  %v6079_v52 = vld [vmem:[%s8357_s1 + $0xa8c] ss:$16 sps:$4 sm:$0xff]  }
 0x1c7   :  { %v3947_v31 = vpop.f32.mrf.mxu1  ;;  %v7873_v16 = vadd.f32 %v3945_v26, %v3905_v27  ;;  %v6082_v7 = vld [vmem:[%s8357_s1 + $0xc8c] ss:$16 sps:$4 sm:$0xff]  }
 0x1c8   :  { %4199 = vmatpush1.bf16.msra.mxu0 %v6065_v23  ;;  %4240 = vmatpush1.bf16.msra.mxu1 %v6068_v24  ;;  %v3907_v58 = vpop.f32.mrf.mxu0  ;;  %v6136_v15 = vld [vmem:[%s8357_s1 + $0xd6c] ss:$16 sps:$4 sm:$0xff]   ;;  %v6137_v23 = vld [vmem:[%s8357_s1 + $0xb48] ss:$16 sps:$4 sm:$0xff]  }
 0x1c9   :  { %v3948_v44 = vpop.f32.mrf.mxu1  ;;  %4200 = vmatprep.subr.bf16.mxu0 %v6073_v33  ;;  %4241 = vmatprep.subr.bf16.mxu1 %v6076_v2  ;;  %v6139_v22 = vld [vmem:[%s8357_s1 + $0xb4c] ss:$16 sps:$4 sm:$0xff]   ;;  %v6140_v24 = vld [vmem:[%s8357_s1 + $0xd48] ss:$16 sps:$4 sm:$0xff]  }
 0x1ca   :  { %v6142_v21 = vld [vmem:[%s8357_s1 + $0xd4c] ss:$16 sps:$4 sm:$0xff]   ;;  %v6143_v33 = vld [vmem:[%s8357_s1 + $0xb28] ss:$16 sps:$4 sm:$0xff]  }
 0x1cb   :  { %v6145_v25 = vld [vmem:[%s8357_s1 + $0xb2c] ss:$16 sps:$4 sm:$0xff]   ;;  %v6146_v2 = vld [vmem:[%s8357_s1 + $0xd28] ss:$16 sps:$4 sm:$0xff]  }
 0x1cc   :  { %4201 = vmatpush1.bf16.msra.mxu0 %v6071_v54  ;;  %4242 = vmatpush1.bf16.msra.mxu1 %v6074_v35  ;;  %v6148_v26 = vld [vmem:[%s8357_s1 + $0xd2c] ss:$16 sps:$4 sm:$0xff]   ;;  %v6149_v31 = vld [vmem:[%s8357_s1 + $0xb08] ss:$16 sps:$4 sm:$0xff]  }
 0x1cd   :  { %4202 = vmatprep.subr.bf16.mxu0 %v6079_v52  ;;  %4243 = vmatprep.subr.bf16.mxu1 %v6082_v7  ;;  %v6151_v27 = vld [vmem:[%s8357_s1 + $0xb0c] ss:$16 sps:$4 sm:$0xff]   ;;  %v6152_v54 = vld [vmem:[%s8357_s1 + $0xd08] ss:$16 sps:$4 sm:$0xff]  }
 0x1ce   :  { %v6154_v28 = vld [vmem:[%s8357_s1 + $0xd0c] ss:$16 sps:$4 sm:$0xff]   ;;  %v6155_v44 = vld [vmem:[%s8357_s1 + $0xee8] ss:$16 sps:$4 sm:$0xff]  }
 0x1cf   :  { %v6157_v35 = vld [vmem:[%s8357_s1 + $0xeec] ss:$16 sps:$4 sm:$0xff]   ;;  %v6158_v52 = vld [vmem:[%s8357_s1 + $0x10e8] ss:$16 sps:$4 sm:$0xff]  }
 0x1d0   :  { %4203 = vmatpush1.bf16.msra.mxu0 %v6077_v59  ;;  %4244 = vmatpush1.bf16.msra.mxu1 %v6080_v38  ;;  %v6160_v58 = vld [vmem:[%s8357_s1 + $0x10ec] ss:$16 sps:$4 sm:$0xff]  }
 0x1d1   :  { %4204 = vmatprep.subr.bf16.mxu0 %v6085_v49  ;;  %4245 = vmatprep.subr.bf16.mxu1 %v6088_v40  ;;  %v6163_v7 = vld [vmem:[%s8357_s1 + $0xecc] ss:$16 sps:$4 sm:$0xff]  }
 0x1d2   :  { %v6166_v59 = vld [vmem:[%s8357_s1 + $0x10cc] ss:$16 sps:$4 sm:$0xff]  }
 0x1d4   :  { %4205 = vmatpush1.bf16.msra.mxu0 %v6083_v3  ;;  %4246 = vmatpush1.bf16.msra.mxu1 %v6086_v53  ;;  %v6161_v3 = vld [vmem:[%s8357_s1 + $0xec8] ss:$16 sps:$4 sm:$0xff]  }
 0x1d5   :  { %4206 = vmatprep.subr.bf16.mxu0 %v6091_v41  ;;  %4247 = vmatprep.subr.bf16.mxu1 %v6094_v42  ;;  %v6164_v53 = vld [vmem:[%s8357_s1 + $0x10c8] ss:$16 sps:$4 sm:$0xff]  }
 0x1d8   :  { %4207 = vmatpush1.bf16.msra.mxu0 %v6089_v45  ;;  %4248 = vmatpush1.bf16.msra.mxu1 %v6092_v46  ;;  %v6167_v46 = vld [vmem:[%s8357_s1 + $0xea8] ss:$16 sps:$4 sm:$0xff]  }
 0x1d9   :  { %4208 = vmatprep.subr.bf16.mxu0 %v6097_v47  ;;  %4249 = vmatprep.subr.bf16.mxu1 %v6100_v50  ;;  %v6170_v47 = vld [vmem:[%s8357_s1 + $0x10a8] ss:$16 sps:$4 sm:$0xff]  }
 0x1dc   :  { %4209 = vmatpush1.bf16.msra.mxu0 %v6095_v51  ;;  %4250 = vmatpush1.bf16.msra.mxu1 %v6098_v55  ;;  %v6173_v55 = vld [vmem:[%s8357_s1 + $0xe88] ss:$16 sps:$4 sm:$0xff]  }
 0x1dd   :  { %4210 = vmatprep.subr.bf16.mxu0 %v6103_v56  ;;  %4251 = vmatprep.subr.bf16.mxu1 %v6106_v60  ;;  %v6176_v56 = vld [vmem:[%s8357_s1 + $0x1088] ss:$16 sps:$4 sm:$0xff]   ;;  %v6181_v60 = vld [vmem:[%s8357_s1 + $0xe6c] ss:$16 sps:$4 sm:$0xff]  }
 0x1e0   :  { %4211 = vmatpush1.bf16.msra.mxu0 %v6101_v61  ;;  %4252 = vmatpush1.bf16.msra.mxu1 %v6104_v63  ;;  %v6184_v61 = vld [vmem:[%s8357_s1 + $0x106c] ss:$16 sps:$4 sm:$0xff]   ;;  %v6179_v63 = vld [vmem:[%s8357_s1 + $0xe68] ss:$16 sps:$4 sm:$0xff]  }
 0x1e1   :  { %4212 = vmatprep.subr.bf16.mxu0 %v6109_v0  ;;  %4253 = vmatprep.subr.bf16.mxu1 %v6112_v1  ;;  %v6182_v0 = vld [vmem:[%s8357_s1 + $0x1068] ss:$16 sps:$4 sm:$0xff]   ;;  %v6187_v1 = vld [vmem:[%s8357_s1 + $0xe4c] ss:$16 sps:$4 sm:$0xff]  }
 0x1e4   :  { %4213 = vmatpush2.bf16.msra.mxu0 %v6107_v5  ;;  %4254 = vmatpush2.bf16.msra.mxu1 %v6110_v17  ;;  %v6190_v5 = vld [vmem:[%s8357_s1 + $0x104c] ss:$16 sps:$4 sm:$0xff]   ;;  %v6185_v17 = vld [vmem:[%s8357_s1 + $0xe48] ss:$16 sps:$4 sm:$0xff]  }
 0x1e5   :  { %4214 = vmatprep.subr.bf16.mxu0 %v6115_v32  ;;  %4255 = vmatprep.subr.bf16.mxu1 %v6118_v62  ;;  %v6188_v32 = vld [vmem:[%s8357_s1 + $0x1048] ss:$16 sps:$4 sm:$0xff]   ;;  %v6193_v62 = vld [vmem:[%s8357_s1 + $0xe2c] ss:$16 sps:$4 sm:$0xff]  }
 0x1e8   :  { %4215 = vmatpush2.bf16.msra.mxu0 %v6113_v6  ;;  %4256 = vmatpush2.bf16.msra.mxu1 %v6116_v39  ;;  %v6196_v6 = vld [vmem:[%s8357_s1 + $0x102c] ss:$16 sps:$4 sm:$0xff]   ;;  %v6191_v39 = vld [vmem:[%s8357_s1 + $0xe28] ss:$16 sps:$4 sm:$0xff]  }
 0x1e9   :  { %4216 = vmatprep.subr.bf16.mxu0 %v6121_v9  ;;  %4257 = vmatprep.subr.bf16.mxu1 %v6124_v10  ;;  %v6194_v9 = vld [vmem:[%s8357_s1 + $0x1028] ss:$16 sps:$4 sm:$0xff]   ;;  %v6199_v10 = vld [vmem:[%s8357_s1 + $0xe0c] ss:$16 sps:$4 sm:$0xff]  }
 0x1ec   :  { %4217 = vmatpush2.bf16.msra.mxu0 %v6119_v11  ;;  %4258 = vmatpush2.bf16.msra.mxu1 %v6122_v36  ;;  %v6202_v11 = vld [vmem:[%s8357_s1 + $0x100c] ss:$16 sps:$4 sm:$0xff]   ;;  %v6197_v36 = vld [vmem:[%s8357_s1 + $0xe08] ss:$16 sps:$4 sm:$0xff]  }
 0x1ed   :  { %4218 = vmatprep.subr.bf16.mxu0 %v6127_v57  ;;  %4259 = vmatprep.subr.bf16.mxu1 %v6130_v48  ;;  %v6200_v57 = vld [vmem:[%s8357_s1 + $0x1008] ss:$16 sps:$4 sm:$0xff]   ;;  %v6205_v48 = vld [vmem:[%s8357_s1 + $0xfec] ss:$16 sps:$4 sm:$0xff]  }
 0x1f0   :  { %4219 = vmatpush2.bf16.msra.mxu0 %v6125_v12  ;;  %4260 = vmatpush2.bf16.msra.mxu1 %v6128_v13  ;;  %v6208_v12 = vld [vmem:[%s8357_s1 + $0x11ec] ss:$16 sps:$4 sm:$0xff]   ;;  %v6203_v13 = vld [vmem:[%s8357_s1 + $0xfe8] ss:$16 sps:$4 sm:$0xff]  }
 0x1f1   :  { %4220 = vmatprep.subr.bf16.mxu0 %v6133_v14  ;;  %4261 = vmatprep.subr.bf16.mxu1 %v6136_v15  ;;  %v6206_v14 = vld [vmem:[%s8357_s1 + $0x11e8] ss:$16 sps:$4 sm:$0xff]   ;;  %v6211_v15 = vld [vmem:[%s8357_s1 + $0xfcc] ss:$16 sps:$4 sm:$0xff]  }
 0x1f4   :  { %4221 = vmatpush2.bf16.msra.mxu0 %v6131_v19  ;;  %4262 = vmatpush2.bf16.msra.mxu1 %v6134_v20  ;;  %v6214_v19 = vld [vmem:[%s8357_s1 + $0x11cc] ss:$16 sps:$4 sm:$0xff]   ;;  %v6209_v20 = vld [vmem:[%s8357_s1 + $0xfc8] ss:$16 sps:$4 sm:$0xff]  }
 0x1f5   :  { %4222 = vmatprep.subr.bf16.mxu0 %v6139_v22  ;;  %4263 = vmatprep.subr.bf16.mxu1 %v6142_v21  ;;  %v6212_v22 = vld [vmem:[%s8357_s1 + $0x11c8] ss:$16 sps:$4 sm:$0xff]   ;;  %v6217_v21 = vld [vmem:[%s8357_s1 + $0xfac] ss:$16 sps:$4 sm:$0xff]  }
 0x1f8   :  { %4223 = vmatpush2.bf16.msra.mxu0 %v6137_v23  ;;  %4264 = vmatpush2.bf16.msra.mxu1 %v6140_v24  ;;  %v6220_v23 = vld [vmem:[%s8357_s1 + $0x11ac] ss:$16 sps:$4 sm:$0xff]   ;;  %v6215_v24 = vld [vmem:[%s8357_s1 + $0xfa8] ss:$16 sps:$4 sm:$0xff]  }
 0x1f9   :  { %4224 = vmatprep.subr.bf16.mxu0 %v6145_v25  ;;  %4265 = vmatprep.subr.bf16.mxu1 %v6148_v26  ;;  %v6218_v25 = vld [vmem:[%s8357_s1 + $0x11a8] ss:$16 sps:$4 sm:$0xff]   ;;  %v6223_v26 = vld [vmem:[%s8357_s1 + $0xf8c] ss:$16 sps:$4 sm:$0xff]  }
 0x1fc   :  { %4225 = vmatpush2.bf16.msra.mxu0 %v6143_v33  ;;  %4266 = vmatpush2.bf16.msra.mxu1 %v6146_v2  ;;  %v6226_v33 = vld [vmem:[%s8357_s1 + $0x118c] ss:$16 sps:$4 sm:$0xff]   ;;  %v6221_v2 = vld [vmem:[%s8357_s1 + $0xf88] ss:$16 sps:$4 sm:$0xff]  }
 0x1fd   :  { %4226 = vmatprep.subr.bf16.mxu0 %v6151_v27  ;;  %4267 = vmatprep.subr.bf16.mxu1 %v6154_v28  ;;  %v6224_v27 = vld [vmem:[%s8357_s1 + $0x1188] ss:$16 sps:$4 sm:$0xff]   ;;  %v6229_v28 = vld [vmem:[%s8357_s1 + $0xf6c] ss:$16 sps:$4 sm:$0xff]  }
 0x200   :  { %4227 = vmatpush2.bf16.msra.mxu0 %v6149_v31  ;;  %4268 = vmatpush2.bf16.msra.mxu1 %v6152_v54  ;;  %v6232_v31 = vld [vmem:[%s8357_s1 + $0x116c] ss:$16 sps:$4 sm:$0xff]   ;;  %v6227_v54 = vld [vmem:[%s8357_s1 + $0xf68] ss:$16 sps:$4 sm:$0xff]  }
 0x201   :  { %4278 = vmatprep.subr.bf16.mxu0 %v6157_v35  ;;  %4319 = vmatprep.subr.bf16.mxu1 %v6160_v58  ;;  %v6230_v35 = vld [vmem:[%s8357_s1 + $0x1168] ss:$16 sps:$4 sm:$0xff]   ;;  %v6235_v58 = vld [vmem:[%s8357_s1 + $0xf4c] ss:$16 sps:$4 sm:$0xff]  }
 0x202   :  { %v3984_v38 = vpop.f32.mrf.mxu0 }
 0x203   :  { %v8055_v49 = vpop.f32.mrf.mxu1  ;;  %4229 = vmatmul.mubr.bf16.vlgmr.msra.gmra.mxu0 %v7009_v4  ;;  %4270 = vmatmul.mubr.bf16.vlgmr.msra.gmra.mxu1 %v7225_v29  ;;  %v8060_v40 = vadd.f32 %v3984_v38, %v7868_v34  ;;  %v6169_v4 = vld [vmem:[%s8357_s1 + $0xeac] ss:$16 sps:$4 sm:$0xff]  }
 0x204   :  { %4279 = vmatpush1.bf16.msra.mxu0 %v6155_v44  ;;  %4320 = vmatpush1.bf16.msra.mxu1 %v6158_v52  ;;  %v8068_v41 = vpop.f32.mrf.mxu0  ;;  %v6172_v29 = vld [vmem:[%s8357_s1 + $0x10ac] ss:$16 sps:$4 sm:$0xff]   ;;  %v6233_v52 = vld [vmem:[%s8357_s1 + $0xf48] ss:$16 sps:$4 sm:$0xff]  }
 0x205   :  { %v8070_v42 = vpop.f32.mrf.mxu1  ;;  %4280 = vmatprep.subr.bf16.mxu0 %v6163_v7  ;;  %4321 = vmatprep.subr.bf16.mxu1 %v6166_v59  ;;  %v6238_v44 = vld [vmem:[%s8357_s1 + $0x114c] ss:$16 sps:$4 sm:$0xff]   ;;  %v6236_v7 = vld [vmem:[%s8357_s1 + $0x1148] ss:$16 sps:$4 sm:$0xff]  }
 0x206   :  { %4310 = vmatprep.mubr.bf16.mxu0 %v7025_v8  ;;  %4351 = vmatprep.mubr.bf16.mxu1 %v7243_v37  ;;  %v3988_v34 = vpop.f32.mrf.mxu0  ;;  %v6175_v8 = vld [vmem:[%s8357_s1 + $0xe8c] ss:$16 sps:$4 sm:$0xff]  }
 0x207   :  { %v4029_v45 = vpop.f32.mrf.mxu1  ;;  %v6178_v37 = vld [vmem:[%s8357_s1 + $0x108c] ss:$16 sps:$4 sm:$0xff]   ;;  %v732_v34 = vsub.s32 2, %v6455_v43 }
 0x208   :  { %4281 = vmatpush1.bf16.msra.mxu0 %v6161_v3  ;;  %4322 = vmatpush1.bf16.msra.mxu1 %v6164_v53  ;;  %v3989_v50 = vpop.f32.mrf.mxu0  ;;  %v6241_v59 = vld [vmem:[%s8357_s1 + $0xf2c] ss:$16 sps:$4 sm:$0xff]   ;;  %v6239_v3 = vld [vmem:[%s8357_s1 + $0xf28] ss:$16 sps:$4 sm:$0xff]   ;;  %v3987_v45 = vadd.f32 %v8068_v41, %v7873_v16 }
 0x209   :  { %v4030_v51 = vpop.f32.mrf.mxu1  ;;  %4282 = vmatprep.subr.bf16.mxu0 %v6169_v4  ;;  %4323 = vmatprep.subr.bf16.mxu1 %v6172_v29  ;;  %v6244_v38 = vld [vmem:[%s8357_s1 + $0x112c] ss:$16 sps:$4 sm:$0xff]   ;;  %v6242_v53 = vld [vmem:[%s8357_s1 + $0x1128] ss:$16 sps:$4 sm:$0xff]  }
 0x20a   :  { %v6247_v4 = vld [vmem:[%s8357_s1 + $0xf0c] ss:$16 sps:$4 sm:$0xff]   ;;  %v6248_v50 = vld [vmem:[%s8357_s1 + $0x1108] ss:$16 sps:$4 sm:$0xff]   ;;  %v4361_v41 = vmax.f32 %v3987_v45, 0.0 }
 0x20b   :  { %v6250_v29 = vld [vmem:[%s8357_s1 + $0x110c] ss:$16 sps:$4 sm:$0xff]  }
 0x20c   :  { %4283 = vmatpush1.bf16.msra.mxu0 %v6167_v46  ;;  %4324 = vmatpush1.bf16.msra.mxu1 %v6170_v47  ;;  %v736_v46 = vsub.s32 3, %v6455_v43  ;;  %v6245_v47 = vld [vmem:[%s8357_s1 + $0xf08] ss:$16 sps:$4 sm:$0xff]   ;;  %v6283_v43 = vld [vmem:[%s8358_s2] sm:$0xf] }
 0x20d   :  { %4284 = vmatprep.subr.bf16.mxu0 %v6175_v8  ;;  %4325 = vmatprep.subr.bf16.mxu1 %v6178_v37  ;;  %v6251_v51 = vld [vmem:[%s8359_s3 + $0x78] sm:$0xff]   ;;  %v733_v16 = vrot.slane %v6283_v43, %v732_v34 }
 0x20e   :  { %v737_v8 = vrot.slane %v6283_v43, %v736_v46  ;;  %v6252_v37 = vld [vmem:[%s8359_s3 + $0x38] sm:$0xff]  }
 0x210   :  { %4285 = vmatpush1.bf16.msra.mxu0 %v6173_v55  ;;  %4326 = vmatpush1.bf16.msra.mxu1 %v6176_v56  ;;  %v6253_v55 = vld [vmem:[%s8359_s3 + $0x70] sm:$0xff]   ;;  %v4026_v56 = vadd.f32 %v8055_v49, %v733_v16  ;;  %v6255_v49 = vld [vmem:[%s8359_s3 + $0x68] sm:$0xff]  }
 0x211   :  { %4286 = vmatprep.subr.bf16.mxu0 %v6181_v60  ;;  %4327 = vmatprep.subr.bf16.mxu1 %v6184_v61  ;;  %v4365_v60 = vpack.c.bf16 %v4361_v41, %v4361_v41 }
 0x214   :  { %4287 = vmatpush1.bf16.msra.mxu0 %v6179_v63  ;;  %4328 = vmatpush1.bf16.msra.mxu1 %v6182_v0  ;;  %v4028_v0 = vadd.f32 %v8070_v42, %v737_v8  ;;  %v6256_v42 = vld [vmem:[%s8359_s3 + $0x28] sm:$0xff]  }
 0x215   :  { %4288 = vmatprep.subr.bf16.mxu0 %v6187_v1  ;;  %4329 = vmatprep.subr.bf16.mxu1 %v6190_v5  ;;  %v6254_v5 = vld [vmem:[%s8359_s3 + $0x30] sm:$0xff]  }
 0x218   :  { %4289 = vmatpush1.bf16.msra.mxu0 %v6185_v17  ;;  %4330 = vmatpush1.bf16.msra.mxu1 %v6188_v32 }
 0x219   :  { %4290 = vmatprep.subr.bf16.mxu0 %v6193_v62  ;;  %4331 = vmatprep.subr.bf16.mxu1 %v6196_v6 }
 0x21c   :  { %4291 = vmatpush1.bf16.msra.mxu0 %v6191_v39  ;;  %4332 = vmatpush1.bf16.msra.mxu1 %v6194_v9  ;;  %v6257_v9 = vld [vmem:[%s8359_s3 + $0x60] sm:$0xff]  }
 0x21d   :  { %4292 = vmatprep.subr.bf16.mxu0 %v6199_v10  ;;  %4333 = vmatprep.subr.bf16.mxu1 %v6202_v11 }
 0x220   :  { %4293 = vmatpush1.bf16.msra.mxu0 %v6197_v36  ;;  %4334 = vmatpush1.bf16.msra.mxu1 %v6200_v57  ;;  %v6267_v36 = vld [vmem:[%s8359_s3 + $0xf8] sm:$0xff]  }
 0x221   :  { %4294 = vmatprep.subr.bf16.mxu0 %v6205_v48  ;;  %4335 = vmatprep.subr.bf16.mxu1 %v6208_v12  ;;  %v6268_v57 = vld [vmem:[%s8359_s3 + $0xb8] sm:$0xff]   ;;  %v6269_v48 = vld [vmem:[%s8359_s3 + $0xf0] sm:$0xff]   ;;  %v6258_v12 = vld [vmem:[%s8359_s3 + $0x20] sm:$0xff]  }
 0x224   :  { %4295 = vmatpush2.bf16.msra.mxu0 %v6203_v13  ;;  %4336 = vmatpush2.bf16.msra.mxu1 %v6206_v14  ;;  %v6270_v13 = vld [vmem:[%s8359_s3 + $0xb0] sm:$0xff]   ;;  %v6259_v14 = vld [vmem:[%s8359_s3 + $0x58] sm:$0xff]  }
 0x225   :  { %4296 = vmatprep.subr.bf16.mxu0 %v6211_v15  ;;  %4337 = vmatprep.subr.bf16.mxu1 %v6214_v19  ;;  %v6271_v15 = vld [vmem:[%s8359_s3 + $0xe8] sm:$0xff]   ;;  %v6260_v19 = vld [vmem:[%s8359_s3 + $0x18] sm:$0xff]  }
 0x228   :  { %4297 = vmatpush2.bf16.msra.mxu0 %v6209_v20  ;;  %4338 = vmatpush2.bf16.msra.mxu1 %v6212_v22  ;;  %v6272_v20 = vld [vmem:[%s8359_s3 + $0xa8] sm:$0xff]   ;;  %v6261_v22 = vld [vmem:[%s8359_s3 + $0x50] sm:$0xff]  }
 0x229   :  { %4298 = vmatprep.subr.bf16.mxu0 %v6217_v21  ;;  %4339 = vmatprep.subr.bf16.mxu1 %v6220_v23  ;;  %v6273_v21 = vld [vmem:[%s8359_s3 + $0xe0] sm:$0xff]   ;;  %v6262_v23 = vld [vmem:[%s8359_s3 + $0x10] sm:$0xff]  }
 0x22c   :  { %4299 = vmatpush2.bf16.msra.mxu0 %v6215_v24  ;;  %4340 = vmatpush2.bf16.msra.mxu1 %v6218_v25  ;;  %v6274_v24 = vld [vmem:[%s8359_s3 + $0xa0] sm:$0xff]   ;;  %v6263_v25 = vld [vmem:[%s8359_s3 + $0x48] sm:$0xff]  }
 0x22d   :  { %4300 = vmatprep.subr.bf16.mxu0 %v6223_v26  ;;  %4341 = vmatprep.subr.bf16.mxu1 %v6226_v33  ;;  %v6275_v26 = vld [vmem:[%s8359_s3 + $0xd8] sm:$0xff]   ;;  %v6264_v33 = vld [vmem:[%s8359_s3 + $0x8] sm:$0xff]  }
 0x230   :  { %4301 = vmatpush2.bf16.msra.mxu0 %v6221_v2  ;;  %4342 = vmatpush2.bf16.msra.mxu1 %v6224_v27  ;;  %v6276_v2 = vld [vmem:[%s8359_s3 + $0x98] sm:$0xff]   ;;  %v6265_v27 = vld [vmem:[%s8359_s3 + $0x40] sm:$0xff]  }
 0x231   :  { %4302 = vmatprep.subr.bf16.mxu0 %v6229_v28  ;;  %4343 = vmatprep.subr.bf16.mxu1 %v6232_v31  ;;  %v6266_v28 = vld [vmem:[%s8359_s3] sm:$0xff]   ;;  %v4360_v31 = vmax.f32 %v8060_v40, 0.0  ;;  %v6279_v40 = vld [vmem:[%s8359_s3 + $0xc8] sm:$0xff]  }
 0x234   :  { %4303 = vmatpush2.bf16.msra.mxu0 %v6227_v54  ;;  %4344 = vmatpush2.bf16.msra.mxu1 %v6230_v35  ;;  %v4364_v54 = vpack.c.bf16 %v4360_v31, %v4360_v31  ;;  %v6277_v35 = vld [vmem:[%s8359_s3 + $0xd0] sm:$0xff]  }
 0x235   :  { %4304 = vmatprep.subr.bf16.mxu0 %v6235_v58  ;;  %4345 = vmatprep.subr.bf16.mxu1 %v6238_v44  ;;  %v6278_v58 = vld [vmem:[%s8359_s3 + $0x90] sm:$0xff]  }
 0x238   :  { %4305 = vmatpush2.bf16.msra.mxu0 %v6233_v52  ;;  %4346 = vmatpush2.bf16.msra.mxu1 %v6236_v7 }
 0x239   :  { %4306 = vmatprep.subr.bf16.mxu0 %v6241_v59  ;;  %4347 = vmatprep.subr.bf16.mxu1 %v6244_v38 }
 0x23c   :  { %4307 = vmatpush2.bf16.msra.mxu0 %v6239_v3  ;;  %4348 = vmatpush2.bf16.msra.mxu1 %v6242_v53 }
 0x23d   :  { %4308 = vmatprep.subr.bf16.mxu0 %v6247_v4  ;;  %4349 = vmatprep.subr.bf16.mxu1 %v6250_v29  ;;  %v6280_v4 = vld [vmem:[%s8359_s3 + $0x88] sm:$0xff]  }
 0x240   :  { %4309 = vmatpush2.bf16.msra.mxu0 %v6245_v47  ;;  %4350 = vmatpush2.bf16.msra.mxu1 %v6248_v50  ;;  %v6281_v50 = vld [vmem:[%s8359_s3 + $0xc0] sm:$0xff]  }
 0x241   :  { %5337 = vmatprep.subr.bf16.mxu0 %v6251_v51  ;;  %5359 = vmatprep.subr.bf16.mxu1 %v6267_v36  ;;  %v6282_v51 = vld [vmem:[%s8359_s3 + $0x80] sm:$0xff]  }
 0x242   :  { %v4066_v61 = vpop.f32.mrf.mxu0 }
 0x243   :  { %v4107_v63 = vpop.f32.mrf.mxu1  ;;  %4311 = vmatmul.mubr.bf16.vlgmr.msra.gmra.mxu0 %v7229_v30  ;;  %4352 = vmatmul.mubr.bf16.vlgmr.msra.gmra.mxu1 %v7441_v18  ;;  %v4067_v1 = vadd.f32 %v4066_v61, %v4026_v56 }
 0x244   :  { %5338 = vmatpush3.bf16.msra.mxu0 %v6252_v37  ;;  %4663 = vmatprep.mubr.bf16.mxu0 %v4365_v60  ;;  %v4068_v17 = vpop.f32.mrf.mxu0 }
 0x245   :  { %v4109_v32 = vpop.f32.mrf.mxu1  ;;  %5339 = vmatprep.subr.bf16.mxu0 %v6253_v55  ;;  %v4108_v62 = vadd.f32 %v4107_v63, %v4067_v1  ;;  %v4069_v30 = vadd.f32 %v4068_v17, %v4028_v0  ;;  %5360 = vmatpush3.bf16.msra.mxu1 %v6268_v57 }
 0x246   :  { %v4070_v6 = vpop.f32.mrf.mxu0  ;;  %5361 = vmatprep.subr.bf16.mxu1 %v6269_v48 }
 0x247   :  { %v4111_v18 = vpop.f32.mrf.mxu1  ;;  %v4110_v39 = vadd.f32 %v4109_v32, %v4069_v30 }
 0x248   :  { %5340 = vmatpush3.bf16.msra.mxu0 %v6254_v5  ;;  %v4071_v10 = vpop.f32.mrf.mxu0 }
 0x249   :  { %v4112_v11 = vpop.f32.mrf.mxu1  ;;  %5341 = vmatprep.subr.bf16.mxu0 %v6255_v49  ;;  %5362 = vmatpush3.bf16.msra.mxu1 %v6270_v13 }
 0x24a   :  { %5363 = vmatprep.subr.bf16.mxu1 %v6271_v15 }
 0x24c   :  { %5342 = vmatpush3.bf16.msra.mxu0 %v6256_v42 }
 0x24d   :  { %5343 = vmatprep.subr.bf16.mxu0 %v6257_v9  ;;  %5364 = vmatpush3.bf16.msra.mxu1 %v6272_v20  ;;  %v5304_v20 = vld [vmem:[%s8360_s4] ss:$0 sm:$0xff] }
 0x24e   :  { %5365 = vmatprep.subr.bf16.mxu1 %v6273_v21 }
 0x250   :  { %5344 = vmatpush3.bf16.msra.mxu0 %v6258_v12 }
 0x251   :  { %5345 = vmatprep.subr.bf16.mxu0 %v6259_v14  ;;  %5366 = vmatpush3.bf16.msra.mxu1 %v6274_v24 }
 0x252   :  { %5367 = vmatprep.subr.bf16.mxu1 %v6275_v26 }
 0x254   :  { %5346 = vmatpush3.bf16.msra.mxu0 %v6260_v19 }
 0x255   :  { %5347 = vmatprep.subr.bf16.mxu0 %v6261_v22  ;;  %5368 = vmatpush3.bf16.msra.mxu1 %v6276_v2 }
 0x256   :  { %5369 = vmatprep.subr.bf16.mxu1 %v6277_v35 }
 0x258   :  { %5348 = vmatpush3.bf16.msra.mxu0 %v6262_v23 }
 0x259   :  { %5349 = vmatprep.subr.bf16.mxu0 %v6263_v25  ;;  %5370 = vmatpush3.bf16.msra.mxu1 %v6278_v58 }
 0x25a   :  { %5371 = vmatprep.subr.bf16.mxu1 %v6279_v40 }
 0x25c   :  { %5350 = vmatpush3.bf16.msra.mxu0 %v6264_v33 }
 0x25d   :  { %5351 = vmatprep.subr.bf16.mxu0 %v6265_v27  ;;  %5372 = vmatpush3.bf16.msra.mxu1 %v6280_v4 }
 0x25e   :  { %5373 = vmatprep.subr.bf16.mxu1 %v6281_v50 }
 0x260   :  { %5352 = vmatpush3.bf16.msra.mxu0 %v6266_v28 }
 0x261   :  { %5374 = vmatpush3.bf16.msra.mxu1 %v6282_v51 }
 0x263   :  { %4664 = vmatmul.mubr.bf16.vlgmr.msra.gmra.mxu0 %v4364_v54 }
 0x283   :  { %v4148_v44 = vpop.f32.mrf.mxu0  ;;  %v4189_v52 = vpop.f32.mrf.mxu1 }
 0x284   :  { %v4149_v7 = vadd.f32 %v4148_v44, %v4108_v62 }
 0x285   :  { %v4150_v59 = vpop.f32.mrf.mxu0  ;;  %v4191_v38 = vpop.f32.mrf.mxu1 }
 0x286   :  { %v4190_v3 = vadd.f32 %v4189_v52, %v4149_v7  ;;  %v4151_v53 = vadd.f32 %v4150_v59, %v4110_v39 }
 0x287   :  { %v4152_v29 = vpop.f32.mrf.mxu0  ;;  %v4193_v34 = vpop.f32.mrf.mxu1 }
 0x288   :  { %v4192_v45 = vadd.f32 %v4191_v38, %v4151_v53 }
 0x289   :  { %v4153_v46 = vpop.f32.mrf.mxu0  ;;  %v4194_v47 = vpop.f32.mrf.mxu1 }
 0x2c3   :  { %v4230_v43 = vpop.f32.mrf.mxu0  ;;  %v4271_v16 = vpop.f32.mrf.mxu1 }
 0x2c4   :  { %v4231_v41 = vadd.f32 %v4230_v43, %v4190_v3 }
 0x2c5   :  { %v4232_v8 = vpop.f32.mrf.mxu0  ;;  %v4273_v37 = vpop.f32.mrf.mxu1 }
 0x2c6   :  { %v4272_v55 = vadd.f32 %v4271_v16, %v4231_v41  ;;  %v4233_v0 = vadd.f32 %v4232_v8, %v4192_v45 }
 0x2c7   :  { %v4234_v56 = vpop.f32.mrf.mxu0  ;;  %v4275_v60 = vpop.f32.mrf.mxu1 }
 0x2c8   :  { %v4274_v17 = vadd.f32 %v4273_v37, %v4233_v0 }
 0x2c9   :  { %v4235_v61 = vpop.f32.mrf.mxu0  ;;  %v4276_v63 = vpop.f32.mrf.mxu1 }
 0x303   :  { %v4312_v1 = vpop.f32.mrf.mxu0  ;;  %v4353_v5 = vpop.f32.mrf.mxu1 }
 0x304   :  { %v4313_v32 = vadd.f32 %v4312_v1, %v4272_v55 }
 0x305   :  { %v4314_v49 = vpop.f32.mrf.mxu0  ;;  %v4355_v62 = vpop.f32.mrf.mxu1 }
 0x306   :  { %v4354_v30 = vadd.f32 %v4353_v5, %v4313_v32  ;;  %v4315_v6 = vadd.f32 %v4314_v49, %v4274_v17 }
 0x307   :  { %v4316_v18 = vpop.f32.mrf.mxu0  ;;  %v4357_v39 = vpop.f32.mrf.mxu1 }
 0x308   :  { %v4356_v42 = vadd.f32 %v4355_v62, %v4315_v6  ;;  %v4362_v9 = vmax.f32 %v4354_v30, 0.0 }
 0x309   :  { %v4317_v10 = vpop.f32.mrf.mxu0  ;;  %v4358_v11 = vpop.f32.mrf.mxu1 }
 0x30a   :  { %v4363_v36 = vmax.f32 %v4356_v42, 0.0  ;;  %v4366_v48 = vpack.c.bf16 %v4362_v9, %v4362_v9 }
 0x30c   :  { %v4367_v57 = vpack.c.bf16 %v4363_v36, %v4363_v36 }
 0x30e   :  { %4703 = vmatprep.mubr.bf16.mxu1 %v4367_v57 }
 0x30f   :  { %4704 = vmatmul.mubr.bf16.vlgmr.msra.gmra.mxu1 %v4366_v48 }
 0x323   :  { %v5353_v12 = vpop.f32.mrf.mxu0 }
 0x325   :  { %v5354_v13 = vpop.f32.mrf.mxu0 }
 0x326   :  { %v5355_v14 = vadd.f32 %v5354_v13, %v5353_v12 }
 0x327   :  { %v5356_v15 = vpop.f32.mrf.mxu0 }
 0x328   :  { %v4666_v23 = vadd.f32 %v5355_v14, %v5304_v20 }
 0x329   :  { %v5357_v19 = vpop.f32.mrf.mxu0 }
 0x3cf   :  { %v5375_v22 = vpop.f32.mrf.mxu1 }
 0x3d1   :  { %v5376_v21 = vpop.f32.mrf.mxu1 }
 0x3d2   :  { %v5377_v24 = vadd.f32 %v5376_v21, %v5375_v22 }
 0x3d3   :  { %v5378_v25 = vpop.f32.mrf.mxu1 }
 0x3d4   :  { %v4706_v26 = vadd.f32 %v5377_v24, %v4666_v23 }
 0x3d5   :  { %v5379_v33 = vpop.f32.mrf.mxu1 }
 0x3d6   :  { %4712 = vst.msk [vmem:[#allocation2] sm:$0x3] %vm4711_vm0, %v4706_v26 }
 0x3d7   :  { %6295 = shalt.err (!%p6292_p4)
}
 0x3d8   :  { %4722 = dma.vmem_to_hbm [thread:$0]  %s4720_s17, 32, %s8361_s5, [#allocation3]  }
 0x3d9   :  { %6304 = dma.done.wait [#allocation3], 32  }
 0x3da   :  { %6305 = vsyncadd [#allocation3], 4294967264 }
 0x3db   :  { %4726 = vsyncpa [#allocation3], 1 }

// kernel: net_forward.2
= control target key start
LH: loop header
LB: loop body
LE: loop exit
PB: predicated region body
PF: predicated region fallthrough
CT: control target
= control target key end

     0   :  { %vm1938_vm0 = vcmask 261120   ;;  %vm8937_vm1 = vmmov 0   ;;  %vm2396_vm2 = vcmask 523264   ;;  %vm6809_vm3 = vcmask 521216   ;;  %s11565_s1 = inlined_call_operand.vmem [shape: bf16[128,32], index: 1, kind: input, shape index: {}]   ;;  %s11566_s0 = inlined_call_operand.vmem [shape: bf16[1568,128], index: 0, kind: input, shape index: {}]   ;;  %s11567_s3 = inlined_call_operand.vmem [shape: bf16[288,64], index: 3, kind: input, shape index: {}]   ;;  %s11568_s2 = inlined_call_operand.vmem [shape: f32[1,32], index: 2, kind: input, shape index: {}]   ;;  %s11569_s4 = inlined_call_operand.vmem [shape: f32[1,64], index: 4, kind: input, shape index: {}]   ;;  %s11570_s5 = inlined_call_operand.vmem [shape: f32[72,64], index: 5, kind: output, shape index: {}]  }
   0x1   :  { %v8812_v0 = vld [vmem:[%s11565_s1 + $0x38] sm:$0xff]   ;;  %v8813_v1 = vld [vmem:[%s11565_s1 + $0x30] sm:$0xff]   ;;  %v8814_v2 = vld [vmem:[%s11565_s1 + $0x28] sm:$0xff]  }
   0x2   :  { %7658 = vmatprep.subr.bf16.mxu0 %v8812_v0  ;;  %v8815_v3 = vld [vmem:[%s11565_s1 + $0x20] sm:$0xff]   ;;  %v8816_v5 = vld [vmem:[%s11565_s1 + $0x18] sm:$0xff]   ;;  %v8817_v6 = vld [vmem:[%s11565_s1 + $0x10] sm:$0xff]  }
   0x3   :  { %7659 = vmatpush3.bf16.msra.mxu0 %v8812_v0  ;;  %v8820_v4 = vld [vmem:[%s11566_s0] sm:$0xff]   ;;  %v8818_v7 = vld [vmem:[%s11565_s1 + $0x8] sm:$0xff]   ;;  %v8822_v10 = vld [vmem:[%s11566_s0 + $0x10] sm:$0xff]  }
   0x4   :  { %7660 = vmatprep.subr.bf16.mxu0 %v8813_v1  ;;  %7674 = vmatprep.mubr.bf16.mxu0 %v8820_v4  ;;  %v8819_v8 = vld [vmem:[%s11565_s1] sm:$0xff]   ;;  %v8821_v9 = vld [vmem:[%s11566_s0 + $0x8] sm:$0xff]   ;;  %v8823_v11 = vld [vmem:[%s11566_s0 + $0x18] sm:$0xff]  }
   0x5   :  { %v8824_v12 = vld [vmem:[%s11566_s0 + $0x20] sm:$0xff]   ;;  %v8825_v13 = vld [vmem:[%s11566_s0 + $0x28] sm:$0xff]   ;;  %v8826_v14 = vld [vmem:[%s11566_s0 + $0x30] sm:$0xff]  }
   0x6   :  { %v8827_v15 = vld [vmem:[%s11566_s0 + $0x38] sm:$0xff]   ;;  %v8828_v16 = vld [vmem:[%s11566_s0 + $0x40] sm:$0xff]   ;;  %v8829_v17 = vld [vmem:[%s11566_s0 + $0x48] sm:$0xff]  }
   0x7   :  { %7661 = vmatpush3.bf16.msra.mxu0 %v8813_v1  ;;  %v8830_v18 = vld [vmem:[%s11566_s0 + $0x50] sm:$0xff]   ;;  %v8831_v19 = vld [vmem:[%s11566_s0 + $0x58] sm:$0xff]   ;;  %v8832_v20 = vld [vmem:[%s11566_s0 + $0x60] sm:$0xff]  }
   0x8   :  { %7662 = vmatprep.subr.bf16.mxu0 %v8814_v2  ;;  %v8833_v21 = vld [vmem:[%s11566_s0 + $0x68] sm:$0xff]   ;;  %v8834_v22 = vld [vmem:[%s11566_s0 + $0x70] sm:$0xff]   ;;  %v8835_v23 = vld [vmem:[%s11566_s0 + $0x78] sm:$0xff]  }
   0x9   :  { %v8836_v24 = vld [vmem:[%s11566_s0 + $0x80] sm:$0xff]   ;;  %v8837_v25 = vld [vmem:[%s11566_s0 + $0x88] sm:$0xff]   ;;  %v8838_v26 = vld [vmem:[%s11566_s0 + $0x90] sm:$0xff]  }
   0xa   :  { %v8839_v27 = vld [vmem:[%s11566_s0 + $0x98] sm:$0xff]   ;;  %v8840_v28 = vld [vmem:[%s11566_s0 + $0xa0] sm:$0xff]   ;;  %v8841_v29 = vld [vmem:[%s11566_s0 + $0xa8] sm:$0xff]  }
   0xb   :  { %7663 = vmatpush3.bf16.msra.mxu0 %v8814_v2  ;;  %v8842_v30 = vld [vmem:[%s11566_s0 + $0xb0] sm:$0xff]   ;;  %v8843_v31 = vld [vmem:[%s11566_s0 + $0xb8] sm:$0xff]   ;;  %v8844_v32 = vld [vmem:[%s11566_s0 + $0xc0] sm:$0xff]  }
   0xc   :  { %7664 = vmatprep.subr.bf16.mxu0 %v8815_v3  ;;  %v8845_v33 = vld [vmem:[%s11566_s0 + $0xc8] sm:$0xff]   ;;  %v8846_v34 = vld [vmem:[%s11566_s0 + $0xd0] sm:$0xff]   ;;  %v8847_v35 = vld [vmem:[%s11566_s0 + $0xd8] sm:$0xff]  }
   0xd   :  { %v8848_v36 = vld [vmem:[%s11566_s0 + $0xe0] sm:$0xff]   ;;  %v8849_v37 = vld [vmem:[%s11566_s0 + $0xe8] sm:$0xff]   ;;  %v8850_v38 = vld [vmem:[%s11566_s0 + $0xf0] sm:$0xff]  }
   0xe   :  { %v8851_v39 = vld [vmem:[%s11566_s0 + $0xf8] sm:$0xff]   ;;  %v8852_v40 = vld [vmem:[%s11566_s0 + $0x100] sm:$0xff]   ;;  %v8853_v41 = vld [vmem:[%s11566_s0 + $0x108] sm:$0xff]  }
   0xf   :  { %7665 = vmatpush3.bf16.msra.mxu0 %v8815_v3  ;;  %v8854_v42 = vld [vmem:[%s11566_s0 + $0x110] sm:$0xff]   ;;  %v8855_v43 = vld [vmem:[%s11566_s0 + $0x118] sm:$0xff]   ;;  %v8856_v44 = vld [vmem:[%s11566_s0 + $0x120] sm:$0xff]  }
  0x10   :  { %7666 = vmatprep.subr.bf16.mxu0 %v8816_v5  ;;  %v8857_v45 = vld [vmem:[%s11566_s0 + $0x128] sm:$0xff]   ;;  %v8858_v46 = vld [vmem:[%s11566_s0 + $0x130] sm:$0xff]   ;;  %v8859_v47 = vld [vmem:[%s11566_s0 + $0x138] sm:$0xff]  }
  0x11   :  { %v8860_v48 = vld [vmem:[%s11566_s0 + $0x140] sm:$0xff]   ;;  %v8861_v49 = vld [vmem:[%s11566_s0 + $0x148] sm:$0xff]   ;;  %v8862_v50 = vld [vmem:[%s11566_s0 + $0x150] sm:$0xff]  }
  0x12   :  { %v8863_v51 = vld [vmem:[%s11566_s0 + $0x158] sm:$0xff]   ;;  %v8864_v52 = vld [vmem:[%s11566_s0 + $0x160] sm:$0xff]   ;;  %v8865_v53 = vld [vmem:[%s11566_s0 + $0x168] sm:$0xff]  }
  0x13   :  { %7667 = vmatpush3.bf16.msra.mxu0 %v8816_v5  ;;  %v8866_v54 = vld [vmem:[%s11566_s0 + $0x170] sm:$0xff]   ;;  %v8867_v55 = vld [vmem:[%s11566_s0 + $0x178] sm:$0xff]   ;;  %v8868_v56 = vld [vmem:[%s11566_s0 + $0x180] sm:$0xff]  }
  0x14   :  { %7668 = vmatprep.subr.bf16.mxu0 %v8817_v6  ;;  %v8869_v57 = vld [vmem:[%s11566_s0 + $0x188] sm:$0xff]   ;;  %v8870_v58 = vld [vmem:[%s11566_s0 + $0x190] sm:$0xff]   ;;  %v8871_v62 = vld [vmem:[%s11566_s0 + $0x198] sm:$0xff]  }
  0x15   :  { %v8872_v63 = vld [vmem:[%s11566_s0 + $0x1a0] sm:$0xff]   ;;  %v8873_v4 = vld [vmem:[%s11566_s0 + $0x1a8] sm:$0xff]   ;;  %v8874_v5 = vld [vmem:[%s11566_s0 + $0x1b0] sm:$0xff]  }
  0x17   :  { %7669 = vmatpush3.bf16.msra.mxu0 %v8817_v6 }
  0x18   :  { %7670 = vmatprep.subr.bf16.mxu0 %v8818_v7 }
  0x1b   :  { %7671 = vmatpush3.bf16.msra.mxu0 %v8818_v7 }
  0x1c   :  { %7672 = vmatprep.subr.bf16.mxu0 %v8819_v8 }
  0x1f   :  { %7673 = vmatpush3.bf16.msra.mxu0 %v8819_v8 }
  0x22   :  { %7675 = vmatmul.mubr.bf16.vlgmr.msra.gmra.mxu0 %v8821_v9 }
  0x23   :  { %7678 = vmatprep.mubr.bf16.mxu0 %v8822_v10  ;;  %v8875_v10 = vld [vmem:[%s11566_s0 + $0x1b8] sm:$0xff]  }
  0x2a   :  { %7679 = vmatmul.mubr.bf16.gmra.mxu0 %v8823_v11  ;;  %v8876_v11 = vld [vmem:[%s11566_s0 + $0x1c0] sm:$0xff]  }
  0x2b   :  { %7682 = vmatprep.mubr.bf16.mxu0 %v8824_v12 }
  0x32   :  { %7683 = vmatmul.mubr.bf16.gmra.mxu0 %v8825_v13 }
  0x33   :  { %7686 = vmatprep.mubr.bf16.mxu0 %v8826_v14 }
  0x3a   :  { %7687 = vmatmul.mubr.bf16.gmra.mxu0 %v8827_v15 }
  0x3b   :  { %7690 = vmatprep.mubr.bf16.mxu0 %v8828_v16  ;;  %v8877_v16 = vld [vmem:[%s11566_s0 + $0x1c8] sm:$0xff]  }
  0x42   :  { %7691 = vmatmul.mubr.bf16.gmra.mxu0 %v8829_v17  ;;  %v8878_v17 = vld [vmem:[%s11566_s0 + $0x1d0] sm:$0xff]  }
  0x43   :  { %7694 = vmatprep.mubr.bf16.mxu0 %v8830_v18 }
  0x4a   :  { %7695 = vmatmul.mubr.bf16.gmra.mxu0 %v8831_v19 }
  0x4b   :  { %7698 = vmatprep.mubr.bf16.mxu0 %v8832_v20 }
  0x52   :  { %7699 = vmatmul.mubr.bf16.gmra.mxu0 %v8833_v21 }
  0x53   :  { %7702 = vmatprep.mubr.bf16.mxu0 %v8834_v22  ;;  %v8879_v22 = vld [vmem:[%s11566_s0 + $0x1d8] sm:$0xff]  }
  0x5a   :  { %7703 = vmatmul.mubr.bf16.gmra.mxu0 %v8835_v23  ;;  %v8880_v23 = vld [vmem:[%s11566_s0 + $0x1e0] sm:$0xff]  }
  0x5b   :  { %7706 = vmatprep.mubr.bf16.mxu0 %v8836_v24 }
  0x62   :  { %7707 = vmatmul.mubr.bf16.gmra.mxu0 %v8837_v25 }
  0x63   :  { %7710 = vmatprep.mubr.bf16.mxu0 %v8838_v26 }
  0x6a   :  { %7711 = vmatmul.mubr.bf16.gmra.mxu0 %v8839_v27 }
  0x6b   :  { %7714 = vmatprep.mubr.bf16.mxu0 %v8840_v28  ;;  %v8881_v28 = vld [vmem:[%s11566_s0 + $0x1e8] sm:$0xff]  }
  0x72   :  { %7715 = vmatmul.mubr.bf16.gmra.mxu0 %v8841_v29  ;;  %v8882_v29 = vld [vmem:[%s11566_s0 + $0x1f0] sm:$0xff]  }
  0x73   :  { %7718 = vmatprep.mubr.bf16.mxu0 %v8842_v30 }
  0x7a   :  { %7719 = vmatmul.mubr.bf16.gmra.mxu0 %v8843_v31 }
  0x7b   :  { %7722 = vmatprep.mubr.bf16.mxu0 %v8844_v32 }
  0x82   :  { %7723 = vmatmul.mubr.bf16.gmra.mxu0 %v8845_v33 }
  0x83   :  { %7726 = vmatprep.mubr.bf16.mxu0 %v8846_v34  ;;  %v8883_v34 = vld [vmem:[%s11566_s0 + $0x1f8] sm:$0xff]  }
  0x8a   :  { %7727 = vmatmul.mubr.bf16.gmra.mxu0 %v8847_v35  ;;  %v8884_v35 = vld [vmem:[%s11566_s0 + $0x200] sm:$0xff]  }
  0x8b   :  { %7730 = vmatprep.mubr.bf16.mxu0 %v8848_v36 }
  0x92   :  { %7731 = vmatmul.mubr.bf16.gmra.mxu0 %v8849_v37 }
  0x93   :  { %7734 = vmatprep.mubr.bf16.mxu0 %v8850_v38 }
  0x9a   :  { %7735 = vmatmul.mubr.bf16.gmra.mxu0 %v8851_v39 }
  0x9b   :  { %7738 = vmatprep.mubr.bf16.mxu0 %v8852_v40  ;;  %v8885_v40 = vld [vmem:[%s11566_s0 + $0x208] sm:$0xff]  }
  0xa2   :  { %7739 = vmatmul.mubr.bf16.gmra.mxu0 %v8853_v41  ;;  %v8886_v41 = vld [vmem:[%s11566_s0 + $0x210] sm:$0xff]  }
  0xa3   :  { %7742 = vmatprep.mubr.bf16.mxu0 %v8854_v42 }
  0xaa   :  { %7743 = vmatmul.mubr.bf16.gmra.mxu0 %v8855_v43 }
  0xab   :  { %7746 = vmatprep.mubr.bf16.mxu0 %v8856_v44 }
  0xb2   :  { %7747 = vmatmul.mubr.bf16.gmra.mxu0 %v8857_v45 }
  0xb3   :  { %7750 = vmatprep.mubr.bf16.mxu0 %v8858_v46  ;;  %v8887_v46 = vld [vmem:[%s11566_s0 + $0x218] sm:$0xff]  }
  0xba   :  { %7751 = vmatmul.mubr.bf16.gmra.mxu0 %v8859_v47  ;;  %v8888_v47 = vld [vmem:[%s11566_s0 + $0x220] sm:$0xff]  }
  0xbb   :  { %7754 = vmatprep.mubr.bf16.mxu0 %v8860_v48 }
  0xc2   :  { %7755 = vmatmul.mubr.bf16.gmra.mxu0 %v8861_v49 }
  0xc3   :  { %7758 = vmatprep.mubr.bf16.mxu0 %v8862_v50 }
  0xca   :  { %7759 = vmatmul.mubr.bf16.gmra.mxu0 %v8863_v51 }
  0xcb   :  { %7762 = vmatprep.mubr.bf16.mxu0 %v8864_v52  ;;  %v8889_v52 = vld [vmem:[%s11566_s0 + $0x228] sm:$0xff]  }
  0xd2   :  { %7763 = vmatmul.mubr.bf16.gmra.mxu0 %v8865_v53  ;;  %v8890_v53 = vld [vmem:[%s11566_s0 + $0x230] sm:$0xff]  }
  0xd3   :  { %7766 = vmatprep.mubr.bf16.mxu0 %v8866_v54 }
  0xda   :  { %7767 = vmatmul.mubr.bf16.gmra.mxu0 %v8867_v55 }
  0xdb   :  { %7770 = vmatprep.mubr.bf16.mxu0 %v8868_v56 }
  0xe2   :  { %v9145_v59 = vpop.f32.mrf.mxu0  ;;  %7771 = vmatmul.mubr.bf16.gmra.mxu0 %v8869_v57 }
  0xe3   :  { %7774 = vmatprep.mubr.bf16.mxu0 %v8870_v58  ;;  %v8891_v58 = vld [vmem:[%s11566_s0 + $0x238] sm:$0xff]  }
  0xe4   :  { %v9147_v60 = vpop.f32.mrf.mxu0 }
  0xe6   :  { %v9149_v61 = vpop.f32.mrf.mxu0 }
  0xe8   :  { %v9157_v0 = vpop.f32.mrf.mxu0 }
  0xea   :  { %v9159_v1 = vpop.f32.mrf.mxu0  ;;  %7775 = vmatmul.mubr.bf16.gmra.mxu0 %v8871_v62  ;;  %v8892_v62 = vld [vmem:[%s11566_s0 + $0x240] sm:$0xff]  }
  0xeb   :  { %7778 = vmatprep.mubr.bf16.mxu0 %v8872_v63 }
  0xec   :  { %v9161_v2 = vpop.f32.mrf.mxu0 }
  0xee   :  { %v9163_v3 = vpop.f32.mrf.mxu0 }
  0xf0   :  { %v9171_v6 = vpop.f32.mrf.mxu0 }
  0xf2   :  { %v9173_v7 = vpop.f32.mrf.mxu0  ;;  %7779 = vmatmul.mubr.bf16.gmra.mxu0 %v8873_v4 }
  0xf3   :  { %7782 = vmatprep.mubr.bf16.mxu0 %v8874_v5 }
  0xf4   :  { %v9175_v8 = vpop.f32.mrf.mxu0 }
  0xf6   :  { %v9177_v9 = vpop.f32.mrf.mxu0 }
  0xf8   :  { %v9185_v12 = vpop.f32.mrf.mxu0 }
  0xfa   :  { %v9187_v13 = vpop.f32.mrf.mxu0  ;;  %7783 = vmatmul.mubr.bf16.gmra.mxu0 %v8875_v10 }
  0xfb   :  { %7786 = vmatprep.mubr.bf16.mxu0 %v8876_v11  ;;  %v8893_v11 = vld [vmem:[%s11566_s0 + $0x248] sm:$0xff]  }
  0xfc   :  { %v9189_v14 = vpop.f32.mrf.mxu0 }
  0xfe   :  { %v9191_v15 = vpop.f32.mrf.mxu0 }
 0x100   :  { %v9199_v18 = vpop.f32.mrf.mxu0 }
 0x102   :  { %v9201_v19 = vpop.f32.mrf.mxu0  ;;  %7787 = vmatmul.mubr.bf16.gmra.mxu0 %v8877_v16  ;;  %v8894_v16 = vld [vmem:[%s11566_s0 + $0x250] sm:$0xff]  }
 0x103   :  { %11573 = vst [vmem:[#allocation4_spill] sm:$0xff] %v9201_v19  ;;  %7790 = vmatprep.mubr.bf16.mxu0 %v8878_v17 }
 0x104   :  { %v9203_v20 = vpop.f32.mrf.mxu0 }
 0x106   :  { %v9205_v21 = vpop.f32.mrf.mxu0 }
 0x107   :  { %11574 = vst [vmem:[#allocation5_spill] sm:$0xff] %v9205_v21 }
 0x108   :  { %v9213_v24 = vpop.f32.mrf.mxu0 }
 0x109   :  { %11575 = vst [vmem:[#allocation6_spill] sm:$0xff] %v9213_v24 }
 0x10a   :  { %v9215_v25 = vpop.f32.mrf.mxu0  ;;  %7791 = vmatmul.mubr.bf16.gmra.mxu0 %v8879_v22 }
 0x10b   :  { %11576 = vst [vmem:[#allocation7_spill] sm:$0xff] %v9215_v25  ;;  %7794 = vmatprep.mubr.bf16.mxu0 %v8880_v23 }
 0x10c   :  { %v9217_v26 = vpop.f32.mrf.mxu0 }
 0x10d   :  { %11577 = vst [vmem:[#allocation8_spill] sm:$0xff] %v9217_v26 }
 0x10e   :  { %v9219_v27 = vpop.f32.mrf.mxu0 }
 0x10f   :  { %11578 = vst [vmem:[#allocation9_spill] sm:$0xff] %v9219_v27 }
 0x110   :  { %v9227_v30 = vpop.f32.mrf.mxu0 }
 0x111   :  { %11579 = vst [vmem:[#allocation10_spill] sm:$0xff] %v9227_v30 }
 0x112   :  { %v9229_v31 = vpop.f32.mrf.mxu0  ;;  %7795 = vmatmul.mubr.bf16.gmra.mxu0 %v8881_v28 }
 0x113   :  { %11580 = vst [vmem:[#allocation11_spill] sm:$0xff] %v9229_v31  ;;  %7798 = vmatprep.mubr.bf16.mxu0 %v8882_v29  ;;  %v8895_v29 = vld [vmem:[%s11566_s0 + $0x258] sm:$0xff]  }
 0x114   :  { %v9231_v32 = vpop.f32.mrf.mxu0 }
 0x115   :  { %11581 = vst [vmem:[#allocation12_spill] sm:$0xff] %v9231_v32 }
 0x116   :  { %v9233_v33 = vpop.f32.mrf.mxu0 }
 0x117   :  { %11582 = vst [vmem:[#allocation13_spill] sm:$0xff] %v9233_v33 }
 0x118   :  { %v9241_v36 = vpop.f32.mrf.mxu0 }
 0x119   :  { %11583 = vst [vmem:[#allocation14_spill] sm:$0xff] %v9241_v36 }
 0x11a   :  { %v9243_v37 = vpop.f32.mrf.mxu0  ;;  %7799 = vmatmul.mubr.bf16.gmra.mxu0 %v8883_v34  ;;  %v8896_v34 = vld [vmem:[%s11566_s0 + $0x260] sm:$0xff]  }
 0x11b   :  { %11584 = vst [vmem:[#allocation15_spill] sm:$0xff] %v9243_v37  ;;  %7802 = vmatprep.mubr.bf16.mxu0 %v8884_v35 }
 0x11c   :  { %v9245_v38 = vpop.f32.mrf.mxu0 }
 0x11d   :  { %11585 = vst [vmem:[#allocation16_spill] sm:$0xff] %v9245_v38 }
 0x11e   :  { %v9247_v39 = vpop.f32.mrf.mxu0 }
 0x11f   :  { %11586 = vst [vmem:[#allocation17_spill] sm:$0xff] %v9247_v39 }
 0x120   :  { %v9255_v42 = vpop.f32.mrf.mxu0 }
 0x121   :  { %11587 = vst [vmem:[#allocation18_spill] sm:$0xff] %v9255_v42  ;;  %v8910_v42 = vld [vmem:[%s11566_s0 + $0x2d0] sm:$0xff]  }
 0x122   :  { %v9257_v43 = vpop.f32.mrf.mxu0  ;;  %7803 = vmatmul.mubr.bf16.gmra.mxu0 %v8885_v40 }
 0x123   :  { %11588 = vst [vmem:[#allocation19_spill] sm:$0xff] %v9257_v43  ;;  %7806 = vmatprep.mubr.bf16.mxu0 %v8886_v41 }
 0x124   :  { %v9259_v44 = vpop.f32.mrf.mxu0 }
 0x125   :  { %11589 = vst [vmem:[#allocation20_spill] sm:$0xff] %v9259_v44  ;;  %v8909_v44 = vld [vmem:[%s11566_s0 + $0x2c8] sm:$0xff]  }
 0x126   :  { %v9261_v45 = vpop.f32.mrf.mxu0 }
 0x127   :  { %11590 = vst [vmem:[#allocation21_spill] sm:$0xff] %v9261_v45 }
 0x128   :  { %v9269_v48 = vpop.f32.mrf.mxu0 }
 0x129   :  { %11591 = vst [vmem:[#allocation22_spill] sm:$0xff] %v9269_v48  ;;  %v8908_v48 = vld [vmem:[%s11566_s0 + $0x2c0] sm:$0xff]  }
 0x12a   :  { %v9271_v49 = vpop.f32.mrf.mxu0  ;;  %7807 = vmatmul.mubr.bf16.gmra.mxu0 %v8887_v46 }
 0x12b   :  { %11592 = vst [vmem:[#allocation23_spill] sm:$0xff] %v9271_v49  ;;  %7810 = vmatprep.mubr.bf16.mxu0 %v8888_v47  ;;  %v8897_v47 = vld [vmem:[%s11566_s0 + $0x268] sm:$0xff]  }
 0x12c   :  { %v9273_v50 = vpop.f32.mrf.mxu0 }
 0x12d   :  { %11593 = vst [vmem:[#allocation24_spill] sm:$0xff] %v9273_v50  ;;  %v8907_v50 = vld [vmem:[%s11566_s0 + $0x2b8] sm:$0xff]  }
 0x12e   :  { %v9275_v51 = vpop.f32.mrf.mxu0 }
 0x12f   :  { %11594 = vst [vmem:[#allocation25_spill] sm:$0xff] %v9275_v51 }
 0x130   :  { %v9283_v54 = vpop.f32.mrf.mxu0 }
 0x131   :  { %11595 = vst [vmem:[#allocation26_spill] sm:$0xff] %v9283_v54  ;;  %v8906_v54 = vld [vmem:[%s11566_s0 + $0x2b0] sm:$0xff]  }
 0x132   :  { %v9285_v55 = vpop.f32.mrf.mxu0  ;;  %7811 = vmatmul.mubr.bf16.gmra.mxu0 %v8889_v52  ;;  %v8898_v52 = vld [vmem:[%s11566_s0 + $0x270] sm:$0xff]  }
 0x133   :  { %11596 = vst [vmem:[#allocation27_spill] sm:$0xff] %v9285_v55  ;;  %7814 = vmatprep.mubr.bf16.mxu0 %v8890_v53 }
 0x134   :  { %v9287_v56 = vpop.f32.mrf.mxu0 }
 0x135   :  { %11597 = vst [vmem:[#allocation28_spill] sm:$0xff] %v9287_v56  ;;  %v8905_v56 = vld [vmem:[%s11566_s0 + $0x2a8] sm:$0xff]  }
 0x136   :  { %v9289_v57 = vpop.f32.mrf.mxu0 }
 0x137   :  { %11598 = vst [vmem:[#allocation29_spill] sm:$0xff] %v9289_v57 }
 0x138   :  { %v9297_v63 = vpop.f32.mrf.mxu0 }
 0x139   :  { %11599 = vst [vmem:[#allocation30_spill] sm:$0xff] %v9297_v63  ;;  %v8904_v63 = vld [vmem:[%s11566_s0 + $0x2a0] sm:$0xff]  }
 0x13a   :  { %v9299_v4 = vpop.f32.mrf.mxu0  ;;  %7815 = vmatmul.mubr.bf16.gmra.mxu0 %v8891_v58 }
 0x13b   :  { %11600 = vst [vmem:[#allocation31_spill] sm:$0xff] %v9299_v4  ;;  %7818 = vmatprep.mubr.bf16.mxu0 %v8892_v62 }
 0x13c   :  { %v9301_v5 = vpop.f32.mrf.mxu0 }
 0x13d   :  { %11601 = vst [vmem:[#allocation32_spill] sm:$0xff] %v9301_v5  ;;  %v8903_v5 = vld [vmem:[%s11566_s0 + $0x298] sm:$0xff]  }
 0x13e   :  { %v9303_v10 = vpop.f32.mrf.mxu0 }
 0x13f   :  { %11602 = vst [vmem:[#allocation33_spill] sm:$0xff] %v9303_v10 }
 0x140   :  { %v9311_v17 = vpop.f32.mrf.mxu0 }
 0x141   :  { %11603 = vst [vmem:[#allocation34_spill] sm:$0xff] %v9311_v17  ;;  %v8902_v17 = vld [vmem:[%s11566_s0 + $0x290] sm:$0xff]  }
 0x142   :  { %v9313_v22 = vpop.f32.mrf.mxu0  ;;  %7819 = vmatmul.mubr.bf16.gmra.mxu0 %v8893_v11 }
 0x143   :  { %7822 = vmatprep.mubr.bf16.mxu0 %v8894_v16  ;;  %v8899_v16 = vld [vmem:[%s11566_s0 + $0x278] sm:$0xff]  }
 0x144   :  { %v9315_v23 = vpop.f32.mrf.mxu0 }
 0x145   :  { %11604 = vst [vmem:[#allocation35_spill] sm:$0xff] %v9315_v23  ;;  %v8901_v23 = vld [vmem:[%s11566_s0 + $0x288] sm:$0xff]  }
 0x146   :  { %v9317_v28 = vpop.f32.mrf.mxu0 }
 0x148   :  { %v9325_v35 = vpop.f32.mrf.mxu0 }
 0x14a   :  { %v9327_v40 = vpop.f32.mrf.mxu0  ;;  %7823 = vmatmul.mubr.bf16.gmra.mxu0 %v8895_v29  ;;  %v8900_v29 = vld [vmem:[%s11566_s0 + $0x280] sm:$0xff]  }
 0x14b   :  { %7826 = vmatprep.mubr.bf16.mxu0 %v8896_v34 }
 0x14c   :  { %v9329_v41 = vpop.f32.mrf.mxu0 }
 0x14e   :  { %v9331_v46 = vpop.f32.mrf.mxu0 }
 0x150   :  { %v9339_v53 = vpop.f32.mrf.mxu0 }
 0x152   :  { %v9341_v58 = vpop.f32.mrf.mxu0  ;;  %7827 = vmatmul.mubr.bf16.gmra.mxu0 %v8897_v47 }
 0x153   :  { %7830 = vmatprep.mubr.bf16.mxu0 %v8898_v52 }
 0x154   :  { %v9343_v62 = vpop.f32.mrf.mxu0 }
 0x156   :  { %v9345_v11 = vpop.f32.mrf.mxu0 }
 0x158   :  { %v9353_v34 = vpop.f32.mrf.mxu0 }
 0x15a   :  { %v9355_v4 = vpop.f32.mrf.mxu0  ;;  %7831 = vmatmul.mubr.bf16.gmra.mxu0 %v8899_v16 }
 0x15b   :  { %7834 = vmatprep.mubr.bf16.mxu0 %v8900_v29 }
 0x15c   :  { %v9357_v47 = vpop.f32.mrf.mxu0 }
 0x15e   :  { %v9359_v52 = vpop.f32.mrf.mxu0 }
 0x160   :  { %v9367_v10 = vpop.f32.mrf.mxu0 }
 0x162   :  { %v9369_v55 = vpop.f32.mrf.mxu0  ;;  %7835 = vmatmul.mubr.bf16.gmra.mxu0 %v8901_v23 }
 0x163   :  { %11605 = vst [vmem:[#allocation36_spill] sm:$0xff] %v9369_v55  ;;  %7838 = vmatprep.mubr.bf16.mxu0 %v8902_v17 }
 0x164   :  { %v9371_v16 = vpop.f32.mrf.mxu0 }
 0x166   :  { %v9373_v29 = vpop.f32.mrf.mxu0 }
 0x167   :  { %11606 = vst [vmem:[#allocation37_spill] sm:$0xff] %v9373_v29 }
 0x168   :  { %v9381_v57 = vpop.f32.mrf.mxu0 }
 0x16a   :  { %v9383_v49 = vpop.f32.mrf.mxu0  ;;  %7839 = vmatmul.mubr.bf16.gmra.mxu0 %v8903_v5 }
 0x16b   :  { %11607 = vst [vmem:[#allocation38_spill] sm:$0xff] %v9383_v49  ;;  %7842 = vmatprep.mubr.bf16.mxu0 %v8904_v63 }
 0x16c   :  { %v9385_v23 = vpop.f32.mrf.mxu0 }
 0x16e   :  { %v9387_v17 = vpop.f32.mrf.mxu0 }
 0x16f   :  { %11608 = vst [vmem:[#allocation39_spill] sm:$0xff] %v9387_v17 }
 0x170   :  { %v9395_v51 = vpop.f32.mrf.mxu0 }
 0x171   :  { %11609 = vst [vmem:[#allocation40_spill] sm:$0xff] %v9395_v51 }
 0x172   :  { %v9397_v43 = vpop.f32.mrf.mxu0  ;;  %7843 = vmatmul.mubr.bf16.gmra.mxu0 %v8905_v56 }
 0x173   :  { %11610 = vst [vmem:[#allocation41_spill] sm:$0xff] %v9397_v43  ;;  %7846 = vmatprep.mubr.bf16.mxu0 %v8906_v54 }
 0x174   :  { %v9399_v5 = vpop.f32.mrf.mxu0 }
 0x175   :  { %11611 = vst [vmem:[#allocation42_spill] sm:$0xff] %v9399_v5 }
 0x176   :  { %v9401_v63 = vpop.f32.mrf.mxu0 }
 0x177   :  { %11612 = vst [vmem:[#allocation43_spill] sm:$0xff] %v9401_v63 }
 0x178   :  { %v9409_v45 = vpop.f32.mrf.mxu0 }
 0x179   :  { %11613 = vst [vmem:[#allocation44_spill] sm:$0xff] %v9409_v45 }
 0x17a   :  { %v9411_v37 = vpop.f32.mrf.mxu0  ;;  %7847 = vmatmul.mubr.bf16.gmra.mxu0 %v8907_v50 }
 0x17b   :  { %11614 = vst [vmem:[#allocation45_spill] sm:$0xff] %v9411_v37  ;;  %7850 = vmatprep.mubr.bf16.mxu0 %v8908_v48  ;;  %v8912_v37 = vld [vmem:[%s11566_s0 + $0x2e0] sm:$0xff]  }
 0x17c   :  { %v9413_v56 = vpop.f32.mrf.mxu0 }
 0x17d   :  { %11615 = vst [vmem:[#allocation46_spill] sm:$0xff] %v9413_v56 }
 0x17e   :  { %v9415_v54 = vpop.f32.mrf.mxu0 }
 0x17f   :  { %11616 = vst [vmem:[#allocation47_spill] sm:$0xff] %v9415_v54  ;;  %v8911_v54 = vld [vmem:[%s11566_s0 + $0x2d8] sm:$0xff]  }
 0x180   :  { %v9423_v39 = vpop.f32.mrf.mxu0 }
 0x181   :  { %11617 = vst [vmem:[#allocation48_spill] sm:$0xff] %v9423_v39 }
 0x182   :  { %v9425_v31 = vpop.f32.mrf.mxu0  ;;  %7851 = vmatmul.mubr.bf16.gmra.mxu0 %v8909_v44 }
 0x183   :  { %11618 = vst [vmem:[#allocation49_spill] sm:$0xff] %v9425_v31  ;;  %7854 = vmatprep.mubr.bf16.mxu0 %v8910_v42  ;;  %v8914_v31 = vld [vmem:[%s11566_s0 + $0x2f0] sm:$0xff]  }
 0x184   :  { %v9427_v50 = vpop.f32.mrf.mxu0 }
 0x185   :  { %11619 = vst [vmem:[#allocation50_spill] sm:$0xff] %v9427_v50 }
 0x186   :  { %v9429_v48 = vpop.f32.mrf.mxu0 }
 0x187   :  { %11620 = vst [vmem:[#allocation51_spill] sm:$0xff] %v9429_v48  ;;  %v8913_v48 = vld [vmem:[%s11566_s0 + $0x2e8] sm:$0xff]  }
 0x188   :  { %v9437_v63 = vpop.f32.mrf.mxu0 }
 0x189   :  { %11621 = vst [vmem:[#allocation52_spill] sm:$0xff] %v9437_v63 }
 0x18a   :  { %v9439_v38 = vpop.f32.mrf.mxu0  ;;  %7855 = vmatmul.mubr.bf16.gmra.mxu0 %v8911_v54 }
 0x18b   :  { %11622 = vst [vmem:[#allocation53_spill] sm:$0xff] %v9439_v38  ;;  %7858 = vmatprep.mubr.bf16.mxu0 %v8912_v37  ;;  %v8915_v37 = vld [vmem:[%s11566_s0 + $0x2f8] sm:$0xff]  }
 0x18c   :  { %v9441_v44 = vpop.f32.mrf.mxu0 }
 0x18d   :  { %11623 = vst [vmem:[#allocation54_spill] sm:$0xff] %v9441_v44 }
 0x18e   :  { %v9443_v42 = vpop.f32.mrf.mxu0 }
 0x18f   :  { %11624 = vst [vmem:[#allocation55_spill] sm:$0xff] %v9443_v42  ;;  %v8916_v42 = vld [vmem:[%s11566_s0 + $0x300] sm:$0xff]  }
 0x190   :  { %v9451_v50 = vpop.f32.mrf.mxu0 }
 0x191   :  { %11625 = vst [vmem:[#allocation56_spill] sm:$0xff] %v9451_v50  ;;  %v8918_v50 = vld [vmem:[%s11567_s3 + $0x8] sm:$0xff]  }
 0x192   :  { %v9453_v39 = vpop.f32.mrf.mxu0  ;;  %7859 = vmatmul.mubr.bf16.gmra.mxu0 %v8913_v48 }
 0x193   :  { %11626 = vst [vmem:[#allocation57_spill] sm:$0xff] %v9453_v39  ;;  %7862 = vmatprep.mubr.bf16.mxu0 %v8914_v31  ;;  %v11571_v39 = vmov 0.0  }
 0x194   :  { %v9455_v54 = vpop.f32.mrf.mxu0  ;;  %7870 = vmatprep.subr.bf16.mxu0 %v11571_v39  ;;  %1988 = vst.msk [vmem:[#allocation2 + $0x188] sm:$0xff] %vm1938_vm0, %v11571_v39  ;;  %1989 = vst.msk [vmem:[#allocation2 + $0x190] sm:$0xff] %vm1938_vm0, %v11571_v39  ;;  %8806 = vmatprep.subr.bf16.mxu1 %v11571_v39 }
 0x195   :  { %11627 = vst [vmem:[#allocation58_spill] sm:$0xff] %v9455_v54  ;;  %1990 = vst.msk [vmem:[#allocation2 + $0x198] sm:$0xff] %vm1938_vm0, %v11571_v39  ;;  %7871 = vmatpush3.bf16.msra.mxu0 %v8918_v50  ;;  %8808 = vmatpush3.bf16.msra.mxu1 %v8918_v50  ;;  %v8917_v50 = vld [vmem:[%s11566_s0 + $0x308] sm:$0xff]  }
 0x196   :  { %v9463_v38 = vpop.f32.mrf.mxu0  ;;  %1991 = vst.msk [vmem:[#allocation2 + $0x1a0] sm:$0xff] %vm1938_vm0, %v11571_v39  ;;  %7872 = vmatprep.subr.bf16.mxu0 %v11571_v39  ;;  %8807 = vmatprep.subr.bf16.mxu1 %v11571_v39 }
 0x197   :  { %11628 = vst [vmem:[#allocation59_spill] sm:$0xff] %v9463_v38  ;;  %v8919_v38 = vld [vmem:[%s11567_s3] sm:$0xff]   ;;  %7918 = vmatprep.mubr.msk.bf16.mxu1 %vm8937_vm1, %v11571_v39 }
 0x198   :  { %v9478_v31 = vpop.f32.mrf.mxu0 }
 0x199   :  { %11629 = vst [vmem:[#allocation60_spill] sm:$0xff] %v9478_v31  ;;  %7873 = vmatpush3.bf16.msra.mxu0 %v8919_v38  ;;  %8809 = vmatpush3.bf16.msra.mxu1 %v8919_v38 }
 0x19a   :  { %v9482_v48 = vpop.f32.mrf.mxu0  ;;  %7863 = vmatmul.mubr.bf16.gmra.mxu0 %v8915_v37  ;;  %7974 = vmatprep.subr.bf16.mxu1 %v11571_v39 }
 0x19b   :  { %11630 = vst [vmem:[#allocation61_spill] sm:$0xff] %v9482_v48  ;;  %7866 = vmatprep.mubr.bf16.mxu0 %v8916_v42  ;;  %8182 = vmatprep.subr.bf16.mxu0 %v11571_v39 }
 0x19c   :  { %v9487_v54 = vpop.f32.mrf.mxu0 }
 0x19d   :  { %11631 = vst [vmem:[#allocation62_spill] sm:$0xff] %v9487_v54 }
 0x19e   :  { %v9494_v31 = vpop.f32.mrf.mxu0 }
 0x19f   :  { %11632 = vst [vmem:[#allocation63_spill] sm:$0xff] %v9494_v31 }
 0x1a0   :  { %v9498_v37 = vpop.f32.mrf.mxu0 }
 0x1a1   :  { %11633 = vst [vmem:[#allocation64_spill] sm:$0xff] %v9498_v37 }
 0x1a2   :  { %v7772_v42 = vpop.f32.mrf.mxu0  ;;  %7867 = vmatmul.mubr.bf16.gmra.mxu0 %v8917_v50 }
 0x1a3   :  { %7874 = vmatprep.mubr.msk.bf16.mxu0 %vm8937_vm1, %v11571_v39 }
 0x1a4   :  { %v9502_v38 = vpop.f32.mrf.mxu0 }
 0x1a5   :  { %11634 = vst [vmem:[#allocation65_spill] sm:$0xff] %v9502_v38 }
 0x1a6   :  { %v9504_v48 = vpop.f32.mrf.mxu0 }
 0x1a8   :  { %v9506_v54 = vpop.f32.mrf.mxu0 }
 0x1a9   :  { %11635 = vst [vmem:[#allocation66_spill] sm:$0xff] %v9506_v54 }
 0x1aa   :  { %v9508_v44 = vpop.f32.mrf.mxu0 }
 0x1ac   :  { %v9510_v31 = vpop.f32.mrf.mxu0 }
 0x1ae   :  { %v9512_v63 = vpop.f32.mrf.mxu0 }
 0x1b0   :  { %v1306_v36 = vpop.f32.mrf.mxu0 }
 0x1b2   :  { %v9514_v43 = vpop.f32.mrf.mxu0 }
 0x1b4   :  { %v9516_v37 = vpop.f32.mrf.mxu0 }
 0x1b6   :  { %v9518_v50 = vpop.f32.mrf.mxu0 }
 0x1b8   :  { %v9520_v39 = vpop.f32.mrf.mxu0 }
 0x1ba   :  { %v9522_v38 = vpop.f32.mrf.mxu0 }
 0x1bc   :  { %v9524_v33 = vpop.f32.mrf.mxu0 }
 0x1be   :  { %v9526_v54 = vpop.f32.mrf.mxu0 }
 0x1c0   :  { %v9528_v56 = vpop.f32.mrf.mxu0 }
 0x1c2   :  { %v9530_v25 = vpop.f32.mrf.mxu0 }
 0x1c4   :  { %v9532_v17 = vpop.f32.mrf.mxu0 }
 0x1c6   :  { %v9534_v32 = vpop.f32.mrf.mxu0 }
 0x1c7   :  { %11636 = vst [vmem:[#allocation67_spill] sm:$0xff] %v9534_v32 }
 0x1c8   :  { %v9536_v45 = vpop.f32.mrf.mxu0 }
 0x1ca   :  { %v9538_v30 = vpop.f32.mrf.mxu0 }
 0x1cb   :  { %11637 = vst [vmem:[#allocation68_spill] sm:$0xff] %v9538_v30 }
 0x1cc   :  { %v9540_v49 = vpop.f32.mrf.mxu0 }
 0x1cd   :  { %11638 = vst [vmem:[#allocation69_spill] sm:$0xff] %v9540_v49 }
 0x1ce   :  { %v9542_v27 = vpop.f32.mrf.mxu0 }
 0x1cf   :  { %11639 = vst [vmem:[#allocation70_spill] sm:$0xff] %v9542_v27 }
 0x1d0   :  { %v9544_v5 = vpop.f32.mrf.mxu0 }
 0x1d1   :  { %11640 = vst [vmem:[#allocation71_spill] sm:$0xff] %v9544_v5 }
 0x1d2   :  { %v9546_v19 = vpop.f32.mrf.mxu0 }
 0x1d3   :  { %11641 = vst [vmem:[#allocation72_spill] sm:$0xff] %v9546_v19 }
 0x1d4   :  { %v9548_v29 = vpop.f32.mrf.mxu0 }
 0x1d5   :  { %11642 = vst [vmem:[#allocation73_spill] sm:$0xff] %v9548_v29 }
 0x1d6   :  { %v9550_v26 = vpop.f32.mrf.mxu0 }
 0x1d7   :  { %11643 = vst [vmem:[#allocation74_spill] sm:$0xff] %v9550_v26 }
 0x1d8   :  { %v9552_v51 = vpop.f32.mrf.mxu0 }
 0x1d9   :  { %11644 = vst [vmem:[#allocation75_spill] sm:$0xff] %v9552_v51 }
 0x1da   :  { %v9554_v24 = vpop.f32.mrf.mxu0 }
 0x1db   :  { %11645 = vst [vmem:[#allocation76_spill] sm:$0xff] %v9554_v24 }
 0x1dc   :  { %v9556_v32 = vpop.f32.mrf.mxu0 }
 0x1dd   :  { %11646 = vst [vmem:[#allocation77_spill] sm:$0xff] %v9556_v32 }
 0x1de   :  { %v9558_v55 = vpop.f32.mrf.mxu0 }
 0x1df   :  { %11647 = vst [vmem:[#allocation78_spill] sm:$0xff] %v9558_v55 }
 0x1e0   :  { %v9560_v30 = vpop.f32.mrf.mxu0 }
 0x1e1   :  { %11648 = vst [vmem:[#allocation79_spill] sm:$0xff] %v9560_v30 }
 0x1e2   :  { %v9562_v49 = vpop.f32.mrf.mxu0 }
 0x1e3   :  { %11649 = vst [vmem:[#allocation80_spill] sm:$0xff] %v9562_v49 }
 0x1e4   :  { %v9564_v27 = vpop.f32.mrf.mxu0 }
 0x1e5   :  { %11650 = vst [vmem:[#allocation81_spill] sm:$0xff] %v9564_v27 }
 0x1e6   :  { %v9566_v5 = vpop.f32.mrf.mxu0 }
 0x1e7   :  { %11651 = vst [vmem:[#allocation82_spill] sm:$0xff] %v9566_v5 }
 0x1e8   :  { %v9568_v19 = vpop.f32.mrf.mxu0 }
 0x1e9   :  { %11652 = vst [vmem:[#allocation83_spill] sm:$0xff] %v9568_v19 }
 0x1ea   :  { %v9570_v29 = vpop.f32.mrf.mxu0 }
 0x1eb   :  { %11653 = vst [vmem:[#allocation84_spill] sm:$0xff] %v9570_v29 }
 0x1ec   :  { %v9572_v26 = vpop.f32.mrf.mxu0 }
 0x1ed   :  { %11654 = vst [vmem:[#allocation85_spill] sm:$0xff] %v9572_v26 }
 0x1ee   :  { %v9574_v51 = vpop.f32.mrf.mxu0 }
 0x1ef   :  { %11655 = vst [vmem:[#allocation86_spill] sm:$0xff] %v9574_v51 }
 0x1f0   :  { %v9576_v24 = vpop.f32.mrf.mxu0 }
 0x1f1   :  { %11656 = vst [vmem:[#allocation87_spill] sm:$0xff] %v9576_v24 }
 0x1f2   :  { %v9578_v32 = vpop.f32.mrf.mxu0 }
 0x1f3   :  { %11657 = vst [vmem:[#allocation88_spill] sm:$0xff] %v9578_v32 }
 0x1f4   :  { %v9580_v55 = vpop.f32.mrf.mxu0 }
 0x1f5   :  { %11658 = vst [vmem:[#allocation89_spill] sm:$0xff] %v9580_v55  ;;  %v1686_v55 = vmax.f32 %v9147_v60, %v9325_v35  ;;  %v1687_v60 = vmax.f32 %v9157_v0, %v9313_v22 }
 0x1f6   :  { %v9582_v30 = vpop.f32.mrf.mxu0 }
 0x1f7   :  { %11659 = vst [vmem:[#allocation90_spill] sm:$0xff] %v9582_v30  ;;  %v9603_v30 = vld [vmem:[%s11568_s2] ss:$0 sm:$0xff] }
 0x1f8   :  { %v9584_v49 = vpop.f32.mrf.mxu0 }
 0x1f9   :  { %11660 = vst [vmem:[#allocation91_spill] sm:$0xff] %v9584_v49 }
 0x1fa   :  { %v9586_v27 = vpop.f32.mrf.mxu0 }
 0x1fb   :  { %11661 = vst [vmem:[#allocation92_spill] sm:$0xff] %v9586_v27 }
 0x1fc   :  { %v9588_v5 = vpop.f32.mrf.mxu0 }
 0x1fd   :  { %11662 = vst [vmem:[#allocation93_spill] sm:$0xff] %v9588_v5 }
 0x1fe   :  { %v9590_v19 = vpop.f32.mrf.mxu0 }
 0x1ff   :  { %11663 = vst [vmem:[#allocation94_spill] sm:$0xff] %v9590_v19 }
 0x200   :  { %v9592_v29 = vpop.f32.mrf.mxu0 }
 0x201   :  { %11664 = vst [vmem:[#allocation95_spill] sm:$0xff] %v9592_v29  ;;  %v1689_v29 = vmax.f32 %v9149_v61, %v9329_v41 }
 0x202   :  { %v9594_v26 = vpop.f32.mrf.mxu0 }
 0x203   :  { %11665 = vst [vmem:[#allocation96_spill] sm:$0xff] %v9594_v26 }
 0x204   :  { %v9596_v51 = vpop.f32.mrf.mxu0 }
 0x205   :  { %11666 = vst [vmem:[#allocation97_spill] sm:$0xff] %v9596_v51 }
 0x206   :  { %v7821_v24 = vpop.f32.mrf.mxu0 }
 0x207   :  { %v1735_v32 = vmax.f32 %v7772_v42, %v7821_v24 }
 0x208   :  { %v9605_v27 = vpop.f32.mrf.mxu0 }
 0x209   :  { %11667 = vst [vmem:[#allocation98_spill] sm:$0xff] %v9605_v27  ;;  %v1784_v5 = vmax.f32 %v1686_v55, %v1735_v32  ;;  %v1690_v27 = vmax.f32 %v9161_v2, %v9339_v53  ;;  %v1693_v2 = vmax.f32 %v9163_v3, %v9343_v62  ;;  %v1694_v62 = vmax.f32 %v9175_v8, %v9353_v34 }
 0x20a   :  { %v7824_v19 = vpop.f32.mrf.mxu0  ;;  %v1697_v34 = vmax.f32 %v9177_v9, %v9357_v47 }
 0x20b   :  { %v1840_v26 = vadd.f32 %v9603_v30, %v1784_v5  ;;  %v1738_v51 = vmax.f32 %v1306_v36, %v7824_v19  ;;  %v1688_v19 = vmax.f32 %v9145_v59, %v9317_v28  ;;  %v1691_v59 = vmax.f32 %v9171_v6, %v9327_v40 }
 0x20c   :  { %v1495_v49 = vpop.f32.mrf.mxu0  ;;  %v1692_v40 = vmax.f32 %v9159_v1, %v9331_v46  ;;  %v1695_v46 = vmax.f32 %v9185_v12, %v9341_v58 }
 0x20d   :  { %v1889_v24 = vmax.f32 %v1840_v26, 0.0  ;;  %v1787_v35 = vmax.f32 %v1689_v29, %v1738_v51  ;;  %v1736_v42 = vmax.f32 %v9504_v48, %v1495_v49 }
 0x20e   :  { %v7825_v21 = vpop.f32.mrf.mxu0 }
 0x20f   :  { %1939 = vst.msk [vmem:[#allocation2] sm:$0xff] %vm1938_vm0, %v1889_v24  ;;  %v1843_v32 = vadd.f32 %v9603_v30, %v1787_v35  ;;  %v1785_v61 = vmax.f32 %v1687_v60, %v1736_v42  ;;  %v1739_v55 = vmax.f32 %v9508_v44, %v7825_v21 }
 0x210   :  { %v1498_v36 = vpop.f32.mrf.mxu0 }
 0x211   :  { %v1892_v0 = vmax.f32 %v1843_v32, 0.0  ;;  %v1841_v26 = vadd.f32 %v9603_v30, %v1785_v61  ;;  %v1788_v51 = vmax.f32 %v1690_v27, %v1739_v55  ;;  %v1737_v49 = vmax.f32 %v9510_v31, %v1498_v36 }
 0x212   :  { %v7828_v22 = vpop.f32.mrf.mxu0 }
 0x213   :  { %1942 = vst.msk [vmem:[#allocation2 + $0x18] sm:$0xff] %vm1938_vm0, %v1892_v0  ;;  %v1890_v41 = vmax.f32 %v1841_v26, 0.0  ;;  %v1844_v53 = vadd.f32 %v9603_v30, %v1788_v51  ;;  %v1786_v21 = vmax.f32 %v1688_v19, %v1737_v49  ;;  %v1742_v29 = vmax.f32 %v9520_v39, %v7828_v22  ;;  %v8921_v51 = vld [vmem:[%s11567_s3 + $0x38] sm:$0xff]  }
 0x214   :  { %v1511_v28 = vpop.f32.mrf.mxu0 }
 0x215   :  { %1940 = vst.msk [vmem:[#allocation2 + $0x8] sm:$0xff] %vm1938_vm0, %v1890_v41  ;;  %v1893_v27 = vmax.f32 %v1844_v53, 0.0  ;;  %v1842_v5 = vadd.f32 %v9603_v30, %v1786_v21  ;;  %v1791_v44 = vmax.f32 %v1693_v2, %v1742_v29  ;;  %v1740_v3 = vmax.f32 %v9512_v63, %v1511_v28 }
 0x216   :  { %v7829_v31 = vpop.f32.mrf.mxu0  ;;  %v1992_v26 = vld [vmem:[#allocation2] sm:$0xff] }
 0x217   :  { %1943 = vst.msk [vmem:[#allocation2 + $0x20] sm:$0xff] %vm1938_vm0, %v1893_v27  ;;  %v1891_v48 = vmax.f32 %v1842_v5, 0.0  ;;  %v1847_v39 = vadd.f32 %v9603_v30, %v1791_v44  ;;  %v1789_v60 = vmax.f32 %v1691_v59, %v1740_v3  ;;  %v1743_v6 = vmax.f32 %v9514_v43, %v7829_v31 }
 0x218   :  { %v1514_v24 = vpop.f32.mrf.mxu0  ;;  %v11668_v59 = vmov 0.0   ;;  %v1699_v3 = vmax.f32 %v9199_v18, %v9355_v4 }
 0x219   :  { %1941 = vst.msk [vmem:[#allocation2 + $0x10] sm:$0xff] %vm1938_vm0, %v1891_v48  ;;  %v1896_v35 = vmax.f32 %v1847_v39, 0.0  ;;  %v1845_v63 = vadd.f32 %v9603_v30, %v1789_v60  ;;  %v1792_v42 = vmax.f32 %v1694_v62, %v1743_v6  ;;  %v1741_v8 = vmax.f32 %v9516_v37, %v1514_v24 }
 0x21a   :  { %v7832_v32 = vpop.f32.mrf.mxu0  ;;  %v1995_v39 = vld [vmem:[#allocation2 + $0x18] sm:$0xff]  ;;  %v1702_v60 = vmax.f32 %v9203_v20, %v9381_v57 }
 0x21b   :  { %1946 = vst.msk [vmem:[#allocation2 + $0x38] sm:$0xff] %vm1938_vm0, %v1896_v35  ;;  %v1894_v61 = vmax.f32 %v1845_v63, 0.0  ;;  %v1848_v43 = vadd.f32 %v9603_v30, %v1792_v42  ;;  %v1790_v55 = vmax.f32 %v1692_v40, %v1741_v8  ;;  %v1746_v1 = vmax.f32 %v9528_v56, %v7832_v32  ;;  %v11669_v8 = vld [vmem:[#allocation5_spill] sm:$0xff] }
 0x21c   :  { %v1527_v19 = vpop.f32.mrf.mxu0  ;;  %v1993_v36 = vld [vmem:[#allocation2 + $0x8] sm:$0xff]  ;;  %v1698_v56 = vmax.f32 %v9189_v14, %v9367_v10 }
 0x21d   :  { %1944 = vst.msk [vmem:[#allocation2 + $0x28] sm:$0xff] %vm1938_vm0, %v1894_v61  ;;  %v1897_v37 = vmax.f32 %v1848_v43, 0.0  ;;  %v1846_v0 = vadd.f32 %v9603_v30, %v1790_v55  ;;  %v1795_v9 = vmax.f32 %v1697_v34, %v1746_v1  ;;  %v1744_v47 = vmax.f32 %v9518_v50, %v1527_v19  ;;  %v11670_v61 = vld [vmem:[#allocation71_spill] sm:$0xff]  ;;  %v11671_v1 = vld [vmem:[#allocation36_spill] sm:$0xff] }
 0x21e   :  { %v7833_v49 = vpop.f32.mrf.mxu0  ;;  %v2041_v12 = vpack.c.bf16 %v1993_v36, %v1992_v26  ;;  %v1696_v50 = vmax.f32 %v9173_v7, %v9345_v11  ;;  %v1701_v7 = vmax.f32 %v9191_v15, %v9371_v16  ;;  %v11674_v26 = vld [vmem:[#allocation40_spill] sm:$0xff] }
 0x21f   :  { %1947 = vst.msk [vmem:[#allocation2 + $0x40] sm:$0xff] %vm1938_vm0, %v1897_v37  ;;  %v1895_v58 = vmax.f32 %v1846_v0, 0.0  ;;  %v1851_v2 = vadd.f32 %v9603_v30, %v1795_v9  ;;  %v1793_v22 = vmax.f32 %v1695_v46, %v1744_v47  ;;  %v1747_v41 = vmax.f32 %v9522_v38, %v7833_v49  ;;  %v8922_v38 = vld [vmem:[%s11567_s3 + $0x30] sm:$0xff]   ;;  %v11672_v46 = vld [vmem:[#allocation6_spill] sm:$0xff]  ;;  %v11673_v0 = vld [vmem:[#allocation67_spill] sm:$0xff] }
 0x220   :  { %7875 = vmatmul.mubr.msk.bf16.vlgmr.msra.gmra.mxu0 %vm1938_vm0, %v2041_v12  ;;  %v1530_v53 = vpop.f32.mrf.mxu0  ;;  %v1994_v44 = vld [vmem:[#allocation2 + $0x10] sm:$0xff]  ;;  %v1703_v19 = vmax.f32 %v11672_v46, %v11671_v1  ;;  %v1996_v47 = vld [vmem:[#allocation2 + $0x20] sm:$0xff] }
 0x221   :  { %1945 = vst.msk [vmem:[#allocation2 + $0x30] sm:$0xff] %vm1938_vm0, %v1895_v58  ;;  %v1900_v21 = vmax.f32 %v1851_v2, 0.0  ;;  %v1849_v14 = vadd.f32 %v9603_v30, %v1793_v22  ;;  %v1796_v10 = vmax.f32 %v1698_v56, %v1747_v41  ;;  %v1745_v29 = vmax.f32 %v9524_v33, %v1530_v53  ;;  %7878 = vmatprep.mubr.msk.bf16.mxu0 %vm8937_vm1, %v11668_v59  ;;  %v11676_v41 = vld [vmem:[#allocation68_spill] sm:$0xff]  ;;  %v11677_v53 = vld [vmem:[#allocation37_spill] sm:$0xff] }
 0x222   :  { %8183 = vmatpush3.bf16.msra.mxu0 %v8921_v51  ;;  %v7836_v11 = vpop.f32.mrf.mxu0  ;;  %v11675_v51 = vld [vmem:[#allocation8_spill] sm:$0xff] }
 0x223   :  { %8184 = vmatprep.subr.bf16.mxu0 %v11668_v59  ;;  %1950 = vst.msk [vmem:[#allocation2 + $0x58] sm:$0xff] %vm1938_vm0, %v1900_v21  ;;  %v1898_v28 = vmax.f32 %v1849_v14, 0.0  ;;  %v1852_v27 = vadd.f32 %v9603_v30, %v1796_v10  ;;  %v1794_v33 = vmax.f32 %v1696_v50, %v1745_v29  ;;  %v1750_v5 = vmax.f32 %v9536_v45, %v7836_v11  ;;  %v11678_v21 = vld [vmem:[#allocation4_spill] sm:$0xff]  ;;  %v11679_v11 = vld [vmem:[#allocation69_spill] sm:$0xff] }
 0x224   :  { %v1543_v62 = vpop.f32.mrf.mxu0  ;;  %v2042_v45 = vpack.c.bf16 %v1995_v39, %v1994_v44  ;;  %v1997_v55 = vld [vmem:[#allocation2 + $0x28] sm:$0xff]  ;;  %v1706_v56 = vmax.f32 %v11675_v51, %v11674_v26  ;;  %v1704_v14 = vmax.f32 %v11678_v21, %v11677_v53  ;;  %v11683_v39 = vld [vmem:[#allocation38_spill] sm:$0xff] }
 0x225   :  { %1948 = vst.msk [vmem:[#allocation2 + $0x48] sm:$0xff] %vm1938_vm0, %v1898_v28  ;;  %v1901_v31 = vmax.f32 %v1852_v27, 0.0  ;;  %v1850_v15 = vadd.f32 %v9603_v30, %v1794_v33  ;;  %v1799_v16 = vmax.f32 %v1701_v7, %v1750_v5  ;;  %v1748_v48 = vmax.f32 %v9526_v54, %v1543_v62  ;;  %v11680_v27 = vld [vmem:[#allocation42_spill] sm:$0xff]  ;;  %v11681_v33 = vld [vmem:[#allocation9_spill] sm:$0xff] }
 0x226   :  { %8185 = vmatpush3.bf16.msra.mxu0 %v8922_v38  ;;  %v7837_v6 = vpop.f32.mrf.mxu0  ;;  %v1700_v54 = vmax.f32 %v9187_v13, %v9359_v52  ;;  %v2043_v12 = vpack.c.bf16 %v1997_v55, %v1996_v47  ;;  %v1709_v5 = vmax.f32 %v11681_v33, %v11680_v27 }
 0x227   :  { %8390 = vmatprep.subr.bf16.mxu0 %v11668_v59  ;;  %1951 = vst.msk [vmem:[#allocation2 + $0x60] sm:$0xff] %vm1938_vm0, %v1901_v31  ;;  %v1899_v18 = vmax.f32 %v1850_v15, 0.0  ;;  %v1855_v4 = vadd.f32 %v9603_v30, %v1799_v16  ;;  %v1797_v40 = vmax.f32 %v1699_v3, %v1748_v48  ;;  %v1751_v24 = vmax.f32 %v9530_v25, %v7837_v6  ;;  %v11682_v15 = vld [vmem:[#allocation75_spill] sm:$0xff] }
 0x228   :  { %7879 = vmatmul.mubr.msk.bf16.gmra.mxu0 %vm1938_vm0, %v2042_v45  ;;  %v1546_v35 = vpop.f32.mrf.mxu0  ;;  %v1705_v25 = vmax.f32 %v11669_v8, %v9385_v23  ;;  %v1998_v48 = vld [vmem:[#allocation2 + $0x30] sm:$0xff] }
 0x229   :  { %1949 = vst.msk [vmem:[#allocation2 + $0x50] sm:$0xff] %vm1938_vm0, %v1899_v18  ;;  %v1904_v20 = vmax.f32 %v1855_v4, 0.0  ;;  %v1853_v57 = vadd.f32 %v9603_v30, %v1797_v40  ;;  %v1800_v63 = vmax.f32 %v1702_v60, %v1751_v24  ;;  %v1749_v42 = vmax.f32 %v9532_v17, %v1546_v35  ;;  %7882 = vmatprep.mubr.msk.bf16.mxu0 %vm8937_vm1, %v11668_v59  ;;  %v11684_v60 = vld [vmem:[#allocation10_spill] sm:$0xff]  ;;  %v1999_v35 = vld [vmem:[#allocation2 + $0x38] sm:$0xff] }
 0x22a   :  { %v7840_v34 = vpop.f32.mrf.mxu0  ;;  %v1707_v6 = vmax.f32 %v11684_v60, %v11683_v39  ;;  %v11685_v24 = vld [vmem:[#allocation70_spill] sm:$0xff]  ;;  %v2044_v8 = vpack.c.bf16 %v1999_v35, %v1998_v48 }
 0x22b   :  { %1954 = vst.msk [vmem:[#allocation2 + $0x78] sm:$0xff] %vm1938_vm0, %v1904_v20  ;;  %v1902_v13 = vmax.f32 %v1853_v57, 0.0  ;;  %v1856_v52 = vadd.f32 %v9603_v30, %v1800_v63  ;;  %v1798_v32 = vmax.f32 %v1700_v54, %v1749_v42  ;;  %v1754_v43 = vmax.f32 %v11670_v61, %v7840_v34  ;;  %v11686_v20 = vld [vmem:[#allocation44_spill] sm:$0xff]  ;;  %v11689_v61 = vld [vmem:[#allocation39_spill] sm:$0xff] }
 0x22c   :  { %v1559_v17 = vpop.f32.mrf.mxu0  ;;  %v11687_v57 = vld [vmem:[#allocation12_spill] sm:$0xff] }
 0x22d   :  { %1952 = vst.msk [vmem:[#allocation2 + $0x68] sm:$0xff] %vm1938_vm0, %v1902_v13  ;;  %v1905_v36 = vmax.f32 %v1856_v52, 0.0  ;;  %v1854_v37 = vadd.f32 %v9603_v30, %v1798_v32  ;;  %v1803_v23 = vmax.f32 %v1705_v25, %v1754_v43  ;;  %v1752_v9 = vmax.f32 %v11673_v0, %v1559_v17  ;;  %v11688_v52 = vld [vmem:[#allocation72_spill] sm:$0xff]  ;;  %v11690_v43 = vld [vmem:[#allocation7_spill] sm:$0xff]  ;;  %v11693_v0 = vld [vmem:[#allocation13_spill] sm:$0xff] }
 0x22e   :  { %v7841_v49 = vpop.f32.mrf.mxu0  ;;  %v1710_v63 = vmax.f32 %v11687_v57, %v11686_v20  ;;  %v1708_v55 = vmax.f32 %v11690_v43, %v11689_v61 }
 0x22f   :  { %1955 = vst.msk [vmem:[#allocation2 + $0x80] sm:$0xff] %vm1938_vm0, %v1905_v36  ;;  %v1903_v58 = vmax.f32 %v1854_v37, 0.0  ;;  %v1859_v2 = vadd.f32 %v9603_v30, %v1803_v23  ;;  %v1801_v22 = vmax.f32 %v1703_v19, %v1752_v9  ;;  %v1755_v50 = vmax.f32 %v11676_v41, %v7841_v49  ;;  %v11691_v36 = vld [vmem:[#allocation73_spill] sm:$0xff]  ;;  %v11692_v23 = vld [vmem:[#allocation46_spill] sm:$0xff]  ;;  %v11694_v49 = vld [vmem:[#allocation79_spill] sm:$0xff] }
 0x230   :  { %7883 = vmatmul.mubr.msk.bf16.gmra.mxu0 %vm1938_vm0, %v2043_v12  ;;  %v1562_v10 = vpop.f32.mrf.mxu0  ;;  %v1713_v9 = vmax.f32 %v11693_v0, %v11692_v23 }
 0x231   :  { %1953 = vst.msk [vmem:[#allocation2 + $0x70] sm:$0xff] %vm1938_vm0, %v1903_v58  ;;  %v1908_v29 = vmax.f32 %v1859_v2, 0.0  ;;  %v1857_v38 = vadd.f32 %v9603_v30, %v1801_v22  ;;  %v1804_v7 = vmax.f32 %v1706_v56, %v1755_v50  ;;  %v1753_v28 = vmax.f32 %v11679_v11, %v1562_v10  ;;  %7886 = vmatprep.mubr.msk.bf16.mxu0 %vm8937_vm1, %v11668_v59  ;;  %v2001_v58 = vld [vmem:[#allocation2 + $0x48] sm:$0xff]  ;;  %v11695_v2 = vld [vmem:[#allocation41_spill] sm:$0xff]  ;;  %v11696_v22 = vld [vmem:[#allocation14_spill] sm:$0xff] }
 0x232   :  { %v7844_v44 = vpop.f32.mrf.mxu0  ;;  %v1711_v41 = vmax.f32 %v11696_v22, %v11695_v2  ;;  %v11697_v10 = vld [vmem:[#allocation74_spill] sm:$0xff]  ;;  %v11699_v11 = vld [vmem:[#allocation16_spill] sm:$0xff] }
 0x233   :  { %1958 = vst.msk [vmem:[#allocation2 + $0x98] sm:$0xff] %vm1938_vm0, %v1908_v29  ;;  %v1906_v3 = vmax.f32 %v1857_v38, 0.0  ;;  %v1860_v62 = vadd.f32 %v9603_v30, %v1804_v7  ;;  %v1802_v31 = vmax.f32 %v1704_v14, %v1753_v28  ;;  %v1758_v16 = vmax.f32 %v11682_v15, %v7844_v44  ;;  %v2000_v38 = vld [vmem:[#allocation2 + $0x40] sm:$0xff]  ;;  %v11698_v7 = vld [vmem:[#allocation48_spill] sm:$0xff]  ;;  %v11701_v15 = vld [vmem:[#allocation43_spill] sm:$0xff] }
 0x234   :  { %v1575_v45 = vpop.f32.mrf.mxu0  ;;  %v1714_v28 = vmax.f32 %v11699_v11, %v11698_v7  ;;  %v2045_v33 = vpack.c.bf16 %v2001_v58, %v2000_v38  ;;  %v11716_v38 = vld [vmem:[#allocation54_spill] sm:$0xff]  ;;  %v11717_v7 = vld [vmem:[#allocation21_spill] sm:$0xff] }
 0x235   :  { %1956 = vst.msk [vmem:[#allocation2 + $0x88] sm:$0xff] %vm1938_vm0, %v1906_v3  ;;  %v1909_v18 = vmax.f32 %v1860_v62, 0.0  ;;  %v1858_v4 = vadd.f32 %v9603_v30, %v1802_v31  ;;  %v1807_v40 = vmax.f32 %v1709_v5, %v1758_v16  ;;  %v1756_v54 = vmax.f32 %v11685_v24, %v1575_v45  ;;  %v11700_v62 = vld [vmem:[#allocation76_spill] sm:$0xff]  ;;  %v11702_v16 = vld [vmem:[#allocation11_spill] sm:$0xff]  ;;  %v11705_v24 = vld [vmem:[#allocation17_spill] sm:$0xff] }
 0x236   :  { %v7845_v42 = vpop.f32.mrf.mxu0  ;;  %v1712_v48 = vmax.f32 %v11702_v16, %v11701_v15  ;;  %v1721_v11 = vmax.f32 %v11717_v7, %v11716_v38  ;;  %v11719_v15 = vld [vmem:[#allocation49_spill] sm:$0xff]  ;;  %v11720_v16 = vld [vmem:[#allocation22_spill] sm:$0xff] }
 0x237   :  { %1959 = vst.msk [vmem:[#allocation2 + $0xa0] sm:$0xff] %vm1938_vm0, %v1909_v18  ;;  %v1907_v25 = vmax.f32 %v1858_v4, 0.0  ;;  %v1863_v34 = vadd.f32 %v9603_v30, %v1807_v40  ;;  %v1805_v13 = vmax.f32 %v1707_v6, %v1756_v54  ;;  %v1759_v32 = vmax.f32 %v11688_v52, %v7845_v42  ;;  %v11703_v18 = vld [vmem:[#allocation77_spill] sm:$0xff]  ;;  %v11704_v40 = vld [vmem:[#allocation50_spill] sm:$0xff]  ;;  %v11706_v42 = vld [vmem:[#allocation83_spill] sm:$0xff] }
 0x238   :  { %7887 = vmatmul.mubr.msk.bf16.gmra.mxu0 %vm1938_vm0, %v2044_v8  ;;  %v1578_v1 = vpop.f32.mrf.mxu0  ;;  %v1717_v54 = vmax.f32 %v11705_v24, %v11704_v40  ;;  %v2004_v40 = vld [vmem:[#allocation2 + $0x60] sm:$0xff]  ;;  %v8923_v24 = vld [vmem:[%s11567_s3 + $0x10] sm:$0xff]   ;;  %v2007_v7 = vld [vmem:[#allocation2 + $0x78] sm:$0xff] }
 0x239   :  { %1957 = vst.msk [vmem:[#allocation2 + $0x90] sm:$0xff] %vm1938_vm0, %v1907_v25  ;;  %v1912_v46 = vmax.f32 %v1863_v34, 0.0  ;;  %v1861_v19 = vadd.f32 %v9603_v30, %v1805_v13  ;;  %v1808_v17 = vmax.f32 %v1710_v63, %v1759_v32  ;;  %v1757_v37 = vmax.f32 %v11691_v36, %v1578_v1  ;;  %7890 = vmatprep.mubr.msk.bf16.mxu0 %vm8937_vm1, %v11668_v59  ;;  %v2002_v25 = vld [vmem:[#allocation2 + $0x50] sm:$0xff]  ;;  %v11707_v34 = vld [vmem:[#allocation45_spill] sm:$0xff]  ;;  %v11708_v13 = vld [vmem:[#allocation18_spill] sm:$0xff] }
 0x23a   :  { %v7848_v47 = vpop.f32.mrf.mxu0  ;;  %v1715_v52 = vmax.f32 %v11708_v13, %v11707_v34  ;;  %v11709_v1 = vld [vmem:[#allocation78_spill] sm:$0xff]  ;;  %v11711_v36 = vld [vmem:[#allocation20_spill] sm:$0xff] }
 0x23b   :  { %1962 = vst.msk [vmem:[#allocation2 + $0xb8] sm:$0xff] %vm1938_vm0, %v1912_v46  ;;  %v1910_v26 = vmax.f32 %v1861_v19, 0.0  ;;  %v1864_v51 = vadd.f32 %v9603_v30, %v1808_v17  ;;  %v1806_v56 = vmax.f32 %v1708_v55, %v1757_v37  ;;  %v1762_v12 = vmax.f32 %v11694_v49, %v7848_v47  ;;  %v2003_v19 = vld [vmem:[#allocation2 + $0x58] sm:$0xff]  ;;  %v11710_v17 = vld [vmem:[#allocation52_spill] sm:$0xff]  ;;  %v11713_v49 = vld [vmem:[#allocation47_spill] sm:$0xff] }
 0x23c   :  { %v1591_v50 = vpop.f32.mrf.mxu0  ;;  %v1718_v37 = vmax.f32 %v11711_v36, %v11710_v17  ;;  %v2046_v0 = vpack.c.bf16 %v2003_v19, %v2002_v25  ;;  %v11724_v34 = vld [vmem:[#allocation84_spill] sm:$0xff]  ;;  %v11727_v17 = vld [vmem:[#allocation85_spill] sm:$0xff] }
 0x23d   :  { %1960 = vst.msk [vmem:[#allocation2 + $0xa8] sm:$0xff] %vm1938_vm0, %v1910_v26  ;;  %v1913_v53 = vmax.f32 %v1864_v51, 0.0  ;;  %v1862_v21 = vadd.f32 %v9603_v30, %v1806_v56  ;;  %v1811_v14 = vmax.f32 %v1713_v9, %v1762_v12  ;;  %v1760_v29 = vmax.f32 %v11697_v10, %v1591_v50  ;;  %v11712_v51 = vld [vmem:[#allocation80_spill] sm:$0xff]  ;;  %v11714_v12 = vld [vmem:[#allocation15_spill] sm:$0xff] }
 0x23e   :  { %v7849_v27 = vpop.f32.mrf.mxu0  ;;  %v1716_v58 = vmax.f32 %v11714_v12, %v11713_v49  ;;  %v11730_v12 = vld [vmem:[#allocation91_spill] sm:$0xff] }
 0x23f   :  { %1963 = vst.msk [vmem:[#allocation2 + $0xc0] sm:$0xff] %vm1938_vm0, %v1913_v53  ;;  %v1911_v5 = vmax.f32 %v1862_v21, 0.0  ;;  %v1867_v44 = vadd.f32 %v9603_v30, %v1811_v14  ;;  %v1809_v3 = vmax.f32 %v1711_v41, %v1760_v29  ;;  %v1763_v31 = vmax.f32 %v11700_v62, %v7849_v27  ;;  %v11715_v21 = vld [vmem:[#allocation81_spill] sm:$0xff] }
 0x240   :  { %7891 = vmatmul.mubr.msk.bf16.gmra.mxu0 %vm1938_vm0, %v2045_v33  ;;  %v1594_v39 = vpop.f32.mrf.mxu0  ;;  %v8920_v29 = vld [vmem:[%s11567_s3 + $0x18] sm:$0xff]  }
 0x241   :  { %1961 = vst.msk [vmem:[#allocation2 + $0xb0] sm:$0xff] %vm1938_vm0, %v1911_v5  ;;  %v1916_v60 = vmax.f32 %v1867_v44, 0.0  ;;  %v1865_v6 = vadd.f32 %v9603_v30, %v1809_v3  ;;  %v1812_v45 = vmax.f32 %v1714_v28, %v1763_v31  ;;  %v1761_v4 = vmax.f32 %v11703_v18, %v1594_v39  ;;  %7894 = vmatprep.mubr.msk.bf16.mxu0 %vm8937_vm1, %v11668_v59  ;;  %v11718_v3 = vld [vmem:[#allocation87_spill] sm:$0xff]  ;;  %v11721_v18 = vld [vmem:[#allocation82_spill] sm:$0xff] }
 0x242   :  { %v7852_v35 = vpop.f32.mrf.mxu0  ;;  %v2015_v10 = vld [vmem:[#allocation2 + $0xb8] sm:$0xff]  ;;  %v2005_v31 = vld [vmem:[#allocation2 + $0x68] sm:$0xff] }
 0x243   :  { %1966 = vst.msk [vmem:[#allocation2 + $0xd8] sm:$0xff] %vm1938_vm0, %v1916_v60  ;;  %v1914_v20 = vmax.f32 %v1865_v6, 0.0  ;;  %v1868_v57 = vadd.f32 %v9603_v30, %v1812_v45  ;;  %v1810_v63 = vmax.f32 %v1712_v48, %v1761_v4  ;;  %v1766_v8 = vmax.f32 %v11706_v42, %v7852_v35  ;;  %v11723_v35 = vld [vmem:[#allocation24_spill] sm:$0xff] }
 0x244   :  { %v1607_v32 = vpop.f32.mrf.mxu0  ;;  %v1719_v48 = vmax.f32 %v11720_v16, %v11719_v15 }
 0x245   :  { %1964 = vst.msk [vmem:[#allocation2 + $0xc8] sm:$0xff] %vm1938_vm0, %v1914_v20  ;;  %v1917_v61 = vmax.f32 %v1868_v57, 0.0  ;;  %v1866_v43 = vadd.f32 %v9603_v30, %v1810_v63  ;;  %v1815_v55 = vmax.f32 %v1717_v54, %v1766_v8  ;;  %v1764_v46 = vmax.f32 %v11709_v1, %v1607_v32  ;;  %v11722_v54 = vld [vmem:[#allocation56_spill] sm:$0xff]  ;;  %v11725_v32 = vld [vmem:[#allocation51_spill] sm:$0xff] }
 0x246   :  { %v7853_v23 = vpop.f32.mrf.mxu0  ;;  %v1722_v20 = vmax.f32 %v11723_v35, %v11722_v54  ;;  %v2047_v63 = vpack.c.bf16 %v2005_v31, %v2004_v40  ;;  %v11736_v31 = vld [vmem:[#allocation88_spill] sm:$0xff]  ;;  %v11739_v40 = vld [vmem:[#allocation89_spill] sm:$0xff]  ;;  %v11740_v35 = vld [vmem:[#allocation62_spill] sm:$0xff] }
 0x247   :  { %1967 = vst.msk [vmem:[#allocation2 + $0xe0] sm:$0xff] %vm1938_vm0, %v1917_v61  ;;  %v1915_v9 = vmax.f32 %v1866_v43, 0.0  ;;  %v1871_v47 = vadd.f32 %v9603_v30, %v1815_v55  ;;  %v1813_v26 = vmax.f32 %v1715_v52, %v1764_v46  ;;  %v1767_v56 = vmax.f32 %v11712_v51, %v7853_v23  ;;  %v11726_v61 = vld [vmem:[#allocation19_spill] sm:$0xff]  ;;  %v11728_v23 = vld [vmem:[#allocation58_spill] sm:$0xff] }
 0x248   :  { %7895 = vmatmul.mubr.msk.bf16.gmra.mxu0 %vm1938_vm0, %v2046_v0  ;;  %v1610_v2 = vpop.f32.mrf.mxu0  ;;  %v2014_v22 = vld [vmem:[#allocation2 + $0xb0] sm:$0xff]  ;;  %v1720_v43 = vmax.f32 %v11726_v61, %v11725_v32  ;;  %v11729_v0 = vld [vmem:[#allocation25_spill] sm:$0xff]  ;;  %v2009_v32 = vld [vmem:[#allocation2 + $0x88] sm:$0xff] }
 0x249   :  { %1965 = vst.msk [vmem:[#allocation2 + $0xd0] sm:$0xff] %vm1938_vm0, %v1915_v9  ;;  %v1920_v41 = vmax.f32 %v1871_v47, 0.0  ;;  %v1869_v50 = vadd.f32 %v9603_v30, %v1813_v26  ;;  %v1816_v53 = vmax.f32 %v1718_v37, %v1767_v56  ;;  %v1765_v14 = vmax.f32 %v11715_v21, %v1610_v2  ;;  %7898 = vmatprep.mubr.msk.bf16.mxu0 %vm8937_vm1, %v11668_v59  ;;  %v2016_v37 = vld [vmem:[#allocation2 + $0xc0] sm:$0xff]  ;;  %v2006_v2 = vld [vmem:[#allocation2 + $0x70] sm:$0xff]  ;;  %v11743_v61 = vld [vmem:[#allocation57_spill] sm:$0xff] }
 0x24a   :  { %v7856_v28 = vpop.f32.mrf.mxu0  ;;  %v2052_v27 = vpack.c.bf16 %v2015_v10, %v2014_v22  ;;  %v1725_v9 = vmax.f32 %v11729_v0, %v11728_v23  ;;  %v11731_v22 = vld [vmem:[#allocation53_spill] sm:$0xff]  ;;  %v2008_v23 = vld [vmem:[#allocation2 + $0x80] sm:$0xff]  ;;  %v11746_v0 = vld [vmem:[#allocation64_spill] sm:$0xff] }
 0x24b   :  { %1970 = vst.msk [vmem:[#allocation2 + $0xf8] sm:$0xff] %vm1938_vm0, %v1920_v41  ;;  %v1918_v33 = vmax.f32 %v1869_v50, 0.0  ;;  %v1872_v5 = vadd.f32 %v9603_v30, %v1816_v53  ;;  %v1814_v44 = vmax.f32 %v1716_v58, %v1765_v14  ;;  %v1770_v62 = vmax.f32 %v11718_v3, %v7856_v28  ;;  %v11732_v41 = vld [vmem:[#allocation26_spill] sm:$0xff]  ;;  %v11735_v28 = vld [vmem:[#allocation28_spill] sm:$0xff]  ;;  %v2019_v54 = vld [vmem:[#allocation2 + $0xd8] sm:$0xff] }
 0x24c   :  { %7919 = vmatmul.mubr.msk.bf16.vlgmr.msra.gmra.mxu1 %vm1938_vm0, %v2052_v27  ;;  %v1623_v39 = vpop.f32.mrf.mxu0  ;;  %v2017_v52 = vld [vmem:[#allocation2 + $0xc8] sm:$0xff]  ;;  %v1723_v50 = vmax.f32 %v11732_v41, %v11731_v22 }
 0x24d   :  { %1968 = vst.msk [vmem:[#allocation2 + $0xe8] sm:$0xff] %vm1938_vm0, %v1918_v33  ;;  %v1921_v60 = vmax.f32 %v1872_v5, 0.0  ;;  %v1870_v6 = vadd.f32 %v9603_v30, %v1814_v44  ;;  %v1819_v45 = vmax.f32 %v1721_v11, %v1770_v62  ;;  %7975 = vmatpush3.bf16.msra.mxu1 %v8920_v29  ;;  %v1768_v4 = vmax.f32 %v11721_v18, %v1623_v39  ;;  %v11733_v29 = vld [vmem:[#allocation86_spill] sm:$0xff]  ;;  %v11734_v11 = vld [vmem:[#allocation60_spill] sm:$0xff]  ;;  %v11738_v39 = vld [vmem:[#allocation23_spill] sm:$0xff] }
 0x24e   :  { %7922 = vmatprep.mubr.msk.bf16.mxu1 %vm8937_vm1, %v11668_v59  ;;  %v7857_v57 = vpop.f32.mrf.mxu0  ;;  %7976 = vmatprep.subr.bf16.mxu1 %v11668_v59  ;;  %v2053_v26 = vpack.c.bf16 %v2017_v52, %v2016_v37  ;;  %v1726_v27 = vmax.f32 %v11735_v28, %v11734_v11  ;;  %v2048_v5 = vpack.c.bf16 %v2007_v7, %v2006_v2  ;;  %v11749_v41 = vld [vmem:[#allocation59_spill] sm:$0xff]  ;;  %v2020_v11 = vld [vmem:[#allocation2 + $0xe0] sm:$0xff]  ;;  %v11752_v28 = vld [vmem:[#allocation65_spill] sm:$0xff] }
 0x24f   :  { %1971 = vst.msk [vmem:[#allocation2 + $0x100] sm:$0xff] %vm1938_vm0, %v1921_v60  ;;  %v1919_v42 = vmax.f32 %v1870_v6, 0.0  ;;  %v1875_v8 = vadd.f32 %v9603_v30, %v1819_v45  ;;  %v1817_v25 = vmax.f32 %v1719_v48, %v1768_v4  ;;  %v1771_v13 = vmax.f32 %v11724_v34, %v7857_v57  ;;  %v11737_v48 = vld [vmem:[#allocation55_spill] sm:$0xff] }
 0x250   :  { %7899 = vmatmul.mubr.msk.bf16.gmra.mxu0 %vm1938_vm0, %v2047_v63  ;;  %v1626_v55 = vpop.f32.mrf.mxu0  ;;  %v2018_v16 = vld [vmem:[#allocation2 + $0xd0] sm:$0xff]  ;;  %v1724_v60 = vmax.f32 %v11738_v39, %v11737_v48  ;;  %v11755_v39 = vld [vmem:[#allocation61_spill] sm:$0xff] }
 0x251   :  { %1969 = vst.msk [vmem:[#allocation2 + $0xf0] sm:$0xff] %vm1938_vm0, %v1919_v42  ;;  %v1924_v1 = vmax.f32 %v1875_v8, 0.0  ;;  %v1873_v46 = vadd.f32 %v9603_v30, %v1817_v25  ;;  %v1820_v19 = vmax.f32 %v1722_v20, %v1771_v13  ;;  %v1769_v36 = vmax.f32 %v11727_v17, %v1626_v55  ;;  %7902 = vmatprep.mubr.msk.bf16.mxu0 %vm8937_vm1, %v11668_v59  ;;  %v11741_v20 = vld [vmem:[#allocation29_spill] sm:$0xff]  ;;  %v11742_v13 = vld [vmem:[#allocation95_spill] sm:$0xff]  ;;  %v2010_v48 = vld [vmem:[#allocation2 + $0x90] sm:$0xff] }
 0x252   :  { %7977 = vmatpush3.bf16.msra.mxu1 %v8923_v24  ;;  %v7860_v47 = vpop.f32.mrf.mxu0  ;;  %v1729_v57 = vmax.f32 %v11741_v20, %v11740_v35  ;;  %v2054_v42 = vpack.c.bf16 %v2019_v54, %v2018_v16  ;;  %v2011_v35 = vld [vmem:[#allocation2 + $0x98] sm:$0xff]  ;;  %v11758_v20 = vld [vmem:[#allocation66_spill] sm:$0xff] }
 0x253   :  { %8078 = vmatprep.subr.bf16.mxu1 %v11668_v59  ;;  %1974 = vst.msk [vmem:[#allocation2 + $0x118] sm:$0xff] %vm1938_vm0, %v1924_v1  ;;  %v1922_v51 = vmax.f32 %v1873_v46, 0.0  ;;  %v1876_v56 = vadd.f32 %v9603_v30, %v1820_v19  ;;  %v1818_v49 = vmax.f32 %v1720_v43, %v1769_v36  ;;  %v1774_v58 = vmax.f32 %v11730_v12, %v7860_v47  ;;  %v11744_v43 = vld [vmem:[#allocation30_spill] sm:$0xff] }
 0x254   :  { %7923 = vmatmul.mubr.msk.bf16.gmra.mxu1 %vm1938_vm0, %v2053_v26  ;;  %v1639_v53 = vpop.f32.mrf.mxu0  ;;  %v1727_v55 = vmax.f32 %v11744_v43, %v11743_v61  ;;  %v11745_v36 = vld [vmem:[#allocation90_spill] sm:$0xff]  ;;  %v2021_v22 = vld [vmem:[#allocation2 + $0xe8] sm:$0xff] }
 0x255   :  { %1972 = vst.msk [vmem:[#allocation2 + $0x108] sm:$0xff] %vm1938_vm0, %v1922_v51  ;;  %v1925_v21 = vmax.f32 %v1876_v56, 0.0  ;;  %v1874_v14 = vadd.f32 %v9603_v30, %v1818_v49  ;;  %v1823_v10 = vmax.f32 %v1725_v9, %v1774_v58  ;;  %v1772_v38 = vmax.f32 %v11733_v29, %v1639_v53  ;;  %7926 = vmatprep.mubr.msk.bf16.mxu1 %vm8937_vm1, %v11668_v59  ;;  %v11747_v9 = vld [vmem:[#allocation32_spill] sm:$0xff]  ;;  %v11761_v43 = vld [vmem:[#allocation63_spill] sm:$0xff] }
 0x256   :  { %v7861_v33 = vpop.f32.mrf.mxu0  ;;  %v1730_v47 = vmax.f32 %v11747_v9, %v11746_v0  ;;  %v2049_v51 = vpack.c.bf16 %v2009_v32, %v2008_v23  ;;  %v11748_v58 = vld [vmem:[#allocation92_spill] sm:$0xff]  ;;  %v2023_v0 = vld [vmem:[#allocation2 + $0xf8] sm:$0xff] }
 0x257   :  { %1975 = vst.msk [vmem:[#allocation2 + $0x120] sm:$0xff] %vm1938_vm0, %v1925_v21  ;;  %v1923_v44 = vmax.f32 %v1874_v14, 0.0  ;;  %v1879_v3 = vadd.f32 %v9603_v30, %v1823_v10  ;;  %v1821_v62 = vmax.f32 %v1723_v50, %v1772_v38  ;;  %v1775_v15 = vmax.f32 %v11736_v31, %v7861_v33  ;;  %v11750_v50 = vld [vmem:[#allocation27_spill] sm:$0xff]  ;;  %v11751_v38 = vld [vmem:[#allocation93_spill] sm:$0xff] }
 0x258   :  { %7903 = vmatmul.mubr.msk.bf16.gmra.mxu0 %vm1938_vm0, %v2048_v5  ;;  %v1642_v6 = vpop.f32.mrf.mxu0  ;;  %v1728_v53 = vmax.f32 %v11750_v50, %v11749_v41  ;;  %v2022_v61 = vld [vmem:[#allocation2 + $0xf0] sm:$0xff]  ;;  %v2024_v50 = vld [vmem:[#allocation2 + $0x100] sm:$0xff] }
 0x259   :  { %1973 = vst.msk [vmem:[#allocation2 + $0x110] sm:$0xff] %vm1938_vm0, %v1923_v44  ;;  %v1928_v45 = vmax.f32 %v1879_v3, 0.0  ;;  %v1877_v18 = vadd.f32 %v9603_v30, %v1821_v62  ;;  %v1824_v4 = vmax.f32 %v1726_v27, %v1775_v15  ;;  %v1773_v24 = vmax.f32 %v11739_v40, %v1642_v6  ;;  %7906 = vmatprep.mubr.msk.bf16.mxu0 %vm8937_vm1, %v11668_v59  ;;  %v11753_v27 = vld [vmem:[#allocation33_spill] sm:$0xff]  ;;  %v11754_v15 = vld [vmem:[#allocation98_spill] sm:$0xff] }
 0x25a   :  { %v7864_v63 = vpop.f32.mrf.mxu0  ;;  %v1733_v33 = vmax.f32 %v11753_v27, %v11752_v28  ;;  %v2055_v44 = vpack.c.bf16 %v2021_v22, %v2020_v11  ;;  %v2056_v9 = vpack.c.bf16 %v2023_v0, %v2022_v61  ;;  %v3536_v11 = vld [vmem:[#allocation2 + $0x1e] sm:$0xff] }
 0x25b   :  { %1978 = vst.msk [vmem:[#allocation2 + $0x138] sm:$0xff] %vm1938_vm0, %v1928_v45  ;;  %v1926_v8 = vmax.f32 %v1877_v18, 0.0  ;;  %v1880_v25 = vadd.f32 %v9603_v30, %v1824_v4  ;;  %v1822_v34 = vmax.f32 %v1724_v60, %v1773_v24  ;;  %v1778_v52 = vmax.f32 %v11742_v13, %v7864_v63  ;;  %v11756_v60 = vld [vmem:[#allocation34_spill] sm:$0xff] }
 0x25c   :  { %7927 = vmatmul.mubr.msk.bf16.gmra.mxu1 %vm1938_vm0, %v2054_v42  ;;  %v1655_v1 = vpop.f32.mrf.mxu0  ;;  %v1731_v6 = vmax.f32 %v11756_v60, %v11755_v39  ;;  %v11757_v24 = vld [vmem:[#allocation94_spill] sm:$0xff]  ;;  %v2025_v41 = vld [vmem:[#allocation2 + $0x108] sm:$0xff] }
 0x25d   :  { %1976 = vst.msk [vmem:[#allocation2 + $0x128] sm:$0xff] %vm1938_vm0, %v1926_v8  ;;  %v1929_v46 = vmax.f32 %v1880_v25, 0.0  ;;  %v1878_v19 = vadd.f32 %v9603_v30, %v1822_v34  ;;  %v1827_v17 = vmax.f32 %v1729_v57, %v1778_v52  ;;  %v1776_v37 = vmax.f32 %v11745_v36, %v1655_v1  ;;  %7930 = vmatprep.mubr.msk.bf16.mxu1 %vm8937_vm1, %v11668_v59  ;;  %v11759_v57 = vld [vmem:[#allocation35_spill] sm:$0xff]  ;;  %v11760_v52 = vld [vmem:[#allocation96_spill] sm:$0xff]  ;;  %v3540_v39 = vld [vmem:[#allocation2 + $0x3e] sm:$0xff] }
 0x25e   :  { %v7865_v26 = vpop.f32.mrf.mxu0  ;;  %v1734_v63 = vmax.f32 %v11759_v57, %v11758_v20  ;;  %v2050_v8 = vpack.c.bf16 %v2011_v35, %v2010_v48  ;;  %v3541_v48 = vld [vmem:[#allocation2 + $0x46] sm:$0xff] }
 0x25f   :  { %1979 = vst.msk [vmem:[#allocation2 + $0x140] sm:$0xff] %vm1938_vm0, %v1929_v46  ;;  %v1927_v56 = vmax.f32 %v1878_v19, 0.0  ;;  %v1883_v49 = vadd.f32 %v9603_v30, %v1827_v17  ;;  %v1825_v12 = vmax.f32 %v1727_v55, %v1776_v37  ;;  %v1779_v2 = vmax.f32 %v11748_v58, %v7865_v26  ;;  %v11762_v55 = vld [vmem:[#allocation31_spill] sm:$0xff]  ;;  %v11763_v37 = vld [vmem:[#allocation97_spill] sm:$0xff]  ;;  %v2012_v58 = vld [vmem:[#allocation2 + $0xa0] sm:$0xff] }
 0x260   :  { %7907 = vmatmul.mubr.msk.bf16.gmra.mxu0 %vm1938_vm0, %v2049_v51  ;;  %v1658_v21 = vpop.f32.mrf.mxu0  ;;  %v1732_v1 = vmax.f32 %v11762_v55, %v11761_v43  ;;  %v3586_v60 = vpack.c.bf16 %v3541_v48, %v3540_v39  ;;  %v3545_v57 = vld [vmem:[#allocation2 + $0x66] sm:$0xff]  ;;  %v3560_v39 = vld [vmem:[#allocation2 + $0xde] sm:$0xff] }
 0x261   :  { %1977 = vst.msk [vmem:[#allocation2 + $0x130] sm:$0xff] %vm1938_vm0, %v1927_v56  ;;  %v1932_v14 = vmax.f32 %v1883_v49, 0.0  ;;  %v1881_v10 = vadd.f32 %v9603_v30, %v1825_v12  ;;  %v1828_v29 = vmax.f32 %v1730_v47, %v1779_v2  ;;  %v1777_v7 = vmax.f32 %v11751_v38, %v1658_v21  ;;  %7910 = vmatprep.mubr.msk.bf16.mxu0 %vm8937_vm1, %v11668_v59  ;;  %v2013_v56 = vld [vmem:[#allocation2 + $0xa8] sm:$0xff] }
 0x262   :  { %v7868_v5 = vpop.f32.mrf.mxu0  ;;  %v2051_v2 = vpack.c.bf16 %v2013_v56, %v2012_v58  ;;  %v3534_v21 = vld [vmem:[#allocation2 + $0xe] sm:$0xff]  ;;  %v3552_v58 = vld [vmem:[#allocation2 + $0x9e] sm:$0xff]  ;;  %v3561_v48 = vld [vmem:[#allocation2 + $0xe6] sm:$0xff] }
 0x263   :  { %1982 = vst.msk [vmem:[#allocation2 + $0x158] sm:$0xff] %vm1938_vm0, %v1932_v14  ;;  %v1930_v3 = vmax.f32 %v1881_v10, 0.0  ;;  %v1884_v62 = vadd.f32 %v9603_v30, %v1828_v29  ;;  %v1826_v31 = vmax.f32 %v1728_v53, %v1777_v7  ;;  %v1782_v16 = vmax.f32 %v11754_v15, %v7868_v5  ;;  %v2026_v10 = vld [vmem:[#allocation2 + $0x110] sm:$0xff]  ;;  %v2027_v29 = vld [vmem:[#allocation2 + $0x118] sm:$0xff]  ;;  %v3537_v7 = vld [vmem:[#allocation2 + $0x26] sm:$0xff] }
 0x264   :  { %7931 = vmatmul.mubr.msk.bf16.gmra.mxu1 %vm1938_vm0, %v2055_v44  ;;  %v1671_v45 = vpop.f32.mrf.mxu0  ;;  %v2057_v53 = vpack.c.bf16 %v2025_v41, %v2024_v50  ;;  %v2058_v38 = vpack.c.bf16 %v2027_v29, %v2026_v10  ;;  %v3584_v28 = vpack.c.bf16 %v3537_v7, %v3536_v11  ;;  %v2029_v27 = vld [vmem:[#allocation2 + $0x128] sm:$0xff]  ;;  %v2031_v15 = vld [vmem:[#allocation2 + $0x138] sm:$0xff] }
 0x265   :  { %1980 = vst.msk [vmem:[#allocation2 + $0x148] sm:$0xff] %vm1938_vm0, %v1930_v3  ;;  %v1933_v18 = vmax.f32 %v1884_v62, 0.0  ;;  %v1882_v4 = vadd.f32 %v9603_v30, %v1826_v31  ;;  %v1831_v40 = vmax.f32 %v1733_v33, %v1782_v16  ;;  %v1780_v54 = vmax.f32 %v11757_v24, %v1671_v45  ;;  %7934 = vmatprep.mubr.msk.bf16.mxu1 %vm8937_vm1, %v11668_v59  ;;  %v2028_v33 = vld [vmem:[#allocation2 + $0x120] sm:$0xff]  ;;  %v3538_v44 = vld [vmem:[#allocation2 + $0x2e] sm:$0xff]  ;;  %v3539_v3 = vld [vmem:[#allocation2 + $0x36] sm:$0xff] }
 0x266   :  { %v7869_v42 = vpop.f32.mrf.mxu0  ;;  %v2059_v5 = vpack.c.bf16 %v2029_v27, %v2028_v33  ;;  %v3585_v62 = vpack.c.bf16 %v3539_v3, %v3538_v44  ;;  %v2032_v45 = vld [vmem:[#allocation2 + $0x140] sm:$0xff]  ;;  %v2448_v41 = vld [vmem:[#allocation2 + $0x11] sm:$0xff]  ;;  %v2451_v10 = vld [vmem:[#allocation2 + $0x29] sm:$0xff] }
 0x267   :  { %1983 = vst.msk [vmem:[#allocation2 + $0x160] sm:$0xff] %vm1938_vm0, %v1933_v18  ;;  %v1931_v25 = vmax.f32 %v1882_v4, 0.0  ;;  %v1887_v34 = vadd.f32 %v9603_v30, %v1831_v40  ;;  %v1829_v13 = vmax.f32 %v1731_v6, %v1780_v54  ;;  %v1783_v32 = vmax.f32 %v11760_v52, %v7869_v42  ;;  %v3542_v4 = vld [vmem:[#allocation2 + $0x4e] sm:$0xff]  ;;  %v3543_v40 = vld [vmem:[#allocation2 + $0x56] sm:$0xff]  ;;  %v2450_v29 = vld [vmem:[#allocation2 + $0x21] sm:$0xff] }
 0x268   :  { %7911 = vmatmul.mubr.msk.bf16.gmra.mxu0 %vm1938_vm0, %v2050_v8  ;;  %v1674_v46 = vpop.f32.mrf.mxu0  ;;  %v2030_v31 = vld [vmem:[#allocation2 + $0x130] sm:$0xff]  ;;  %v3587_v24 = vpack.c.bf16 %v3543_v40, %v3542_v4  ;;  %v2449_v50 = vld [vmem:[#allocation2 + $0x19] sm:$0xff]  ;;  %v3557_v7 = vld [vmem:[#allocation2 + $0xc6] sm:$0xff] }
 0x269   :  { %1981 = vst.msk [vmem:[#allocation2 + $0x150] sm:$0xff] %vm1938_vm0, %v1931_v25  ;;  %v1936_v19 = vmax.f32 %v1887_v34, 0.0  ;;  %v1885_v17 = vadd.f32 %v9603_v30, %v1829_v13  ;;  %v1832_v36 = vmax.f32 %v1734_v63, %v1783_v32  ;;  %v1781_v23 = vmax.f32 %v11763_v37, %v1674_v46  ;;  %7914 = vmatprep.mubr.msk.bf16.mxu0 %vm8937_vm1, %v11668_v59  ;;  %v3544_v63 = vld [vmem:[#allocation2 + $0x5e] sm:$0xff]  ;;  %v3546_v13 = vld [vmem:[#allocation2 + $0x6e] sm:$0xff]  ;;  %v3547_v52 = vld [vmem:[#allocation2 + $0x76] sm:$0xff] }
 0x26a   :  { %v2060_v16 = vpack.c.bf16 %v2031_v15, %v2030_v31  ;;  %v2035_v35 = vld [vmem:[#allocation2 + $0x158] sm:$0xff]  ;;  %v3588_v42 = vpack.c.bf16 %v3545_v57, %v3544_v63  ;;  %v3589_v32 = vpack.c.bf16 %v3547_v52, %v3546_v13  ;;  %v3550_v37 = vld [vmem:[#allocation2 + $0x8e] sm:$0xff]  ;;  %v2454_v15 = vld [vmem:[#allocation2 + $0x41] sm:$0xff] }
 0x26b   :  { %1986 = vst.msk [vmem:[#allocation2 + $0x178] sm:$0xff] %vm1938_vm0, %v1936_v19  ;;  %v1934_v47 = vmax.f32 %v1885_v17, 0.0  ;;  %v1888_v26 = vadd.f32 %v9603_v30, %v1832_v36  ;;  %v1830_v51 = vmax.f32 %v1732_v1, %v1781_v23  ;;  %v3549_v1 = vld [vmem:[#allocation2 + $0x86] sm:$0xff]  ;;  %v3548_v46 = vld [vmem:[#allocation2 + $0x7e] sm:$0xff]  ;;  %v3551_v23 = vld [vmem:[#allocation2 + $0x96] sm:$0xff] }
 0x26c   :  { %7935 = vmatmul.mubr.msk.bf16.gmra.mxu1 %vm1938_vm0, %v2056_v9  ;;  %v2033_v6 = vld [vmem:[#allocation2 + $0x148] sm:$0xff]  ;;  %v3590_v19 = vpack.c.bf16 %v3549_v1, %v3548_v46  ;;  %v3591_v0 = vpack.c.bf16 %v3551_v23, %v3550_v37  ;;  %v3556_v11 = vld [vmem:[#allocation2 + $0xbe] sm:$0xff]  ;;  %v2452_v27 = vld [vmem:[#allocation2 + $0x31] sm:$0xff] }
 0x26d   :  { %1984 = vst.msk [vmem:[#allocation2 + $0x168] sm:$0xff] %vm1938_vm0, %v1934_v47  ;;  %v1937_v49 = vmax.f32 %v1888_v26, 0.0  ;;  %v1886_v12 = vadd.f32 %v9603_v30, %v1830_v51  ;;  %7938 = vmatprep.mubr.msk.bf16.mxu1 %vm8937_vm1, %v11668_v59  ;;  %v3535_v30 = vld [vmem:[#allocation2 + $0x16] sm:$0xff]  ;;  %v2061_v18 = vpack.c.bf16 %v2033_v6, %v2032_v45  ;;  %v2447_v9 = vld [vmem:[#allocation2 + $0x9] sm:$0xff]  ;;  %v2446_v26 = vld [vmem:[#allocation2 + $0x1] sm:$0xff]  ;;  %v3596_v6 = vpack.c.bf16 %v3561_v48, %v3560_v39 }
 0x26e   :  { %v3583_v14 = vpack.c.bf16 %v3535_v30, %v3534_v21  ;;  %v2036_v25 = vld [vmem:[#allocation2 + $0x160] sm:$0xff]  ;;  %v8926_v47 = vld [vmem:[%s11567_s3 + $0x58] sm:$0xff]   ;;  %v8924_v51 = vld [vmem:[%s11567_s3 + $0x28] sm:$0xff]   ;;  %v2495_v56 = vpack.c.bf16 %v2447_v9, %v2446_v26 }
 0x26f   :  { %1987 = vst.msk [vmem:[#allocation2 + $0x180] sm:$0xff] %vm1938_vm0, %v1937_v49  ;;  %v1935_v22 = vmax.f32 %v1886_v12, 0.0  ;;  %v3553_v49 = vld [vmem:[#allocation2 + $0xa6] sm:$0xff]  ;;  %v8927_v12 = vld [vmem:[%s11567_s3 + $0x50] sm:$0xff]   ;;  %v2453_v33 = vld [vmem:[#allocation2 + $0x39] sm:$0xff] }
 0x270   :  { %7915 = vmatmul.mubr.msk.bf16.gmra.mxu0 %vm1938_vm0, %v2051_v2  ;;  %v2034_v54 = vld [vmem:[#allocation2 + $0x150] sm:$0xff]  ;;  %v8925_v2 = vld [vmem:[%s11567_s3 + $0x20] sm:$0xff]  }
 0x271   :  { %1985 = vst.msk [vmem:[#allocation2 + $0x170] sm:$0xff] %vm1938_vm0, %v1935_v22  ;;  %8186 = vmatprep.mubr.msk.bf16.mxu0 %vm8937_vm1, %v11668_v59  ;;  %v2062_v20 = vpack.c.bf16 %v2035_v35, %v2034_v54  ;;  %v3592_v22 = vpack.c.bf16 %v3553_v49, %v3552_v58  ;;  %v3554_v21 = vld [vmem:[#allocation2 + $0xae] sm:$0xff]  ;;  %v3555_v30 = vld [vmem:[#allocation2 + $0xb6] sm:$0xff]  ;;  %v2458_v52 = vld [vmem:[#allocation2 + $0x61] sm:$0xff] }
 0x272   :  { %v2039_v43 = vld [vmem:[#allocation2 + $0x178] sm:$0xff]  ;;  %v3558_v44 = vld [vmem:[#allocation2 + $0xce] sm:$0xff] }
 0x273   :  { %v3559_v3 = vld [vmem:[#allocation2 + $0xd6] sm:$0xff]  ;;  %v2455_v31 = vld [vmem:[#allocation2 + $0x49] sm:$0xff]  ;;  %v3564_v46 = vld [vmem:[#allocation2 + $0xfe] sm:$0xff] }
 0x274   :  { %7939 = vmatmul.mubr.msk.bf16.gmra.mxu1 %vm1938_vm0, %v2057_v53  ;;  %v2037_v8 = vld [vmem:[#allocation2 + $0x168] sm:$0xff]  ;;  %v2496_v53 = vpack.c.bf16 %v2449_v50, %v2448_v41  ;;  %v2456_v45 = vld [vmem:[#allocation2 + $0x51] sm:$0xff]  ;;  %v2457_v40 = vld [vmem:[#allocation2 + $0x59] sm:$0xff] }
 0x275   :  { %7942 = vmatprep.mubr.msk.bf16.mxu1 %vm8937_vm1, %v11668_v59  ;;  %v2063_v34 = vpack.c.bf16 %v2037_v8, %v2036_v25  ;;  %v2500_v54 = vpack.c.bf16 %v2457_v40, %v2456_v45  ;;  %v3562_v35 = vld [vmem:[#allocation2 + $0xee] sm:$0xff]  ;;  %v2462_v50 = vld [vmem:[#allocation2 + $0x81] sm:$0xff] }
 0x276   :  { %v2040_v17 = vld [vmem:[#allocation2 + $0x180] sm:$0xff]  ;;  %v2459_v25 = vld [vmem:[#allocation2 + $0x69] sm:$0xff] }
 0x277   :  { %v2065_v36 = vpack.c.bf16 %v2040_v17, %v2040_v17  ;;  %v3566_v26 = vld [vmem:[#allocation2 + $0x10e] sm:$0xff] }
 0x278   :  { %8187 = vmatmul.mubr.msk.bf16.vlgmr.msra.gmra.mxu0 %vm1938_vm0, %v3583_v14  ;;  %v2038_v61 = vld [vmem:[#allocation2 + $0x170] sm:$0xff]  ;;  %v3593_v14 = vpack.c.bf16 %v3555_v30, %v3554_v21  ;;  %v3569_v30 = vld [vmem:[#allocation2 + $0x126] sm:$0xff] }
 0x279   :  { %8190 = vmatprep.mubr.msk.bf16.mxu0 %vm8937_vm1, %v11668_v59  ;;  %v2064_v55 = vpack.c.bf16 %v2039_v43, %v2038_v61  ;;  %8391 = vmatpush3.bf16.msra.mxu0 %v8926_v47  ;;  %v2501_v61 = vpack.c.bf16 %v2459_v25, %v2458_v52  ;;  %v3565_v43 = vld [vmem:[#allocation2 + $0x106] sm:$0xff] }
 0x27a   :  { %8392 = vmatprep.subr.bf16.mxu0 %v11668_v59  ;;  %v3598_v17 = vpack.c.bf16 %v3565_v43, %v3564_v46  ;;  %v2467_v39 = vld [vmem:[#allocation2 + $0xa9] sm:$0xff]  ;;  %v2469_v43 = vld [vmem:[#allocation2 + $0xb9] sm:$0xff] }
 0x27c   :  { %7943 = vmatmul.mubr.msk.bf16.gmra.mxu1 %vm1938_vm0, %v2058_v38  ;;  %v2497_v38 = vpack.c.bf16 %v2451_v10, %v2450_v29  ;;  %v3568_v29 = vld [vmem:[#allocation2 + $0x11e] sm:$0xff] }
 0x27d   :  { %7946 = vmatprep.mubr.msk.bf16.mxu1 %vm8937_vm1, %v11668_v59  ;;  %8393 = vmatpush3.bf16.msra.mxu0 %v8927_v12 }
 0x27e   :  { %8598 = vmatprep.subr.bf16.mxu0 %v11668_v59 }
 0x280   :  { %8191 = vmatmul.mubr.msk.bf16.gmra.mxu0 %vm1938_vm0, %v3584_v28  ;;  %v3594_v28 = vpack.c.bf16 %v3557_v7, %v3556_v11  ;;  %v3600_v7 = vpack.c.bf16 %v3569_v30, %v3568_v29  ;;  %v2464_v11 = vld [vmem:[#allocation2 + $0x91] sm:$0xff]  ;;  %v3576_v29 = vld [vmem:[#allocation2 + $0x15e] sm:$0xff] }
 0x281   :  { %8194 = vmatprep.mubr.msk.bf16.mxu0 %vm8937_vm1, %v11668_v59 }
 0x284   :  { %7947 = vmatmul.mubr.msk.bf16.gmra.mxu1 %vm1938_vm0, %v2059_v5  ;;  %v2498_v5 = vpack.c.bf16 %v2453_v33, %v2452_v27  ;;  %v2465_v33 = vld [vmem:[#allocation2 + $0x99] sm:$0xff] }
 0x285   :  { %7950 = vmatprep.mubr.msk.bf16.mxu1 %vm8937_vm1, %v11668_v59 }
 0x288   :  { %8195 = vmatmul.mubr.msk.bf16.gmra.mxu0 %vm1938_vm0, %v3585_v62  ;;  %v3595_v62 = vpack.c.bf16 %v3559_v3, %v3558_v44  ;;  %v2504_v44 = vpack.c.bf16 %v2465_v33, %v2464_v11  ;;  %v3570_v3 = vld [vmem:[#allocation2 + $0x12e] sm:$0xff] }
 0x289   :  { %8198 = vmatprep.mubr.msk.bf16.mxu0 %vm8937_vm1, %v11668_v59 }
 0x28c   :  { %7951 = vmatmul.mubr.msk.bf16.gmra.mxu1 %vm1938_vm0, %v2060_v16  ;;  %v2499_v16 = vpack.c.bf16 %v2455_v31, %v2454_v15 }
 0x28d   :  { %7954 = vmatprep.mubr.msk.bf16.mxu1 %vm8937_vm1, %v11668_v59 }
 0x290   :  { %8199 = vmatmul.mubr.msk.bf16.gmra.mxu0 %vm1938_vm0, %v3586_v60  ;;  %v10012_v60 = vld [vmem:[%s11569_s4] ss:$0 sm:$0xff] }
 0x291   :  { %8202 = vmatprep.mubr.msk.bf16.mxu0 %vm8937_vm1, %v11668_v59 }
 0x294   :  { %7955 = vmatmul.mubr.msk.bf16.gmra.mxu1 %vm1938_vm0, %v2061_v18 }
 0x295   :  { %7958 = vmatprep.mubr.msk.bf16.mxu1 %vm8937_vm1, %v11668_v59 }
 0x298   :  { %8203 = vmatmul.mubr.msk.bf16.gmra.mxu0 %vm1938_vm0, %v3587_v24 }
 0x299   :  { %8206 = vmatprep.mubr.msk.bf16.mxu0 %vm8937_vm1, %v11668_v59 }
 0x29c   :  { %7959 = vmatmul.mubr.msk.bf16.gmra.mxu1 %vm1938_vm0, %v2062_v20  ;;  %v3563_v20 = vld [vmem:[#allocation2 + $0xf6] sm:$0xff] }
 0x29d   :  { %7962 = vmatprep.mubr.msk.bf16.mxu1 %vm8937_vm1, %v11668_v59  ;;  %v3597_v8 = vpack.c.bf16 %v3563_v20, %v3562_v35 }
 0x2a0   :  { %8207 = vmatmul.mubr.msk.bf16.gmra.mxu0 %vm1938_vm0, %v3588_v42 }
 0x2a1   :  { %8210 = vmatprep.mubr.msk.bf16.mxu0 %vm8937_vm1, %v11668_v59 }
 0x2a4   :  { %7963 = vmatmul.mubr.msk.bf16.gmra.mxu1 %vm1938_vm0, %v2063_v34 }
 0x2a5   :  { %7966 = vmatprep.mubr.msk.bf16.mxu1 %vm8937_vm1, %v11668_v59 }
 0x2a8   :  { %8211 = vmatmul.mubr.msk.bf16.gmra.mxu0 %vm1938_vm0, %v3589_v32 }
 0x2a9   :  { %8214 = vmatprep.mubr.msk.bf16.mxu0 %vm8937_vm1, %v11668_v59 }
 0x2ac   :  { %7967 = vmatmul.mubr.msk.bf16.gmra.mxu1 %vm1938_vm0, %v2064_v55 }
 0x2ad   :  { %7970 = vmatprep.mubr.msk.bf16.mxu1 %vm8937_vm1, %v11668_v59 }
 0x2b0   :  { %8215 = vmatmul.mubr.msk.bf16.gmra.mxu0 %vm1938_vm0, %v3590_v19 }
 0x2b1   :  { %8218 = vmatprep.mubr.msk.bf16.mxu0 %vm8937_vm1, %v11668_v59 }
 0x2b4   :  { %7971 = vmatmul.mubr.msk.bf16.gmra.mxu1 %vm1938_vm0, %v2065_v36  ;;  %v2460_v36 = vld [vmem:[#allocation2 + $0x71] sm:$0xff] }
 0x2b5   :  { %7978 = vmatprep.mubr.msk.bf16.mxu1 %vm8937_vm1, %v11668_v59 }
 0x2b8   :  { %8219 = vmatmul.mubr.msk.bf16.gmra.mxu0 %vm1938_vm0, %v3591_v0  ;;  %v2461_v0 = vld [vmem:[#allocation2 + $0x79] sm:$0xff] }
 0x2b9   :  { %8222 = vmatprep.mubr.msk.bf16.mxu0 %vm8937_vm1, %v11668_v59  ;;  %v2502_v47 = vpack.c.bf16 %v2461_v0, %v2460_v36 }
 0x2bc   :  { %7979 = vmatmul.mubr.msk.bf16.vlgmr.msra.gmra.mxu1 %vm1938_vm0, %v2495_v56 }
 0x2bd   :  { %8079 = vmatpush3.bf16.msra.mxu1 %v8924_v51  ;;  %7982 = vmatprep.mubr.msk.bf16.mxu1 %vm8937_vm1, %v11668_v59  ;;  %v3567_v51 = vld [vmem:[#allocation2 + $0x116] sm:$0xff] }
 0x2be   :  { %8080 = vmatprep.subr.bf16.mxu1 %v11668_v59  ;;  %v3599_v58 = vpack.c.bf16 %v3567_v51, %v3566_v26  ;;  %v2471_v51 = vld [vmem:[#allocation2 + $0xc9] sm:$0xff] }
 0x2c0   :  { %8223 = vmatmul.mubr.msk.bf16.gmra.mxu0 %vm1938_vm0, %v3592_v22 }
 0x2c1   :  { %8226 = vmatprep.mubr.msk.bf16.mxu0 %vm8937_vm1, %v11668_v59  ;;  %8081 = vmatpush3.bf16.msra.mxu1 %v8925_v2  ;;  %v2463_v2 = vld [vmem:[#allocation2 + $0x89] sm:$0xff] }
 0x2c2   :  { %8286 = vmatprep.subr.bf16.mxu1 %v11668_v59  ;;  %v2503_v21 = vpack.c.bf16 %v2463_v2, %v2462_v50  ;;  %v2470_v2 = vld [vmem:[#allocation2 + $0xc1] sm:$0xff] }
 0x2c3   :  { %v2507_v50 = vpack.c.bf16 %v2471_v51, %v2470_v2 }
 0x2c4   :  { %7983 = vmatmul.mubr.msk.bf16.gmra.mxu1 %vm1938_vm0, %v2496_v53 }
 0x2c5   :  { %7986 = vmatprep.mubr.msk.bf16.mxu1 %vm8937_vm1, %v11668_v59 }
 0x2c8   :  { %8227 = vmatmul.mubr.msk.bf16.gmra.mxu0 %vm1938_vm0, %v3593_v14 }
 0x2c9   :  { %8230 = vmatprep.mubr.msk.bf16.mxu0 %vm8937_vm1, %v11668_v59 }
 0x2cc   :  { %7987 = vmatmul.mubr.msk.bf16.gmra.mxu1 %vm1938_vm0, %v2497_v38 }
 0x2cd   :  { %7990 = vmatprep.mubr.msk.bf16.mxu1 %vm8937_vm1, %v11668_v59 }
 0x2d0   :  { %8231 = vmatmul.mubr.msk.bf16.gmra.mxu0 %vm1938_vm0, %v3594_v28 }
 0x2d1   :  { %8234 = vmatprep.mubr.msk.bf16.mxu0 %vm8937_vm1, %v11668_v59 }
 0x2d4   :  { %7991 = vmatmul.mubr.msk.bf16.gmra.mxu1 %vm1938_vm0, %v2498_v5 }
 0x2d5   :  { %7994 = vmatprep.mubr.msk.bf16.mxu1 %vm8937_vm1, %v11668_v59 }
 0x2d8   :  { %8235 = vmatmul.mubr.msk.bf16.gmra.mxu0 %vm1938_vm0, %v3595_v62  ;;  %v3571_v62 = vld [vmem:[#allocation2 + $0x136] sm:$0xff] }
 0x2d9   :  { %8238 = vmatprep.mubr.msk.bf16.mxu0 %vm8937_vm1, %v11668_v59  ;;  %v3601_v48 = vpack.c.bf16 %v3571_v62, %v3570_v3  ;;  %v2473_v3 = vld [vmem:[#allocation2 + $0xd9] sm:$0xff] }
 0x2dc   :  { %7995 = vmatmul.mubr.msk.bf16.gmra.mxu1 %vm1938_vm0, %v2499_v16 }
 0x2dd   :  { %7998 = vmatprep.mubr.msk.bf16.mxu1 %vm8937_vm1, %v11668_v59 }
 0x2e0   :  { %v2198_v18 = vpop.f32.mrf.mxu0  ;;  %8239 = vmatmul.mubr.msk.bf16.gmra.mxu0 %vm1938_vm0, %v3596_v6 }
 0x2e1   :  { %v2199_v4 = vadd.f32 %v10012_v60, %v2198_v18  ;;  %8242 = vmatprep.mubr.msk.bf16.mxu0 %vm8937_vm1, %v11668_v59  ;;  %v2466_v18 = vld [vmem:[#allocation2 + $0xa1] sm:$0xff] }
 0x2e2   :  { %v7876_v24 = vpop.f32.mrf.mxu0  ;;  %v2505_v40 = vpack.c.bf16 %v2467_v39, %v2466_v18 }
 0x2e3   :  { %2397 = vst.msk [vmem:[#allocation3] sm:$0xff] %vm2396_vm2, %v2199_v4  ;;  %v3573_v24 = vld [vmem:[#allocation2 + $0x146] sm:$0xff] }
 0x2e4   :  { %v2201_v57 = vpop.f32.mrf.mxu0  ;;  %7999 = vmatmul.mubr.msk.bf16.gmra.mxu1 %vm1938_vm0, %v2500_v54 }
 0x2e5   :  { %v2202_v63 = vadd.f32 %v10012_v60, %v2201_v57  ;;  %8002 = vmatprep.mubr.msk.bf16.mxu1 %vm8937_vm1, %v11668_v59 }
 0x2e6   :  { %v7877_v42 = vpop.f32.mrf.mxu0 }
 0x2e7   :  { %2398 = vst.msk [vmem:[#allocation3 + $0x8] sm:$0xff] %vm2396_vm2, %v2202_v63  ;;  %v3572_v63 = vld [vmem:[#allocation2 + $0x13e] sm:$0xff] }
 0x2e8   :  { %v2206_v34 = vpop.f32.mrf.mxu0  ;;  %8243 = vmatmul.mubr.msk.bf16.gmra.mxu0 %vm1938_vm0, %v3597_v8  ;;  %v3602_v25 = vpack.c.bf16 %v3573_v24, %v3572_v63 }
 0x2e9   :  { %v2207_v13 = vadd.f32 %v10012_v60, %v2206_v34  ;;  %8246 = vmatprep.mubr.msk.bf16.mxu0 %vm8937_vm1, %v11668_v59  ;;  %v2468_v34 = vld [vmem:[#allocation2 + $0xb1] sm:$0xff] }
 0x2ea   :  { %v7880_v32 = vpop.f32.mrf.mxu0  ;;  %v2506_v46 = vpack.c.bf16 %v2469_v43, %v2468_v34 }
 0x2eb   :  { %2399 = vst.msk [vmem:[#allocation3 + $0x10] sm:$0xff] %vm2396_vm2, %v2207_v13 }
 0x2ec   :  { %v2209_v55 = vpop.f32.mrf.mxu0  ;;  %8003 = vmatmul.mubr.msk.bf16.gmra.mxu1 %vm1938_vm0, %v2501_v61 }
 0x2ed   :  { %v2210_v1 = vadd.f32 %v10012_v60, %v2209_v55  ;;  %8006 = vmatprep.mubr.msk.bf16.mxu1 %vm8937_vm1, %v11668_v59 }
 0x2ee   :  { %v7881_v19 = vpop.f32.mrf.mxu0 }
 0x2ef   :  { %2400 = vst.msk [vmem:[#allocation3 + $0x18] sm:$0xff] %vm2396_vm2, %v2210_v1  ;;  %v3574_v19 = vld [vmem:[#allocation2 + $0x14e] sm:$0xff] }
 0x2f0   :  { %v2214_v37 = vpop.f32.mrf.mxu0  ;;  %8247 = vmatmul.mubr.msk.bf16.gmra.mxu0 %vm1938_vm0, %v3598_v17  ;;  %v3575_v17 = vld [vmem:[#allocation2 + $0x156] sm:$0xff] }
 0x2f1   :  { %v2215_v23 = vadd.f32 %v10012_v60, %v2214_v37  ;;  %8250 = vmatprep.mubr.msk.bf16.mxu0 %vm8937_vm1, %v11668_v59  ;;  %v3603_v26 = vpack.c.bf16 %v3575_v17, %v3574_v19  ;;  %v2476_v17 = vld [vmem:[#allocation2 + $0xf1] sm:$0xff] }
 0x2f2   :  { %v7884_v9 = vpop.f32.mrf.mxu0 }
 0x2f3   :  { %2401 = vst.msk [vmem:[#allocation3 + $0x20] sm:$0xff] %vm2396_vm2, %v2215_v23 }
 0x2f4   :  { %v2217_v56 = vpop.f32.mrf.mxu0  ;;  %8007 = vmatmul.mubr.msk.bf16.gmra.mxu1 %vm1938_vm0, %v2502_v47 }
 0x2f5   :  { %v2218_v49 = vadd.f32 %v10012_v60, %v2217_v56  ;;  %8010 = vmatprep.mubr.msk.bf16.mxu1 %vm8937_vm1, %v11668_v59 }
 0x2f6   :  { %v7885_v12 = vpop.f32.mrf.mxu0 }
 0x2f7   :  { %2402 = vst.msk [vmem:[#allocation3 + $0x28] sm:$0xff] %vm2396_vm2, %v2218_v49 }
 0x2f8   :  { %v2222_v22 = vpop.f32.mrf.mxu0  ;;  %8251 = vmatmul.mubr.msk.bf16.gmra.mxu0 %vm1938_vm0, %v3599_v58 }
 0x2f9   :  { %v2223_v41 = vadd.f32 %v10012_v60, %v2222_v22  ;;  %8254 = vmatprep.mubr.msk.bf16.mxu0 %vm8937_vm1, %v11668_v59 }
 0x2fa   :  { %v7888_v53 = vpop.f32.mrf.mxu0 }
 0x2fb   :  { %2403 = vst.msk [vmem:[#allocation3 + $0x30] sm:$0xff] %vm2396_vm2, %v2223_v41  ;;  %v3577_v53 = vld [vmem:[#allocation2 + $0x166] sm:$0xff] }
 0x2fc   :  { %v2225_v14 = vpop.f32.mrf.mxu0  ;;  %8011 = vmatmul.mubr.msk.bf16.gmra.mxu1 %vm1938_vm0, %v2503_v21  ;;  %v3604_v11 = vpack.c.bf16 %v3577_v53, %v3576_v29  ;;  %v2479_v53 = vld [vmem:[#allocation2 + $0x109] sm:$0xff] }
 0x2fd   :  { %v2226_v10 = vadd.f32 %v10012_v60, %v2225_v14  ;;  %8014 = vmatprep.mubr.msk.bf16.mxu1 %vm8937_vm1, %v11668_v59 }
 0x2fe   :  { %v7889_v38 = vpop.f32.mrf.mxu0 }
 0x2ff   :  { %2404 = vst.msk [vmem:[#allocation3 + $0x38] sm:$0xff] %vm2396_vm2, %v2226_v10 }
 0x300   :  { %v2230_v28 = vpop.f32.mrf.mxu0  ;;  %8255 = vmatmul.mubr.msk.bf16.gmra.mxu0 %vm1938_vm0, %v3600_v7 }
 0x301   :  { %v2231_v27 = vadd.f32 %v10012_v60, %v2230_v28  ;;  %8258 = vmatprep.mubr.msk.bf16.mxu0 %vm8937_vm1, %v11668_v59  ;;  %v2472_v28 = vld [vmem:[#allocation2 + $0xd1] sm:$0xff] }
 0x302   :  { %v7892_v5 = vpop.f32.mrf.mxu0 }
 0x303   :  { %2405 = vst.msk [vmem:[#allocation3 + $0x40] sm:$0xff] %vm2396_vm2, %v2231_v27 }
 0x304   :  { %v2233_v31 = vpop.f32.mrf.mxu0  ;;  %8015 = vmatmul.mubr.msk.bf16.gmra.mxu1 %vm1938_vm0, %v2504_v44 }
 0x305   :  { %v2234_v15 = vadd.f32 %v10012_v60, %v2233_v31  ;;  %8018 = vmatprep.mubr.msk.bf16.mxu1 %vm8937_vm1, %v11668_v59 }
 0x306   :  { %v7893_v16 = vpop.f32.mrf.mxu0 }
 0x307   :  { %2406 = vst.msk [vmem:[#allocation3 + $0x48] sm:$0xff] %vm2396_vm2, %v2234_v15  ;;  %v2508_v15 = vpack.c.bf16 %v2473_v3, %v2472_v28  ;;  %v3578_v16 = vld [vmem:[#allocation2 + $0x16e] sm:$0xff] }
 0x308   :  { %v2238_v6 = vpop.f32.mrf.mxu0  ;;  %8259 = vmatmul.mubr.msk.bf16.gmra.mxu0 %vm1938_vm0, %v3601_v48  ;;  %v3579_v48 = vld [vmem:[#allocation2 + $0x176] sm:$0xff] }
 0x309   :  { %v2239_v45 = vadd.f32 %v10012_v60, %v2238_v6  ;;  %8262 = vmatprep.mubr.msk.bf16.mxu0 %vm8937_vm1, %v11668_v59  ;;  %v3605_v24 = vpack.c.bf16 %v3579_v48, %v3578_v16 }
 0x30a   :  { %v7896_v4 = vpop.f32.mrf.mxu0 }
 0x30b   :  { %2407 = vst.msk [vmem:[#allocation3 + $0x50] sm:$0xff] %vm2396_vm2, %v2239_v45 }
 0x30c   :  { %v2241_v54 = vpop.f32.mrf.mxu0  ;;  %v2286_v35 = vpop.f32.mrf.mxu1  ;;  %8019 = vmatmul.mubr.msk.bf16.gmra.mxu1 %vm1938_vm0, %v2505_v40 }
 0x30d   :  { %v2242_v20 = vadd.f32 %v10012_v60, %v2241_v54  ;;  %v2287_v57 = vadd.f32 %v10012_v60, %v2286_v35  ;;  %8022 = vmatprep.mubr.msk.bf16.mxu1 %vm8937_vm1, %v11668_v59  ;;  %v2475_v54 = vld [vmem:[#allocation2 + $0xe9] sm:$0xff] }
 0x30e   :  { %v7897_v42 = vpop.f32.mrf.mxu0  ;;  %v7920_v8 = vpop.f32.mrf.mxu1 }
 0x30f   :  { %2408 = vst.msk [vmem:[#allocation3 + $0x58] sm:$0xff] %vm2396_vm2, %v2242_v20  ;;  %2419 = vst.msk [vmem:[#allocation3 + $0xb0] sm:$0xff] %vm2396_vm2, %v2287_v57  ;;  %v2474_v42 = vld [vmem:[#allocation2 + $0xe1] sm:$0xff] }
 0x310   :  { %v2246_v13 = vpop.f32.mrf.mxu0  ;;  %v2289_v52 = vpop.f32.mrf.mxu1  ;;  %8263 = vmatmul.mubr.msk.bf16.gmra.mxu0 %vm1938_vm0, %v3602_v25  ;;  %v2509_v34 = vpack.c.bf16 %v2475_v54, %v2474_v42  ;;  %v2483_v42 = vld [vmem:[#allocation2 + $0x129] sm:$0xff] }
 0x311   :  { %v2247_v32 = vadd.f32 %v10012_v60, %v2246_v13  ;;  %v2290_v61 = vadd.f32 %v10012_v60, %v2289_v52  ;;  %8266 = vmatprep.mubr.msk.bf16.mxu0 %vm8937_vm1, %v11668_v59  ;;  %v3580_v13 = vld [vmem:[#allocation2 + $0x17e] sm:$0xff]  ;;  %v3581_v52 = vld [vmem:[#allocation2 + $0x186] sm:$0xff] }
 0x312   :  { %v7900_v55 = vpop.f32.mrf.mxu0  ;;  %v7921_v1 = vpop.f32.mrf.mxu1  ;;  %v3606_v19 = vpack.c.bf16 %v3581_v52, %v3580_v13  ;;  %v2482_v13 = vld [vmem:[#allocation2 + $0x121] sm:$0xff] }
 0x313   :  { %2409 = vst.msk [vmem:[#allocation3 + $0x60] sm:$0xff] %vm2396_vm2, %v2247_v32  ;;  %2420 = vst.msk [vmem:[#allocation3 + $0xb8] sm:$0xff] %vm2396_vm2, %v2290_v61 }
 0x314   :  { %v2249_v36 = vpop.f32.mrf.mxu0  ;;  %v2294_v37 = vpop.f32.mrf.mxu1  ;;  %8023 = vmatmul.mubr.msk.bf16.gmra.mxu1 %vm1938_vm0, %v2506_v46 }
 0x315   :  { %v2250_v23 = vadd.f32 %v10012_v60, %v2249_v36  ;;  %v2295_v0 = vadd.f32 %v10012_v60, %v2294_v37  ;;  %8026 = vmatprep.mubr.msk.bf16.mxu1 %vm8937_vm1, %v11668_v59 }
 0x316   :  { %v7901_v9 = vpop.f32.mrf.mxu0  ;;  %v7924_v47 = vpop.f32.mrf.mxu1 }
 0x317   :  { %2410 = vst.msk [vmem:[#allocation3 + $0x68] sm:$0xff] %vm2396_vm2, %v2250_v23  ;;  %2421 = vst.msk [vmem:[#allocation3 + $0xc0] sm:$0xff] %vm2396_vm2, %v2295_v0  ;;  %v2477_v9 = vld [vmem:[#allocation2 + $0xf9] sm:$0xff]  ;;  %v3582_v47 = vld [vmem:[#allocation2 + $0x18e] sm:$0xff] }
 0x318   :  { %v2254_v56 = vpop.f32.mrf.mxu0  ;;  %v2297_v49 = vpop.f32.mrf.mxu1  ;;  %8267 = vmatmul.mubr.msk.bf16.gmra.mxu0 %vm1938_vm0, %v3603_v26 }
 0x319   :  { %v2255_v12 = vadd.f32 %v10012_v60, %v2254_v56  ;;  %v2298_v58 = vadd.f32 %v10012_v60, %v2297_v49  ;;  %8270 = vmatprep.mubr.msk.bf16.mxu0 %vm8937_vm1, %v11668_v59  ;;  %v2510_v56 = vpack.c.bf16 %v2477_v9, %v2476_v17 }
 0x31a   :  { %v7904_v22 = vpop.f32.mrf.mxu0  ;;  %v7925_v41 = vpop.f32.mrf.mxu1 }
 0x31b   :  { %2411 = vst.msk [vmem:[#allocation3 + $0x70] sm:$0xff] %vm2396_vm2, %v2255_v12  ;;  %2422 = vst.msk [vmem:[#allocation3 + $0xc8] sm:$0xff] %vm2396_vm2, %v2298_v58  ;;  %v3607_v58 = vpack.c.bf16 %v3582_v47, %v3582_v47 }
 0x31c   :  { %v2257_v21 = vpop.f32.mrf.mxu0  ;;  %v2302_v30 = vpop.f32.mrf.mxu1  ;;  %8027 = vmatmul.mubr.msk.bf16.gmra.mxu1 %vm1938_vm0, %v2507_v50 }
 0x31d   :  { %v2258_v14 = vadd.f32 %v10012_v60, %v2257_v21  ;;  %v2303_v10 = vadd.f32 %v10012_v60, %v2302_v30  ;;  %8030 = vmatprep.mubr.msk.bf16.mxu1 %vm8937_vm1, %v11668_v59 }
 0x31e   :  { %v7905_v38 = vpop.f32.mrf.mxu0  ;;  %v7928_v7 = vpop.f32.mrf.mxu1 }
 0x31f   :  { %2412 = vst.msk [vmem:[#allocation3 + $0x78] sm:$0xff] %vm2396_vm2, %v2258_v14  ;;  %2423 = vst.msk [vmem:[#allocation3 + $0xd0] sm:$0xff] %vm2396_vm2, %v2303_v10  ;;  %v2478_v10 = vld [vmem:[#allocation2 + $0x101] sm:$0xff] }
 0x320   :  { %v2262_v27 = vpop.f32.mrf.mxu0  ;;  %v2305_v33 = vpop.f32.mrf.mxu1  ;;  %8271 = vmatmul.mubr.msk.bf16.gmra.mxu0 %vm1938_vm0, %v3604_v11  ;;  %v2511_v7 = vpack.c.bf16 %v2479_v53, %v2478_v10  ;;  %v4622_v11 = vld [vmem:[#allocation2 + $0x10] sm:$0xff] }
 0x321   :  { %v2263_v5 = vadd.f32 %v10012_v60, %v2262_v27  ;;  %v2306_v44 = vadd.f32 %v10012_v60, %v2305_v33  ;;  %8274 = vmatprep.mubr.msk.bf16.mxu0 %vm8937_vm1, %v11668_v59 }
 0x322   :  { %v7908_v62 = vpop.f32.mrf.mxu0  ;;  %v7929_v31 = vpop.f32.mrf.mxu1 }
 0x323   :  { %2413 = vst.msk [vmem:[#allocation3 + $0x80] sm:$0xff] %vm2396_vm2, %v2263_v5  ;;  %2424 = vst.msk [vmem:[#allocation3 + $0xd8] sm:$0xff] %vm2396_vm2, %v2306_v44  ;;  %v4623_v5 = vld [vmem:[#allocation2 + $0x18] sm:$0xff] }
 0x324   :  { %v2265_v39 = vpop.f32.mrf.mxu0  ;;  %v2310_v6 = vpop.f32.mrf.mxu1  ;;  %8031 = vmatmul.mubr.msk.bf16.gmra.mxu1 %vm1938_vm0, %v2508_v15  ;;  %v4671_v62 = vpack.c.bf16 %v4623_v5, %v4622_v11  ;;  %v2480_v31 = vld [vmem:[#allocation2 + $0x111] sm:$0xff] }
 0x325   :  { %v2266_v45 = vadd.f32 %v10012_v60, %v2265_v39  ;;  %v2311_v18 = vadd.f32 %v10012_v60, %v2310_v6  ;;  %8034 = vmatprep.mubr.msk.bf16.mxu1 %vm8937_vm1, %v11668_v59  ;;  %v2481_v39 = vld [vmem:[#allocation2 + $0x119] sm:$0xff]  ;;  %v4630_v5 = vld [vmem:[#allocation2 + $0x50] sm:$0xff] }
 0x326   :  { %v7909_v4 = vpop.f32.mrf.mxu0  ;;  %v7932_v40 = vpop.f32.mrf.mxu1 }
 0x327   :  { %2414 = vst.msk [vmem:[#allocation3 + $0x88] sm:$0xff] %vm2396_vm2, %v2266_v45  ;;  %2425 = vst.msk [vmem:[#allocation3 + $0xe0] sm:$0xff] %vm2396_vm2, %v2311_v18  ;;  %v2512_v18 = vpack.c.bf16 %v2481_v39, %v2480_v31  ;;  %v4625_v4 = vld [vmem:[#allocation2 + $0x28] sm:$0xff]  ;;  %v4631_v31 = vld [vmem:[#allocation2 + $0x58] sm:$0xff] }
 0x328   :  { %v2270_v35 = vpop.f32.mrf.mxu0  ;;  %v2313_v20 = vpop.f32.mrf.mxu1  ;;  %8275 = vmatmul.mubr.msk.bf16.gmra.mxu0 %vm1938_vm0, %v3605_v24  ;;  %v4675_v39 = vpack.c.bf16 %v4631_v31, %v4630_v5  ;;  %v2494_v31 = vld [vmem:[#allocation2 + $0x181] sm:$0xff] }
 0x329   :  { %v2271_v57 = vadd.f32 %v10012_v60, %v2270_v35  ;;  %v2314_v63 = vadd.f32 %v10012_v60, %v2313_v20  ;;  %8278 = vmatprep.mubr.msk.bf16.mxu0 %vm8937_vm1, %v11668_v59  ;;  %v4624_v35 = vld [vmem:[#allocation2 + $0x20] sm:$0xff] }
 0x32a   :  { %v7912_v8 = vpop.f32.mrf.mxu0  ;;  %v7933_v25 = vpop.f32.mrf.mxu1 }
 0x32b   :  { %2415 = vst.msk [vmem:[#allocation3 + $0x90] sm:$0xff] %vm2396_vm2, %v2271_v57  ;;  %2426 = vst.msk [vmem:[#allocation3 + $0xe8] sm:$0xff] %vm2396_vm2, %v2314_v63  ;;  %v4672_v63 = vpack.c.bf16 %v4625_v4, %v4624_v35 }
 0x32c   :  { %v2273_v32 = vpop.f32.mrf.mxu0  ;;  %v2318_v61 = vpop.f32.mrf.mxu1  ;;  %8035 = vmatmul.mubr.msk.bf16.gmra.mxu1 %vm1938_vm0, %v2509_v34 }
 0x32d   :  { %v2274_v43 = vadd.f32 %v10012_v60, %v2273_v32  ;;  %v2319_v55 = vadd.f32 %v10012_v60, %v2318_v61  ;;  %8038 = vmatprep.mubr.msk.bf16.mxu1 %vm8937_vm1, %v11668_v59  ;;  %v2513_v61 = vpack.c.bf16 %v2483_v42, %v2482_v13 }
 0x32e   :  { %v7913_v1 = vpop.f32.mrf.mxu0  ;;  %v7936_v46 = vpop.f32.mrf.mxu1 }
 0x32f   :  { %2416 = vst.msk [vmem:[#allocation3 + $0x98] sm:$0xff] %vm2396_vm2, %v2274_v43  ;;  %2427 = vst.msk [vmem:[#allocation3 + $0xf0] sm:$0xff] %vm2396_vm2, %v2319_v55  ;;  %v4626_v43 = vld [vmem:[#allocation2 + $0x30] sm:$0xff] }
 0x330   :  { %v2278_v36 = vpop.f32.mrf.mxu0  ;;  %v2321_v37 = vpop.f32.mrf.mxu1  ;;  %8279 = vmatmul.mubr.msk.bf16.gmra.mxu0 %vm1938_vm0, %v3606_v19  ;;  %v4627_v19 = vld [vmem:[#allocation2 + $0x38] sm:$0xff] }
 0x331   :  { %v2279_v23 = vadd.f32 %v10012_v60, %v2278_v36  ;;  %v2322_v0 = vadd.f32 %v10012_v60, %v2321_v37  ;;  %8282 = vmatprep.mubr.msk.bf16.mxu0 %vm8937_vm1, %v11668_v59  ;;  %v4673_v37 = vpack.c.bf16 %v4627_v19, %v4626_v43  ;;  %v2490_v19 = vld [vmem:[#allocation2 + $0x161] sm:$0xff] }
 0x332   :  { %v7916_v26 = vpop.f32.mrf.mxu0  ;;  %v7937_v51 = vpop.f32.mrf.mxu1 }
 0x333   :  { %2417 = vst.msk [vmem:[#allocation3 + $0xa0] sm:$0xff] %vm2396_vm2, %v2279_v23  ;;  %2428 = vst.msk [vmem:[#allocation3 + $0xf8] sm:$0xff] %vm2396_vm2, %v2322_v0  ;;  %v2484_v23 = vld [vmem:[#allocation2 + $0x131] sm:$0xff]  ;;  %v2485_v26 = vld [vmem:[#allocation2 + $0x139] sm:$0xff] }
 0x334   :  { %v2281_v49 = vpop.f32.mrf.mxu0  ;;  %v2326_v12 = vpop.f32.mrf.mxu1  ;;  %8039 = vmatmul.mubr.msk.bf16.gmra.mxu1 %vm1938_vm0, %v2510_v56 }
 0x335   :  { %v2282_v2 = vadd.f32 %v10012_v60, %v2281_v49  ;;  %v2327_v22 = vadd.f32 %v10012_v60, %v2326_v12  ;;  %8042 = vmatprep.mubr.msk.bf16.mxu1 %vm8937_vm1, %v11668_v59  ;;  %v2514_v49 = vpack.c.bf16 %v2485_v26, %v2484_v23  ;;  %v4629_v12 = vld [vmem:[#allocation2 + $0x48] sm:$0xff]  ;;  %v4634_v23 = vld [vmem:[#allocation2 + $0x70] sm:$0xff] }
 0x336   :  { %v7917_v41 = vpop.f32.mrf.mxu0  ;;  %v7940_v50 = vpop.f32.mrf.mxu1 }
 0x337   :  { %2418 = vst.msk [vmem:[#allocation3 + $0xa8] sm:$0xff] %vm2396_vm2, %v2282_v2  ;;  %2429 = vst.msk [vmem:[#allocation3 + $0x100] sm:$0xff] %vm2396_vm2, %v2327_v22  ;;  %v4628_v41 = vld [vmem:[#allocation2 + $0x40] sm:$0xff] }
 0x338   :  { %v2329_v21 = vpop.f32.mrf.mxu1  ;;  %v10146_v30 = vpop.f32.mrf.mxu0  ;;  %8283 = vmatmul.mubr.msk.bf16.gmra.mxu0 %vm1938_vm0, %v3607_v58 }
 0x339   :  { %v2330_v14 = vadd.f32 %v10012_v60, %v2329_v21  ;;  %8394 = vmatprep.mubr.msk.bf16.mxu0 %vm8937_vm1, %v11668_v59  ;;  %v4674_v21 = vpack.c.bf16 %v4629_v12, %v4628_v41 }
 0x33a   :  { %v7941_v29 = vpop.f32.mrf.mxu1  ;;  %v8188_v38 = vpop.f32.mrf.mxu0 }
 0x33b   :  { %2430 = vst.msk [vmem:[#allocation3 + $0x108] sm:$0xff] %vm2396_vm2, %v2330_v14  ;;  %v2487_v14 = vld [vmem:[#allocation2 + $0x149] sm:$0xff] }
 0x33c   :  { %v2334_v28 = vpop.f32.mrf.mxu1  ;;  %8043 = vmatmul.mubr.msk.bf16.gmra.mxu1 %vm1938_vm0, %v2511_v7  ;;  %v10154_v27 = vpop.f32.mrf.mxu0  ;;  %v2486_v7 = vld [vmem:[#allocation2 + $0x141] sm:$0xff] }
 0x33d   :  { %v2335_v33 = vadd.f32 %v10012_v60, %v2334_v28  ;;  %8046 = vmatprep.mubr.msk.bf16.mxu1 %vm8937_vm1, %v11668_v59 }
 0x33e   :  { %v7944_v44 = vpop.f32.mrf.mxu1  ;;  %v8189_v3 = vpop.f32.mrf.mxu0 }
 0x33f   :  { %2431 = vst.msk [vmem:[#allocation3 + $0x110] sm:$0xff] %vm2396_vm2, %v2335_v33  ;;  %v2515_v33 = vpack.c.bf16 %v2487_v14, %v2486_v7 }
 0x340   :  { %v2337_v15 = vpop.f32.mrf.mxu1  ;;  %v10160_v16 = vpop.f32.mrf.mxu0  ;;  %8395 = vmatmul.mubr.msk.bf16.vlgmr.msra.gmra.mxu0 %vm1938_vm0, %v4671_v62 }
 0x341   :  { %v2338_v48 = vadd.f32 %v10012_v60, %v2337_v15  ;;  %8398 = vmatprep.mubr.msk.bf16.mxu0 %vm8937_vm1, %v11668_v59 }
 0x342   :  { %v7945_v6 = vpop.f32.mrf.mxu1  ;;  %v8192_v45 = vpop.f32.mrf.mxu0 }
 0x343   :  { %2432 = vst.msk [vmem:[#allocation3 + $0x118] sm:$0xff] %vm2396_vm2, %v2338_v48  ;;  %v2488_v6 = vld [vmem:[#allocation2 + $0x151] sm:$0xff] }
 0x344   :  { %v2342_v40 = vpop.f32.mrf.mxu1  ;;  %8047 = vmatmul.mubr.msk.bf16.gmra.mxu1 %vm1938_vm0, %v2512_v18  ;;  %v10168_v24 = vpop.f32.mrf.mxu0 }
 0x345   :  { %v2343_v54 = vadd.f32 %v10012_v60, %v2342_v40  ;;  %8050 = vmatprep.mubr.msk.bf16.mxu1 %vm8937_vm1, %v11668_v59  ;;  %v2489_v40 = vld [vmem:[#allocation2 + $0x159] sm:$0xff] }
 0x346   :  { %v7948_v20 = vpop.f32.mrf.mxu1  ;;  %v8193_v57 = vpop.f32.mrf.mxu0 }
 0x347   :  { %2433 = vst.msk [vmem:[#allocation3 + $0x120] sm:$0xff] %vm2396_vm2, %v2343_v54  ;;  %v2516_v20 = vpack.c.bf16 %v2489_v40, %v2488_v6  ;;  %v4633_v57 = vld [vmem:[#allocation2 + $0x68] sm:$0xff]  ;;  %v2519_v6 = vpack.c.bf16 %v2494_v31, %v2494_v31 }
 0x348   :  { %v2345_v8 = vpop.f32.mrf.mxu1  ;;  %v10174_v25 = vpop.f32.mrf.mxu0  ;;  %8399 = vmatmul.mubr.msk.bf16.gmra.mxu0 %vm1938_vm0, %v4672_v63  ;;  %v2524_v31 = vld [vmem:[#allocation3 + $0x20] sm:$0xff] }
 0x349   :  { %v2346_v34 = vadd.f32 %v10012_v60, %v2345_v8  ;;  %8402 = vmatprep.mubr.msk.bf16.mxu0 %vm8937_vm1, %v11668_v59 }
 0x34a   :  { %v7949_v52 = vpop.f32.mrf.mxu1  ;;  %v8196_v32 = vpop.f32.mrf.mxu0 }
 0x34b   :  { %2434 = vst.msk [vmem:[#allocation3 + $0x128] sm:$0xff] %vm2396_vm2, %v2346_v34  ;;  %v4632_v34 = vld [vmem:[#allocation2 + $0x60] sm:$0xff] }
 0x34c   :  { %v2350_v55 = vpop.f32.mrf.mxu1  ;;  %8051 = vmatmul.mubr.msk.bf16.gmra.mxu1 %vm1938_vm0, %v2513_v61  ;;  %v10182_v1 = vpop.f32.mrf.mxu0  ;;  %v4676_v32 = vpack.c.bf16 %v4633_v57, %v4632_v34  ;;  %v2491_v61 = vld [vmem:[#allocation2 + $0x169] sm:$0xff] }
 0x34d   :  { %v2351_v46 = vadd.f32 %v10012_v60, %v2350_v55  ;;  %8054 = vmatprep.mubr.msk.bf16.mxu1 %vm8937_vm1, %v11668_v59  ;;  %v2991_v34 = vld [vmem:[#allocation2 + $0xa] sm:$0xff] }
 0x34e   :  { %v7952_v17 = vpop.f32.mrf.mxu1  ;;  %v8197_v36 = vpop.f32.mrf.mxu0 }
 0x34f   :  { %2435 = vst.msk [vmem:[#allocation3 + $0x130] sm:$0xff] %vm2396_vm2, %v2351_v46 }
 0x350   :  { %v2353_v0 = vpop.f32.mrf.mxu1  ;;  %v10188_v9 = vpop.f32.mrf.mxu0  ;;  %8403 = vmatmul.mubr.msk.bf16.gmra.mxu0 %vm1938_vm0, %v4673_v37  ;;  %v2517_v37 = vpack.c.bf16 %v2491_v61, %v2490_v19  ;;  %v8930_v19 = vld [vmem:[%s11567_s3 + $0x78] sm:$0xff]  }
 0x351   :  { %v2354_v47 = vadd.f32 %v10012_v60, %v2353_v0  ;;  %8406 = vmatprep.mubr.msk.bf16.mxu0 %vm8937_vm1, %v11668_v59  ;;  %8599 = vmatpush3.bf16.msra.mxu0 %v8930_v19 }
 0x352   :  { %v7953_v51 = vpop.f32.mrf.mxu1  ;;  %v8200_v56 = vpop.f32.mrf.mxu0  ;;  %8600 = vmatprep.subr.bf16.mxu0 %v11668_v59 }
 0x353   :  { %2436 = vst.msk [vmem:[#allocation3 + $0x138] sm:$0xff] %vm2396_vm2, %v2354_v47  ;;  %v4635_v51 = vld [vmem:[#allocation2 + $0x78] sm:$0xff] }
 0x354   :  { %v2358_v58 = vpop.f32.mrf.mxu1  ;;  %8055 = vmatmul.mubr.msk.bf16.gmra.mxu1 %vm1938_vm0, %v2514_v49  ;;  %v10196_v2 = vpop.f32.mrf.mxu0  ;;  %v4677_v12 = vpack.c.bf16 %v4635_v51, %v4634_v23  ;;  %v4641_v23 = vld [vmem:[#allocation2 + $0xa8] sm:$0xff] }
 0x355   :  { %v2359_v22 = vadd.f32 %v10012_v60, %v2358_v58  ;;  %8058 = vmatprep.mubr.msk.bf16.mxu1 %vm8937_vm1, %v11668_v59  ;;  %v2492_v58 = vld [vmem:[#allocation2 + $0x171] sm:$0xff] }
 0x356   :  { %v7956_v50 = vpop.f32.mrf.mxu1  ;;  %v8201_v53 = vpop.f32.mrf.mxu0 }
 0x357   :  { %2437 = vst.msk [vmem:[#allocation3 + $0x140] sm:$0xff] %vm2396_vm2, %v2359_v22  ;;  %v2493_v53 = vld [vmem:[#allocation2 + $0x179] sm:$0xff] }
 0x358   :  { %v2361_v10 = vpop.f32.mrf.mxu1  ;;  %v10202_v29 = vpop.f32.mrf.mxu0  ;;  %8407 = vmatmul.mubr.msk.bf16.gmra.mxu0 %vm1938_vm0, %v4674_v21 }
 0x359   :  { %v2362_v38 = vadd.f32 %v10012_v60, %v2361_v10  ;;  %8410 = vmatprep.mubr.msk.bf16.mxu0 %vm8937_vm1, %v11668_v59  ;;  %v2518_v10 = vpack.c.bf16 %v2493_v53, %v2492_v58  ;;  %v8931_v58 = vld [vmem:[%s11567_s3 + $0x70] sm:$0xff]  }
 0x35a   :  { %v7957_v11 = vpop.f32.mrf.mxu1  ;;  %v8204_v28 = vpop.f32.mrf.mxu0  ;;  %8601 = vmatpush3.bf16.msra.mxu0 %v8931_v58 }
 0x35b   :  { %2438 = vst.msk [vmem:[#allocation3 + $0x148] sm:$0xff] %vm2396_vm2, %v2362_v38  ;;  %v4637_v38 = vld [vmem:[#allocation2 + $0x88] sm:$0xff] }
 0x35c   :  { %v2366_v44 = vpop.f32.mrf.mxu1  ;;  %8059 = vmatmul.mubr.msk.bf16.gmra.mxu1 %vm1938_vm0, %v2515_v33  ;;  %v10210_v3 = vpop.f32.mrf.mxu0  ;;  %v4636_v33 = vld [vmem:[#allocation2 + $0x80] sm:$0xff] }
 0x35d   :  { %v2367_v62 = vadd.f32 %v10012_v60, %v2366_v44  ;;  %8062 = vmatprep.mubr.msk.bf16.mxu1 %vm8937_vm1, %v11668_v59 }
 0x35e   :  { %v7960_v15 = vpop.f32.mrf.mxu1  ;;  %v8205_v48 = vpop.f32.mrf.mxu0 }
 0x35f   :  { %2439 = vst.msk [vmem:[#allocation3 + $0x150] sm:$0xff] %vm2396_vm2, %v2367_v62  ;;  %v4678_v62 = vpack.c.bf16 %v4637_v38, %v4636_v33 }
 0x360   :  { %v2369_v45 = vpop.f32.mrf.mxu1  ;;  %v10216_v18 = vpop.f32.mrf.mxu0  ;;  %8411 = vmatmul.mubr.msk.bf16.gmra.mxu0 %vm1938_vm0, %v4675_v39 }
 0x361   :  { %v2370_v4 = vadd.f32 %v10012_v60, %v2369_v45  ;;  %8414 = vmatprep.mubr.msk.bf16.mxu0 %vm8937_vm1, %v11668_v59  ;;  %v4638_v45 = vld [vmem:[#allocation2 + $0x90] sm:$0xff] }
 0x362   :  { %v7961_v54 = vpop.f32.mrf.mxu1  ;;  %v8208_v35 = vpop.f32.mrf.mxu0 }
 0x363   :  { %2440 = vst.msk [vmem:[#allocation3 + $0x158] sm:$0xff] %vm2396_vm2, %v2370_v4  ;;  %v2520_v4 = vld [vmem:[#allocation3] sm:$0xff] }
 0x364   :  { %v2374_v63 = vpop.f32.mrf.mxu1  ;;  %8063 = vmatmul.mubr.msk.bf16.gmra.mxu1 %vm1938_vm0, %v2516_v20  ;;  %v10224_v42 = vpop.f32.mrf.mxu0  ;;  %v4639_v20 = vld [vmem:[#allocation2 + $0x98] sm:$0xff] }
 0x365   :  { %v2375_v8 = vadd.f32 %v10012_v60, %v2374_v63  ;;  %8066 = vmatprep.mubr.msk.bf16.mxu1 %vm8937_vm1, %v11668_v59 }
 0x366   :  { %v7964_v13 = vpop.f32.mrf.mxu1  ;;  %v8209_v52 = vpop.f32.mrf.mxu0 }
 0x367   :  { %2441 = vst.msk [vmem:[#allocation3 + $0x160] sm:$0xff] %vm2396_vm2, %v2375_v8  ;;  %v4679_v8 = vpack.c.bf16 %v4639_v20, %v4638_v45  ;;  %v2521_v13 = vld [vmem:[#allocation3 + $0x8] sm:$0xff] }
 0x368   :  { %v2377_v43 = vpop.f32.mrf.mxu1  ;;  %v10230_v55 = vpop.f32.mrf.mxu0  ;;  %8415 = vmatmul.mubr.msk.bf16.gmra.mxu0 %vm1938_vm0, %v4676_v32  ;;  %v2525_v20 = vld [vmem:[#allocation3 + $0x28] sm:$0xff] }
 0x369   :  { %v2378_v46 = vadd.f32 %v10012_v60, %v2377_v43  ;;  %8418 = vmatprep.mubr.msk.bf16.mxu0 %vm8937_vm1, %v11668_v59  ;;  %v2990_v43 = vld [vmem:[#allocation2 + $0x2] sm:$0xff] }
 0x36a   :  { %v7965_v17 = vpop.f32.mrf.mxu1  ;;  %v8212_v36 = vpop.f32.mrf.mxu0 }
 0x36b   :  { %2442 = vst.msk [vmem:[#allocation3 + $0x168] sm:$0xff] %vm2396_vm2, %v2378_v46  ;;  %v8928_v46 = vld [vmem:[%s11567_s3 + $0x48] sm:$0xff]  }
 0x36c   :  { %v2382_v0 = vpop.f32.mrf.mxu1  ;;  %8067 = vmatmul.mubr.msk.bf16.gmra.mxu1 %vm1938_vm0, %v2517_v37  ;;  %v10238_v47 = vpop.f32.mrf.mxu0  ;;  %v3039_v37 = vpack.c.bf16 %v2991_v34, %v2990_v43  ;;  %v2994_v34 = vld [vmem:[#allocation2 + $0x22] sm:$0xff] }
 0x36d   :  { %v2383_v26 = vadd.f32 %v10012_v60, %v2382_v0  ;;  %8070 = vmatprep.mubr.msk.bf16.mxu1 %vm8937_vm1, %v11668_v59  ;;  %v2522_v0 = vld [vmem:[#allocation3 + $0x10] sm:$0xff]  ;;  %v4645_v43 = vld [vmem:[#allocation2 + $0xc8] sm:$0xff] }
 0x36e   :  { %v7968_v56 = vpop.f32.mrf.mxu1  ;;  %v8213_v49 = vpop.f32.mrf.mxu0 }
 0x36f   :  { %2443 = vst.msk [vmem:[#allocation3 + $0x170] sm:$0xff] %vm2396_vm2, %v2383_v26  ;;  %v4640_v49 = vld [vmem:[#allocation2 + $0xa0] sm:$0xff] }
 0x370   :  { %v2385_v22 = vpop.f32.mrf.mxu1  ;;  %v10244_v41 = vpop.f32.mrf.mxu0  ;;  %8419 = vmatmul.mubr.msk.bf16.gmra.mxu0 %vm1938_vm0, %v4677_v12  ;;  %v8929_v12 = vld [vmem:[%s11567_s3 + $0x40] sm:$0xff]   ;;  %v4680_v53 = vpack.c.bf16 %v4641_v23, %v4640_v49 }
 0x371   :  { %v2386_v50 = vadd.f32 %v10012_v60, %v2385_v22  ;;  %8422 = vmatprep.mubr.msk.bf16.mxu0 %vm8937_vm1, %v11668_v59  ;;  %v2527_v49 = vld [vmem:[#allocation3 + $0x38] sm:$0xff] }
 0x372   :  { %v7969_v21 = vpop.f32.mrf.mxu1  ;;  %v8216_v14 = vpop.f32.mrf.mxu0 }
 0x373   :  { %2444 = vst.msk [vmem:[#allocation3 + $0x178] sm:$0xff] %vm2396_vm2, %v2386_v50  ;;  %v2992_v21 = vld [vmem:[#allocation2 + $0x12] sm:$0xff]  ;;  %v2523_v14 = vld [vmem:[#allocation3 + $0x18] sm:$0xff] }
 0x374   :  { %v2390_v7 = vpop.f32.mrf.mxu1  ;;  %8071 = vmatmul.mubr.msk.bf16.gmra.mxu1 %vm1938_vm0, %v2518_v10  ;;  %v10252_v11 = vpop.f32.mrf.mxu0 }
 0x375   :  { %v2391_v28 = vadd.f32 %v10012_v60, %v2390_v7  ;;  %8074 = vmatprep.mubr.msk.bf16.mxu1 %vm8937_vm1, %v11668_v59 }
 0x376   :  { %v7972_v5 = vpop.f32.mrf.mxu1  ;;  %v8217_v44 = vpop.f32.mrf.mxu0 }
 0x377   :  { %2445 = vst.msk [vmem:[#allocation3 + $0x180] sm:$0xff] %vm2396_vm2, %v2391_v28  ;;  %v2993_v28 = vld [vmem:[#allocation2 + $0x1a] sm:$0xff] }
 0x378   :  { %v2393_v15 = vpop.f32.mrf.mxu1  ;;  %v10258_v48 = vpop.f32.mrf.mxu0  ;;  %8423 = vmatmul.mubr.msk.bf16.gmra.mxu0 %vm1938_vm0, %v4678_v62  ;;  %v3040_v44 = vpack.c.bf16 %v2993_v28, %v2992_v21  ;;  %v4642_v62 = vld [vmem:[#allocation2 + $0xb0] sm:$0xff] }
 0x379   :  { %8426 = vmatprep.mubr.msk.bf16.mxu0 %vm8937_vm1, %v11668_v59 }
 0x37a   :  { %v7973_v39 = vpop.f32.mrf.mxu1  ;;  %v8220_v60 = vpop.f32.mrf.mxu0 }
 0x37c   :  { %v2694_v40 = vpop.f32.mrf.mxu1  ;;  %8075 = vmatmul.mubr.msk.bf16.gmra.mxu1 %vm1938_vm0, %v2519_v6  ;;  %v10264_v54 = vpop.f32.mrf.mxu0  ;;  %v4643_v6 = vld [vmem:[#allocation2 + $0xb8] sm:$0xff] }
 0x37d   :  { %v2892_v35 = vadd.f32 %v2694_v40, %v2520_v4  ;;  %8082 = vmatprep.mubr.msk.bf16.mxu1 %vm8937_vm1, %v11668_v59  ;;  %v4681_v40 = vpack.c.bf16 %v4643_v6, %v4642_v62  ;;  %v2529_v6 = vld [vmem:[#allocation3 + $0x48] sm:$0xff] }
 0x37e   :  { %v7980_v57 = vpop.f32.mrf.mxu1  ;;  %v8221_v63 = vpop.f32.mrf.mxu0 }
 0x37f   :  { %2941 = vst.msk [vmem:[#allocation3] sm:$0xff] %vm2396_vm2, %v2892_v35  ;;  %v2995_v35 = vld [vmem:[#allocation2 + $0x2a] sm:$0xff] }
 0x380   :  { %v2697_v52 = vpop.f32.mrf.mxu1  ;;  %v10269_v32 = vpop.f32.mrf.mxu0  ;;  %8427 = vmatmul.mubr.msk.bf16.gmra.mxu0 %vm1938_vm0, %v4679_v8 }
 0x381   :  { %v2893_v61 = vadd.f32 %v2697_v52, %v2521_v13  ;;  %8430 = vmatprep.mubr.msk.bf16.mxu0 %vm8937_vm1, %v11668_v59 }
 0x382   :  { %v7981_v17 = vpop.f32.mrf.mxu1  ;;  %v8224_v36 = vpop.f32.mrf.mxu0 }
 0x383   :  { %2942 = vst.msk [vmem:[#allocation3 + $0x8] sm:$0xff] %vm2396_vm2, %v2893_v61  ;;  %v3041_v61 = vpack.c.bf16 %v2995_v35, %v2994_v34  ;;  %v2998_v35 = vld [vmem:[#allocation2 + $0x42] sm:$0xff] }
 0x384   :  { %v2702_v26 = vpop.f32.mrf.mxu1  ;;  %8083 = vmatmul.mubr.msk.bf16.vlgmr.msra.gmra.mxu1 %vm1938_vm0, %v3039_v37  ;;  %v10282_v51 = vpop.f32.mrf.mxu0  ;;  %v4644_v37 = vld [vmem:[#allocation2 + $0xc0] sm:$0xff]  ;;  %v4649_v34 = vld [vmem:[#allocation2 + $0xe8] sm:$0xff] }
 0x385   :  { %v2894_v56 = vadd.f32 %v2702_v26, %v2522_v0  ;;  %8287 = vmatpush3.bf16.msra.mxu1 %v8928_v46  ;;  %8086 = vmatprep.mubr.msk.bf16.mxu1 %vm8937_vm1, %v11668_v59  ;;  %v2526_v46 = vld [vmem:[#allocation3 + $0x30] sm:$0xff]  ;;  %v4682_v26 = vpack.c.bf16 %v4645_v43, %v4644_v37 }
 0x386   :  { %v7984_v22 = vpop.f32.mrf.mxu1  ;;  %v8225_v50 = vpop.f32.mrf.mxu0  ;;  %8288 = vmatprep.subr.bf16.mxu1 %v11668_v59 }
 0x387   :  { %2943 = vst.msk [vmem:[#allocation3 + $0x10] sm:$0xff] %vm2396_vm2, %v2894_v56  ;;  %v2996_v56 = vld [vmem:[#allocation2 + $0x32] sm:$0xff]  ;;  %v2997_v50 = vld [vmem:[#allocation2 + $0x3a] sm:$0xff] }
 0x388   :  { %v2705_v10 = vpop.f32.mrf.mxu1  ;;  %v10295_v38 = vpop.f32.mrf.mxu0  ;;  %8431 = vmatmul.mubr.msk.bf16.gmra.mxu0 %vm1938_vm0, %v4680_v53 }
 0x389   :  { %v2895_v7 = vadd.f32 %v2705_v10, %v2523_v14  ;;  %8434 = vmatprep.mubr.msk.bf16.mxu0 %vm8937_vm1, %v11668_v59  ;;  %8289 = vmatpush3.bf16.msra.mxu1 %v8929_v12  ;;  %v3042_v14 = vpack.c.bf16 %v2997_v50, %v2996_v56  ;;  %v4646_v10 = vld [vmem:[#allocation2 + $0xd0] sm:$0xff] }
 0x38a   :  { %v7985_v33 = vpop.f32.mrf.mxu1  ;;  %v8228_v5 = vpop.f32.mrf.mxu0  ;;  %8494 = vmatprep.subr.bf16.mxu1 %v11668_v59 }
 0x38b   :  { %2944 = vst.msk [vmem:[#allocation3 + $0x18] sm:$0xff] %vm2396_vm2, %v2895_v7  ;;  %v2528_v7 = vld [vmem:[#allocation3 + $0x40] sm:$0xff] }
 0x38c   :  { %v2710_v15 = vpop.f32.mrf.mxu1  ;;  %8087 = vmatmul.mubr.msk.bf16.gmra.mxu1 %vm1938_vm0, %v3040_v44  ;;  %v10303_v39 = vpop.f32.mrf.mxu0  ;;  %v4647_v44 = vld [vmem:[#allocation2 + $0xd8] sm:$0xff] }
 0x38d   :  { %v2896_v60 = vadd.f32 %v2710_v15, %v2524_v31  ;;  %8090 = vmatprep.mubr.msk.bf16.mxu1 %vm8937_vm1, %v11668_v59  ;;  %v4683_v15 = vpack.c.bf16 %v4647_v44, %v4646_v10 }
 0x38e   :  { %v7988_v45 = vpop.f32.mrf.mxu1  ;;  %v8229_v4 = vpop.f32.mrf.mxu0 }
 0x38f   :  { %2945 = vst.msk [vmem:[#allocation3 + $0x20] sm:$0xff] %vm2396_vm2, %v2896_v60  ;;  %v2999_v60 = vld [vmem:[#allocation2 + $0x4a] sm:$0xff] }
 0x390   :  { %v2713_v57 = vpop.f32.mrf.mxu1  ;;  %v10308_v63 = vpop.f32.mrf.mxu0  ;;  %8435 = vmatmul.mubr.msk.bf16.gmra.mxu0 %vm1938_vm0, %v4681_v40 }
 0x391   :  { %v2897_v8 = vadd.f32 %v2713_v57, %v2525_v20  ;;  %8438 = vmatprep.mubr.msk.bf16.mxu0 %vm8937_vm1, %v11668_v59 }
 0x392   :  { %v7989_v13 = vpop.f32.mrf.mxu1  ;;  %v8232_v52 = vpop.f32.mrf.mxu0 }
 0x393   :  { %2946 = vst.msk [vmem:[#allocation3 + $0x28] sm:$0xff] %vm2396_vm2, %v2897_v8  ;;  %v3043_v8 = vpack.c.bf16 %v2999_v60, %v2998_v35  ;;  %v2530_v13 = vld [vmem:[#allocation3 + $0x50] sm:$0xff]  ;;  %v2533_v60 = vld [vmem:[#allocation3 + $0x68] sm:$0xff]  ;;  %v3002_v35 = vld [vmem:[#allocation2 + $0x62] sm:$0xff] }
 0x394   :  { %v2718_v19 = vpop.f32.mrf.mxu1  ;;  %8091 = vmatmul.mubr.msk.bf16.gmra.mxu1 %vm1938_vm0, %v3041_v61  ;;  %v10315_v17 = vpop.f32.mrf.mxu0 }
 0x395   :  { %v2898_v36 = vadd.f32 %v2718_v19, %v2526_v46  ;;  %8094 = vmatprep.mubr.msk.bf16.mxu1 %vm8937_vm1, %v11668_v59  ;;  %v4648_v46 = vld [vmem:[#allocation2 + $0xe0] sm:$0xff] }
 0x396   :  { %v7992_v23 = vpop.f32.mrf.mxu1  ;;  %v8233_v0 = vpop.f32.mrf.mxu0  ;;  %v4684_v37 = vpack.c.bf16 %v4649_v34, %v4648_v46  ;;  %v4653_v34 = vld [vmem:[#allocation2 + $0x108] sm:$0xff] }
 0x397   :  { %2947 = vst.msk [vmem:[#allocation3 + $0x30] sm:$0xff] %vm2396_vm2, %v2898_v36  ;;  %v3000_v23 = vld [vmem:[#allocation2 + $0x52] sm:$0xff]  ;;  %v2531_v0 = vld [vmem:[#allocation3 + $0x58] sm:$0xff] }
 0x398   :  { %v2721_v12 = vpop.f32.mrf.mxu1  ;;  %v10320_v58 = vpop.f32.mrf.mxu0  ;;  %8439 = vmatmul.mubr.msk.bf16.gmra.mxu0 %vm1938_vm0, %v4682_v26 }
 0x399   :  { %v2899_v22 = vadd.f32 %v2721_v12, %v2527_v49  ;;  %8442 = vmatprep.mubr.msk.bf16.mxu0 %vm8937_vm1, %v11668_v59  ;;  %v3001_v12 = vld [vmem:[#allocation2 + $0x5a] sm:$0xff] }
 0x39a   :  { %v7993_v53 = vpop.f32.mrf.mxu1  ;;  %v8236_v21 = vpop.f32.mrf.mxu0 }
 0x39b   :  { %2948 = vst.msk [vmem:[#allocation3 + $0x38] sm:$0xff] %vm2396_vm2, %v2899_v22  ;;  %v3044_v53 = vpack.c.bf16 %v3001_v12, %v3000_v23  ;;  %v4650_v21 = vld [vmem:[#allocation2 + $0xf0] sm:$0xff] }
 0x39c   :  { %v2726_v28 = vpop.f32.mrf.mxu1  ;;  %8095 = vmatmul.mubr.msk.bf16.gmra.mxu1 %vm1938_vm0, %v3042_v14  ;;  %v10327_v33 = vpop.f32.mrf.mxu0  ;;  %v2532_v14 = vld [vmem:[#allocation3 + $0x60] sm:$0xff] }
 0x39d   :  { %v2900_v5 = vadd.f32 %v2726_v28, %v2528_v7  ;;  %8098 = vmatprep.mubr.msk.bf16.mxu1 %vm8937_vm1, %v11668_v59 }
 0x39e   :  { %v7996_v62 = vpop.f32.mrf.mxu1  ;;  %v8237_v31 = vpop.f32.mrf.mxu0 }
 0x39f   :  { %2949 = vst.msk [vmem:[#allocation3 + $0x40] sm:$0xff] %vm2396_vm2, %v2900_v5  ;;  %v4651_v5 = vld [vmem:[#allocation2 + $0xf8] sm:$0xff] }
 0x3a0   :  { %v2729_v45 = vpop.f32.mrf.mxu1  ;;  %v10332_v4 = vpop.f32.mrf.mxu0  ;;  %8443 = vmatmul.mubr.msk.bf16.gmra.mxu0 %vm1938_vm0, %v4683_v15  ;;  %v4685_v31 = vpack.c.bf16 %v4651_v5, %v4650_v21  ;;  %v3003_v15 = vld [vmem:[#allocation2 + $0x6a] sm:$0xff] }
 0x3a1   :  { %v2901_v40 = vadd.f32 %v2729_v45, %v2529_v6  ;;  %8446 = vmatprep.mubr.msk.bf16.mxu0 %vm8937_vm1, %v11668_v59 }
 0x3a2   :  { %v7997_v20 = vpop.f32.mrf.mxu1  ;;  %v8240_v57 = vpop.f32.mrf.mxu0 }
 0x3a3   :  { %2950 = vst.msk [vmem:[#allocation3 + $0x48] sm:$0xff] %vm2396_vm2, %v2901_v40 }
 0x3a4   :  { %v2734_v52 = vpop.f32.mrf.mxu1  ;;  %8099 = vmatmul.mubr.msk.bf16.gmra.mxu1 %vm1938_vm0, %v3043_v8  ;;  %v10339_v61 = vpop.f32.mrf.mxu0  ;;  %v3045_v8 = vpack.c.bf16 %v3003_v15, %v3002_v35  ;;  %v2537_v35 = vld [vmem:[#allocation3 + $0x88] sm:$0xff] }
 0x3a5   :  { %v2902_v43 = vadd.f32 %v2734_v52, %v2530_v13  ;;  %8102 = vmatprep.mubr.msk.bf16.mxu1 %vm8937_vm1, %v11668_v59  ;;  %v2534_v13 = vld [vmem:[#allocation3 + $0x70] sm:$0xff] }
 0x3a6   :  { %v8000_v19 = vpop.f32.mrf.mxu1  ;;  %v8241_v36 = vpop.f32.mrf.mxu0 }
 0x3a7   :  { %2951 = vst.msk [vmem:[#allocation3 + $0x50] sm:$0xff] %vm2396_vm2, %v2902_v43  ;;  %v4652_v19 = vld [vmem:[#allocation2 + $0x100] sm:$0xff] }
 0x3a8   :  { %v2737_v26 = vpop.f32.mrf.mxu1  ;;  %v10344_v56 = vpop.f32.mrf.mxu0  ;;  %8447 = vmatmul.mubr.msk.bf16.gmra.mxu0 %vm1938_vm0, %v4684_v37  ;;  %v4686_v23 = vpack.c.bf16 %v4653_v34, %v4652_v19  ;;  %v3006_v34 = vld [vmem:[#allocation2 + $0x82] sm:$0xff] }
 0x3a9   :  { %v2903_v49 = vadd.f32 %v2737_v26, %v2531_v0  ;;  %8450 = vmatprep.mubr.msk.bf16.mxu0 %vm8937_vm1, %v11668_v59  ;;  %v3004_v0 = vld [vmem:[#allocation2 + $0x72] sm:$0xff]  ;;  %v2535_v26 = vld [vmem:[#allocation3 + $0x78] sm:$0xff]  ;;  %v4657_v19 = vld [vmem:[#allocation2 + $0x128] sm:$0xff] }
 0x3aa   :  { %v8001_v22 = vpop.f32.mrf.mxu1  ;;  %v8244_v50 = vpop.f32.mrf.mxu0 }
 0x3ab   :  { %2952 = vst.msk [vmem:[#allocation3 + $0x58] sm:$0xff] %vm2396_vm2, %v2903_v49  ;;  %v3005_v50 = vld [vmem:[#allocation2 + $0x7a] sm:$0xff] }
 0x3ac   :  { %v2742_v10 = vpop.f32.mrf.mxu1  ;;  %8103 = vmatmul.mubr.msk.bf16.gmra.mxu1 %vm1938_vm0, %v3044_v53  ;;  %v10351_v7 = vpop.f32.mrf.mxu0 }
 0x3ad   :  { %v2904_v28 = vadd.f32 %v2742_v10, %v2532_v14  ;;  %8106 = vmatprep.mubr.msk.bf16.mxu1 %vm8937_vm1, %v11668_v59  ;;  %v3046_v14 = vpack.c.bf16 %v3005_v50, %v3004_v0  ;;  %v4654_v10 = vld [vmem:[#allocation2 + $0x110] sm:$0xff] }
 0x3ae   :  { %v8004_v44 = vpop.f32.mrf.mxu1  ;;  %v8245_v62 = vpop.f32.mrf.mxu0 }
 0x3af   :  { %2953 = vst.msk [vmem:[#allocation3 + $0x60] sm:$0xff] %vm2396_vm2, %v2904_v28  ;;  %v2536_v28 = vld [vmem:[#allocation3 + $0x80] sm:$0xff] }
 0x3b0   :  { %v2745_v6 = vpop.f32.mrf.mxu1  ;;  %v10356_v45 = vpop.f32.mrf.mxu0  ;;  %8451 = vmatmul.mubr.msk.bf16.gmra.mxu0 %vm1938_vm0, %v4685_v31  ;;  %v4655_v31 = vld [vmem:[#allocation2 + $0x118] sm:$0xff] }
 0x3b1   :  { %v2905_v40 = vadd.f32 %v2745_v6, %v2533_v60  ;;  %8454 = vmatprep.mubr.msk.bf16.mxu0 %vm8937_vm1, %v11668_v59  ;;  %v4687_v6 = vpack.c.bf16 %v4655_v31, %v4654_v10 }
 0x3b2   :  { %v8005_v20 = vpop.f32.mrf.mxu1  ;;  %v8248_v57 = vpop.f32.mrf.mxu0 }
 0x3b3   :  { %2954 = vst.msk [vmem:[#allocation3 + $0x68] sm:$0xff] %vm2396_vm2, %v2905_v40  ;;  %v3007_v40 = vld [vmem:[#allocation2 + $0x8a] sm:$0xff] }
 0x3b4   :  { %v2750_v52 = vpop.f32.mrf.mxu1  ;;  %8107 = vmatmul.mubr.msk.bf16.gmra.mxu1 %vm1938_vm0, %v3045_v8  ;;  %v10363_v43 = vpop.f32.mrf.mxu0 }
 0x3b5   :  { %v2906_v46 = vadd.f32 %v2750_v52, %v2534_v13  ;;  %8110 = vmatprep.mubr.msk.bf16.mxu1 %vm8937_vm1, %v11668_v59 }
 0x3b6   :  { %v8008_v36 = vpop.f32.mrf.mxu1  ;;  %v8249_v37 = vpop.f32.mrf.mxu0 }
 0x3b7   :  { %2955 = vst.msk [vmem:[#allocation3 + $0x70] sm:$0xff] %vm2396_vm2, %v2906_v46  ;;  %v3047_v46 = vpack.c.bf16 %v3007_v40, %v3006_v34  ;;  %v2538_v36 = vld [vmem:[#allocation3 + $0x90] sm:$0xff] }
 0x3b8   :  { %v2753_v49 = vpop.f32.mrf.mxu1  ;;  %v10368_v12 = vpop.f32.mrf.mxu0  ;;  %8455 = vmatmul.mubr.msk.bf16.gmra.mxu0 %vm1938_vm0, %v4686_v23 }
 0x3b9   :  { %v2907_v22 = vadd.f32 %v2753_v49, %v2535_v26  ;;  %8458 = vmatprep.mubr.msk.bf16.mxu0 %vm8937_vm1, %v11668_v59  ;;  %v4656_v26 = vld [vmem:[#allocation2 + $0x120] sm:$0xff] }
 0x3ba   :  { %v8009_v53 = vpop.f32.mrf.mxu1  ;;  %v8252_v21 = vpop.f32.mrf.mxu0  ;;  %v4688_v50 = vpack.c.bf16 %v4657_v19, %v4656_v26  ;;  %v2541_v19 = vld [vmem:[#allocation3 + $0xa8] sm:$0xff]  ;;  %v3010_v26 = vld [vmem:[#allocation2 + $0xa2] sm:$0xff] }
 0x3bb   :  { %2956 = vst.msk [vmem:[#allocation3 + $0x78] sm:$0xff] %vm2396_vm2, %v2907_v22  ;;  %v3008_v53 = vld [vmem:[#allocation2 + $0x92] sm:$0xff]  ;;  %v2539_v21 = vld [vmem:[#allocation3 + $0x98] sm:$0xff] }
 0x3bc   :  { %v2758_v5 = vpop.f32.mrf.mxu1  ;;  %8111 = vmatmul.mubr.msk.bf16.gmra.mxu1 %vm1938_vm0, %v3046_v14  ;;  %v10375_v44 = vpop.f32.mrf.mxu0 }
 0x3bd   :  { %v2908_v62 = vadd.f32 %v2758_v5, %v2536_v28  ;;  %8114 = vmatprep.mubr.msk.bf16.mxu1 %vm8937_vm1, %v11668_v59  ;;  %v3009_v5 = vld [vmem:[#allocation2 + $0x9a] sm:$0xff] }
 0x3be   :  { %v8012_v15 = vpop.f32.mrf.mxu1  ;;  %v8253_v60 = vpop.f32.mrf.mxu0 }
 0x3bf   :  { %2957 = vst.msk [vmem:[#allocation3 + $0x80] sm:$0xff] %vm2396_vm2, %v2908_v62  ;;  %v3048_v15 = vpack.c.bf16 %v3009_v5, %v3008_v53  ;;  %v4658_v60 = vld [vmem:[#allocation2 + $0x130] sm:$0xff]  ;;  %v4661_v53 = vld [vmem:[#allocation2 + $0x148] sm:$0xff] }
 0x3c0   :  { %v2761_v20 = vpop.f32.mrf.mxu1  ;;  %v10380_v57 = vpop.f32.mrf.mxu0  ;;  %8459 = vmatmul.mubr.msk.bf16.gmra.mxu0 %vm1938_vm0, %v4687_v6  ;;  %v2540_v6 = vld [vmem:[#allocation3 + $0xa0] sm:$0xff] }
 0x3c1   :  { %v2909_v8 = vadd.f32 %v2761_v20, %v2537_v35  ;;  %8462 = vmatprep.mubr.msk.bf16.mxu0 %vm8937_vm1, %v11668_v59 }
 0x3c2   :  { %v8013_v13 = vpop.f32.mrf.mxu1  ;;  %v8256_v52 = vpop.f32.mrf.mxu0 }
 0x3c3   :  { %2958 = vst.msk [vmem:[#allocation3 + $0x88] sm:$0xff] %vm2396_vm2, %v2909_v8  ;;  %v4659_v8 = vld [vmem:[#allocation2 + $0x138] sm:$0xff] }
 0x3c4   :  { %v2766_v37 = vpop.f32.mrf.mxu1  ;;  %8115 = vmatmul.mubr.msk.bf16.gmra.mxu1 %vm1938_vm0, %v3047_v46  ;;  %v10387_v23 = vpop.f32.mrf.mxu0  ;;  %v4689_v52 = vpack.c.bf16 %v4659_v8, %v4658_v60  ;;  %v3011_v46 = vld [vmem:[#allocation2 + $0xaa] sm:$0xff] }
 0x3c5   :  { %v2910_v0 = vadd.f32 %v2766_v37, %v2538_v36  ;;  %8118 = vmatprep.mubr.msk.bf16.mxu1 %vm8937_vm1, %v11668_v59 }
 0x3c6   :  { %v8016_v49 = vpop.f32.mrf.mxu1  ;;  %v8257_v22 = vpop.f32.mrf.mxu0 }
 0x3c7   :  { %2959 = vst.msk [vmem:[#allocation3 + $0x90] sm:$0xff] %vm2396_vm2, %v2910_v0 }
 0x3c8   :  { %v2769_v14 = vpop.f32.mrf.mxu1  ;;  %v10392_v10 = vpop.f32.mrf.mxu0  ;;  %8463 = vmatmul.mubr.msk.bf16.gmra.mxu0 %vm1938_vm0, %v4688_v50  ;;  %v3049_v50 = vpack.c.bf16 %v3011_v46, %v3010_v26 }
 0x3c9   :  { %v2911_v28 = vadd.f32 %v2769_v14, %v2539_v21  ;;  %8466 = vmatprep.mubr.msk.bf16.mxu0 %vm8937_vm1, %v11668_v59  ;;  %v2542_v21 = vld [vmem:[#allocation3 + $0xb0] sm:$0xff] }
 0x3ca   :  { %v8017_v62 = vpop.f32.mrf.mxu1  ;;  %v8260_v31 = vpop.f32.mrf.mxu0 }
 0x3cb   :  { %2960 = vst.msk [vmem:[#allocation3 + $0x98] sm:$0xff] %vm2396_vm2, %v2911_v28  ;;  %v4660_v62 = vld [vmem:[#allocation2 + $0x140] sm:$0xff] }
 0x3cc   :  { %v2774_v40 = vpop.f32.mrf.mxu1  ;;  %8119 = vmatmul.mubr.msk.bf16.gmra.mxu1 %vm1938_vm0, %v3048_v15  ;;  %v10399_v35 = vpop.f32.mrf.mxu0  ;;  %v4690_v60 = vpack.c.bf16 %v4661_v53, %v4660_v62  ;;  %v2545_v62 = vld [vmem:[#allocation3 + $0xc8] sm:$0xff] }
 0x3cd   :  { %v2912_v20 = vadd.f32 %v2774_v40, %v2540_v6  ;;  %8122 = vmatprep.mubr.msk.bf16.mxu1 %vm8937_vm1, %v11668_v59  ;;  %v3012_v6 = vld [vmem:[#allocation2 + $0xb2] sm:$0xff]  ;;  %v2543_v40 = vld [vmem:[#allocation3 + $0xb8] sm:$0xff] }
 0x3ce   :  { %v8020_v34 = vpop.f32.mrf.mxu1  ;;  %v8261_v13 = vpop.f32.mrf.mxu0 }
 0x3cf   :  { %2961 = vst.msk [vmem:[#allocation3 + $0xa0] sm:$0xff] %vm2396_vm2, %v2912_v20  ;;  %v3013_v13 = vld [vmem:[#allocation2 + $0xba] sm:$0xff] }
 0x3d0   :  { %v2777_v36 = vpop.f32.mrf.mxu1  ;;  %v10404_v37 = vpop.f32.mrf.mxu0  ;;  %8467 = vmatmul.mubr.msk.bf16.gmra.mxu0 %vm1938_vm0, %v4689_v52 }
 0x3d1   :  { %v2913_v0 = vadd.f32 %v2777_v36, %v2541_v19  ;;  %8470 = vmatprep.mubr.msk.bf16.mxu0 %vm8937_vm1, %v11668_v59  ;;  %v3050_v19 = vpack.c.bf16 %v3013_v13, %v3012_v6  ;;  %v4662_v36 = vld [vmem:[#allocation2 + $0x150] sm:$0xff]  ;;  %v3014_v6 = vld [vmem:[#allocation2 + $0xc2] sm:$0xff] }
 0x3d2   :  { %v8021_v49 = vpop.f32.mrf.mxu1  ;;  %v8264_v22 = vpop.f32.mrf.mxu0  ;;  %v4665_v13 = vld [vmem:[#allocation2 + $0x168] sm:$0xff] }
 0x3d3   :  { %2962 = vst.msk [vmem:[#allocation3 + $0xa8] sm:$0xff] %vm2396_vm2, %v2913_v0  ;;  %v2544_v0 = vld [vmem:[#allocation3 + $0xc0] sm:$0xff] }
 0x3d4   :  { %v2782_v14 = vpop.f32.mrf.mxu1  ;;  %8123 = vmatmul.mubr.msk.bf16.gmra.mxu1 %vm1938_vm0, %v3049_v50  ;;  %v10411_v28 = vpop.f32.mrf.mxu0  ;;  %v4663_v50 = vld [vmem:[#allocation2 + $0x158] sm:$0xff] }
 0x3d5   :  { %v2914_v5 = vadd.f32 %v2782_v14, %v2542_v21  ;;  %8126 = vmatprep.mubr.msk.bf16.mxu1 %vm8937_vm1, %v11668_v59  ;;  %v4691_v14 = vpack.c.bf16 %v4663_v50, %v4662_v36 }
 0x3d6   :  { %v8024_v31 = vpop.f32.mrf.mxu1  ;;  %v8265_v15 = vpop.f32.mrf.mxu0 }
 0x3d7   :  { %2963 = vst.msk [vmem:[#allocation3 + $0xb0] sm:$0xff] %vm2396_vm2, %v2914_v5  ;;  %v3015_v5 = vld [vmem:[#allocation2 + $0xca] sm:$0xff] }
 0x3d8   :  { %v2785_v20 = vpop.f32.mrf.mxu1  ;;  %v10416_v8 = vpop.f32.mrf.mxu0  ;;  %8471 = vmatmul.mubr.msk.bf16.gmra.mxu0 %vm1938_vm0, %v4690_v60 }
 0x3d9   :  { %v2915_v34 = vadd.f32 %v2785_v20, %v2543_v40  ;;  %8474 = vmatprep.mubr.msk.bf16.mxu0 %vm8937_vm1, %v11668_v59 }
 0x3da   :  { %v8025_v52 = vpop.f32.mrf.mxu1  ;;  %v8268_v46 = vpop.f32.mrf.mxu0 }
 0x3db   :  { %2964 = vst.msk [vmem:[#allocation3 + $0xb8] sm:$0xff] %vm2396_vm2, %v2915_v34  ;;  %v3051_v34 = vpack.c.bf16 %v3015_v5, %v3014_v6  ;;  %v2546_v52 = vld [vmem:[#allocation3 + $0xd0] sm:$0xff] }
 0x3dc   :  { %v2790_v26 = vpop.f32.mrf.mxu1  ;;  %8127 = vmatmul.mubr.msk.bf16.gmra.mxu1 %vm1938_vm0, %v3050_v19  ;;  %v10423_v49 = vpop.f32.mrf.mxu0 }
 0x3dd   :  { %v2916_v22 = vadd.f32 %v2790_v26, %v2544_v0  ;;  %8130 = vmatprep.mubr.msk.bf16.mxu1 %vm8937_vm1, %v11668_v59  ;;  %v4664_v0 = vld [vmem:[#allocation2 + $0x160] sm:$0xff] }
 0x3de   :  { %v8028_v53 = vpop.f32.mrf.mxu1  ;;  %v8269_v21 = vpop.f32.mrf.mxu0  ;;  %v4692_v50 = vpack.c.bf16 %v4665_v13, %v4664_v0 }
 0x3df   :  { %2965 = vst.msk [vmem:[#allocation3 + $0xc0] sm:$0xff] %vm2396_vm2, %v2916_v22  ;;  %v3016_v53 = vld [vmem:[#allocation2 + $0xd2] sm:$0xff]  ;;  %v2547_v21 = vld [vmem:[#allocation3 + $0xd8] sm:$0xff] }
 0x3e0   :  { %v2793_v31 = vpop.f32.mrf.mxu1  ;;  %v10428_v15 = vpop.f32.mrf.mxu0  ;;  %8475 = vmatmul.mubr.msk.bf16.gmra.mxu0 %vm1938_vm0, %v4691_v14 }
 0x3e1   :  { %v2917_v60 = vadd.f32 %v2793_v31, %v2545_v62  ;;  %8478 = vmatprep.mubr.msk.bf16.mxu0 %vm8937_vm1, %v11668_v59  ;;  %v3017_v31 = vld [vmem:[#allocation2 + $0xda] sm:$0xff] }
 0x3e2   :  { %v8029_v40 = vpop.f32.mrf.mxu1  ;;  %v8272_v20 = vpop.f32.mrf.mxu0 }
 0x3e3   :  { %2966 = vst.msk [vmem:[#allocation3 + $0xc8] sm:$0xff] %vm2396_vm2, %v2917_v60  ;;  %v3052_v40 = vpack.c.bf16 %v3017_v31, %v3016_v53  ;;  %v4666_v20 = vld [vmem:[#allocation2 + $0x170] sm:$0xff]  ;;  %v3018_v31 = vld [vmem:[#allocation2 + $0xe2] sm:$0xff] }
 0x3e4   :  { %v2798_v46 = vpop.f32.mrf.mxu1  ;;  %8131 = vmatmul.mubr.msk.bf16.gmra.mxu1 %vm1938_vm0, %v3051_v34  ;;  %v10435_v19 = vpop.f32.mrf.mxu0  ;;  %v2548_v34 = vld [vmem:[#allocation3 + $0xe0] sm:$0xff]  ;;  %v2549_v53 = vld [vmem:[#allocation3 + $0xe8] sm:$0xff] }
 0x3e5   :  { %v2918_v36 = vadd.f32 %v2798_v46, %v2546_v52  ;;  %8134 = vmatprep.mubr.msk.bf16.mxu1 %vm8937_vm1, %v11668_v59 }
 0x3e6   :  { %v8032_v26 = vpop.f32.mrf.mxu1  ;;  %v8273_v22 = vpop.f32.mrf.mxu0 }
 0x3e7   :  { %2967 = vst.msk [vmem:[#allocation3 + $0xd0] sm:$0xff] %vm2396_vm2, %v2918_v36  ;;  %v4667_v36 = vld [vmem:[#allocation2 + $0x178] sm:$0xff] }
 0x3e8   :  { %v2801_v14 = vpop.f32.mrf.mxu1  ;;  %v10440_v5 = vpop.f32.mrf.mxu0  ;;  %8479 = vmatmul.mubr.msk.bf16.gmra.mxu0 %vm1938_vm0, %v4692_v50  ;;  %v4693_v22 = vpack.c.bf16 %v4667_v36, %v4666_v20  ;;  %v3019_v50 = vld [vmem:[#allocation2 + $0xea] sm:$0xff]  ;;  %v4668_v20 = vld [vmem:[#allocation2 + $0x180] sm:$0xff] }
 0x3e9   :  { %v2919_v62 = vadd.f32 %v2801_v14, %v2547_v21  ;;  %8482 = vmatprep.mubr.msk.bf16.mxu0 %vm8937_vm1, %v11668_v59 }
 0x3ea   :  { %v8033_v60 = vpop.f32.mrf.mxu1  ;;  %v8276_v6 = vpop.f32.mrf.mxu0 }
 0x3eb   :  { %2968 = vst.msk [vmem:[#allocation3 + $0xd8] sm:$0xff] %vm2396_vm2, %v2919_v62 }
 0x3ec   :  { %v2806_v13 = vpop.f32.mrf.mxu1  ;;  %8135 = vmatmul.mubr.msk.bf16.gmra.mxu1 %vm1938_vm0, %v3052_v40  ;;  %v10447_v52 = vpop.f32.mrf.mxu0  ;;  %v3053_v40 = vpack.c.bf16 %v3019_v50, %v3018_v31  ;;  %v3020_v50 = vld [vmem:[#allocation2 + $0xf2] sm:$0xff] }
 0x3ed   :  { %v2920_v46 = vadd.f32 %v2806_v13, %v2548_v34  ;;  %8138 = vmatprep.mubr.msk.bf16.mxu1 %vm8937_vm1, %v11668_v59  ;;  %v4669_v34 = vld [vmem:[#allocation2 + $0x188] sm:$0xff]  ;;  %v2550_v13 = vld [vmem:[#allocation3 + $0xf0] sm:$0xff] }
 0x3ee   :  { %v8036_v0 = vpop.f32.mrf.mxu1  ;;  %v8277_v26 = vpop.f32.mrf.mxu0 }
 0x3ef   :  { %2969 = vst.msk [vmem:[#allocation3 + $0xe0] sm:$0xff] %vm2396_vm2, %v2920_v46 }
 0x3f0   :  { %v2809_v21 = vpop.f32.mrf.mxu1  ;;  %v10452_v14 = vpop.f32.mrf.mxu0  ;;  %8483 = vmatmul.mubr.msk.bf16.gmra.mxu0 %vm1938_vm0, %v4693_v22 }
 0x3f1   :  { %v2921_v62 = vadd.f32 %v2809_v21, %v2549_v53  ;;  %8486 = vmatprep.mubr.msk.bf16.mxu0 %vm8937_vm1, %v11668_v59  ;;  %v4694_v53 = vpack.c.bf16 %v4669_v34, %v4668_v20  ;;  %v2551_v21 = vld [vmem:[#allocation3 + $0xf8] sm:$0xff]  ;;  %v2552_v20 = vld [vmem:[#allocation3 + $0x100] sm:$0xff] }
 0x3f2   :  { %v8037_v60 = vpop.f32.mrf.mxu1  ;;  %v8280_v6 = vpop.f32.mrf.mxu0 }
 0x3f3   :  { %2970 = vst.msk [vmem:[#allocation3 + $0xe8] sm:$0xff] %vm2396_vm2, %v2921_v62  ;;  %v3021_v6 = vld [vmem:[#allocation2 + $0xfa] sm:$0xff] }
 0x3f4   :  { %v2814_v46 = vpop.f32.mrf.mxu1  ;;  %8139 = vmatmul.mubr.msk.bf16.gmra.mxu1 %vm1938_vm0, %v3053_v40  ;;  %v10459_v36 = vpop.f32.mrf.mxu0  ;;  %v4670_v40 = vld [vmem:[#allocation2 + $0x190] sm:$0xff] }
 0x3f5   :  { %v2922_v0 = vadd.f32 %v2814_v46, %v2550_v13  ;;  %8142 = vmatprep.mubr.msk.bf16.mxu1 %vm8937_vm1, %v11668_v59 }
 0x3f6   :  { %v8040_v26 = vpop.f32.mrf.mxu1  ;;  %v8281_v22 = vpop.f32.mrf.mxu0 }
 0x3f7   :  { %2971 = vst.msk [vmem:[#allocation3 + $0xf0] sm:$0xff] %vm2396_vm2, %v2922_v0  ;;  %v3054_v26 = vpack.c.bf16 %v3021_v6, %v3020_v50  ;;  %v4695_v22 = vpack.c.bf16 %v4670_v40, %v4670_v40  ;;  %v3022_v6 = vld [vmem:[#allocation2 + $0x102] sm:$0xff] }
 0x3f8   :  { %v2817_v62 = vpop.f32.mrf.mxu1  ;;  %v10464_v31 = vpop.f32.mrf.mxu0  ;;  %8487 = vmatmul.mubr.msk.bf16.gmra.mxu0 %vm1938_vm0, %v4694_v53 }
 0x3f9   :  { %11764 = vst [vmem:[#allocation5_spill] sm:$0xff] %v10464_v31  ;;  %v2923_v60 = vadd.f32 %v2817_v62, %v2551_v21  ;;  %8490 = vmatprep.mubr.msk.bf16.mxu0 %vm8937_vm1, %v11668_v59  ;;  %v3023_v62 = vld [vmem:[#allocation2 + $0x10a] sm:$0xff] }
 0x3fa   :  { %v8041_v13 = vpop.f32.mrf.mxu1  ;;  %v8284_v46 = vpop.f32.mrf.mxu0 }
 0x3fb   :  { %2972 = vst.msk [vmem:[#allocation3 + $0xf8] sm:$0xff] %vm2396_vm2, %v2923_v60  ;;  %v2553_v13 = vld [vmem:[#allocation3 + $0x108] sm:$0xff] }
 0x3fc   :  { %v2822_v34 = vpop.f32.mrf.mxu1  ;;  %8143 = vmatmul.mubr.msk.bf16.gmra.mxu1 %vm1938_vm0, %v3054_v26  ;;  %v3977_v0 = vpop.f32.mrf.mxu0 }
 0x3fd   :  { %v2924_v31 = vadd.f32 %v2822_v34, %v2552_v20  ;;  %8146 = vmatprep.mubr.msk.bf16.mxu1 %vm8937_vm1, %v11668_v59  ;;  %v3055_v20 = vpack.c.bf16 %v3023_v62, %v3022_v6  ;;  %v5711_v34 = vld [vmem:[#allocation2 + $0x25] sm:$0xff]  ;;  %v2554_v0 = vld [vmem:[#allocation3 + $0x110] sm:$0xff] }
 0x3fe   :  { %v8044_v53 = vpop.f32.mrf.mxu1  ;;  %v8285_v21 = vpop.f32.mrf.mxu0  ;;  %v3024_v62 = vld [vmem:[#allocation2 + $0x112] sm:$0xff]  ;;  %v2555_v6 = vld [vmem:[#allocation3 + $0x118] sm:$0xff] }
 0x3ff   :  { %2973 = vst.msk [vmem:[#allocation3 + $0x100] sm:$0xff] %vm2396_vm2, %v2924_v31 }
 0x400   :  { %v2825_v46 = vpop.f32.mrf.mxu1  ;;  %v10474_v50 = vpop.f32.mrf.mxu0  ;;  %8491 = vmatmul.mubr.msk.bf16.gmra.mxu0 %vm1938_vm0, %v4695_v22 }
 0x401   :  { %11765 = vst [vmem:[#allocation71_spill] sm:$0xff] %v10474_v50  ;;  %v2925_v60 = vadd.f32 %v2825_v46, %v2553_v13  ;;  %8602 = vmatprep.mubr.msk.bf16.mxu0 %vm8937_vm1, %v11668_v59  ;;  %v5710_v50 = vld [vmem:[#allocation2 + $0x1d] sm:$0xff] }
 0x402   :  { %v8045_v40 = vpop.f32.mrf.mxu1  ;;  %v8396_v26 = vpop.f32.mrf.mxu0  ;;  %v5759_v46 = vpack.c.bf16 %v5711_v34, %v5710_v50  ;;  %v5712_v50 = vld [vmem:[#allocation2 + $0x2d] sm:$0xff]  ;;  %v5713_v34 = vld [vmem:[#allocation2 + $0x35] sm:$0xff] }
 0x403   :  { %2974 = vst.msk [vmem:[#allocation3 + $0x108] sm:$0xff] %vm2396_vm2, %v2925_v60 }
 0x404   :  { %v2830_v31 = vpop.f32.mrf.mxu1  ;;  %8147 = vmatmul.mubr.msk.bf16.gmra.mxu1 %vm1938_vm0, %v3055_v20  ;;  %v10481_v53 = vpop.f32.mrf.mxu0  ;;  %v3025_v20 = vld [vmem:[#allocation2 + $0x11a] sm:$0xff] }
 0x405   :  { %11766 = vst [vmem:[#allocation36_spill] sm:$0xff] %v10481_v53  ;;  %v2926_v21 = vadd.f32 %v2830_v31, %v2554_v0  ;;  %8150 = vmatprep.mubr.msk.bf16.mxu1 %vm8937_vm1, %v11668_v59  ;;  %v3056_v53 = vpack.c.bf16 %v3025_v20, %v3024_v62  ;;  %v3027_v62 = vld [vmem:[#allocation2 + $0x12a] sm:$0xff] }
 0x406   :  { %v8048_v22 = vpop.f32.mrf.mxu1  ;;  %v8397_v13 = vpop.f32.mrf.mxu0  ;;  %v2557_v20 = vld [vmem:[#allocation3 + $0x128] sm:$0xff] }
 0x407   :  { %2975 = vst.msk [vmem:[#allocation3 + $0x110] sm:$0xff] %vm2396_vm2, %v2926_v21  ;;  %v2556_v21 = vld [vmem:[#allocation3 + $0x120] sm:$0xff] }
 0x408   :  { %v2833_v60 = vpop.f32.mrf.mxu1  ;;  %v10486_v40 = vpop.f32.mrf.mxu0  ;;  %8603 = vmatmul.mubr.msk.bf16.vlgmr.msra.gmra.mxu0 %vm1938_vm0, %v5759_v46 }
 0x409   :  { %11767 = vst [vmem:[#allocation6_spill] sm:$0xff] %v10486_v40  ;;  %v2927_v26 = vadd.f32 %v2833_v60, %v2555_v6  ;;  %8606 = vmatprep.mubr.msk.bf16.mxu0 %vm8937_vm1, %v11668_v59  ;;  %v5760_v60 = vpack.c.bf16 %v5713_v34, %v5712_v50  ;;  %v5715_v50 = vld [vmem:[#allocation2 + $0x45] sm:$0xff]  ;;  %v2558_v34 = vld [vmem:[#allocation3 + $0x130] sm:$0xff] }
 0x40a   :  { %v8049_v0 = vpop.f32.mrf.mxu1  ;;  %v8400_v31 = vpop.f32.mrf.mxu0 }
 0x40b   :  { %2976 = vst.msk [vmem:[#allocation3 + $0x118] sm:$0xff] %vm2396_vm2, %v2927_v26 }
 0x40c   :  { %v2838_v22 = vpop.f32.mrf.mxu1  ;;  %8151 = vmatmul.mubr.msk.bf16.gmra.mxu1 %vm1938_vm0, %v3056_v53  ;;  %v10493_v13 = vpop.f32.mrf.mxu0  ;;  %v3026_v53 = vld [vmem:[#allocation2 + $0x122] sm:$0xff] }
 0x40d   :  { %11768 = vst [vmem:[#allocation67_spill] sm:$0xff] %v10493_v13  ;;  %v2928_v40 = vadd.f32 %v2838_v22, %v2556_v21  ;;  %8154 = vmatprep.mubr.msk.bf16.mxu1 %vm8937_vm1, %v11668_v59  ;;  %v3057_v13 = vpack.c.bf16 %v3027_v62, %v3026_v53  ;;  %v3028_v62 = vld [vmem:[#allocation2 + $0x132] sm:$0xff]  ;;  %v2559_v53 = vld [vmem:[#allocation3 + $0x138] sm:$0xff] }
 0x40e   :  { %v8052_v46 = vpop.f32.mrf.mxu1  ;;  %v8401_v6 = vpop.f32.mrf.mxu0 }
 0x40f   :  { %2977 = vst.msk [vmem:[#allocation3 + $0x120] sm:$0xff] %vm2396_vm2, %v2928_v40 }
 0x410   :  { %v2841_v26 = vpop.f32.mrf.mxu1  ;;  %v10498_v0 = vpop.f32.mrf.mxu0  ;;  %8607 = vmatmul.mubr.msk.bf16.gmra.mxu0 %vm1938_vm0, %v5760_v60 }
 0x411   :  { %11769 = vst [vmem:[#allocation40_spill] sm:$0xff] %v10498_v0  ;;  %v2929_v31 = vadd.f32 %v2841_v26, %v2557_v20  ;;  %8610 = vmatprep.mubr.msk.bf16.mxu0 %vm8937_vm1, %v11668_v59  ;;  %v5714_v0 = vld [vmem:[#allocation2 + $0x3d] sm:$0xff] }
 0x412   :  { %v8053_v21 = vpop.f32.mrf.mxu1  ;;  %v8404_v22 = vpop.f32.mrf.mxu0  ;;  %v5761_v26 = vpack.c.bf16 %v5715_v50, %v5714_v0  ;;  %v5716_v0 = vld [vmem:[#allocation2 + $0x4d] sm:$0xff]  ;;  %v5717_v50 = vld [vmem:[#allocation2 + $0x55] sm:$0xff] }
 0x413   :  { %2978 = vst.msk [vmem:[#allocation3 + $0x128] sm:$0xff] %vm2396_vm2, %v2929_v31  ;;  %v3029_v22 = vld [vmem:[#allocation2 + $0x13a] sm:$0xff] }
 0x414   :  { %v2846_v40 = vpop.f32.mrf.mxu1  ;;  %8155 = vmatmul.mubr.msk.bf16.gmra.mxu1 %vm1938_vm0, %v3057_v13  ;;  %v10505_v46 = vpop.f32.mrf.mxu0 }
 0x415   :  { %11770 = vst [vmem:[#allocation8_spill] sm:$0xff] %v10505_v46  ;;  %v2930_v6 = vadd.f32 %v2846_v40, %v2558_v34  ;;  %8158 = vmatprep.mubr.msk.bf16.mxu1 %vm8937_vm1, %v11668_v59  ;;  %v3058_v46 = vpack.c.bf16 %v3029_v22, %v3028_v62  ;;  %v3031_v62 = vld [vmem:[#allocation2 + $0x14a] sm:$0xff] }
 0x416   :  { %v8056_v60 = vpop.f32.mrf.mxu1  ;;  %v8405_v20 = vpop.f32.mrf.mxu0  ;;  %v2561_v22 = vld [vmem:[#allocation3 + $0x148] sm:$0xff] }
 0x417   :  { %2979 = vst.msk [vmem:[#allocation3 + $0x130] sm:$0xff] %vm2396_vm2, %v2930_v6  ;;  %v2560_v6 = vld [vmem:[#allocation3 + $0x140] sm:$0xff] }
 0x418   :  { %v2849_v31 = vpop.f32.mrf.mxu1  ;;  %v10510_v21 = vpop.f32.mrf.mxu0  ;;  %8611 = vmatmul.mubr.msk.bf16.gmra.mxu0 %vm1938_vm0, %v5761_v26 }
 0x419   :  { %11771 = vst [vmem:[#allocation68_spill] sm:$0xff] %v10510_v21  ;;  %v2931_v13 = vadd.f32 %v2849_v31, %v2559_v53  ;;  %8614 = vmatprep.mubr.msk.bf16.mxu0 %vm8937_vm1, %v11668_v59  ;;  %v5762_v31 = vpack.c.bf16 %v5717_v50, %v5716_v0  ;;  %v5719_v0 = vld [vmem:[#allocation2 + $0x65] sm:$0xff]  ;;  %v2562_v50 = vld [vmem:[#allocation3 + $0x150] sm:$0xff] }
 0x41a   :  { %v8057_v34 = vpop.f32.mrf.mxu1  ;;  %v8408_v40 = vpop.f32.mrf.mxu0 }
 0x41b   :  { %2980 = vst.msk [vmem:[#allocation3 + $0x138] sm:$0xff] %vm2396_vm2, %v2931_v13 }
 0x41c   :  { %v2854_v60 = vpop.f32.mrf.mxu1  ;;  %8159 = vmatmul.mubr.msk.bf16.gmra.mxu1 %vm1938_vm0, %v3058_v46  ;;  %v10517_v20 = vpop.f32.mrf.mxu0  ;;  %v3030_v46 = vld [vmem:[#allocation2 + $0x142] sm:$0xff] }
 0x41d   :  { %11772 = vst [vmem:[#allocation37_spill] sm:$0xff] %v10517_v20  ;;  %v2932_v21 = vadd.f32 %v2854_v60, %v2560_v6  ;;  %8162 = vmatprep.mubr.msk.bf16.mxu1 %vm8937_vm1, %v11668_v59  ;;  %v3059_v20 = vpack.c.bf16 %v3031_v62, %v3030_v46  ;;  %v3032_v62 = vld [vmem:[#allocation2 + $0x152] sm:$0xff]  ;;  %v2563_v46 = vld [vmem:[#allocation3 + $0x158] sm:$0xff] }
 0x41e   :  { %v8060_v26 = vpop.f32.mrf.mxu1  ;;  %v8409_v53 = vpop.f32.mrf.mxu0 }
 0x41f   :  { %2981 = vst.msk [vmem:[#allocation3 + $0x140] sm:$0xff] %vm2396_vm2, %v2932_v21 }
 0x420   :  { %v2857_v13 = vpop.f32.mrf.mxu1  ;;  %v10522_v34 = vpop.f32.mrf.mxu0  ;;  %8615 = vmatmul.mubr.msk.bf16.gmra.mxu0 %vm1938_vm0, %v5762_v31 }
 0x421   :  { %11773 = vst [vmem:[#allocation4_spill] sm:$0xff] %v10522_v34  ;;  %v2933_v40 = vadd.f32 %v2857_v13, %v2561_v22  ;;  %8618 = vmatprep.mubr.msk.bf16.mxu0 %vm8937_vm1, %v11668_v59  ;;  %v5718_v34 = vld [vmem:[#allocation2 + $0x5d] sm:$0xff] }
 0x422   :  { %v8061_v6 = vpop.f32.mrf.mxu1  ;;  %v8412_v60 = vpop.f32.mrf.mxu0  ;;  %v5763_v13 = vpack.c.bf16 %v5719_v0, %v5718_v34  ;;  %v5720_v34 = vld [vmem:[#allocation2 + $0x6d] sm:$0xff]  ;;  %v5721_v0 = vld [vmem:[#allocation2 + $0x75] sm:$0xff] }
 0x423   :  { %2982 = vst.msk [vmem:[#allocation3 + $0x148] sm:$0xff] %vm2396_vm2, %v2933_v40  ;;  %v3033_v60 = vld [vmem:[#allocation2 + $0x15a] sm:$0xff] }
 0x424   :  { %v2862_v21 = vpop.f32.mrf.mxu1  ;;  %8163 = vmatmul.mubr.msk.bf16.gmra.mxu1 %vm1938_vm0, %v3059_v20  ;;  %v10529_v26 = vpop.f32.mrf.mxu0 }
 0x425   :  { %11774 = vst [vmem:[#allocation69_spill] sm:$0xff] %v10529_v26  ;;  %v2934_v53 = vadd.f32 %v2862_v21, %v2562_v50  ;;  %8166 = vmatprep.mubr.msk.bf16.mxu1 %vm8937_vm1, %v11668_v59  ;;  %v3060_v26 = vpack.c.bf16 %v3033_v60, %v3032_v62  ;;  %v3035_v62 = vld [vmem:[#allocation2 + $0x16a] sm:$0xff] }
 0x426   :  { %v8064_v31 = vpop.f32.mrf.mxu1  ;;  %v8413_v22 = vpop.f32.mrf.mxu0  ;;  %v2565_v60 = vld [vmem:[#allocation3 + $0x168] sm:$0xff] }
 0x427   :  { %2983 = vst.msk [vmem:[#allocation3 + $0x150] sm:$0xff] %vm2396_vm2, %v2934_v53  ;;  %v2564_v53 = vld [vmem:[#allocation3 + $0x160] sm:$0xff] }
 0x428   :  { %v2865_v40 = vpop.f32.mrf.mxu1  ;;  %v10534_v6 = vpop.f32.mrf.mxu0  ;;  %8619 = vmatmul.mubr.msk.bf16.gmra.mxu0 %vm1938_vm0, %v5763_v13 }
 0x429   :  { %11775 = vst [vmem:[#allocation42_spill] sm:$0xff] %v10534_v6  ;;  %v2935_v20 = vadd.f32 %v2865_v40, %v2563_v46  ;;  %8622 = vmatprep.mubr.msk.bf16.mxu0 %vm8937_vm1, %v11668_v59  ;;  %v5764_v40 = vpack.c.bf16 %v5721_v0, %v5720_v34  ;;  %v5723_v34 = vld [vmem:[#allocation2 + $0x85] sm:$0xff]  ;;  %v2566_v0 = vld [vmem:[#allocation3 + $0x170] sm:$0xff] }
 0x42a   :  { %v8065_v50 = vpop.f32.mrf.mxu1  ;;  %v8416_v21 = vpop.f32.mrf.mxu0 }
 0x42b   :  { %2984 = vst.msk [vmem:[#allocation3 + $0x158] sm:$0xff] %vm2396_vm2, %v2935_v20 }
 0x42c   :  { %v2870_v31 = vpop.f32.mrf.mxu1  ;;  %8167 = vmatmul.mubr.msk.bf16.gmra.mxu1 %vm1938_vm0, %v3060_v26  ;;  %v10541_v22 = vpop.f32.mrf.mxu0  ;;  %v3034_v26 = vld [vmem:[#allocation2 + $0x162] sm:$0xff] }
 0x42d   :  { %11776 = vst [vmem:[#allocation9_spill] sm:$0xff] %v10541_v22  ;;  %v2936_v6 = vadd.f32 %v2870_v31, %v2564_v53  ;;  %8170 = vmatprep.mubr.msk.bf16.mxu1 %vm8937_vm1, %v11668_v59  ;;  %v3061_v22 = vpack.c.bf16 %v3035_v62, %v3034_v26  ;;  %v3036_v62 = vld [vmem:[#allocation2 + $0x172] sm:$0xff]  ;;  %v2567_v26 = vld [vmem:[#allocation3 + $0x178] sm:$0xff] }
 0x42e   :  { %v8068_v13 = vpop.f32.mrf.mxu1  ;;  %v8417_v46 = vpop.f32.mrf.mxu0 }
 0x42f   :  { %2985 = vst.msk [vmem:[#allocation3 + $0x160] sm:$0xff] %vm2396_vm2, %v2936_v6 }
 0x430   :  { %v2873_v20 = vpop.f32.mrf.mxu1  ;;  %v10546_v50 = vpop.f32.mrf.mxu0  ;;  %8623 = vmatmul.mubr.msk.bf16.gmra.mxu0 %vm1938_vm0, %v5764_v40 }
 0x431   :  { %11777 = vst [vmem:[#allocation75_spill] sm:$0xff] %v10546_v50  ;;  %v2937_v21 = vadd.f32 %v2873_v20, %v2565_v60  ;;  %8626 = vmatprep.mubr.msk.bf16.mxu0 %vm8937_vm1, %v11668_v59  ;;  %v5722_v50 = vld [vmem:[#allocation2 + $0x7d] sm:$0xff] }
 0x432   :  { %v8069_v53 = vpop.f32.mrf.mxu1  ;;  %v8420_v31 = vpop.f32.mrf.mxu0  ;;  %v5765_v20 = vpack.c.bf16 %v5723_v34, %v5722_v50  ;;  %v5724_v50 = vld [vmem:[#allocation2 + $0x8d] sm:$0xff]  ;;  %v5725_v34 = vld [vmem:[#allocation2 + $0x95] sm:$0xff] }
 0x433   :  { %2986 = vst.msk [vmem:[#allocation3 + $0x168] sm:$0xff] %vm2396_vm2, %v2937_v21  ;;  %v3037_v31 = vld [vmem:[#allocation2 + $0x17a] sm:$0xff] }
 0x434   :  { %v2878_v6 = vpop.f32.mrf.mxu1  ;;  %8171 = vmatmul.mubr.msk.bf16.gmra.mxu1 %vm1938_vm0, %v3061_v22  ;;  %v10553_v13 = vpop.f32.mrf.mxu0 }
 0x435   :  { %11778 = vst [vmem:[#allocation38_spill] sm:$0xff] %v10553_v13  ;;  %v2938_v46 = vadd.f32 %v2878_v6, %v2566_v0  ;;  %8174 = vmatprep.mubr.msk.bf16.mxu1 %vm8937_vm1, %v11668_v59  ;;  %v3062_v13 = vpack.c.bf16 %v3037_v31, %v3036_v62  ;;  %v3038_v62 = vld [vmem:[#allocation2 + $0x182] sm:$0xff] }
 0x436   :  { %v8072_v40 = vpop.f32.mrf.mxu1  ;;  %v8421_v60 = vpop.f32.mrf.mxu0 }
 0x437   :  { %2987 = vst.msk [vmem:[#allocation3 + $0x170] sm:$0xff] %vm2396_vm2, %v2938_v46  ;;  %v2568_v46 = vld [vmem:[#allocation3 + $0x180] sm:$0xff] }
 0x438   :  { %v2881_v21 = vpop.f32.mrf.mxu1  ;;  %v10558_v53 = vpop.f32.mrf.mxu0  ;;  %8627 = vmatmul.mubr.msk.bf16.gmra.mxu0 %vm1938_vm0, %v5765_v20 }
 0x439   :  { %11779 = vst [vmem:[#allocation10_spill] sm:$0xff] %v10558_v53  ;;  %v2939_v22 = vadd.f32 %v2881_v21, %v2567_v26  ;;  %8630 = vmatprep.mubr.msk.bf16.mxu0 %vm8937_vm1, %v11668_v59  ;;  %v5766_v21 = vpack.c.bf16 %v5725_v34, %v5724_v50  ;;  %v5726_v34 = vld [vmem:[#allocation2 + $0x9d] sm:$0xff] }
 0x43a   :  { %v8073_v0 = vpop.f32.mrf.mxu1  ;;  %v8424_v6 = vpop.f32.mrf.mxu0 }
 0x43b   :  { %2988 = vst.msk [vmem:[#allocation3 + $0x178] sm:$0xff] %vm2396_vm2, %v2939_v22  ;;  %v3063_v6 = vpack.c.bf16 %v3038_v62, %v3038_v62  ;;  %v3065_v62 = vld [vmem:[#allocation3 + $0x8] sm:$0xff] }
 0x43c   :  { %v2886_v40 = vpop.f32.mrf.mxu1  ;;  %8175 = vmatmul.mubr.msk.bf16.gmra.mxu1 %vm1938_vm0, %v3062_v13  ;;  %v10565_v60 = vpop.f32.mrf.mxu0 }
 0x43d   :  { %11780 = vst [vmem:[#allocation70_spill] sm:$0xff] %v10565_v60  ;;  %v2940_v53 = vadd.f32 %v2886_v40, %v2568_v46  ;;  %8178 = vmatprep.mubr.msk.bf16.mxu1 %vm8937_vm1, %v11668_v59  ;;  %v5727_v46 = vld [vmem:[#allocation2 + $0xa5] sm:$0xff] }
 0x43e   :  { %v8076_v20 = vpop.f32.mrf.mxu1  ;;  %v8425_v26 = vpop.f32.mrf.mxu0  ;;  %v3064_v40 = vld [vmem:[#allocation3] sm:$0xff] }
 0x43f   :  { %2989 = vst.msk [vmem:[#allocation3 + $0x180] sm:$0xff] %vm2396_vm2, %v2940_v53 }
 0x440   :  { %v2889_v31 = vpop.f32.mrf.mxu1  ;;  %v10570_v22 = vpop.f32.mrf.mxu0  ;;  %8631 = vmatmul.mubr.msk.bf16.gmra.mxu0 %vm1938_vm0, %v5766_v21  ;;  %v5767_v21 = vpack.c.bf16 %v5727_v46, %v5726_v34 }
 0x441   :  { %11781 = vst [vmem:[#allocation44_spill] sm:$0xff] %v10570_v22  ;;  %8634 = vmatprep.mubr.msk.bf16.mxu0 %vm8937_vm1, %v11668_v59  ;;  %v4078_v31 = vld [vmem:[#allocation2 + $0xf] sm:$0xff] }
 0x442   :  { %v8077_v13 = vpop.f32.mrf.mxu1  ;;  %v8428_v0 = vpop.f32.mrf.mxu0 }
 0x443   :  { %v4079_v13 = vld [vmem:[#allocation2 + $0x17] sm:$0xff] }
 0x444   :  { %v3238_v60 = vpop.f32.mrf.mxu1  ;;  %8179 = vmatmul.mubr.msk.bf16.gmra.mxu1 %vm1938_vm0, %v3063_v6  ;;  %v10576_v50 = vpop.f32.mrf.mxu0  ;;  %v4127_v34 = vpack.c.bf16 %v4079_v13, %v4078_v31 }
 0x445   :  { %11782 = vst [vmem:[#allocation12_spill] sm:$0xff] %v10576_v50  ;;  %v3436_v53 = vadd.f32 %v3238_v60, %v3064_v40  ;;  %8290 = vmatprep.mubr.msk.bf16.mxu1 %vm8937_vm1, %v11668_v59  ;;  %v8932_v60 = vld [vmem:[%s11567_s3 + $0x68] sm:$0xff]  }
 0x446   :  { %v8084_v20 = vpop.f32.mrf.mxu1  ;;  %v8429_v26 = vpop.f32.mrf.mxu0 }
 0x447   :  { %3485 = vst.msk [vmem:[#allocation3] sm:$0xff] %vm2396_vm2, %v3436_v53  ;;  %v5728_v53 = vld [vmem:[#allocation2 + $0xad] sm:$0xff]  ;;  %v5729_v20 = vld [vmem:[#allocation2 + $0xb5] sm:$0xff] }
 0x448   :  { %v3241_v0 = vpop.f32.mrf.mxu1  ;;  %v10581_v22 = vpop.f32.mrf.mxu0  ;;  %8635 = vmatmul.mubr.msk.bf16.gmra.mxu0 %vm1938_vm0, %v5767_v21  ;;  %v3066_v26 = vld [vmem:[#allocation3 + $0x10] sm:$0xff] }
 0x449   :  { %11783 = vst [vmem:[#allocation72_spill] sm:$0xff] %v10581_v22  ;;  %v3437_v6 = vadd.f32 %v3241_v0, %v3065_v62  ;;  %8638 = vmatprep.mubr.msk.bf16.mxu0 %vm8937_vm1, %v11668_v59  ;;  %v8933_v0 = vld [vmem:[%s11567_s3 + $0x60] sm:$0xff]  }
 0x44a   :  { %v8085_v40 = vpop.f32.mrf.mxu1  ;;  %v8432_v46 = vpop.f32.mrf.mxu0  ;;  %v4080_v22 = vld [vmem:[#allocation2 + $0x1f] sm:$0xff] }
 0x44b   :  { %3486 = vst.msk [vmem:[#allocation3 + $0x8] sm:$0xff] %vm2396_vm2, %v3437_v6  ;;  %v5768_v6 = vpack.c.bf16 %v5729_v20, %v5728_v53  ;;  %v4081_v46 = vld [vmem:[#allocation2 + $0x27] sm:$0xff] }
 0x44c   :  { %v3246_v50 = vpop.f32.mrf.mxu1  ;;  %8291 = vmatmul.mubr.msk.bf16.vlgmr.msra.gmra.mxu1 %vm1938_vm0, %v4127_v34  ;;  %v10591_v21 = vpop.f32.mrf.mxu0 }
 0x44d   :  { %11784 = vst [vmem:[#allocation39_spill] sm:$0xff] %v10591_v21  ;;  %v3438_v62 = vadd.f32 %v3246_v50, %v3066_v26  ;;  %8495 = vmatpush3.bf16.msra.mxu1 %v8932_v60  ;;  %8294 = vmatprep.mubr.msk.bf16.mxu1 %vm8937_vm1, %v11668_v59  ;;  %v3067_v50 = vld [vmem:[#allocation3 + $0x18] sm:$0xff] }
 0x44e   :  { %v8088_v31 = vpop.f32.mrf.mxu1  ;;  %v8433_v13 = vpop.f32.mrf.mxu0  ;;  %8496 = vmatprep.subr.bf16.mxu1 %v11668_v59  ;;  %v3608_v40 = vld [vmem:[#allocation3] sm:$0xff] }
 0x44f   :  { %3487 = vst.msk [vmem:[#allocation3 + $0x10] sm:$0xff] %vm2396_vm2, %v3438_v62  ;;  %v3980_v34 = vadd.f32 %v10146_v30, %v3608_v40  ;;  %v4128_v62 = vpack.c.bf16 %v4081_v46, %v4080_v22  ;;  %v5731_v30 = vld [vmem:[#allocation2 + $0xc5] sm:$0xff] }
 0x450   :  { %v3249_v60 = vpop.f32.mrf.mxu1  ;;  %v10601_v26 = vpop.f32.mrf.mxu0  ;;  %8639 = vmatmul.mubr.msk.bf16.gmra.mxu0 %vm1938_vm0, %v5768_v6  ;;  %v3068_v6 = vld [vmem:[#allocation3 + $0x20] sm:$0xff] }
 0x451   :  { %v3439_v21 = vadd.f32 %v3249_v60, %v3067_v50  ;;  %8642 = vmatprep.mubr.msk.bf16.mxu0 %vm8937_vm1, %v11668_v59  ;;  %8497 = vmatpush3.bf16.msra.mxu1 %v8933_v0  ;;  %4029 = vst.msk [vmem:[#allocation3] sm:$0xff] %vm2396_vm2, %v3980_v34  ;;  %v5730_v60 = vld [vmem:[#allocation2 + $0xbd] sm:$0xff] }
 0x452   :  { %v8089_v53 = vpop.f32.mrf.mxu1  ;;  %v8436_v20 = vpop.f32.mrf.mxu0  ;;  %v3609_v31 = vld [vmem:[#allocation3 + $0x8] sm:$0xff]  ;;  %8702 = vmatprep.subr.bf16.mxu1 %v11668_v59  ;;  %v5769_v34 = vpack.c.bf16 %v5731_v30, %v5730_v60 }
 0x453   :  { %3488 = vst.msk [vmem:[#allocation3 + $0x18] sm:$0xff] %vm2396_vm2, %v3439_v21  ;;  %v3981_v13 = vadd.f32 %v10154_v27, %v3609_v31  ;;  %v4082_v27 = vld [vmem:[#allocation2 + $0x2f] sm:$0xff]  ;;  %v4083_v53 = vld [vmem:[#allocation2 + $0x37] sm:$0xff] }
 0x454   :  { %v3254_v40 = vpop.f32.mrf.mxu1  ;;  %8295 = vmatmul.mubr.msk.bf16.gmra.mxu1 %vm1938_vm0, %v4128_v62  ;;  %v10611_v50 = vpop.f32.mrf.mxu0  ;;  %v3069_v62 = vld [vmem:[#allocation3 + $0x28] sm:$0xff] }
 0x455   :  { %11785 = vst [vmem:[#allocation7_spill] sm:$0xff] %v10611_v50  ;;  %v3440_v0 = vadd.f32 %v3254_v40, %v3068_v6  ;;  %8298 = vmatprep.mubr.msk.bf16.mxu1 %vm8937_vm1, %v11668_v59  ;;  %4030 = vst.msk [vmem:[#allocation3 + $0x8] sm:$0xff] %vm2396_vm2, %v3981_v13  ;;  %v4129_v40 = vpack.c.bf16 %v4083_v53, %v4082_v27  ;;  %v5732_v60 = vld [vmem:[#allocation2 + $0xcd] sm:$0xff] }
 0x456   :  { %v8092_v22 = vpop.f32.mrf.mxu1  ;;  %v8437_v46 = vpop.f32.mrf.mxu0  ;;  %v3610_v21 = vld [vmem:[#allocation3 + $0x10] sm:$0xff] }
 0x457   :  { %3489 = vst.msk [vmem:[#allocation3 + $0x20] sm:$0xff] %vm2396_vm2, %v3440_v0  ;;  %v3982_v20 = vadd.f32 %v10160_v16, %v3610_v21  ;;  %v5733_v16 = vld [vmem:[#allocation2 + $0xd5] sm:$0xff] }
 0x458   :  { %v3257_v31 = vpop.f32.mrf.mxu1  ;;  %v10618_v50 = vpop.f32.mrf.mxu0  ;;  %8643 = vmatmul.mubr.msk.bf16.gmra.mxu0 %vm1938_vm0, %v5769_v34  ;;  %v3070_v46 = vld [vmem:[#allocation3 + $0x30] sm:$0xff] }
 0x459   :  { %v3441_v6 = vadd.f32 %v3257_v31, %v3069_v62  ;;  %8646 = vmatprep.mubr.msk.bf16.mxu0 %vm8937_vm1, %v11668_v59  ;;  %4031 = vst.msk [vmem:[#allocation3 + $0x10] sm:$0xff] %vm2396_vm2, %v3982_v20  ;;  %v5770_v20 = vpack.c.bf16 %v5733_v16, %v5732_v60 }
 0x45a   :  { %v8093_v30 = vpop.f32.mrf.mxu1  ;;  %v8440_v13 = vpop.f32.mrf.mxu0  ;;  %v3611_v0 = vld [vmem:[#allocation3 + $0x18] sm:$0xff] }
 0x45b   :  { %3490 = vst.msk [vmem:[#allocation3 + $0x28] sm:$0xff] %vm2396_vm2, %v3441_v6  ;;  %v3983_v22 = vadd.f32 %v10168_v24, %v3611_v0  ;;  %v4085_v6 = vld [vmem:[#allocation2 + $0x47] sm:$0xff] }
 0x45c   :  { %v3262_v21 = vpop.f32.mrf.mxu1  ;;  %8299 = vmatmul.mubr.msk.bf16.gmra.mxu1 %vm1938_vm0, %v4129_v40  ;;  %v10627_v34 = vpop.f32.mrf.mxu0  ;;  %v3071_v30 = vld [vmem:[#allocation3 + $0x38] sm:$0xff] }
 0x45d   :  { %v3442_v62 = vadd.f32 %v3262_v21, %v3070_v46  ;;  %8302 = vmatprep.mubr.msk.bf16.mxu1 %vm8937_vm1, %v11668_v59  ;;  %4032 = vst.msk [vmem:[#allocation3 + $0x18] sm:$0xff] %vm2396_vm2, %v3983_v22  ;;  %v4084_v46 = vld [vmem:[#allocation2 + $0x3f] sm:$0xff] }
 0x45e   :  { %v8096_v27 = vpop.f32.mrf.mxu1  ;;  %v8441_v53 = vpop.f32.mrf.mxu0  ;;  %v3612_v31 = vld [vmem:[#allocation3 + $0x20] sm:$0xff]  ;;  %v4130_v22 = vpack.c.bf16 %v4085_v6, %v4084_v46  ;;  %v4087_v46 = vld [vmem:[#allocation2 + $0x57] sm:$0xff] }
 0x45f   :  { %3491 = vst.msk [vmem:[#allocation3 + $0x30] sm:$0xff] %vm2396_vm2, %v3442_v62  ;;  %v3984_v24 = vadd.f32 %v10174_v25, %v3612_v31  ;;  %v5735_v25 = vld [vmem:[#allocation2 + $0xe5] sm:$0xff] }
 0x460   :  { %v3265_v13 = vpop.f32.mrf.mxu1  ;;  %v10634_v40 = vpop.f32.mrf.mxu0  ;;  %8647 = vmatmul.mubr.msk.bf16.gmra.mxu0 %vm1938_vm0, %v5770_v20  ;;  %v3072_v27 = vld [vmem:[#allocation3 + $0x40] sm:$0xff] }
 0x461   :  { %v3443_v0 = vadd.f32 %v3265_v13, %v3071_v30  ;;  %8650 = vmatprep.mubr.msk.bf16.mxu0 %vm8937_vm1, %v11668_v59  ;;  %4033 = vst.msk [vmem:[#allocation3 + $0x20] sm:$0xff] %vm2396_vm2, %v3984_v24  ;;  %v5734_v30 = vld [vmem:[#allocation2 + $0xdd] sm:$0xff] }
 0x462   :  { %v8097_v60 = vpop.f32.mrf.mxu1  ;;  %v8444_v16 = vpop.f32.mrf.mxu0  ;;  %v3613_v21 = vld [vmem:[#allocation3 + $0x28] sm:$0xff]  ;;  %v5771_v13 = vpack.c.bf16 %v5735_v25, %v5734_v30 }
 0x463   :  { %3492 = vst.msk [vmem:[#allocation3 + $0x38] sm:$0xff] %vm2396_vm2, %v3443_v0  ;;  %v3985_v62 = vadd.f32 %v10182_v1, %v3613_v21  ;;  %v4086_v1 = vld [vmem:[#allocation2 + $0x4f] sm:$0xff] }
 0x464   :  { %v3270_v53 = vpop.f32.mrf.mxu1  ;;  %8303 = vmatmul.mubr.msk.bf16.gmra.mxu1 %vm1938_vm0, %v4130_v22  ;;  %v10643_v20 = vpop.f32.mrf.mxu0  ;;  %v3073_v16 = vld [vmem:[#allocation3 + $0x48] sm:$0xff] }
 0x465   :  { %v3444_v31 = vadd.f32 %v3270_v53, %v3072_v27  ;;  %8306 = vmatprep.mubr.msk.bf16.mxu1 %vm8937_vm1, %v11668_v59  ;;  %4034 = vst.msk [vmem:[#allocation3 + $0x28] sm:$0xff] %vm2396_vm2, %v3985_v62  ;;  %v4131_v53 = vpack.c.bf16 %v4087_v46, %v4086_v1  ;;  %v5736_v30 = vld [vmem:[#allocation2 + $0xed] sm:$0xff] }
 0x466   :  { %v8100_v6 = vpop.f32.mrf.mxu1  ;;  %v8445_v24 = vpop.f32.mrf.mxu0  ;;  %v3614_v0 = vld [vmem:[#allocation3 + $0x30] sm:$0xff] }
 0x467   :  { %3493 = vst.msk [vmem:[#allocation3 + $0x40] sm:$0xff] %vm2396_vm2, %v3444_v31  ;;  %v3986_v60 = vadd.f32 %v10188_v9, %v3614_v0  ;;  %v5737_v9 = vld [vmem:[#allocation2 + $0xf5] sm:$0xff] }
 0x468   :  { %v3273_v22 = vpop.f32.mrf.mxu1  ;;  %v10650_v21 = vpop.f32.mrf.mxu0  ;;  %8651 = vmatmul.mubr.msk.bf16.gmra.mxu0 %vm1938_vm0, %v5771_v13  ;;  %v3074_v24 = vld [vmem:[#allocation3 + $0x50] sm:$0xff] }
 0x469   :  { %v3445_v27 = vadd.f32 %v3273_v22, %v3073_v16  ;;  %8654 = vmatprep.mubr.msk.bf16.mxu0 %vm8937_vm1, %v11668_v59  ;;  %4035 = vst.msk [vmem:[#allocation3 + $0x30] sm:$0xff] %vm2396_vm2, %v3986_v60  ;;  %v5772_v60 = vpack.c.bf16 %v5737_v9, %v5736_v30 }
 0x46a   :  { %v8101_v25 = vpop.f32.mrf.mxu1  ;;  %v8448_v62 = vpop.f32.mrf.mxu0  ;;  %v3615_v31 = vld [vmem:[#allocation3 + $0x38] sm:$0xff] }
 0x46b   :  { %3494 = vst.msk [vmem:[#allocation3 + $0x48] sm:$0xff] %vm2396_vm2, %v3445_v27  ;;  %v3987_v6 = vadd.f32 %v10196_v2, %v3615_v31  ;;  %v4089_v27 = vld [vmem:[#allocation2 + $0x67] sm:$0xff] }
 0x46c   :  { %v3278_v0 = vpop.f32.mrf.mxu1  ;;  %8307 = vmatmul.mubr.msk.bf16.gmra.mxu1 %vm1938_vm0, %v4131_v53  ;;  %v10659_v13 = vpop.f32.mrf.mxu0  ;;  %v3075_v25 = vld [vmem:[#allocation3 + $0x58] sm:$0xff] }
 0x46d   :  { %v3446_v16 = vadd.f32 %v3278_v0, %v3074_v24  ;;  %8310 = vmatprep.mubr.msk.bf16.mxu1 %vm8937_vm1, %v11668_v59  ;;  %4036 = vst.msk [vmem:[#allocation3 + $0x38] sm:$0xff] %vm2396_vm2, %v3987_v6  ;;  %v4088_v24 = vld [vmem:[#allocation2 + $0x5f] sm:$0xff] }
 0x46e   :  { %v8104_v1 = vpop.f32.mrf.mxu1  ;;  %v8449_v46 = vpop.f32.mrf.mxu0  ;;  %v3616_v22 = vld [vmem:[#allocation3 + $0x40] sm:$0xff]  ;;  %v4132_v6 = vpack.c.bf16 %v4089_v27, %v4088_v24  ;;  %v4091_v24 = vld [vmem:[#allocation2 + $0x77] sm:$0xff] }
 0x46f   :  { %3495 = vst.msk [vmem:[#allocation3 + $0x50] sm:$0xff] %vm2396_vm2, %v3446_v16  ;;  %v3988_v2 = vadd.f32 %v10202_v29, %v3616_v22  ;;  %v5739_v29 = vld [vmem:[#allocation2 + $0x105] sm:$0xff] }
 0x470   :  { %v3281_v62 = vpop.f32.mrf.mxu1  ;;  %v10666_v53 = vpop.f32.mrf.mxu0  ;;  %8655 = vmatmul.mubr.msk.bf16.gmra.mxu0 %vm1938_vm0, %v5772_v60  ;;  %v3076_v1 = vld [vmem:[#allocation3 + $0x60] sm:$0xff] }
 0x471   :  { %v3447_v31 = vadd.f32 %v3281_v62, %v3075_v25  ;;  %8658 = vmatprep.mubr.msk.bf16.mxu0 %vm8937_vm1, %v11668_v59  ;;  %4037 = vst.msk [vmem:[#allocation3 + $0x40] sm:$0xff] %vm2396_vm2, %v3988_v2  ;;  %v5738_v25 = vld [vmem:[#allocation2 + $0xfd] sm:$0xff] }
 0x472   :  { %v8105_v30 = vpop.f32.mrf.mxu1  ;;  %v8452_v9 = vpop.f32.mrf.mxu0  ;;  %v3617_v0 = vld [vmem:[#allocation3 + $0x48] sm:$0xff]  ;;  %v5773_v62 = vpack.c.bf16 %v5739_v29, %v5738_v25 }
 0x473   :  { %3496 = vst.msk [vmem:[#allocation3 + $0x58] sm:$0xff] %vm2396_vm2, %v3447_v31  ;;  %v3989_v16 = vadd.f32 %v10210_v3, %v3617_v0  ;;  %v4090_v3 = vld [vmem:[#allocation2 + $0x6f] sm:$0xff] }
 0x474   :  { %v3286_v46 = vpop.f32.mrf.mxu1  ;;  %8311 = vmatmul.mubr.msk.bf16.gmra.mxu1 %vm1938_vm0, %v4132_v6  ;;  %v10675_v60 = vpop.f32.mrf.mxu0  ;;  %v3077_v9 = vld [vmem:[#allocation3 + $0x68] sm:$0xff] }
 0x475   :  { %v3448_v22 = vadd.f32 %v3286_v46, %v3076_v1  ;;  %8314 = vmatprep.mubr.msk.bf16.mxu1 %vm8937_vm1, %v11668_v59  ;;  %4038 = vst.msk [vmem:[#allocation3 + $0x48] sm:$0xff] %vm2396_vm2, %v3989_v16  ;;  %v4133_v46 = vpack.c.bf16 %v4091_v24, %v4090_v3  ;;  %v5740_v25 = vld [vmem:[#allocation2 + $0x10d] sm:$0xff] }
 0x476   :  { %v8108_v27 = vpop.f32.mrf.mxu1  ;;  %v8453_v2 = vpop.f32.mrf.mxu0  ;;  %v3618_v31 = vld [vmem:[#allocation3 + $0x50] sm:$0xff] }
 0x477   :  { %3497 = vst.msk [vmem:[#allocation3 + $0x60] sm:$0xff] %vm2396_vm2, %v3448_v22  ;;  %v3990_v30 = vadd.f32 %v10216_v18, %v3618_v31  ;;  %v5741_v18 = vld [vmem:[#allocation2 + $0x115] sm:$0xff] }
 0x478   :  { %v3289_v6 = vpop.f32.mrf.mxu1  ;;  %v10682_v0 = vpop.f32.mrf.mxu0  ;;  %8659 = vmatmul.mubr.msk.bf16.gmra.mxu0 %vm1938_vm0, %v5773_v62  ;;  %v3078_v2 = vld [vmem:[#allocation3 + $0x70] sm:$0xff] }
 0x479   :  { %v3449_v1 = vadd.f32 %v3289_v6, %v3077_v9  ;;  %8662 = vmatprep.mubr.msk.bf16.mxu0 %vm8937_vm1, %v11668_v59  ;;  %4039 = vst.msk [vmem:[#allocation3 + $0x50] sm:$0xff] %vm2396_vm2, %v3990_v30  ;;  %v5774_v30 = vpack.c.bf16 %v5741_v18, %v5740_v25 }
 0x47a   :  { %v8109_v29 = vpop.f32.mrf.mxu1  ;;  %v8456_v16 = vpop.f32.mrf.mxu0  ;;  %v3619_v22 = vld [vmem:[#allocation3 + $0x58] sm:$0xff] }
 0x47b   :  { %3498 = vst.msk [vmem:[#allocation3 + $0x68] sm:$0xff] %vm2396_vm2, %v3449_v1  ;;  %v3991_v27 = vadd.f32 %v10224_v42, %v3619_v22  ;;  %v4093_v1 = vld [vmem:[#allocation2 + $0x87] sm:$0xff] }
 0x47c   :  { %v3294_v31 = vpop.f32.mrf.mxu1  ;;  %8315 = vmatmul.mubr.msk.bf16.gmra.mxu1 %vm1938_vm0, %v4133_v46  ;;  %v10691_v62 = vpop.f32.mrf.mxu0  ;;  %v3079_v29 = vld [vmem:[#allocation3 + $0x78] sm:$0xff] }
 0x47d   :  { %v3450_v9 = vadd.f32 %v3294_v31, %v3078_v2  ;;  %8318 = vmatprep.mubr.msk.bf16.mxu1 %vm8937_vm1, %v11668_v59  ;;  %4040 = vst.msk [vmem:[#allocation3 + $0x58] sm:$0xff] %vm2396_vm2, %v3991_v27  ;;  %v4092_v2 = vld [vmem:[#allocation2 + $0x7f] sm:$0xff] }
 0x47e   :  { %v8112_v3 = vpop.f32.mrf.mxu1  ;;  %v8457_v24 = vpop.f32.mrf.mxu0  ;;  %v3620_v6 = vld [vmem:[#allocation3 + $0x60] sm:$0xff]  ;;  %v4134_v27 = vpack.c.bf16 %v4093_v1, %v4092_v2  ;;  %v4095_v2 = vld [vmem:[#allocation2 + $0x97] sm:$0xff] }
 0x47f   :  { %3499 = vst.msk [vmem:[#allocation3 + $0x70] sm:$0xff] %vm2396_vm2, %v3450_v9  ;;  %v3992_v42 = vadd.f32 %v10230_v55, %v3620_v6  ;;  %v5743_v55 = vld [vmem:[#allocation2 + $0x125] sm:$0xff] }
 0x480   :  { %v3297_v16 = vpop.f32.mrf.mxu1  ;;  %v10698_v46 = vpop.f32.mrf.mxu0  ;;  %8663 = vmatmul.mubr.msk.bf16.gmra.mxu0 %vm1938_vm0, %v5774_v30  ;;  %v3080_v3 = vld [vmem:[#allocation3 + $0x80] sm:$0xff] }
 0x481   :  { %v3451_v22 = vadd.f32 %v3297_v16, %v3079_v29  ;;  %8666 = vmatprep.mubr.msk.bf16.mxu0 %vm8937_vm1, %v11668_v59  ;;  %4041 = vst.msk [vmem:[#allocation3 + $0x60] sm:$0xff] %vm2396_vm2, %v3992_v42  ;;  %v5742_v29 = vld [vmem:[#allocation2 + $0x11d] sm:$0xff] }
 0x482   :  { %v8113_v25 = vpop.f32.mrf.mxu1  ;;  %v8460_v18 = vpop.f32.mrf.mxu0  ;;  %v3621_v31 = vld [vmem:[#allocation3 + $0x68] sm:$0xff]  ;;  %v5775_v16 = vpack.c.bf16 %v5743_v55, %v5742_v29 }
 0x483   :  { %3500 = vst.msk [vmem:[#allocation3 + $0x78] sm:$0xff] %vm2396_vm2, %v3451_v22  ;;  %v3993_v9 = vadd.f32 %v10238_v47, %v3621_v31  ;;  %v4094_v47 = vld [vmem:[#allocation2 + $0x8f] sm:$0xff] }
 0x484   :  { %v3302_v24 = vpop.f32.mrf.mxu1  ;;  %8319 = vmatmul.mubr.msk.bf16.gmra.mxu1 %vm1938_vm0, %v4134_v27  ;;  %v10707_v30 = vpop.f32.mrf.mxu0  ;;  %v3081_v18 = vld [vmem:[#allocation3 + $0x88] sm:$0xff] }
 0x485   :  { %v3452_v6 = vadd.f32 %v3302_v24, %v3080_v3  ;;  %8322 = vmatprep.mubr.msk.bf16.mxu1 %vm8937_vm1, %v11668_v59  ;;  %4042 = vst.msk [vmem:[#allocation3 + $0x68] sm:$0xff] %vm2396_vm2, %v3993_v9  ;;  %v4135_v24 = vpack.c.bf16 %v4095_v2, %v4094_v47  ;;  %v5744_v29 = vld [vmem:[#allocation2 + $0x12d] sm:$0xff] }
 0x486   :  { %v8116_v1 = vpop.f32.mrf.mxu1  ;;  %v8461_v42 = vpop.f32.mrf.mxu0  ;;  %v3622_v22 = vld [vmem:[#allocation3 + $0x70] sm:$0xff] }
 0x487   :  { %3501 = vst.msk [vmem:[#allocation3 + $0x80] sm:$0xff] %vm2396_vm2, %v3452_v6  ;;  %v3994_v25 = vadd.f32 %v10244_v41, %v3622_v22  ;;  %v5745_v41 = vld [vmem:[#allocation2 + $0x135] sm:$0xff] }
 0x488   :  { %v3305_v27 = vpop.f32.mrf.mxu1  ;;  %v10714_v31 = vpop.f32.mrf.mxu0  ;;  %8667 = vmatmul.mubr.msk.bf16.gmra.mxu0 %vm1938_vm0, %v5775_v16  ;;  %v3082_v42 = vld [vmem:[#allocation3 + $0x90] sm:$0xff] }
 0x489   :  { %v3453_v3 = vadd.f32 %v3305_v27, %v3081_v18  ;;  %8670 = vmatprep.mubr.msk.bf16.mxu0 %vm8937_vm1, %v11668_v59  ;;  %4043 = vst.msk [vmem:[#allocation3 + $0x70] sm:$0xff] %vm2396_vm2, %v3994_v25  ;;  %v5776_v25 = vpack.c.bf16 %v5745_v41, %v5744_v29 }
 0x48a   :  { %v8117_v55 = vpop.f32.mrf.mxu1  ;;  %v8464_v9 = vpop.f32.mrf.mxu0  ;;  %v3623_v6 = vld [vmem:[#allocation3 + $0x78] sm:$0xff] }
 0x48b   :  { %3502 = vst.msk [vmem:[#allocation3 + $0x88] sm:$0xff] %vm2396_vm2, %v3453_v3  ;;  %v3995_v1 = vadd.f32 %v10252_v11, %v3623_v6  ;;  %v4097_v3 = vld [vmem:[#allocation2 + $0xa7] sm:$0xff] }
 0x48c   :  { %v3310_v22 = vpop.f32.mrf.mxu1  ;;  %8323 = vmatmul.mubr.msk.bf16.gmra.mxu1 %vm1938_vm0, %v4135_v24  ;;  %v10723_v16 = vpop.f32.mrf.mxu0  ;;  %v3083_v55 = vld [vmem:[#allocation3 + $0x98] sm:$0xff] }
 0x48d   :  { %v3454_v18 = vadd.f32 %v3310_v22, %v3082_v42  ;;  %8326 = vmatprep.mubr.msk.bf16.mxu1 %vm8937_vm1, %v11668_v59  ;;  %4044 = vst.msk [vmem:[#allocation3 + $0x78] sm:$0xff] %vm2396_vm2, %v3995_v1  ;;  %v4096_v42 = vld [vmem:[#allocation2 + $0x9f] sm:$0xff] }
 0x48e   :  { %v8120_v47 = vpop.f32.mrf.mxu1  ;;  %v8465_v2 = vpop.f32.mrf.mxu0  ;;  %v3624_v27 = vld [vmem:[#allocation3 + $0x80] sm:$0xff]  ;;  %v4136_v1 = vpack.c.bf16 %v4097_v3, %v4096_v42  ;;  %v4099_v42 = vld [vmem:[#allocation2 + $0xb7] sm:$0xff] }
 0x48f   :  { %3503 = vst.msk [vmem:[#allocation3 + $0x90] sm:$0xff] %vm2396_vm2, %v3454_v18  ;;  %v3996_v11 = vadd.f32 %v10258_v48, %v3624_v27  ;;  %v5747_v48 = vld [vmem:[#allocation2 + $0x145] sm:$0xff] }
 0x490   :  { %v3313_v9 = vpop.f32.mrf.mxu1  ;;  %v10730_v24 = vpop.f32.mrf.mxu0  ;;  %8671 = vmatmul.mubr.msk.bf16.gmra.mxu0 %vm1938_vm0, %v5776_v25  ;;  %v3084_v47 = vld [vmem:[#allocation3 + $0xa0] sm:$0xff] }
 0x491   :  { %v3455_v6 = vadd.f32 %v3313_v9, %v3083_v55  ;;  %8674 = vmatprep.mubr.msk.bf16.mxu0 %vm8937_vm1, %v11668_v59  ;;  %4045 = vst.msk [vmem:[#allocation3 + $0x80] sm:$0xff] %vm2396_vm2, %v3996_v11  ;;  %v5746_v55 = vld [vmem:[#allocation2 + $0x13d] sm:$0xff] }
 0x492   :  { %v8121_v29 = vpop.f32.mrf.mxu1  ;;  %v8468_v41 = vpop.f32.mrf.mxu0  ;;  %v3625_v22 = vld [vmem:[#allocation3 + $0x88] sm:$0xff]  ;;  %v5777_v9 = vpack.c.bf16 %v5747_v48, %v5746_v55 }
 0x493   :  { %3504 = vst.msk [vmem:[#allocation3 + $0x98] sm:$0xff] %vm2396_vm2, %v3455_v6  ;;  %v3997_v18 = vadd.f32 %v10264_v54, %v3625_v22  ;;  %v4098_v54 = vld [vmem:[#allocation2 + $0xaf] sm:$0xff] }
 0x494   :  { %v3318_v2 = vpop.f32.mrf.mxu1  ;;  %8327 = vmatmul.mubr.msk.bf16.gmra.mxu1 %vm1938_vm0, %v4136_v1  ;;  %v10739_v25 = vpop.f32.mrf.mxu0  ;;  %v3085_v41 = vld [vmem:[#allocation3 + $0xa8] sm:$0xff] }
 0x495   :  { %v3456_v27 = vadd.f32 %v3318_v2, %v3084_v47  ;;  %8330 = vmatprep.mubr.msk.bf16.mxu1 %vm8937_vm1, %v11668_v59  ;;  %4046 = vst.msk [vmem:[#allocation3 + $0x88] sm:$0xff] %vm2396_vm2, %v3997_v18  ;;  %v4137_v2 = vpack.c.bf16 %v4099_v42, %v4098_v54  ;;  %v5748_v55 = vld [vmem:[#allocation2 + $0x14d] sm:$0xff] }
 0x496   :  { %v8124_v3 = vpop.f32.mrf.mxu1  ;;  %v8469_v11 = vpop.f32.mrf.mxu0  ;;  %v3626_v6 = vld [vmem:[#allocation3 + $0x90] sm:$0xff] }
 0x497   :  { %3505 = vst.msk [vmem:[#allocation3 + $0xa0] sm:$0xff] %vm2396_vm2, %v3456_v27  ;;  %v3998_v29 = vadd.f32 %v10269_v32, %v3626_v6  ;;  %v5749_v32 = vld [vmem:[#allocation2 + $0x155] sm:$0xff] }
 0x498   :  { %v3321_v1 = vpop.f32.mrf.mxu1  ;;  %v10746_v22 = vpop.f32.mrf.mxu0  ;;  %8675 = vmatmul.mubr.msk.bf16.gmra.mxu0 %vm1938_vm0, %v5777_v9  ;;  %v3086_v11 = vld [vmem:[#allocation3 + $0xb0] sm:$0xff] }
 0x499   :  { %v3457_v47 = vadd.f32 %v3321_v1, %v3085_v41  ;;  %8678 = vmatprep.mubr.msk.bf16.mxu0 %vm8937_vm1, %v11668_v59  ;;  %4047 = vst.msk [vmem:[#allocation3 + $0x90] sm:$0xff] %vm2396_vm2, %v3998_v29  ;;  %v5778_v29 = vpack.c.bf16 %v5749_v32, %v5748_v55 }
 0x49a   :  { %v8125_v48 = vpop.f32.mrf.mxu1  ;;  %v8472_v18 = vpop.f32.mrf.mxu0  ;;  %v3627_v27 = vld [vmem:[#allocation3 + $0x98] sm:$0xff] }
 0x49b   :  { %3506 = vst.msk [vmem:[#allocation3 + $0xa8] sm:$0xff] %vm2396_vm2, %v3457_v47  ;;  %v3999_v3 = vadd.f32 %v10282_v51, %v3627_v27  ;;  %v4101_v47 = vld [vmem:[#allocation2 + $0xc7] sm:$0xff] }
 0x49c   :  { %v3326_v6 = vpop.f32.mrf.mxu1  ;;  %8331 = vmatmul.mubr.msk.bf16.gmra.mxu1 %vm1938_vm0, %v4137_v2  ;;  %v10755_v9 = vpop.f32.mrf.mxu0  ;;  %v3087_v48 = vld [vmem:[#allocation3 + $0xb8] sm:$0xff] }
 0x49d   :  { %v3458_v41 = vadd.f32 %v3326_v6, %v3086_v11  ;;  %8334 = vmatprep.mubr.msk.bf16.mxu1 %vm8937_vm1, %v11668_v59  ;;  %4048 = vst.msk [vmem:[#allocation3 + $0x98] sm:$0xff] %vm2396_vm2, %v3999_v3  ;;  %v4100_v11 = vld [vmem:[#allocation2 + $0xbf] sm:$0xff] }
 0x49e   :  { %v8128_v54 = vpop.f32.mrf.mxu1  ;;  %v8473_v42 = vpop.f32.mrf.mxu0  ;;  %v3628_v1 = vld [vmem:[#allocation3 + $0xa0] sm:$0xff]  ;;  %v4138_v3 = vpack.c.bf16 %v4101_v47, %v4100_v11  ;;  %v4103_v11 = vld [vmem:[#allocation2 + $0xd7] sm:$0xff] }
 0x49f   :  { %3507 = vst.msk [vmem:[#allocation3 + $0xb0] sm:$0xff] %vm2396_vm2, %v3458_v41  ;;  %v4000_v51 = vadd.f32 %v10295_v38, %v3628_v1  ;;  %v5751_v38 = vld [vmem:[#allocation2 + $0x165] sm:$0xff] }
 0x4a0   :  { %v3329_v18 = vpop.f32.mrf.mxu1  ;;  %v10762_v2 = vpop.f32.mrf.mxu0  ;;  %8679 = vmatmul.mubr.msk.bf16.gmra.mxu0 %vm1938_vm0, %v5778_v29  ;;  %v3088_v54 = vld [vmem:[#allocation3 + $0xc0] sm:$0xff] }
 0x4a1   :  { %v3459_v27 = vadd.f32 %v3329_v18, %v3087_v48  ;;  %8682 = vmatprep.mubr.msk.bf16.mxu0 %vm8937_vm1, %v11668_v59  ;;  %4049 = vst.msk [vmem:[#allocation3 + $0xa0] sm:$0xff] %vm2396_vm2, %v4000_v51  ;;  %v5750_v48 = vld [vmem:[#allocation2 + $0x15d] sm:$0xff] }
 0x4a2   :  { %v8129_v55 = vpop.f32.mrf.mxu1  ;;  %v8476_v32 = vpop.f32.mrf.mxu0  ;;  %v3629_v6 = vld [vmem:[#allocation3 + $0xa8] sm:$0xff]  ;;  %v5779_v18 = vpack.c.bf16 %v5751_v38, %v5750_v48 }
 0x4a3   :  { %3508 = vst.msk [vmem:[#allocation3 + $0xb8] sm:$0xff] %vm2396_vm2, %v3459_v27  ;;  %v4001_v41 = vadd.f32 %v10303_v39, %v3629_v6  ;;  %v4102_v39 = vld [vmem:[#allocation2 + $0xcf] sm:$0xff] }
 0x4a4   :  { %v3334_v42 = vpop.f32.mrf.mxu1  ;;  %8335 = vmatmul.mubr.msk.bf16.gmra.mxu1 %vm1938_vm0, %v4138_v3  ;;  %v10771_v29 = vpop.f32.mrf.mxu0  ;;  %v3089_v32 = vld [vmem:[#allocation3 + $0xc8] sm:$0xff] }
 0x4a5   :  { %v3460_v1 = vadd.f32 %v3334_v42, %v3088_v54  ;;  %8338 = vmatprep.mubr.msk.bf16.mxu1 %vm8937_vm1, %v11668_v59  ;;  %4050 = vst.msk [vmem:[#allocation3 + $0xa8] sm:$0xff] %vm2396_vm2, %v4001_v41  ;;  %v4139_v42 = vpack.c.bf16 %v4103_v11, %v4102_v39  ;;  %v5752_v48 = vld [vmem:[#allocation2 + $0x16d] sm:$0xff] }
 0x4a6   :  { %v8132_v47 = vpop.f32.mrf.mxu1  ;;  %v8477_v51 = vpop.f32.mrf.mxu0  ;;  %v3630_v27 = vld [vmem:[#allocation3 + $0xb0] sm:$0xff] }
 0x4a7   :  { %3509 = vst.msk [vmem:[#allocation3 + $0xc0] sm:$0xff] %vm2396_vm2, %v3460_v1  ;;  %v4002_v55 = vadd.f32 %v10308_v63, %v3630_v27  ;;  %v5753_v63 = vld [vmem:[#allocation2 + $0x175] sm:$0xff] }
 0x4a8   :  { %v3337_v3 = vpop.f32.mrf.mxu1  ;;  %v10778_v6 = vpop.f32.mrf.mxu0  ;;  %8683 = vmatmul.mubr.msk.bf16.gmra.mxu0 %vm1938_vm0, %v5779_v18  ;;  %v3090_v51 = vld [vmem:[#allocation3 + $0xd0] sm:$0xff] }
 0x4a9   :  { %v3461_v54 = vadd.f32 %v3337_v3, %v3089_v32  ;;  %8686 = vmatprep.mubr.msk.bf16.mxu0 %vm8937_vm1, %v11668_v59  ;;  %4051 = vst.msk [vmem:[#allocation3 + $0xb0] sm:$0xff] %vm2396_vm2, %v4002_v55  ;;  %v5780_v55 = vpack.c.bf16 %v5753_v63, %v5752_v48 }
 0x4aa   :  { %v8133_v38 = vpop.f32.mrf.mxu1  ;;  %v8480_v41 = vpop.f32.mrf.mxu0  ;;  %v3631_v1 = vld [vmem:[#allocation3 + $0xb8] sm:$0xff] }
 0x4ab   :  { %3510 = vst.msk [vmem:[#allocation3 + $0xc8] sm:$0xff] %vm2396_vm2, %v3461_v54  ;;  %v4003_v47 = vadd.f32 %v10315_v17, %v3631_v1  ;;  %v4105_v54 = vld [vmem:[#allocation2 + $0xe7] sm:$0xff] }
 0x4ac   :  { %v3342_v27 = vpop.f32.mrf.mxu1  ;;  %8339 = vmatmul.mubr.msk.bf16.gmra.mxu1 %vm1938_vm0, %v4139_v42  ;;  %v10787_v18 = vpop.f32.mrf.mxu0  ;;  %v3091_v38 = vld [vmem:[#allocation3 + $0xd8] sm:$0xff] }
 0x4ad   :  { %v3462_v32 = vadd.f32 %v3342_v27, %v3090_v51  ;;  %8342 = vmatprep.mubr.msk.bf16.mxu1 %vm8937_vm1, %v11668_v59  ;;  %4052 = vst.msk [vmem:[#allocation3 + $0xb8] sm:$0xff] %vm2396_vm2, %v4003_v47  ;;  %v4104_v51 = vld [vmem:[#allocation2 + $0xdf] sm:$0xff] }
 0x4ae   :  { %v8136_v39 = vpop.f32.mrf.mxu1  ;;  %v8481_v11 = vpop.f32.mrf.mxu0  ;;  %v3632_v3 = vld [vmem:[#allocation3 + $0xc0] sm:$0xff]  ;;  %v4140_v47 = vpack.c.bf16 %v4105_v54, %v4104_v51 }
 0x4af   :  { %3511 = vst.msk [vmem:[#allocation3 + $0xd0] sm:$0xff] %vm2396_vm2, %v3462_v32  ;;  %v4004_v17 = vadd.f32 %v10320_v58, %v3632_v3  ;;  %v5754_v58 = vld [vmem:[#allocation2 + $0x17d] sm:$0xff]  ;;  %v5755_v32 = vld [vmem:[#allocation2 + $0x185] sm:$0xff]  ;;  %v4106_v51 = vld [vmem:[#allocation2 + $0xef] sm:$0xff] }
 0x4b0   :  { %v3345_v41 = vpop.f32.mrf.mxu1  ;;  %v10794_v42 = vpop.f32.mrf.mxu0  ;;  %8687 = vmatmul.mubr.msk.bf16.gmra.mxu0 %vm1938_vm0, %v5780_v55  ;;  %v3092_v11 = vld [vmem:[#allocation3 + $0xe0] sm:$0xff] }
 0x4b1   :  { %v3463_v1 = vadd.f32 %v3345_v41, %v3091_v38  ;;  %8690 = vmatprep.mubr.msk.bf16.mxu0 %vm8937_vm1, %v11668_v59  ;;  %4053 = vst.msk [vmem:[#allocation3 + $0xc0] sm:$0xff] %vm2396_vm2, %v4004_v17  ;;  %v5781_v41 = vpack.c.bf16 %v5755_v32, %v5754_v58 }
 0x4b2   :  { %v8137_v48 = vpop.f32.mrf.mxu1  ;;  %v8484_v63 = vpop.f32.mrf.mxu0  ;;  %v3633_v27 = vld [vmem:[#allocation3 + $0xc8] sm:$0xff] }
 0x4b3   :  { %3512 = vst.msk [vmem:[#allocation3 + $0xd8] sm:$0xff] %vm2396_vm2, %v3463_v1  ;;  %v4005_v39 = vadd.f32 %v10327_v33, %v3633_v27  ;;  %v4107_v33 = vld [vmem:[#allocation2 + $0xf7] sm:$0xff] }
 0x4b4   :  { %v3350_v3 = vpop.f32.mrf.mxu1  ;;  %8343 = vmatmul.mubr.msk.bf16.gmra.mxu1 %vm1938_vm0, %v4140_v47  ;;  %v10803_v55 = vpop.f32.mrf.mxu0  ;;  %v3093_v63 = vld [vmem:[#allocation3 + $0xe8] sm:$0xff] }
 0x4b5   :  { %v3464_v38 = vadd.f32 %v3350_v3, %v3092_v11  ;;  %8346 = vmatprep.mubr.msk.bf16.mxu1 %vm8937_vm1, %v11668_v59  ;;  %4054 = vst.msk [vmem:[#allocation3 + $0xc8] sm:$0xff] %vm2396_vm2, %v4005_v39  ;;  %v4141_v39 = vpack.c.bf16 %v4107_v33, %v4106_v51  ;;  %v4109_v33 = vld [vmem:[#allocation2 + $0x107] sm:$0xff] }
 0x4b6   :  { %v8140_v54 = vpop.f32.mrf.mxu1  ;;  %v8485_v17 = vpop.f32.mrf.mxu0  ;;  %v3634_v1 = vld [vmem:[#allocation3 + $0xd0] sm:$0xff] }
 0x4b7   :  { %3513 = vst.msk [vmem:[#allocation3 + $0xe0] sm:$0xff] %vm2396_vm2, %v3464_v38  ;;  %v4006_v48 = vadd.f32 %v10332_v4, %v3634_v1  ;;  %v3094_v38 = vld [vmem:[#allocation3 + $0xf0] sm:$0xff] }
 0x4b8   :  { %v3353_v47 = vpop.f32.mrf.mxu1  ;;  %v10810_v27 = vpop.f32.mrf.mxu0  ;;  %8691 = vmatmul.mubr.msk.bf16.gmra.mxu0 %vm1938_vm0, %v5781_v41 }
 0x4b9   :  { %v3465_v11 = vadd.f32 %v3353_v47, %v3093_v63  ;;  %4055 = vst.msk [vmem:[#allocation3 + $0xd0] sm:$0xff] %vm2396_vm2, %v4006_v48  ;;  %8694 = vmatprep.mubr.msk.bf16.mxu0 %vm8937_vm1, %v11668_v59  ;;  %v3095_v63 = vld [vmem:[#allocation3 + $0xf8] sm:$0xff] }
 0x4ba   :  { %v8141_v58 = vpop.f32.mrf.mxu1  ;;  %v8488_v32 = vpop.f32.mrf.mxu0  ;;  %v3635_v3 = vld [vmem:[#allocation3 + $0xd8] sm:$0xff] }
 0x4bb   :  { %3514 = vst.msk [vmem:[#allocation3 + $0xe8] sm:$0xff] %vm2396_vm2, %v3465_v11  ;;  %v4007_v4 = vadd.f32 %v10339_v61, %v3635_v3  ;;  %v4108_v32 = vld [vmem:[#allocation2 + $0xff] sm:$0xff] }
 0x4bc   :  { %v3358_v54 = vpop.f32.mrf.mxu1  ;;  %8347 = vmatmul.mubr.msk.bf16.gmra.mxu1 %vm1938_vm0, %v4141_v39  ;;  %v10819_v17 = vpop.f32.mrf.mxu0 }
 0x4bd   :  { %v3466_v41 = vadd.f32 %v3358_v54, %v3094_v38  ;;  %8350 = vmatprep.mubr.msk.bf16.mxu1 %vm8937_vm1, %v11668_v59  ;;  %4056 = vst.msk [vmem:[#allocation3 + $0xd8] sm:$0xff] %vm2396_vm2, %v4007_v4  ;;  %v4142_v38 = vpack.c.bf16 %v4109_v33, %v4108_v32  ;;  %v4110_v33 = vld [vmem:[#allocation2 + $0x10f] sm:$0xff] }
 0x4be   :  { %v8144_v1 = vpop.f32.mrf.mxu1  ;;  %v8489_v48 = vpop.f32.mrf.mxu0  ;;  %v3636_v51 = vld [vmem:[#allocation3 + $0xe0] sm:$0xff] }
 0x4bf   :  { %3515 = vst.msk [vmem:[#allocation3 + $0xf0] sm:$0xff] %vm2396_vm2, %v3466_v41  ;;  %v4008_v61 = vadd.f32 %v10344_v56, %v3636_v51  ;;  %v3096_v41 = vld [vmem:[#allocation3 + $0x100] sm:$0xff] }
 0x4c0   :  { %v3361_v47 = vpop.f32.mrf.mxu1  ;;  %v10826_v11 = vpop.f32.mrf.mxu0 }
 0x4c1   :  { %v3467_v58 = vadd.f32 %v3361_v47, %v3095_v63  ;;  %4057 = vst.msk [vmem:[#allocation3 + $0xe0] sm:$0xff] %vm2396_vm2, %v4008_v61  ;;  %v4111_v47 = vld [vmem:[#allocation2 + $0x117] sm:$0xff] }
 0x4c2   :  { %v8145_v39 = vpop.f32.mrf.mxu1  ;;  %v8492_v3 = vpop.f32.mrf.mxu0  ;;  %v3637_v4 = vld [vmem:[#allocation3 + $0xe8] sm:$0xff] }
 0x4c3   :  { %3516 = vst.msk [vmem:[#allocation3 + $0xf8] sm:$0xff] %vm2396_vm2, %v3467_v58  ;;  %v4009_v54 = vadd.f32 %v10351_v7, %v3637_v4  ;;  %v3097_v58 = vld [vmem:[#allocation3 + $0x108] sm:$0xff] }
 0x4c4   :  { %v3366_v1 = vpop.f32.mrf.mxu1  ;;  %8351 = vmatmul.mubr.msk.bf16.gmra.mxu1 %vm1938_vm0, %v4142_v38  ;;  %v5065_v56 = vpop.f32.mrf.mxu0 }
 0x4c5   :  { %v3468_v48 = vadd.f32 %v3366_v1, %v3096_v41  ;;  %8354 = vmatprep.mubr.msk.bf16.mxu1 %vm8937_vm1, %v11668_v59  ;;  %4058 = vst.msk [vmem:[#allocation3 + $0xe8] sm:$0xff] %vm2396_vm2, %v4009_v54  ;;  %v4143_v41 = vpack.c.bf16 %v4111_v47, %v4110_v33  ;;  %v3098_v56 = vld [vmem:[#allocation3 + $0x110] sm:$0xff]  ;;  %v4113_v47 = vld [vmem:[#allocation2 + $0x127] sm:$0xff] }
 0x4c6   :  { %v8148_v51 = vpop.f32.mrf.mxu1  ;;  %v8493_v61 = vpop.f32.mrf.mxu0  ;;  %v3638_v63 = vld [vmem:[#allocation3 + $0xf0] sm:$0xff] }
 0x4c7   :  { %3517 = vst.msk [vmem:[#allocation3 + $0x100] sm:$0xff] %vm2396_vm2, %v3468_v48  ;;  %v4010_v7 = vadd.f32 %v10356_v45, %v3638_v63 }
 0x4c8   :  { %v3369_v32 = vpop.f32.mrf.mxu1  ;;  %v10837_v39 = vpop.f32.mrf.mxu0 }
 0x4c9   :  { %v3469_v3 = vadd.f32 %v3369_v32, %v3097_v58  ;;  %4059 = vst.msk [vmem:[#allocation3 + $0xf0] sm:$0xff] %vm2396_vm2, %v4010_v7  ;;  %v3099_v7 = vld [vmem:[#allocation3 + $0x118] sm:$0xff] }
 0x4ca   :  { %v8149_v38 = vpop.f32.mrf.mxu1  ;;  %v8604_v4 = vpop.f32.mrf.mxu0  ;;  %v3639_v54 = vld [vmem:[#allocation3 + $0xf8] sm:$0xff] }
 0x4cb   :  { %3518 = vst.msk [vmem:[#allocation3 + $0x108] sm:$0xff] %vm2396_vm2, %v3469_v3  ;;  %v4011_v1 = vadd.f32 %v10363_v43, %v3639_v54  ;;  %v4112_v38 = vld [vmem:[#allocation2 + $0x11f] sm:$0xff] }
 0x4cc   :  { %v3374_v48 = vpop.f32.mrf.mxu1  ;;  %8355 = vmatmul.mubr.msk.bf16.gmra.mxu1 %vm1938_vm0, %v4143_v41  ;;  %v10843_v45 = vpop.f32.mrf.mxu0  ;;  %v4144_v54 = vpack.c.bf16 %v4113_v47, %v4112_v38 }
 0x4cd   :  { %v3470_v51 = vadd.f32 %v3374_v48, %v3098_v56  ;;  %8358 = vmatprep.mubr.msk.bf16.mxu1 %vm8937_vm1, %v11668_v59  ;;  %4060 = vst.msk [vmem:[#allocation3 + $0xf8] sm:$0xff] %vm2396_vm2, %v4011_v1  ;;  %v3100_v48 = vld [vmem:[#allocation3 + $0x120] sm:$0xff] }
 0x4ce   :  { %v8152_v61 = vpop.f32.mrf.mxu1  ;;  %v8605_v63 = vpop.f32.mrf.mxu0  ;;  %v3640_v33 = vld [vmem:[#allocation3 + $0x100] sm:$0xff] }
 0x4cf   :  { %3519 = vst.msk [vmem:[#allocation3 + $0x110] sm:$0xff] %vm2396_vm2, %v3470_v51  ;;  %v4012_v43 = vadd.f32 %v10368_v12, %v3640_v33 }
 0x4d0   :  { %v3377_v58 = vpop.f32.mrf.mxu1  ;;  %v10850_v32 = vpop.f32.mrf.mxu0 }
 0x4d1   :  { %v3471_v3 = vadd.f32 %v3377_v58, %v3099_v7  ;;  %4061 = vst.msk [vmem:[#allocation3 + $0x100] sm:$0xff] %vm2396_vm2, %v4012_v43  ;;  %v4114_v43 = vld [vmem:[#allocation2 + $0x12f] sm:$0xff]  ;;  %v4115_v7 = vld [vmem:[#allocation2 + $0x137] sm:$0xff] }
 0x4d2   :  { %v8153_v4 = vpop.f32.mrf.mxu1  ;;  %v8608_v41 = vpop.f32.mrf.mxu0  ;;  %v3641_v1 = vld [vmem:[#allocation3 + $0x108] sm:$0xff] }
 0x4d3   :  { %3520 = vst.msk [vmem:[#allocation3 + $0x118] sm:$0xff] %vm2396_vm2, %v3471_v3  ;;  %v4013_v56 = vadd.f32 %v10375_v44, %v3641_v1  ;;  %v3101_v58 = vld [vmem:[#allocation3 + $0x128] sm:$0xff]  ;;  %v4145_v1 = vpack.c.bf16 %v4115_v7, %v4114_v43  ;;  %v4117_v7 = vld [vmem:[#allocation2 + $0x147] sm:$0xff] }
 0x4d4   :  { %v3382_v51 = vpop.f32.mrf.mxu1  ;;  %8359 = vmatmul.mubr.msk.bf16.gmra.mxu1 %vm1938_vm0, %v4144_v54  ;;  %v10856_v12 = vpop.f32.mrf.mxu0 }
 0x4d5   :  { %v3472_v61 = vadd.f32 %v3382_v51, %v3100_v48  ;;  %8362 = vmatprep.mubr.msk.bf16.mxu1 %vm8937_vm1, %v11668_v59  ;;  %4062 = vst.msk [vmem:[#allocation3 + $0x108] sm:$0xff] %vm2396_vm2, %v4013_v56  ;;  %v3102_v51 = vld [vmem:[#allocation3 + $0x130] sm:$0xff] }
 0x4d6   :  { %v8156_v63 = vpop.f32.mrf.mxu1  ;;  %v8609_v33 = vpop.f32.mrf.mxu0  ;;  %v3642_v47 = vld [vmem:[#allocation3 + $0x110] sm:$0xff] }
 0x4d7   :  { %3521 = vst.msk [vmem:[#allocation3 + $0x120] sm:$0xff] %vm2396_vm2, %v3472_v61  ;;  %v4014_v44 = vadd.f32 %v10380_v57, %v3642_v47 }
 0x4d8   :  { %v3385_v3 = vpop.f32.mrf.mxu1  ;;  %v10863_v38 = vpop.f32.mrf.mxu0 }
 0x4d9   :  { %v3473_v4 = vadd.f32 %v3385_v3, %v3101_v58  ;;  %4063 = vst.msk [vmem:[#allocation3 + $0x110] sm:$0xff] %vm2396_vm2, %v4014_v44  ;;  %v3103_v44 = vld [vmem:[#allocation3 + $0x138] sm:$0xff] }
 0x4da   :  { %v8157_v41 = vpop.f32.mrf.mxu1  ;;  %v8612_v54 = vpop.f32.mrf.mxu0  ;;  %v3643_v56 = vld [vmem:[#allocation3 + $0x118] sm:$0xff] }
 0x4db   :  { %3522 = vst.msk [vmem:[#allocation3 + $0x128] sm:$0xff] %vm2396_vm2, %v3473_v4  ;;  %v4015_v48 = vadd.f32 %v10387_v23, %v3643_v56  ;;  %v4116_v41 = vld [vmem:[#allocation2 + $0x13f] sm:$0xff] }
 0x4dc   :  { %v3390_v61 = vpop.f32.mrf.mxu1  ;;  %8363 = vmatmul.mubr.msk.bf16.gmra.mxu1 %vm1938_vm0, %v4145_v1  ;;  %v10869_v57 = vpop.f32.mrf.mxu0  ;;  %v4146_v56 = vpack.c.bf16 %v4117_v7, %v4116_v41 }
 0x4dd   :  { %v3474_v63 = vadd.f32 %v3390_v61, %v3102_v51  ;;  %8366 = vmatprep.mubr.msk.bf16.mxu1 %vm8937_vm1, %v11668_v59  ;;  %4064 = vst.msk [vmem:[#allocation3 + $0x118] sm:$0xff] %vm2396_vm2, %v4015_v48  ;;  %v3104_v61 = vld [vmem:[#allocation3 + $0x140] sm:$0xff] }
 0x4de   :  { %v8160_v33 = vpop.f32.mrf.mxu1  ;;  %v8613_v47 = vpop.f32.mrf.mxu0  ;;  %v3644_v43 = vld [vmem:[#allocation3 + $0x120] sm:$0xff] }
 0x4df   :  { %3523 = vst.msk [vmem:[#allocation3 + $0x130] sm:$0xff] %vm2396_vm2, %v3474_v63  ;;  %v4016_v23 = vadd.f32 %v10392_v10, %v3644_v43 }
 0x4e0   :  { %v3393_v58 = vpop.f32.mrf.mxu1  ;;  %v10876_v3 = vpop.f32.mrf.mxu0 }
 0x4e1   :  { %v3475_v4 = vadd.f32 %v3393_v58, %v3103_v44  ;;  %4065 = vst.msk [vmem:[#allocation3 + $0x120] sm:$0xff] %vm2396_vm2, %v4016_v23  ;;  %v4118_v23 = vld [vmem:[#allocation2 + $0x14f] sm:$0xff]  ;;  %v4119_v44 = vld [vmem:[#allocation2 + $0x157] sm:$0xff] }
 0x4e2   :  { %v8161_v54 = vpop.f32.mrf.mxu1  ;;  %v8616_v1 = vpop.f32.mrf.mxu0  ;;  %v3645_v48 = vld [vmem:[#allocation3 + $0x128] sm:$0xff] }
 0x4e3   :  { %3524 = vst.msk [vmem:[#allocation3 + $0x138] sm:$0xff] %vm2396_vm2, %v3475_v4  ;;  %v4017_v51 = vadd.f32 %v10399_v35, %v3645_v48  ;;  %v3105_v58 = vld [vmem:[#allocation3 + $0x148] sm:$0xff]  ;;  %v4147_v48 = vpack.c.bf16 %v4119_v44, %v4118_v23  ;;  %v4121_v44 = vld [vmem:[#allocation2 + $0x167] sm:$0xff] }
 0x4e4   :  { %v3398_v63 = vpop.f32.mrf.mxu1  ;;  %8367 = vmatmul.mubr.msk.bf16.gmra.mxu1 %vm1938_vm0, %v4146_v56  ;;  %v10882_v10 = vpop.f32.mrf.mxu0 }
 0x4e5   :  { %v3476_v33 = vadd.f32 %v3398_v63, %v3104_v61  ;;  %8370 = vmatprep.mubr.msk.bf16.mxu1 %vm8937_vm1, %v11668_v59  ;;  %4066 = vst.msk [vmem:[#allocation3 + $0x128] sm:$0xff] %vm2396_vm2, %v4017_v51  ;;  %v3106_v63 = vld [vmem:[#allocation3 + $0x150] sm:$0xff] }
 0x4e6   :  { %v8164_v47 = vpop.f32.mrf.mxu1  ;;  %v8617_v43 = vpop.f32.mrf.mxu0  ;;  %v3646_v7 = vld [vmem:[#allocation3 + $0x130] sm:$0xff] }
 0x4e7   :  { %3525 = vst.msk [vmem:[#allocation3 + $0x140] sm:$0xff] %vm2396_vm2, %v3476_v33  ;;  %v4018_v35 = vadd.f32 %v10404_v37, %v3646_v7 }
 0x4e8   :  { %v3401_v4 = vpop.f32.mrf.mxu1  ;;  %v10889_v41 = vpop.f32.mrf.mxu0 }
 0x4e9   :  { %v3477_v54 = vadd.f32 %v3401_v4, %v3105_v58  ;;  %4067 = vst.msk [vmem:[#allocation3 + $0x130] sm:$0xff] %vm2396_vm2, %v4018_v35  ;;  %v3107_v35 = vld [vmem:[#allocation3 + $0x158] sm:$0xff] }
 0x4ea   :  { %v8165_v1 = vpop.f32.mrf.mxu1  ;;  %v8620_v56 = vpop.f32.mrf.mxu0  ;;  %v3647_v51 = vld [vmem:[#allocation3 + $0x138] sm:$0xff] }
 0x4eb   :  { %3526 = vst.msk [vmem:[#allocation3 + $0x148] sm:$0xff] %vm2396_vm2, %v3477_v54  ;;  %v4019_v61 = vadd.f32 %v10411_v28, %v3647_v51  ;;  %v4120_v1 = vld [vmem:[#allocation2 + $0x15f] sm:$0xff] }
 0x4ec   :  { %v3406_v33 = vpop.f32.mrf.mxu1  ;;  %8371 = vmatmul.mubr.msk.bf16.gmra.mxu1 %vm1938_vm0, %v4147_v48  ;;  %v10895_v37 = vpop.f32.mrf.mxu0  ;;  %v4148_v51 = vpack.c.bf16 %v4121_v44, %v4120_v1 }
 0x4ed   :  { %v3478_v47 = vadd.f32 %v3406_v33, %v3106_v63  ;;  %8374 = vmatprep.mubr.msk.bf16.mxu1 %vm8937_vm1, %v11668_v59  ;;  %4068 = vst.msk [vmem:[#allocation3 + $0x138] sm:$0xff] %vm2396_vm2, %v4019_v61  ;;  %v3108_v33 = vld [vmem:[#allocation3 + $0x160] sm:$0xff] }
 0x4ee   :  { %v8168_v43 = vpop.f32.mrf.mxu1  ;;  %v8621_v7 = vpop.f32.mrf.mxu0  ;;  %v3648_v23 = vld [vmem:[#allocation3 + $0x140] sm:$0xff] }
 0x4ef   :  { %3527 = vst.msk [vmem:[#allocation3 + $0x150] sm:$0xff] %vm2396_vm2, %v3478_v47  ;;  %v4020_v28 = vadd.f32 %v10416_v8, %v3648_v23 }
 0x4f0   :  { %v3409_v58 = vpop.f32.mrf.mxu1  ;;  %v10902_v4 = vpop.f32.mrf.mxu0 }
 0x4f1   :  { %v3479_v54 = vadd.f32 %v3409_v58, %v3107_v35  ;;  %4069 = vst.msk [vmem:[#allocation3 + $0x140] sm:$0xff] %vm2396_vm2, %v4020_v28  ;;  %v4122_v28 = vld [vmem:[#allocation2 + $0x16f] sm:$0xff]  ;;  %v4123_v35 = vld [vmem:[#allocation2 + $0x177] sm:$0xff] }
 0x4f2   :  { %v8169_v56 = vpop.f32.mrf.mxu1  ;;  %v8624_v48 = vpop.f32.mrf.mxu0  ;;  %v3649_v61 = vld [vmem:[#allocation3 + $0x148] sm:$0xff] }
 0x4f3   :  { %3528 = vst.msk [vmem:[#allocation3 + $0x158] sm:$0xff] %vm2396_vm2, %v3479_v54  ;;  %v4021_v63 = vadd.f32 %v10423_v49, %v3649_v61  ;;  %v3109_v58 = vld [vmem:[#allocation3 + $0x168] sm:$0xff]  ;;  %v4149_v61 = vpack.c.bf16 %v4123_v35, %v4122_v28  ;;  %v4124_v35 = vld [vmem:[#allocation2 + $0x17f] sm:$0xff] }
 0x4f4   :  { %v3414_v47 = vpop.f32.mrf.mxu1  ;;  %8375 = vmatmul.mubr.msk.bf16.gmra.mxu1 %vm1938_vm0, %v4148_v51  ;;  %v10908_v8 = vpop.f32.mrf.mxu0 }
 0x4f5   :  { %v3480_v43 = vadd.f32 %v3414_v47, %v3108_v33  ;;  %8378 = vmatprep.mubr.msk.bf16.mxu1 %vm8937_vm1, %v11668_v59  ;;  %4070 = vst.msk [vmem:[#allocation3 + $0x148] sm:$0xff] %vm2396_vm2, %v4021_v63  ;;  %v3110_v47 = vld [vmem:[#allocation3 + $0x170] sm:$0xff] }
 0x4f6   :  { %v8172_v7 = vpop.f32.mrf.mxu1  ;;  %v8625_v23 = vpop.f32.mrf.mxu0  ;;  %v3650_v44 = vld [vmem:[#allocation3 + $0x150] sm:$0xff] }
 0x4f7   :  { %3529 = vst.msk [vmem:[#allocation3 + $0x160] sm:$0xff] %vm2396_vm2, %v3480_v43  ;;  %v4022_v49 = vadd.f32 %v10428_v15, %v3650_v44 }
 0x4f8   :  { %v3417_v54 = vpop.f32.mrf.mxu1  ;;  %v10915_v1 = vpop.f32.mrf.mxu0 }
 0x4f9   :  { %v3481_v56 = vadd.f32 %v3417_v54, %v3109_v58  ;;  %4071 = vst.msk [vmem:[#allocation3 + $0x150] sm:$0xff] %vm2396_vm2, %v4022_v49  ;;  %v4125_v49 = vld [vmem:[#allocation2 + $0x187] sm:$0xff] }
 0x4fa   :  { %v8173_v48 = vpop.f32.mrf.mxu1  ;;  %v8628_v51 = vpop.f32.mrf.mxu0  ;;  %v3651_v63 = vld [vmem:[#allocation3 + $0x158] sm:$0xff] }
 0x4fb   :  { %3530 = vst.msk [vmem:[#allocation3 + $0x168] sm:$0xff] %vm2396_vm2, %v3481_v56  ;;  %v4023_v33 = vadd.f32 %v10435_v19, %v3651_v63  ;;  %v3111_v58 = vld [vmem:[#allocation3 + $0x178] sm:$0xff]  ;;  %v4150_v63 = vpack.c.bf16 %v4125_v49, %v4124_v35 }
 0x4fc   :  { %v3422_v43 = vpop.f32.mrf.mxu1  ;;  %8379 = vmatmul.mubr.msk.bf16.gmra.mxu1 %vm1938_vm0, %v4149_v61  ;;  %v10921_v15 = vpop.f32.mrf.mxu0 }
 0x4fd   :  { %v3482_v7 = vadd.f32 %v3422_v43, %v3110_v47  ;;  %8382 = vmatprep.mubr.msk.bf16.mxu1 %vm8937_vm1, %v11668_v59  ;;  %4072 = vst.msk [vmem:[#allocation3 + $0x158] sm:$0xff] %vm2396_vm2, %v4023_v33  ;;  %v3112_v43 = vld [vmem:[#allocation3 + $0x180] sm:$0xff] }
 0x4fe   :  { %v8176_v23 = vpop.f32.mrf.mxu1  ;;  %v8629_v44 = vpop.f32.mrf.mxu0  ;;  %v3652_v28 = vld [vmem:[#allocation3 + $0x160] sm:$0xff] }
 0x4ff   :  { %3531 = vst.msk [vmem:[#allocation3 + $0x170] sm:$0xff] %vm2396_vm2, %v3482_v7  ;;  %v4024_v19 = vadd.f32 %v10440_v5, %v3652_v28  ;;  %v4126_v44 = vld [vmem:[#allocation2 + $0x18f] sm:$0xff] }
 0x500   :  { %v3425_v54 = vpop.f32.mrf.mxu1  ;;  %v10928_v56 = vpop.f32.mrf.mxu0 }
 0x501   :  { %v3483_v48 = vadd.f32 %v3425_v54, %v3111_v58  ;;  %4073 = vst.msk [vmem:[#allocation3 + $0x160] sm:$0xff] %vm2396_vm2, %v4024_v19  ;;  %v4151_v54 = vpack.c.bf16 %v4126_v44, %v4126_v44 }
 0x502   :  { %v8177_v51 = vpop.f32.mrf.mxu1  ;;  %v8632_v61 = vpop.f32.mrf.mxu0  ;;  %v3653_v33 = vld [vmem:[#allocation3 + $0x168] sm:$0xff] }
 0x503   :  { %3532 = vst.msk [vmem:[#allocation3 + $0x178] sm:$0xff] %vm2396_vm2, %v3483_v48  ;;  %v4025_v47 = vadd.f32 %v10447_v52, %v3653_v33  ;;  %v4152_v33 = vld [vmem:[#allocation3] sm:$0xff] }
 0x504   :  { %v3430_v7 = vpop.f32.mrf.mxu1  ;;  %8383 = vmatmul.mubr.msk.bf16.gmra.mxu1 %vm1938_vm0, %v4150_v63  ;;  %v10934_v5 = vpop.f32.mrf.mxu0 }
 0x505   :  { %v3484_v23 = vadd.f32 %v3430_v7, %v3112_v43  ;;  %8386 = vmatprep.mubr.msk.bf16.mxu1 %vm8937_vm1, %v11668_v59  ;;  %4074 = vst.msk [vmem:[#allocation3 + $0x168] sm:$0xff] %vm2396_vm2, %v4025_v47 }
 0x506   :  { %v8180_v28 = vpop.f32.mrf.mxu1  ;;  %v8633_v35 = vpop.f32.mrf.mxu0  ;;  %v3654_v49 = vld [vmem:[#allocation3 + $0x170] sm:$0xff] }
 0x507   :  { %3533 = vst.msk [vmem:[#allocation3 + $0x180] sm:$0xff] %vm2396_vm2, %v3484_v23  ;;  %v4026_v52 = vadd.f32 %v10452_v14, %v3654_v49  ;;  %v5167_v28 = vld [vmem:[#allocation2 + $0x24] sm:$0xff]  ;;  %v11787_v35 = vld [vmem:[#allocation5_spill] sm:$0xff]  ;;  %v4153_v49 = vld [vmem:[#allocation3 + $0x8] sm:$0xff] }
 0x508   :  { %v3433_v19 = vpop.f32.mrf.mxu1  ;;  %v10941_v58 = vpop.f32.mrf.mxu0 }
 0x509   :  { %4075 = vst.msk [vmem:[#allocation3 + $0x170] sm:$0xff] %vm2396_vm2, %v4026_v52 }
 0x50a   :  { %v8181_v48 = vpop.f32.mrf.mxu1  ;;  %v8636_v51 = vpop.f32.mrf.mxu0  ;;  %v3655_v61 = vld [vmem:[#allocation3 + $0x178] sm:$0xff] }
 0x50b   :  { %v4027_v63 = vadd.f32 %v10459_v36, %v3655_v61  ;;  %v5166_v48 = vld [vmem:[#allocation2 + $0x1c] sm:$0xff]  ;;  %v8934_v51 = vld [vmem:[%s11567_s3 + $0x88] sm:$0xff]  }
 0x50c   :  { %v4326_v47 = vpop.f32.mrf.mxu1  ;;  %8387 = vmatmul.mubr.msk.bf16.gmra.mxu1 %vm1938_vm0, %v4151_v54  ;;  %v10946_v43 = vpop.f32.mrf.mxu0 }
 0x50d   :  { %11786 = vst [vmem:[#allocation73_spill] sm:$0xff] %v10946_v43  ;;  %v4524_v7 = vadd.f32 %v4326_v47, %v4152_v33  ;;  %8498 = vmatprep.mubr.msk.bf16.mxu1 %vm8937_vm1, %v11668_v59  ;;  %4076 = vst.msk [vmem:[#allocation3 + $0x178] sm:$0xff] %vm2396_vm2, %v4027_v63  ;;  %v5215_v33 = vpack.c.bf16 %v5167_v28, %v5166_v48  ;;  %v4154_v47 = vld [vmem:[#allocation3 + $0x10] sm:$0xff] }
 0x50e   :  { %v8292_v14 = vpop.f32.mrf.mxu1  ;;  %v8637_v23 = vpop.f32.mrf.mxu0  ;;  %v3656_v44 = vld [vmem:[#allocation3 + $0x180] sm:$0xff] }
 0x50f   :  { %4573 = vst.msk [vmem:[#allocation3] sm:$0xff] %vm2396_vm2, %v4524_v7  ;;  %v4028_v36 = vadd.f32 %v11787_v35, %v3656_v44  ;;  %v8935_v44 = vld [vmem:[%s11567_s3 + $0x80] sm:$0xff]  }
 0x510   :  { %v4329_v52 = vpop.f32.mrf.mxu1  ;;  %v10953_v19 = vpop.f32.mrf.mxu0 }
 0x511   :  { %11788 = vst [vmem:[#allocation46_spill] sm:$0xff] %v10953_v19  ;;  %v4525_v54 = vadd.f32 %v4329_v52, %v4153_v49  ;;  %4077 = vst.msk [vmem:[#allocation3 + $0x180] sm:$0xff] %vm2396_vm2, %v4028_v36  ;;  %v5168_v49 = vld [vmem:[#allocation2 + $0x2c] sm:$0xff]  ;;  %v5169_v52 = vld [vmem:[#allocation2 + $0x34] sm:$0xff] }
 0x512   :  { %v8293_v61 = vpop.f32.mrf.mxu1  ;;  %v8640_v63 = vpop.f32.mrf.mxu0  ;;  %v4156_v19 = vld [vmem:[#allocation3 + $0x20] sm:$0xff] }
 0x513   :  { %4574 = vst.msk [vmem:[#allocation3 + $0x8] sm:$0xff] %vm2396_vm2, %v4525_v54  ;;  %v11790_v54 = vld [vmem:[#allocation71_spill] sm:$0xff]  ;;  %v4155_v61 = vld [vmem:[#allocation3 + $0x18] sm:$0xff] }
 0x514   :  { %v4334_v7 = vpop.f32.mrf.mxu1  ;;  %8499 = vmatmul.mubr.msk.bf16.vlgmr.msra.gmra.mxu1 %vm1938_vm0, %v5215_v33  ;;  %v10961_v14 = vpop.f32.mrf.mxu0 }
 0x515   :  { %11789 = vst [vmem:[#allocation13_spill] sm:$0xff] %v10961_v14  ;;  %v4526_v23 = vadd.f32 %v4334_v7, %v4154_v47  ;;  %8703 = vmatpush3.bf16.msra.mxu1 %v8934_v51  ;;  %8502 = vmatprep.mubr.msk.bf16.mxu1 %vm8937_vm1, %v11668_v59  ;;  %v11792_v14 = vld [vmem:[#allocation36_spill] sm:$0xff] }
 0x516   :  { %v8296_v35 = vpop.f32.mrf.mxu1  ;;  %v8641_v36 = vpop.f32.mrf.mxu0  ;;  %8704 = vmatprep.subr.bf16.mxu1 %v11668_v59  ;;  %v4696_v28 = vld [vmem:[#allocation3] sm:$0xff] }
 0x517   :  { %4575 = vst.msk [vmem:[#allocation3 + $0x10] sm:$0xff] %vm2396_vm2, %v4526_v23  ;;  %v5068_v48 = vadd.f32 %v11790_v54, %v4696_v28  ;;  %v5216_v35 = vpack.c.bf16 %v5169_v52, %v5168_v49  ;;  %v5171_v52 = vld [vmem:[#allocation2 + $0x44] sm:$0xff] }
 0x518   :  { %v4337_v51 = vpop.f32.mrf.mxu1  ;;  %v10971_v63 = vpop.f32.mrf.mxu0 }
 0x519   :  { %11791 = vst [vmem:[#allocation79_spill] sm:$0xff] %v10971_v63  ;;  %v4527_v33 = vadd.f32 %v4337_v51, %v4155_v61  ;;  %8705 = vmatpush3.bf16.msra.mxu1 %v8935_v44  ;;  %5117 = vst.msk [vmem:[#allocation3] sm:$0xff] %vm2396_vm2, %v5068_v48  ;;  %v11794_v61 = vld [vmem:[#allocation6_spill] sm:$0xff]  ;;  %v4157_v51 = vld [vmem:[#allocation3 + $0x28] sm:$0xff] }
 0x51a   :  { %v8297_v47 = vpop.f32.mrf.mxu1  ;;  %v8644_v7 = vpop.f32.mrf.mxu0  ;;  %v4697_v36 = vld [vmem:[#allocation3 + $0x8] sm:$0xff] }
 0x51b   :  { %4576 = vst.msk [vmem:[#allocation3 + $0x18] sm:$0xff] %vm2396_vm2, %v4527_v33  ;;  %v5069_v23 = vadd.f32 %v11792_v14, %v4697_v36 }
 0x51c   :  { %v4342_v43 = vpop.f32.mrf.mxu1  ;;  %8503 = vmatmul.mubr.msk.bf16.gmra.mxu1 %vm1938_vm0, %v5216_v35  ;;  %v10977_v28 = vpop.f32.mrf.mxu0  ;;  %v5170_v35 = vld [vmem:[#allocation2 + $0x3c] sm:$0xff] }
 0x51d   :  { %11793 = vst [vmem:[#allocation41_spill] sm:$0xff] %v10977_v28  ;;  %v4528_v54 = vadd.f32 %v4342_v43, %v4156_v19  ;;  %8506 = vmatprep.mubr.msk.bf16.mxu1 %vm8937_vm1, %v11668_v59  ;;  %5118 = vst.msk [vmem:[#allocation3 + $0x8] sm:$0xff] %vm2396_vm2, %v5069_v23  ;;  %v5217_v36 = vpack.c.bf16 %v5171_v52, %v5170_v35  ;;  %v11798_v35 = vld [vmem:[#allocation40_spill] sm:$0xff] }
 0x51e   :  { %v8300_v44 = vpop.f32.mrf.mxu1  ;;  %v8645_v48 = vpop.f32.mrf.mxu0  ;;  %v4698_v49 = vld [vmem:[#allocation3 + $0x10] sm:$0xff] }
 0x51f   :  { %4577 = vst.msk [vmem:[#allocation3 + $0x20] sm:$0xff] %vm2396_vm2, %v4528_v54  ;;  %v5070_v14 = vadd.f32 %v11794_v61, %v4698_v49  ;;  %v11796_v44 = vld [vmem:[#allocation67_spill] sm:$0xff]  ;;  %v4158_v54 = vld [vmem:[#allocation3 + $0x30] sm:$0xff] }
 0x520   :  { %v4345_v33 = vpop.f32.mrf.mxu1  ;;  %v10984_v47 = vpop.f32.mrf.mxu0 }
 0x521   :  { %11795 = vst [vmem:[#allocation14_spill] sm:$0xff] %v10984_v47  ;;  %v4529_v7 = vadd.f32 %v4345_v33, %v4157_v51  ;;  %5119 = vst.msk [vmem:[#allocation3 + $0x10] sm:$0xff] %vm2396_vm2, %v5070_v14  ;;  %v5172_v33 = vld [vmem:[#allocation2 + $0x4c] sm:$0xff] }
 0x522   :  { %v8301_v43 = vpop.f32.mrf.mxu1  ;;  %v8648_v19 = vpop.f32.mrf.mxu0  ;;  %v4699_v23 = vld [vmem:[#allocation3 + $0x18] sm:$0xff] }
 0x523   :  { %4578 = vst.msk [vmem:[#allocation3 + $0x28] sm:$0xff] %vm2396_vm2, %v4529_v7  ;;  %v5071_v48 = vadd.f32 %v11796_v44, %v4699_v23  ;;  %v5173_v7 = vld [vmem:[#allocation2 + $0x54] sm:$0xff]  ;;  %v4159_v19 = vld [vmem:[#allocation3 + $0x38] sm:$0xff] }
 0x524   :  { %v4350_v28 = vpop.f32.mrf.mxu1  ;;  %8507 = vmatmul.mubr.msk.bf16.gmra.mxu1 %vm1938_vm0, %v5217_v36  ;;  %v10990_v49 = vpop.f32.mrf.mxu0 }
 0x525   :  { %11797 = vst [vmem:[#allocation74_spill] sm:$0xff] %v10990_v49  ;;  %v4530_v61 = vadd.f32 %v4350_v28, %v4158_v54  ;;  %8510 = vmatprep.mubr.msk.bf16.mxu1 %vm8937_vm1, %v11668_v59  ;;  %5120 = vst.msk [vmem:[#allocation3 + $0x18] sm:$0xff] %vm2396_vm2, %v5071_v48  ;;  %v5218_v49 = vpack.c.bf16 %v5173_v7, %v5172_v33  ;;  %v5175_v7 = vld [vmem:[#allocation2 + $0x64] sm:$0xff] }
 0x526   :  { %v8304_v14 = vpop.f32.mrf.mxu1  ;;  %v8649_v51 = vpop.f32.mrf.mxu0  ;;  %v4700_v52 = vld [vmem:[#allocation3 + $0x20] sm:$0xff] }
 0x527   :  { %4579 = vst.msk [vmem:[#allocation3 + $0x30] sm:$0xff] %vm2396_vm2, %v4530_v61  ;;  %v5072_v43 = vadd.f32 %v11798_v35, %v4700_v52  ;;  %v11800_v14 = vld [vmem:[#allocation8_spill] sm:$0xff]  ;;  %v4160_v61 = vld [vmem:[#allocation3 + $0x40] sm:$0xff] }
 0x528   :  { %v4353_v23 = vpop.f32.mrf.mxu1  ;;  %v10997_v36 = vpop.f32.mrf.mxu0 }
 0x529   :  { %11799 = vst [vmem:[#allocation48_spill] sm:$0xff] %v10997_v36  ;;  %v4531_v44 = vadd.f32 %v4353_v23, %v4159_v19  ;;  %5121 = vst.msk [vmem:[#allocation3 + $0x20] sm:$0xff] %vm2396_vm2, %v5072_v43  ;;  %v11802_v23 = vld [vmem:[#allocation68_spill] sm:$0xff] }
 0x52a   :  { %v8305_v28 = vpop.f32.mrf.mxu1  ;;  %v8652_v54 = vpop.f32.mrf.mxu0  ;;  %v4701_v48 = vld [vmem:[#allocation3 + $0x28] sm:$0xff] }
 0x52b   :  { %4580 = vst.msk [vmem:[#allocation3 + $0x38] sm:$0xff] %vm2396_vm2, %v4531_v44  ;;  %v5073_v51 = vadd.f32 %v11800_v14, %v4701_v48  ;;  %v4161_v28 = vld [vmem:[#allocation3 + $0x48] sm:$0xff]  ;;  %v5174_v14 = vld [vmem:[#allocation2 + $0x5c] sm:$0xff] }
 0x52c   :  { %v4358_v47 = vpop.f32.mrf.mxu1  ;;  %8511 = vmatmul.mubr.msk.bf16.gmra.mxu1 %vm1938_vm0, %v5218_v49  ;;  %v11003_v52 = vpop.f32.mrf.mxu0 }
 0x52d   :  { %11801 = vst [vmem:[#allocation16_spill] sm:$0xff] %v11003_v52  ;;  %v4532_v35 = vadd.f32 %v4358_v47, %v4160_v61  ;;  %8514 = vmatprep.mubr.msk.bf16.mxu1 %vm8937_vm1, %v11668_v59  ;;  %5122 = vst.msk [vmem:[#allocation3 + $0x28] sm:$0xff] %vm2396_vm2, %v5073_v51  ;;  %v5219_v52 = vpack.c.bf16 %v5175_v7, %v5174_v14  ;;  %v11806_v14 = vld [vmem:[#allocation4_spill] sm:$0xff] }
 0x52e   :  { %v8308_v43 = vpop.f32.mrf.mxu1  ;;  %v8653_v19 = vpop.f32.mrf.mxu0  ;;  %v4702_v33 = vld [vmem:[#allocation3 + $0x30] sm:$0xff] }
 0x52f   :  { %4581 = vst.msk [vmem:[#allocation3 + $0x40] sm:$0xff] %vm2396_vm2, %v4532_v35  ;;  %v5074_v44 = vadd.f32 %v11802_v23, %v4702_v33  ;;  %v11804_v43 = vld [vmem:[#allocation37_spill] sm:$0xff] }
 0x530   :  { %v4361_v54 = vpop.f32.mrf.mxu1  ;;  %v11010_v48 = vpop.f32.mrf.mxu0  ;;  %v4162_v35 = vld [vmem:[#allocation3 + $0x50] sm:$0xff] }
 0x531   :  { %11803 = vst [vmem:[#allocation76_spill] sm:$0xff] %v11010_v48  ;;  %v4533_v49 = vadd.f32 %v4361_v54, %v4161_v28  ;;  %5123 = vst.msk [vmem:[#allocation3 + $0x30] sm:$0xff] %vm2396_vm2, %v5074_v44  ;;  %v5176_v54 = vld [vmem:[#allocation2 + $0x6c] sm:$0xff] }
 0x532   :  { %v8309_v47 = vpop.f32.mrf.mxu1  ;;  %v8656_v61 = vpop.f32.mrf.mxu0  ;;  %v4703_v51 = vld [vmem:[#allocation3 + $0x38] sm:$0xff] }
 0x533   :  { %4582 = vst.msk [vmem:[#allocation3 + $0x48] sm:$0xff] %vm2396_vm2, %v4533_v49  ;;  %v5075_v19 = vadd.f32 %v11804_v43, %v4703_v51  ;;  %v5177_v49 = vld [vmem:[#allocation2 + $0x74] sm:$0xff]  ;;  %v4163_v61 = vld [vmem:[#allocation3 + $0x58] sm:$0xff] }
 0x534   :  { %v4366_v36 = vpop.f32.mrf.mxu1  ;;  %8515 = vmatmul.mubr.msk.bf16.gmra.mxu1 %vm1938_vm0, %v5219_v52  ;;  %v11016_v33 = vpop.f32.mrf.mxu0 }
 0x535   :  { %11805 = vst [vmem:[#allocation43_spill] sm:$0xff] %v11016_v33  ;;  %v4534_v23 = vadd.f32 %v4366_v36, %v4162_v35  ;;  %8518 = vmatprep.mubr.msk.bf16.mxu1 %vm8937_vm1, %v11668_v59  ;;  %5124 = vst.msk [vmem:[#allocation3 + $0x38] sm:$0xff] %vm2396_vm2, %v5075_v19  ;;  %v5220_v33 = vpack.c.bf16 %v5177_v49, %v5176_v54  ;;  %v5179_v49 = vld [vmem:[#allocation2 + $0x84] sm:$0xff] }
 0x536   :  { %v8312_v44 = vpop.f32.mrf.mxu1  ;;  %v8657_v28 = vpop.f32.mrf.mxu0  ;;  %v4704_v7 = vld [vmem:[#allocation3 + $0x40] sm:$0xff] }
 0x537   :  { %4583 = vst.msk [vmem:[#allocation3 + $0x50] sm:$0xff] %vm2396_vm2, %v4534_v23  ;;  %v5076_v47 = vadd.f32 %v11806_v14, %v4704_v7  ;;  %v11808_v44 = vld [vmem:[#allocation69_spill] sm:$0xff]  ;;  %v4164_v23 = vld [vmem:[#allocation3 + $0x60] sm:$0xff] }
 0x538   :  { %v4369_v51 = vpop.f32.mrf.mxu1  ;;  %v11023_v52 = vpop.f32.mrf.mxu0 }
 0x539   :  { %11807 = vst [vmem:[#allocation11_spill] sm:$0xff] %v11023_v52  ;;  %v4535_v43 = vadd.f32 %v4369_v51, %v4163_v61  ;;  %5125 = vst.msk [vmem:[#allocation3 + $0x40] sm:$0xff] %vm2396_vm2, %v5076_v47  ;;  %v11810_v51 = vld [vmem:[#allocation42_spill] sm:$0xff] }
 0x53a   :  { %v8313_v36 = vpop.f32.mrf.mxu1  ;;  %v8660_v35 = vpop.f32.mrf.mxu0  ;;  %v4705_v19 = vld [vmem:[#allocation3 + $0x48] sm:$0xff] }
 0x53b   :  { %4584 = vst.msk [vmem:[#allocation3 + $0x58] sm:$0xff] %vm2396_vm2, %v4535_v43  ;;  %v5077_v28 = vadd.f32 %v11808_v44, %v4705_v19  ;;  %v4165_v36 = vld [vmem:[#allocation3 + $0x68] sm:$0xff]  ;;  %v5178_v44 = vld [vmem:[#allocation2 + $0x7c] sm:$0xff] }
 0x53c   :  { %v4374_v48 = vpop.f32.mrf.mxu1  ;;  %8519 = vmatmul.mubr.msk.bf16.gmra.mxu1 %vm1938_vm0, %v5220_v33  ;;  %v11029_v7 = vpop.f32.mrf.mxu0 }
 0x53d   :  { %11809 = vst [vmem:[#allocation77_spill] sm:$0xff] %v11029_v7  ;;  %v4536_v14 = vadd.f32 %v4374_v48, %v4164_v23  ;;  %8522 = vmatprep.mubr.msk.bf16.mxu1 %vm8937_vm1, %v11668_v59  ;;  %5126 = vst.msk [vmem:[#allocation3 + $0x48] sm:$0xff] %vm2396_vm2, %v5077_v28  ;;  %v5221_v7 = vpack.c.bf16 %v5179_v49, %v5178_v44  ;;  %v11814_v44 = vld [vmem:[#allocation75_spill] sm:$0xff] }
 0x53e   :  { %v8316_v47 = vpop.f32.mrf.mxu1  ;;  %v8661_v61 = vpop.f32.mrf.mxu0  ;;  %v4706_v54 = vld [vmem:[#allocation3 + $0x50] sm:$0xff] }
 0x53f   :  { %4585 = vst.msk [vmem:[#allocation3 + $0x60] sm:$0xff] %vm2396_vm2, %v4536_v14  ;;  %v5078_v43 = vadd.f32 %v11810_v51, %v4706_v54  ;;  %v11812_v47 = vld [vmem:[#allocation9_spill] sm:$0xff] }
 0x540   :  { %v4377_v35 = vpop.f32.mrf.mxu1  ;;  %v11036_v19 = vpop.f32.mrf.mxu0  ;;  %v4166_v14 = vld [vmem:[#allocation3 + $0x70] sm:$0xff] }
 0x541   :  { %11811 = vst [vmem:[#allocation50_spill] sm:$0xff] %v11036_v19  ;;  %v4537_v33 = vadd.f32 %v4377_v35, %v4165_v36  ;;  %5127 = vst.msk [vmem:[#allocation3 + $0x50] sm:$0xff] %vm2396_vm2, %v5078_v43  ;;  %v5180_v35 = vld [vmem:[#allocation2 + $0x8c] sm:$0xff] }
 0x542   :  { %v8317_v48 = vpop.f32.mrf.mxu1  ;;  %v8664_v23 = vpop.f32.mrf.mxu0  ;;  %v4707_v28 = vld [vmem:[#allocation3 + $0x58] sm:$0xff] }
 0x543   :  { %4586 = vst.msk [vmem:[#allocation3 + $0x68] sm:$0xff] %vm2396_vm2, %v4537_v33  ;;  %v5079_v61 = vadd.f32 %v11812_v47, %v4707_v28  ;;  %v5181_v33 = vld [vmem:[#allocation2 + $0x94] sm:$0xff]  ;;  %v4167_v23 = vld [vmem:[#allocation3 + $0x78] sm:$0xff] }
 0x544   :  { %v4382_v52 = vpop.f32.mrf.mxu1  ;;  %8523 = vmatmul.mubr.msk.bf16.gmra.mxu1 %vm1938_vm0, %v5221_v7  ;;  %v11042_v54 = vpop.f32.mrf.mxu0 }
 0x545   :  { %11813 = vst [vmem:[#allocation17_spill] sm:$0xff] %v11042_v54  ;;  %v4538_v51 = vadd.f32 %v4382_v52, %v4166_v14  ;;  %8526 = vmatprep.mubr.msk.bf16.mxu1 %vm8937_vm1, %v11668_v59  ;;  %5128 = vst.msk [vmem:[#allocation3 + $0x58] sm:$0xff] %vm2396_vm2, %v5079_v61  ;;  %v5222_v54 = vpack.c.bf16 %v5181_v33, %v5180_v35  ;;  %v5183_v33 = vld [vmem:[#allocation2 + $0xa4] sm:$0xff] }
 0x546   :  { %v8320_v43 = vpop.f32.mrf.mxu1  ;;  %v8665_v36 = vpop.f32.mrf.mxu0  ;;  %v4708_v49 = vld [vmem:[#allocation3 + $0x60] sm:$0xff] }
 0x547   :  { %4587 = vst.msk [vmem:[#allocation3 + $0x70] sm:$0xff] %vm2396_vm2, %v4538_v51  ;;  %v5080_v48 = vadd.f32 %v11814_v44, %v4708_v49  ;;  %v11816_v43 = vld [vmem:[#allocation38_spill] sm:$0xff]  ;;  %v4168_v51 = vld [vmem:[#allocation3 + $0x80] sm:$0xff] }
 0x548   :  { %v4385_v28 = vpop.f32.mrf.mxu1  ;;  %v11049_v7 = vpop.f32.mrf.mxu0 }
 0x549   :  { %11815 = vst [vmem:[#allocation83_spill] sm:$0xff] %v11049_v7  ;;  %v4539_v47 = vadd.f32 %v4385_v28, %v4167_v23  ;;  %5129 = vst.msk [vmem:[#allocation3 + $0x60] sm:$0xff] %vm2396_vm2, %v5080_v48  ;;  %v11818_v28 = vld [vmem:[#allocation10_spill] sm:$0xff] }
 0x54a   :  { %v8321_v52 = vpop.f32.mrf.mxu1  ;;  %v8668_v14 = vpop.f32.mrf.mxu0  ;;  %v4709_v61 = vld [vmem:[#allocation3 + $0x68] sm:$0xff] }
 0x54b   :  { %4588 = vst.msk [vmem:[#allocation3 + $0x78] sm:$0xff] %vm2396_vm2, %v4539_v47  ;;  %v5081_v36 = vadd.f32 %v11816_v43, %v4709_v61  ;;  %v4169_v52 = vld [vmem:[#allocation3 + $0x88] sm:$0xff]  ;;  %v5182_v43 = vld [vmem:[#allocation2 + $0x9c] sm:$0xff] }
 0x54c   :  { %v4390_v19 = vpop.f32.mrf.mxu1  ;;  %8527 = vmatmul.mubr.msk.bf16.gmra.mxu1 %vm1938_vm0, %v5222_v54  ;;  %v11055_v49 = vpop.f32.mrf.mxu0 }
 0x54d   :  { %11817 = vst [vmem:[#allocation45_spill] sm:$0xff] %v11055_v49  ;;  %v4540_v44 = vadd.f32 %v4390_v19, %v4168_v51  ;;  %8530 = vmatprep.mubr.msk.bf16.mxu1 %vm8937_vm1, %v11668_v59  ;;  %5130 = vst.msk [vmem:[#allocation3 + $0x68] sm:$0xff] %vm2396_vm2, %v5081_v36  ;;  %v5223_v49 = vpack.c.bf16 %v5183_v33, %v5182_v43  ;;  %v5184_v33 = vld [vmem:[#allocation2 + $0xac] sm:$0xff] }
 0x54e   :  { %v8324_v48 = vpop.f32.mrf.mxu1  ;;  %v8669_v23 = vpop.f32.mrf.mxu0  ;;  %v4710_v35 = vld [vmem:[#allocation3 + $0x70] sm:$0xff]  ;;  %v5756_v43 = vld [vmem:[#allocation2 + $0x18d] sm:$0xff] }
 0x54f   :  { %4589 = vst.msk [vmem:[#allocation3 + $0x80] sm:$0xff] %vm2396_vm2, %v4540_v44  ;;  %v5082_v47 = vadd.f32 %v11818_v28, %v4710_v35  ;;  %v11820_v48 = vld [vmem:[#allocation70_spill] sm:$0xff]  ;;  %v4170_v44 = vld [vmem:[#allocation3 + $0x90] sm:$0xff] }
 0x550   :  { %v4393_v14 = vpop.f32.mrf.mxu1  ;;  %v11062_v61 = vpop.f32.mrf.mxu0 }
 0x551   :  { %11819 = vst [vmem:[#allocation18_spill] sm:$0xff] %v11062_v61  ;;  %v4541_v54 = vadd.f32 %v4393_v14, %v4169_v52  ;;  %5131 = vst.msk [vmem:[#allocation3 + $0x70] sm:$0xff] %vm2396_vm2, %v5082_v47 }
 0x552   :  { %v8325_v19 = vpop.f32.mrf.mxu1  ;;  %v8672_v51 = vpop.f32.mrf.mxu0  ;;  %v4711_v36 = vld [vmem:[#allocation3 + $0x78] sm:$0xff] }
 0x553   :  { %4590 = vst.msk [vmem:[#allocation3 + $0x88] sm:$0xff] %vm2396_vm2, %v4541_v54  ;;  %v5083_v23 = vadd.f32 %v11820_v48, %v4711_v36  ;;  %v5185_v54 = vld [vmem:[#allocation2 + $0xb4] sm:$0xff] }
 0x554   :  { %v4398_v7 = vpop.f32.mrf.mxu1  ;;  %8531 = vmatmul.mubr.msk.bf16.gmra.mxu1 %vm1938_vm0, %v5223_v49  ;;  %v11068_v35 = vpop.f32.mrf.mxu0  ;;  %v5757_v19 = vld [vmem:[#allocation2 + $0x195] sm:$0xff]  ;;  %v4171_v49 = vld [vmem:[#allocation3 + $0x98] sm:$0xff] }
 0x555   :  { %11821 = vst [vmem:[#allocation78_spill] sm:$0xff] %v11068_v35  ;;  %v4542_v28 = vadd.f32 %v4398_v7, %v4170_v44  ;;  %8534 = vmatprep.mubr.msk.bf16.mxu1 %vm8937_vm1, %v11668_v59  ;;  %5132 = vst.msk [vmem:[#allocation3 + $0x78] sm:$0xff] %vm2396_vm2, %v5083_v23  ;;  %v11822_v51 = vld [vmem:[#allocation44_spill] sm:$0xff]  ;;  %v5782_v7 = vpack.c.bf16 %v5757_v19, %v5756_v43 }
 0x556   :  { %v8328_v47 = vpop.f32.mrf.mxu1  ;;  %v8673_v52 = vpop.f32.mrf.mxu0  ;;  %v4712_v14 = vld [vmem:[#allocation3 + $0x80] sm:$0xff] }
 0x557   :  { %4591 = vst.msk [vmem:[#allocation3 + $0x90] sm:$0xff] %vm2396_vm2, %v4542_v28  ;;  %v5084_v36 = vadd.f32 %v11822_v51, %v4712_v14  ;;  %v5224_v52 = vpack.c.bf16 %v5185_v54, %v5184_v33  ;;  %8695 = vmatmul.mubr.msk.bf16.gmra.mxu0 %vm1938_vm0, %v5782_v7  ;;  %v11823_v28 = vld [vmem:[#allocation12_spill] sm:$0xff]  ;;  %v4172_v51 = vld [vmem:[#allocation3 + $0xa0] sm:$0xff] }
 0x558   :  { %v4401_v48 = vpop.f32.mrf.mxu1  ;;  %v11075_v35 = vpop.f32.mrf.mxu0  ;;  %8698 = vmatprep.mubr.msk.bf16.mxu0 %vm8937_vm1, %v11668_v59 }
 0x559   :  { %v4543_v44 = vadd.f32 %v4401_v48, %v4171_v49  ;;  %5133 = vst.msk [vmem:[#allocation3 + $0x80] sm:$0xff] %vm2396_vm2, %v5084_v36  ;;  %v5187_v49 = vld [vmem:[#allocation2 + $0xc4] sm:$0xff] }
 0x55a   :  { %v8329_v23 = vpop.f32.mrf.mxu1  ;;  %v8676_v47 = vpop.f32.mrf.mxu0  ;;  %v4713_v61 = vld [vmem:[#allocation3 + $0x88] sm:$0xff]  ;;  %v5758_v48 = vld [vmem:[#allocation2 + $0x19d] sm:$0xff] }
 0x55b   :  { %4592 = vst.msk [vmem:[#allocation3 + $0x98] sm:$0xff] %vm2396_vm2, %v4543_v44  ;;  %v5085_v14 = vadd.f32 %v11823_v28, %v4713_v61  ;;  %v11825_v61 = vld [vmem:[#allocation72_spill] sm:$0xff]  ;;  %v5186_v28 = vld [vmem:[#allocation2 + $0xbc] sm:$0xff] }
 0x55c   :  { %v4406_v63 = vpop.f32.mrf.mxu1  ;;  %8535 = vmatmul.mubr.msk.bf16.gmra.mxu1 %vm1938_vm0, %v5224_v52  ;;  %v11084_v43 = vpop.f32.mrf.mxu0  ;;  %v4173_v44 = vld [vmem:[#allocation3 + $0xa8] sm:$0xff]  ;;  %v5783_v52 = vpack.c.bf16 %v5758_v48, %v5758_v48 }
 0x55d   :  { %11824 = vst [vmem:[#allocation52_spill] sm:$0xff] %v11084_v43  ;;  %v4544_v19 = vadd.f32 %v4406_v63, %v4172_v51  ;;  %8538 = vmatprep.mubr.msk.bf16.mxu1 %vm8937_vm1, %v11668_v59  ;;  %5134 = vst.msk [vmem:[#allocation3 + $0x88] sm:$0xff] %vm2396_vm2, %v5085_v14 }
 0x55e   :  { %v8332_v33 = vpop.f32.mrf.mxu1  ;;  %v8677_v54 = vpop.f32.mrf.mxu0  ;;  %v4714_v36 = vld [vmem:[#allocation3 + $0x90] sm:$0xff] }
 0x55f   :  { %4593 = vst.msk [vmem:[#allocation3 + $0xa0] sm:$0xff] %vm2396_vm2, %v4544_v19  ;;  %v5086_v7 = vadd.f32 %v11825_v61, %v4714_v36  ;;  %v5225_v33 = vpack.c.bf16 %v5187_v49, %v5186_v28  ;;  %8699 = vmatmul.mubr.msk.bf16.gmra.mxu0 %vm1938_vm0, %v5783_v52  ;;  %v11827_v19 = vld [vmem:[#allocation39_spill] sm:$0xff]  ;;  %v4174_v36 = vld [vmem:[#allocation3 + $0xb0] sm:$0xff]  ;;  %v4175_v28 = vld [vmem:[#allocation3 + $0xb8] sm:$0xff] }
 0x560   :  { %v4409_v23 = vpop.f32.mrf.mxu1  ;;  %v11091_v47 = vpop.f32.mrf.mxu0  ;;  %v5189_v52 = vld [vmem:[#allocation2 + $0xd4] sm:$0xff] }
 0x561   :  { %11826 = vst [vmem:[#allocation20_spill] sm:$0xff] %v11091_v47  ;;  %v4545_v63 = vadd.f32 %v4409_v23, %v4173_v44  ;;  %5135 = vst.msk [vmem:[#allocation3 + $0x90] sm:$0xff] %vm2396_vm2, %v5086_v7  ;;  %v5188_v23 = vld [vmem:[#allocation2 + $0xcc] sm:$0xff] }
 0x562   :  { %v8333_v51 = vpop.f32.mrf.mxu1  ;;  %v8680_v14 = vpop.f32.mrf.mxu0  ;;  %v4715_v54 = vld [vmem:[#allocation3 + $0x98] sm:$0xff] }
 0x563   :  { %4594 = vst.msk [vmem:[#allocation3 + $0xa8] sm:$0xff] %vm2396_vm2, %v4545_v63  ;;  %v5087_v43 = vadd.f32 %v11827_v19, %v4715_v54 }
 0x564   :  { %v4414_v61 = vpop.f32.mrf.mxu1  ;;  %8539 = vmatmul.mubr.msk.bf16.gmra.mxu1 %vm1938_vm0, %v5225_v33  ;;  %v11098_v47 = vpop.f32.mrf.mxu0 }
 0x565   :  { %v4546_v48 = vadd.f32 %v4414_v61, %v4174_v36  ;;  %8542 = vmatprep.mubr.msk.bf16.mxu1 %vm8937_vm1, %v11668_v59  ;;  %5136 = vst.msk [vmem:[#allocation3 + $0x98] sm:$0xff] %vm2396_vm2, %v5087_v43  ;;  %v5226_v36 = vpack.c.bf16 %v5189_v52, %v5188_v23  ;;  %v11828_v61 = vld [vmem:[#allocation7_spill] sm:$0xff] }
 0x566   :  { %v8336_v49 = vpop.f32.mrf.mxu1  ;;  %v8681_v7 = vpop.f32.mrf.mxu0  ;;  %v4716_v44 = vld [vmem:[#allocation3 + $0xa0] sm:$0xff] }
 0x567   :  { %4595 = vst.msk [vmem:[#allocation3 + $0xb0] sm:$0xff] %vm2396_vm2, %v4546_v48  ;;  %v5088_v63 = vadd.f32 %v10601_v26, %v4716_v44  ;;  %v4176_v48 = vld [vmem:[#allocation3 + $0xc0] sm:$0xff] }
 0x568   :  { %v4417_v51 = vpop.f32.mrf.mxu1  ;;  %v11105_v14 = vpop.f32.mrf.mxu0  ;;  %v5191_v52 = vld [vmem:[#allocation2 + $0xe4] sm:$0xff] }
 0x569   :  { %v4547_v33 = vadd.f32 %v4417_v51, %v4175_v28  ;;  %5137 = vst.msk [vmem:[#allocation3 + $0xa0] sm:$0xff] %vm2396_vm2, %v5088_v63 }
 0x56a   :  { %v8337_v54 = vpop.f32.mrf.mxu1  ;;  %v8684_v19 = vpop.f32.mrf.mxu0  ;;  %v4717_v43 = vld [vmem:[#allocation3 + $0xa8] sm:$0xff] }
 0x56b   :  { %4596 = vst.msk [vmem:[#allocation3 + $0xb8] sm:$0xff] %vm2396_vm2, %v4547_v33  ;;  %v5089_v49 = vadd.f32 %v11828_v61, %v4717_v43  ;;  %v4177_v33 = vld [vmem:[#allocation3 + $0xc8] sm:$0xff]  ;;  %v5190_v43 = vld [vmem:[#allocation2 + $0xdc] sm:$0xff] }
 0x56c   :  { %v4422_v7 = vpop.f32.mrf.mxu1  ;;  %8543 = vmatmul.mubr.msk.bf16.gmra.mxu1 %vm1938_vm0, %v5226_v36  ;;  %v11111_v26 = vpop.f32.mrf.mxu0 }
 0x56d   :  { %v4548_v44 = vadd.f32 %v4422_v7, %v4176_v48  ;;  %8546 = vmatprep.mubr.msk.bf16.mxu1 %vm8937_vm1, %v11668_v59  ;;  %5138 = vst.msk [vmem:[#allocation3 + $0xa8] sm:$0xff] %vm2396_vm2, %v5089_v49  ;;  %v5227_v7 = vpack.c.bf16 %v5191_v52, %v5190_v43  ;;  %v4179_v43 = vld [vmem:[#allocation3 + $0xd8] sm:$0xff] }
 0x56e   :  { %v8340_v63 = vpop.f32.mrf.mxu1  ;;  %v8685_v28 = vpop.f32.mrf.mxu0  ;;  %v4718_v23 = vld [vmem:[#allocation3 + $0xb0] sm:$0xff] }
 0x56f   :  { %4597 = vst.msk [vmem:[#allocation3 + $0xc0] sm:$0xff] %vm2396_vm2, %v4548_v44  ;;  %v5090_v51 = vadd.f32 %v10618_v50, %v4718_v23  ;;  %v4178_v44 = vld [vmem:[#allocation3 + $0xd0] sm:$0xff] }
 0x570   :  { %v4425_v54 = vpop.f32.mrf.mxu1  ;;  %v11118_v19 = vpop.f32.mrf.mxu0 }
 0x571   :  { %v4549_v36 = vadd.f32 %v4425_v54, %v4177_v33  ;;  %5139 = vst.msk [vmem:[#allocation3 + $0xb0] sm:$0xff] %vm2396_vm2, %v5090_v51  ;;  %v5192_v54 = vld [vmem:[#allocation2 + $0xec] sm:$0xff] }
 0x572   :  { %v8341_v61 = vpop.f32.mrf.mxu1  ;;  %v8688_v48 = vpop.f32.mrf.mxu0  ;;  %v4719_v49 = vld [vmem:[#allocation3 + $0xb8] sm:$0xff] }
 0x573   :  { %4598 = vst.msk [vmem:[#allocation3 + $0xc8] sm:$0xff] %vm2396_vm2, %v4549_v36  ;;  %v5091_v63 = vadd.f32 %v10627_v34, %v4719_v49  ;;  %v5193_v36 = vld [vmem:[#allocation2 + $0xf4] sm:$0xff] }
 0x574   :  { %v4430_v28 = vpop.f32.mrf.mxu1  ;;  %8547 = vmatmul.mubr.msk.bf16.gmra.mxu1 %vm1938_vm0, %v5227_v7  ;;  %v11124_v50 = vpop.f32.mrf.mxu0 }
 0x575   :  { %v4550_v23 = vadd.f32 %v4430_v28, %v4178_v44  ;;  %8550 = vmatprep.mubr.msk.bf16.mxu1 %vm8937_vm1, %v11668_v59  ;;  %5140 = vst.msk [vmem:[#allocation3 + $0xb8] sm:$0xff] %vm2396_vm2, %v5091_v63  ;;  %v5228_v28 = vpack.c.bf16 %v5193_v36, %v5192_v54  ;;  %v5195_v36 = vld [vmem:[#allocation2 + $0x104] sm:$0xff] }
 0x576   :  { %v8344_v51 = vpop.f32.mrf.mxu1  ;;  %v8689_v33 = vpop.f32.mrf.mxu0  ;;  %v4720_v52 = vld [vmem:[#allocation3 + $0xc0] sm:$0xff] }
 0x577   :  { %4599 = vst.msk [vmem:[#allocation3 + $0xd0] sm:$0xff] %vm2396_vm2, %v4550_v23  ;;  %v5092_v34 = vadd.f32 %v10634_v40, %v4720_v52  ;;  %v4180_v23 = vld [vmem:[#allocation3 + $0xe0] sm:$0xff] }
 0x578   :  { %v4433_v61 = vpop.f32.mrf.mxu1  ;;  %v11131_v48 = vpop.f32.mrf.mxu0 }
 0x579   :  { %v4551_v7 = vadd.f32 %v4433_v61, %v4179_v43  ;;  %5141 = vst.msk [vmem:[#allocation3 + $0xc0] sm:$0xff] %vm2396_vm2, %v5092_v34  ;;  %v4181_v61 = vld [vmem:[#allocation3 + $0xe8] sm:$0xff] }
 0x57a   :  { %v8345_v49 = vpop.f32.mrf.mxu1  ;;  %v8692_v44 = vpop.f32.mrf.mxu0  ;;  %v4721_v63 = vld [vmem:[#allocation3 + $0xc8] sm:$0xff] }
 0x57b   :  { %4600 = vst.msk [vmem:[#allocation3 + $0xd8] sm:$0xff] %vm2396_vm2, %v4551_v7  ;;  %v5093_v51 = vadd.f32 %v10643_v20, %v4721_v63  ;;  %v5194_v44 = vld [vmem:[#allocation2 + $0xfc] sm:$0xff] }
 0x57c   :  { %v4438_v33 = vpop.f32.mrf.mxu1  ;;  %8551 = vmatmul.mubr.msk.bf16.gmra.mxu1 %vm1938_vm0, %v5228_v28  ;;  %v11137_v40 = vpop.f32.mrf.mxu0  ;;  %v5229_v63 = vpack.c.bf16 %v5195_v36, %v5194_v44  ;;  %v5197_v36 = vld [vmem:[#allocation2 + $0x114] sm:$0xff] }
 0x57d   :  { %v4552_v52 = vadd.f32 %v4438_v33, %v4180_v23  ;;  %8554 = vmatprep.mubr.msk.bf16.mxu1 %vm8937_vm1, %v11668_v59  ;;  %5142 = vst.msk [vmem:[#allocation3 + $0xc8] sm:$0xff] %vm2396_vm2, %v5093_v51  ;;  %v4182_v33 = vld [vmem:[#allocation3 + $0xf0] sm:$0xff] }
 0x57e   :  { %v8348_v34 = vpop.f32.mrf.mxu1  ;;  %v8693_v43 = vpop.f32.mrf.mxu0  ;;  %v4722_v54 = vld [vmem:[#allocation3 + $0xd0] sm:$0xff] }
 0x57f   :  { %4601 = vst.msk [vmem:[#allocation3 + $0xe0] sm:$0xff] %vm2396_vm2, %v4552_v52  ;;  %v5094_v20 = vadd.f32 %v10650_v21, %v4722_v54  ;;  %v5196_v54 = vld [vmem:[#allocation2 + $0x10c] sm:$0xff] }
 0x580   :  { %v4441_v7 = vpop.f32.mrf.mxu1  ;;  %v5230_v44 = vpack.c.bf16 %v5197_v36, %v5196_v54  ;;  %v5198_v36 = vld [vmem:[#allocation2 + $0x11c] sm:$0xff] }
 0x581   :  { %v4553_v49 = vadd.f32 %v4441_v7, %v4181_v61  ;;  %5143 = vst.msk [vmem:[#allocation3 + $0xd0] sm:$0xff] %vm2396_vm2, %v5094_v20  ;;  %v4183_v61 = vld [vmem:[#allocation3 + $0xf8] sm:$0xff] }
 0x582   :  { %v8349_v28 = vpop.f32.mrf.mxu1  ;;  %v4723_v23 = vld [vmem:[#allocation3 + $0xd8] sm:$0xff] }
 0x583   :  { %4602 = vst.msk [vmem:[#allocation3 + $0xe8] sm:$0xff] %vm2396_vm2, %v4553_v49  ;;  %v5095_v51 = vadd.f32 %v10659_v13, %v4723_v23  ;;  %v4184_v23 = vld [vmem:[#allocation3 + $0x100] sm:$0xff] }
 0x584   :  { %v4446_v34 = vpop.f32.mrf.mxu1  ;;  %8555 = vmatmul.mubr.msk.bf16.gmra.mxu1 %vm1938_vm0, %v5229_v63 }
 0x585   :  { %v4554_v52 = vadd.f32 %v4446_v34, %v4182_v33  ;;  %8558 = vmatprep.mubr.msk.bf16.mxu1 %vm8937_vm1, %v11668_v59  ;;  %5144 = vst.msk [vmem:[#allocation3 + $0xd8] sm:$0xff] %vm2396_vm2, %v5095_v51 }
 0x586   :  { %v8352_v21 = vpop.f32.mrf.mxu1  ;;  %v4724_v43 = vld [vmem:[#allocation3 + $0xe0] sm:$0xff] }
 0x587   :  { %4603 = vst.msk [vmem:[#allocation3 + $0xf0] sm:$0xff] %vm2396_vm2, %v4554_v52  ;;  %v5096_v20 = vadd.f32 %v10666_v53, %v4724_v43  ;;  %v5199_v52 = vld [vmem:[#allocation2 + $0x124] sm:$0xff]  ;;  %v4185_v43 = vld [vmem:[#allocation3 + $0x108] sm:$0xff] }
 0x588   :  { %v4449_v13 = vpop.f32.mrf.mxu1 }
 0x589   :  { %v4555_v7 = vadd.f32 %v4449_v13, %v4183_v61  ;;  %5145 = vst.msk [vmem:[#allocation3 + $0xe0] sm:$0xff] %vm2396_vm2, %v5096_v20  ;;  %v5231_v61 = vpack.c.bf16 %v5199_v52, %v5198_v36 }
 0x58a   :  { %v8353_v49 = vpop.f32.mrf.mxu1  ;;  %v4725_v28 = vld [vmem:[#allocation3 + $0xe8] sm:$0xff] }
 0x58b   :  { %4604 = vst.msk [vmem:[#allocation3 + $0xf8] sm:$0xff] %vm2396_vm2, %v4555_v7  ;;  %v5097_v63 = vadd.f32 %v10675_v60, %v4725_v28  ;;  %v4186_v49 = vld [vmem:[#allocation3 + $0x110] sm:$0xff] }
 0x58c   :  { %v4454_v51 = vpop.f32.mrf.mxu1  ;;  %8559 = vmatmul.mubr.msk.bf16.gmra.mxu1 %vm1938_vm0, %v5230_v44 }
 0x58d   :  { %v4556_v33 = vadd.f32 %v4454_v51, %v4184_v23  ;;  %8562 = vmatprep.mubr.msk.bf16.mxu1 %vm8937_vm1, %v11668_v59  ;;  %5146 = vst.msk [vmem:[#allocation3 + $0xe8] sm:$0xff] %vm2396_vm2, %v5097_v63  ;;  %v5200_v23 = vld [vmem:[#allocation2 + $0x12c] sm:$0xff]  ;;  %v5201_v51 = vld [vmem:[#allocation2 + $0x134] sm:$0xff] }
 0x58e   :  { %v8356_v53 = vpop.f32.mrf.mxu1  ;;  %v4726_v34 = vld [vmem:[#allocation3 + $0xf0] sm:$0xff] }
 0x58f   :  { %4605 = vst.msk [vmem:[#allocation3 + $0x100] sm:$0xff] %vm2396_vm2, %v4556_v33  ;;  %v5098_v21 = vadd.f32 %v10682_v0, %v4726_v34  ;;  %v4187_v53 = vld [vmem:[#allocation3 + $0x118] sm:$0xff] }
 0x590   :  { %v4457_v54 = vpop.f32.mrf.mxu1 }
 0x591   :  { %v4557_v60 = vadd.f32 %v4457_v54, %v4185_v43  ;;  %5147 = vst.msk [vmem:[#allocation3 + $0xf0] sm:$0xff] %vm2396_vm2, %v5098_v21  ;;  %v5232_v21 = vpack.c.bf16 %v5201_v51, %v5200_v23 }
 0x592   :  { %v8357_v20 = vpop.f32.mrf.mxu1  ;;  %v4727_v13 = vld [vmem:[#allocation3 + $0xf8] sm:$0xff] }
 0x593   :  { %4606 = vst.msk [vmem:[#allocation3 + $0x108] sm:$0xff] %vm2396_vm2, %v4557_v60  ;;  %v5099_v7 = vadd.f32 %v10691_v62, %v4727_v13  ;;  %v4188_v60 = vld [vmem:[#allocation3 + $0x120] sm:$0xff] }
 0x594   :  { %v4462_v44 = vpop.f32.mrf.mxu1  ;;  %8563 = vmatmul.mubr.msk.bf16.gmra.mxu1 %vm1938_vm0, %v5231_v61  ;;  %v5203_v13 = vld [vmem:[#allocation2 + $0x144] sm:$0xff] }
 0x595   :  { %v4558_v28 = vadd.f32 %v4462_v44, %v4186_v49  ;;  %8566 = vmatprep.mubr.msk.bf16.mxu1 %vm8937_vm1, %v11668_v59  ;;  %5148 = vst.msk [vmem:[#allocation3 + $0xf8] sm:$0xff] %vm2396_vm2, %v5099_v7  ;;  %v4189_v49 = vld [vmem:[#allocation3 + $0x128] sm:$0xff] }
 0x596   :  { %v8360_v0 = vpop.f32.mrf.mxu1  ;;  %v4728_v63 = vld [vmem:[#allocation3 + $0x100] sm:$0xff] }
 0x597   :  { %4607 = vst.msk [vmem:[#allocation3 + $0x110] sm:$0xff] %vm2396_vm2, %v4558_v28  ;;  %v5100_v33 = vadd.f32 %v10698_v46, %v4728_v63  ;;  %v5202_v28 = vld [vmem:[#allocation2 + $0x13c] sm:$0xff] }
 0x598   :  { %v4465_v62 = vpop.f32.mrf.mxu1  ;;  %v5233_v63 = vpack.c.bf16 %v5203_v13, %v5202_v28  ;;  %v4192_v13 = vld [vmem:[#allocation3 + $0x140] sm:$0xff] }
 0x599   :  { %v4559_v34 = vadd.f32 %v4465_v62, %v4187_v53  ;;  %5149 = vst.msk [vmem:[#allocation3 + $0x100] sm:$0xff] %vm2396_vm2, %v5100_v33  ;;  %v4190_v33 = vld [vmem:[#allocation3 + $0x130] sm:$0xff] }
 0x59a   :  { %v8361_v52 = vpop.f32.mrf.mxu1  ;;  %v4729_v43 = vld [vmem:[#allocation3 + $0x108] sm:$0xff] }
 0x59b   :  { %4608 = vst.msk [vmem:[#allocation3 + $0x118] sm:$0xff] %vm2396_vm2, %v4559_v34  ;;  %v5101_v54 = vadd.f32 %v10707_v30, %v4729_v43  ;;  %v5204_v52 = vld [vmem:[#allocation2 + $0x14c] sm:$0xff] }
 0x59c   :  { %v4470_v36 = vpop.f32.mrf.mxu1  ;;  %8567 = vmatmul.mubr.msk.bf16.gmra.mxu1 %vm1938_vm0, %v5232_v21  ;;  %v5205_v21 = vld [vmem:[#allocation2 + $0x154] sm:$0xff] }
 0x59d   :  { %v4560_v20 = vadd.f32 %v4470_v36, %v4188_v60  ;;  %8570 = vmatprep.mubr.msk.bf16.mxu1 %vm8937_vm1, %v11668_v59  ;;  %5150 = vst.msk [vmem:[#allocation3 + $0x108] sm:$0xff] %vm2396_vm2, %v5101_v54  ;;  %v4191_v54 = vld [vmem:[#allocation3 + $0x138] sm:$0xff] }
 0x59e   :  { %v8364_v46 = vpop.f32.mrf.mxu1  ;;  %v4730_v61 = vld [vmem:[#allocation3 + $0x110] sm:$0xff] }
 0x59f   :  { %4609 = vst.msk [vmem:[#allocation3 + $0x120] sm:$0xff] %vm2396_vm2, %v4560_v20  ;;  %v5102_v7 = vadd.f32 %v10714_v31, %v4730_v61  ;;  %v5234_v20 = vpack.c.bf16 %v5205_v21, %v5204_v52 }
 0x5a0   :  { %v4473_v44 = vpop.f32.mrf.mxu1 }
 0x5a1   :  { %v4561_v30 = vadd.f32 %v4473_v44, %v4189_v49  ;;  %5151 = vst.msk [vmem:[#allocation3 + $0x110] sm:$0xff] %vm2396_vm2, %v5102_v7 }
 0x5a2   :  { %v8365_v0 = vpop.f32.mrf.mxu1  ;;  %v4731_v23 = vld [vmem:[#allocation3 + $0x118] sm:$0xff] }
 0x5a3   :  { %4610 = vst.msk [vmem:[#allocation3 + $0x128] sm:$0xff] %vm2396_vm2, %v4561_v30  ;;  %v5103_v51 = vadd.f32 %v10723_v16, %v4731_v23  ;;  %v5207_v30 = vld [vmem:[#allocation2 + $0x164] sm:$0xff]  ;;  %v4193_v0 = vld [vmem:[#allocation3 + $0x148] sm:$0xff]  ;;  %v5206_v23 = vld [vmem:[#allocation2 + $0x15c] sm:$0xff] }
 0x5a4   :  { %v4478_v53 = vpop.f32.mrf.mxu1  ;;  %8571 = vmatmul.mubr.msk.bf16.gmra.mxu1 %vm1938_vm0, %v5233_v63 }
 0x5a5   :  { %v4562_v62 = vadd.f32 %v4478_v53, %v4190_v33  ;;  %8574 = vmatprep.mubr.msk.bf16.mxu1 %vm8937_vm1, %v11668_v59  ;;  %5152 = vst.msk [vmem:[#allocation3 + $0x118] sm:$0xff] %vm2396_vm2, %v5103_v51  ;;  %v5235_v33 = vpack.c.bf16 %v5207_v30, %v5206_v23  ;;  %v5210_v30 = vld [vmem:[#allocation2 + $0x17c] sm:$0xff] }
 0x5a6   :  { %v8368_v31 = vpop.f32.mrf.mxu1  ;;  %v4732_v34 = vld [vmem:[#allocation3 + $0x120] sm:$0xff] }
 0x5a7   :  { %4611 = vst.msk [vmem:[#allocation3 + $0x130] sm:$0xff] %vm2396_vm2, %v4562_v62  ;;  %v5104_v43 = vadd.f32 %v10730_v24, %v4732_v34  ;;  %v4194_v31 = vld [vmem:[#allocation3 + $0x150] sm:$0xff] }
 0x5a8   :  { %v4481_v16 = vpop.f32.mrf.mxu1 }
 0x5a9   :  { %v4563_v60 = vadd.f32 %v4481_v16, %v4191_v54  ;;  %5153 = vst.msk [vmem:[#allocation3 + $0x120] sm:$0xff] %vm2396_vm2, %v5104_v43  ;;  %v5208_v43 = vld [vmem:[#allocation2 + $0x16c] sm:$0xff]  ;;  %v5209_v54 = vld [vmem:[#allocation2 + $0x174] sm:$0xff] }
 0x5aa   :  { %v8369_v36 = vpop.f32.mrf.mxu1  ;;  %v4733_v46 = vld [vmem:[#allocation3 + $0x128] sm:$0xff] }
 0x5ab   :  { %4612 = vst.msk [vmem:[#allocation3 + $0x138] sm:$0xff] %vm2396_vm2, %v4563_v60  ;;  %v5105_v61 = vadd.f32 %v10739_v25, %v4733_v46  ;;  %v4195_v60 = vld [vmem:[#allocation3 + $0x158] sm:$0xff]  ;;  %v5236_v46 = vpack.c.bf16 %v5209_v54, %v5208_v43 }
 0x5ac   :  { %v4486_v7 = vpop.f32.mrf.mxu1  ;;  %8575 = vmatmul.mubr.msk.bf16.gmra.mxu1 %vm1938_vm0, %v5234_v20  ;;  %v4199_v54 = vld [vmem:[#allocation3 + $0x178] sm:$0xff] }
 0x5ad   :  { %v4564_v49 = vadd.f32 %v4486_v7, %v4192_v13  ;;  %8578 = vmatprep.mubr.msk.bf16.mxu1 %vm8937_vm1, %v11668_v59  ;;  %5154 = vst.msk [vmem:[#allocation3 + $0x128] sm:$0xff] %vm2396_vm2, %v5105_v61  ;;  %v4196_v7 = vld [vmem:[#allocation3 + $0x160] sm:$0xff] }
 0x5ae   :  { %v8372_v24 = vpop.f32.mrf.mxu1  ;;  %v4734_v44 = vld [vmem:[#allocation3 + $0x130] sm:$0xff] }
 0x5af   :  { %4613 = vst.msk [vmem:[#allocation3 + $0x140] sm:$0xff] %vm2396_vm2, %v4564_v49  ;;  %v5106_v28 = vadd.f32 %v10746_v22, %v4734_v44 }
 0x5b0   :  { %v4489_v63 = vpop.f32.mrf.mxu1 }
 0x5b1   :  { %v4565_v25 = vadd.f32 %v4489_v63, %v4193_v0  ;;  %5155 = vst.msk [vmem:[#allocation3 + $0x130] sm:$0xff] %vm2396_vm2, %v5106_v28  ;;  %v5211_v28 = vld [vmem:[#allocation2 + $0x184] sm:$0xff]  ;;  %v4197_v63 = vld [vmem:[#allocation3 + $0x168] sm:$0xff] }
 0x5b2   :  { %v8373_v51 = vpop.f32.mrf.mxu1  ;;  %v4735_v53 = vld [vmem:[#allocation3 + $0x138] sm:$0xff] }
 0x5b3   :  { %4614 = vst.msk [vmem:[#allocation3 + $0x148] sm:$0xff] %vm2396_vm2, %v4565_v25  ;;  %v5107_v62 = vadd.f32 %v10755_v9, %v4735_v53  ;;  %v5237_v51 = vpack.c.bf16 %v5211_v28, %v5210_v30 }
 0x5b4   :  { %v4494_v34 = vpop.f32.mrf.mxu1  ;;  %8579 = vmatmul.mubr.msk.bf16.gmra.mxu1 %vm1938_vm0, %v5235_v33 }
 0x5b5   :  { %v4566_v52 = vadd.f32 %v4494_v34, %v4194_v31  ;;  %8582 = vmatprep.mubr.msk.bf16.mxu1 %vm8937_vm1, %v11668_v59  ;;  %5156 = vst.msk [vmem:[#allocation3 + $0x138] sm:$0xff] %vm2396_vm2, %v5107_v62  ;;  %v4198_v62 = vld [vmem:[#allocation3 + $0x170] sm:$0xff] }
 0x5b6   :  { %v8376_v22 = vpop.f32.mrf.mxu1  ;;  %v4736_v21 = vld [vmem:[#allocation3 + $0x140] sm:$0xff] }
 0x5b7   :  { %4615 = vst.msk [vmem:[#allocation3 + $0x150] sm:$0xff] %vm2396_vm2, %v4566_v52  ;;  %v5108_v16 = vadd.f32 %v10762_v2, %v4736_v21  ;;  %v5213_v52 = vld [vmem:[#allocation2 + $0x194] sm:$0xff] }
 0x5b8   :  { %v4497_v9 = vpop.f32.mrf.mxu1 }
 0x5b9   :  { %v4567_v36 = vadd.f32 %v4497_v9, %v4195_v60  ;;  %5157 = vst.msk [vmem:[#allocation3 + $0x140] sm:$0xff] %vm2396_vm2, %v5108_v16 }
 0x5ba   :  { %v8377_v20 = vpop.f32.mrf.mxu1  ;;  %v4737_v61 = vld [vmem:[#allocation3 + $0x148] sm:$0xff] }
 0x5bb   :  { %4616 = vst.msk [vmem:[#allocation3 + $0x158] sm:$0xff] %vm2396_vm2, %v4567_v36  ;;  %v5109_v13 = vadd.f32 %v10771_v29, %v4737_v61 }
 0x5bc   :  { %v4502_v49 = vpop.f32.mrf.mxu1  ;;  %8583 = vmatmul.mubr.msk.bf16.gmra.mxu1 %vm1938_vm0, %v5236_v46  ;;  %v4200_v46 = vld [vmem:[#allocation3 + $0x180] sm:$0xff] }
 0x5bd   :  { %v4568_v24 = vadd.f32 %v4502_v49, %v4196_v7  ;;  %8586 = vmatprep.mubr.msk.bf16.mxu1 %vm8937_vm1, %v11668_v59  ;;  %5158 = vst.msk [vmem:[#allocation3 + $0x148] sm:$0xff] %vm2396_vm2, %v5109_v13 }
 0x5be   :  { %v8380_v2 = vpop.f32.mrf.mxu1  ;;  %v4738_v44 = vld [vmem:[#allocation3 + $0x150] sm:$0xff] }
 0x5bf   :  { %4617 = vst.msk [vmem:[#allocation3 + $0x160] sm:$0xff] %vm2396_vm2, %v4568_v24  ;;  %v5110_v0 = vadd.f32 %v10778_v6, %v4738_v44  ;;  %v5212_v6 = vld [vmem:[#allocation2 + $0x18c] sm:$0xff] }
 0x5c0   :  { %v4505_v29 = vpop.f32.mrf.mxu1  ;;  %v5238_v16 = vpack.c.bf16 %v5213_v52, %v5212_v6  ;;  %v5242_v6 = vld [vmem:[#allocation3 + $0x10] sm:$0xff] }
 0x5c1   :  { %v4569_v25 = vadd.f32 %v4505_v29, %v4197_v63  ;;  %5159 = vst.msk [vmem:[#allocation3 + $0x150] sm:$0xff] %vm2396_vm2, %v5110_v0  ;;  %v5240_v0 = vld [vmem:[#allocation3] sm:$0xff] }
 0x5c2   :  { %v8381_v23 = vpop.f32.mrf.mxu1  ;;  %v4739_v33 = vld [vmem:[#allocation3 + $0x158] sm:$0xff] }
 0x5c3   :  { %4618 = vst.msk [vmem:[#allocation3 + $0x168] sm:$0xff] %vm2396_vm2, %v4569_v25  ;;  %v5111_v53 = vadd.f32 %v10787_v18, %v4739_v33  ;;  %v6255_v23 = vld [vmem:[#allocation2 + $0x26] sm:$0xff]  ;;  %v5241_v33 = vld [vmem:[#allocation3 + $0x8] sm:$0xff] }
 0x5c4   :  { %v4510_v31 = vpop.f32.mrf.mxu1  ;;  %8587 = vmatmul.mubr.msk.bf16.gmra.mxu1 %vm1938_vm0, %v5237_v51 }
 0x5c5   :  { %v4570_v34 = vadd.f32 %v4510_v31, %v4198_v62  ;;  %8590 = vmatprep.mubr.msk.bf16.mxu1 %vm8937_vm1, %v11668_v59  ;;  %5160 = vst.msk [vmem:[#allocation3 + $0x158] sm:$0xff] %vm2396_vm2, %v5111_v53  ;;  %v6254_v62 = vld [vmem:[#allocation2 + $0x1e] sm:$0xff] }
 0x5c6   :  { %v8384_v22 = vpop.f32.mrf.mxu1  ;;  %v4740_v21 = vld [vmem:[#allocation3 + $0x160] sm:$0xff] }
 0x5c7   :  { %4619 = vst.msk [vmem:[#allocation3 + $0x170] sm:$0xff] %vm2396_vm2, %v4570_v34  ;;  %v5112_v43 = vadd.f32 %v10794_v42, %v4740_v21  ;;  %v5214_v42 = vld [vmem:[#allocation2 + $0x19c] sm:$0xff]  ;;  %v6303_v34 = vpack.c.bf16 %v6255_v23, %v6254_v62 }
 0x5c8   :  { %v4513_v18 = vpop.f32.mrf.mxu1  ;;  %v5239_v44 = vpack.c.bf16 %v5214_v42, %v5214_v42  ;;  %v5247_v62 = vld [vmem:[#allocation3 + $0x38] sm:$0xff] }
 0x5c9   :  { %v4571_v60 = vadd.f32 %v4513_v18, %v4199_v54  ;;  %5161 = vst.msk [vmem:[#allocation3 + $0x160] sm:$0xff] %vm2396_vm2, %v5112_v43  ;;  %v6256_v43 = vld [vmem:[#allocation2 + $0x2e] sm:$0xff]  ;;  %v6257_v54 = vld [vmem:[#allocation2 + $0x36] sm:$0xff] }
 0x5ca   :  { %v8385_v9 = vpop.f32.mrf.mxu1  ;;  %v4741_v36 = vld [vmem:[#allocation3 + $0x168] sm:$0xff] }
 0x5cb   :  { %4620 = vst.msk [vmem:[#allocation3 + $0x178] sm:$0xff] %vm2396_vm2, %v4571_v60  ;;  %v5113_v20 = vadd.f32 %v10803_v55, %v4741_v36 }
 0x5cc   :  { %v4518_v61 = vpop.f32.mrf.mxu1  ;;  %8591 = vmatmul.mubr.msk.bf16.gmra.mxu1 %vm1938_vm0, %v5238_v16  ;;  %v5243_v16 = vld [vmem:[#allocation3 + $0x18] sm:$0xff] }
 0x5cd   :  { %v4572_v13 = vadd.f32 %v4518_v61, %v4200_v46  ;;  %8594 = vmatprep.mubr.msk.bf16.mxu1 %vm8937_vm1, %v11668_v59  ;;  %5162 = vst.msk [vmem:[#allocation3 + $0x168] sm:$0xff] %vm2396_vm2, %v5113_v20  ;;  %v6304_v20 = vpack.c.bf16 %v6257_v54, %v6256_v43 }
 0x5ce   :  { %v8388_v7 = vpop.f32.mrf.mxu1  ;;  %v4742_v49 = vld [vmem:[#allocation3 + $0x170] sm:$0xff] }
 0x5cf   :  { %4621 = vst.msk [vmem:[#allocation3 + $0x180] sm:$0xff] %vm2396_vm2, %v4572_v13  ;;  %v5114_v24 = vadd.f32 %v10810_v27, %v4742_v49  ;;  %v5244_v13 = vld [vmem:[#allocation3 + $0x20] sm:$0xff] }
 0x5d0   :  { %v4521_v2 = vpop.f32.mrf.mxu1 }
 0x5d1   :  { %5163 = vst.msk [vmem:[#allocation3 + $0x170] sm:$0xff] %vm2396_vm2, %v5114_v24  ;;  %v6259_v24 = vld [vmem:[#allocation2 + $0x46] sm:$0xff] }
 0x5d2   :  { %v8389_v55 = vpop.f32.mrf.mxu1  ;;  %v4743_v30 = vld [vmem:[#allocation3 + $0x178] sm:$0xff] }
 0x5d3   :  { %v5115_v28 = vadd.f32 %v10819_v17, %v4743_v30  ;;  %v6258_v30 = vld [vmem:[#allocation2 + $0x3e] sm:$0xff] }
 0x5d4   :  { %v5414_v63 = vpop.f32.mrf.mxu1  ;;  %8595 = vmatmul.mubr.msk.bf16.gmra.mxu1 %vm1938_vm0, %v5239_v44  ;;  %v5245_v44 = vld [vmem:[#allocation3 + $0x28] sm:$0xff] }
 0x5d5   :  { %v5612_v29 = vadd.f32 %v5414_v63, %v5240_v0  ;;  %8706 = vmatprep.mubr.msk.bf16.mxu1 %vm8937_vm1, %v11668_v59  ;;  %5164 = vst.msk [vmem:[#allocation3 + $0x178] sm:$0xff] %vm2396_vm2, %v5115_v28  ;;  %v6305_v0 = vpack.c.bf16 %v6259_v24, %v6258_v30  ;;  %v6264_v24 = vld [vmem:[#allocation2 + $0x6e] sm:$0xff] }
 0x5d6   :  { %v8500_v25 = vpop.f32.mrf.mxu1  ;;  %v4744_v27 = vld [vmem:[#allocation3 + $0x180] sm:$0xff] }
 0x5d7   :  { %5661 = vst.msk [vmem:[#allocation3] sm:$0xff] %vm2396_vm2, %v5612_v29  ;;  %v5116_v51 = vadd.f32 %v10826_v11, %v4744_v27  ;;  %v5246_v25 = vld [vmem:[#allocation3 + $0x30] sm:$0xff] }
 0x5d8   :  { %v5417_v53 = vpop.f32.mrf.mxu1 }
 0x5d9   :  { %v5613_v17 = vadd.f32 %v5417_v53, %v5241_v33  ;;  %5165 = vst.msk [vmem:[#allocation3 + $0x180] sm:$0xff] %vm2396_vm2, %v5116_v51  ;;  %v6260_v33 = vld [vmem:[#allocation2 + $0x4e] sm:$0xff]  ;;  %v6261_v53 = vld [vmem:[#allocation2 + $0x56] sm:$0xff] }
 0x5da   :  { %v8501_v31 = vpop.f32.mrf.mxu1 }
 0x5db   :  { %5662 = vst.msk [vmem:[#allocation3 + $0x8] sm:$0xff] %vm2396_vm2, %v5613_v17 }
 0x5dc   :  { %v5422_v52 = vpop.f32.mrf.mxu1  ;;  %8707 = vmatmul.mubr.msk.bf16.vlgmr.msra.gmra.mxu1 %vm1938_vm0, %v6303_v34 }
 0x5dd   :  { %v5614_v22 = vadd.f32 %v5422_v52, %v5242_v6  ;;  %8710 = vmatprep.mubr.msk.bf16.mxu1 %vm8937_vm1, %v11668_v59  ;;  %v6306_v6 = vpack.c.bf16 %v6261_v53, %v6260_v33  ;;  %v5253_v33 = vld [vmem:[#allocation3 + $0x68] sm:$0xff] }
 0x5de   :  { %v8504_v21 = vpop.f32.mrf.mxu1  ;;  %v5784_v11 = vld [vmem:[#allocation3] sm:$0xff] }
 0x5df   :  { %5663 = vst.msk [vmem:[#allocation3 + $0x10] sm:$0xff] %vm2396_vm2, %v5614_v22  ;;  %v6156_v18 = vadd.f32 %v10837_v39, %v5784_v11  ;;  %v5248_v21 = vld [vmem:[#allocation3 + $0x40] sm:$0xff] }
 0x5e0   :  { %v5425_v60 = vpop.f32.mrf.mxu1 }
 0x5e1   :  { %v5615_v9 = vadd.f32 %v5425_v60, %v5243_v16  ;;  %6205 = vst.msk [vmem:[#allocation3] sm:$0xff] %vm2396_vm2, %v6156_v18  ;;  %v6263_v18 = vld [vmem:[#allocation2 + $0x66] sm:$0xff]  ;;  %v5249_v60 = vld [vmem:[#allocation3 + $0x48] sm:$0xff] }
 0x5e2   :  { %v8505_v36 = vpop.f32.mrf.mxu1  ;;  %v5785_v46 = vld [vmem:[#allocation3 + $0x8] sm:$0xff] }
 0x5e3   :  { %5664 = vst.msk [vmem:[#allocation3 + $0x18] sm:$0xff] %vm2396_vm2, %v5615_v9  ;;  %v6157_v61 = vadd.f32 %v10843_v45, %v5785_v46  ;;  %v6262_v36 = vld [vmem:[#allocation2 + $0x5e] sm:$0xff] }
 0x5e4   :  { %v5430_v42 = vpop.f32.mrf.mxu1  ;;  %8711 = vmatmul.mubr.msk.bf16.gmra.mxu1 %vm1938_vm0, %v6304_v20  ;;  %v6307_v46 = vpack.c.bf16 %v6263_v18, %v6262_v36  ;;  %v5256_v36 = vld [vmem:[#allocation3 + $0x80] sm:$0xff] }
 0x5e5   :  { %v5616_v7 = vadd.f32 %v5430_v42, %v5244_v13  ;;  %8714 = vmatprep.mubr.msk.bf16.mxu1 %vm8937_vm1, %v11668_v59  ;;  %6206 = vst.msk [vmem:[#allocation3 + $0x8] sm:$0xff] %vm2396_vm2, %v6157_v61  ;;  %v5250_v42 = vld [vmem:[#allocation3 + $0x50] sm:$0xff] }
 0x5e6   :  { %v8508_v39 = vpop.f32.mrf.mxu1  ;;  %v5786_v49 = vld [vmem:[#allocation3 + $0x10] sm:$0xff] }
 0x5e7   :  { %5665 = vst.msk [vmem:[#allocation3 + $0x20] sm:$0xff] %vm2396_vm2, %v5616_v7  ;;  %v6158_v2 = vadd.f32 %v10850_v32, %v5786_v49 }
 0x5e8   :  { %v5433_v55 = vpop.f32.mrf.mxu1 }
 0x5e9   :  { %v5617_v45 = vadd.f32 %v5433_v55, %v5245_v44  ;;  %6207 = vst.msk [vmem:[#allocation3 + $0x10] sm:$0xff] %vm2396_vm2, %v6158_v2  ;;  %v6265_v2 = vld [vmem:[#allocation2 + $0x76] sm:$0xff]  ;;  %v5251_v55 = vld [vmem:[#allocation3 + $0x58] sm:$0xff] }
 0x5ea   :  { %v8509_v28 = vpop.f32.mrf.mxu1  ;;  %v5787_v63 = vld [vmem:[#allocation3 + $0x18] sm:$0xff] }
 0x5eb   :  { %5666 = vst.msk [vmem:[#allocation3 + $0x28] sm:$0xff] %vm2396_vm2, %v5617_v45  ;;  %v6159_v29 = vadd.f32 %v10856_v12, %v5787_v63  ;;  %v6308_v28 = vpack.c.bf16 %v6265_v2, %v6264_v24 }
 0x5ec   :  { %v5438_v27 = vpop.f32.mrf.mxu1  ;;  %8715 = vmatmul.mubr.msk.bf16.gmra.mxu1 %vm1938_vm0, %v6305_v0 }
 0x5ed   :  { %v5618_v23 = vadd.f32 %v5438_v27, %v5246_v25  ;;  %8718 = vmatprep.mubr.msk.bf16.mxu1 %vm8937_vm1, %v11668_v59  ;;  %6208 = vst.msk [vmem:[#allocation3 + $0x18] sm:$0xff] %vm2396_vm2, %v6159_v29  ;;  %v5252_v29 = vld [vmem:[#allocation3 + $0x60] sm:$0xff] }
 0x5ee   :  { %v8512_v32 = vpop.f32.mrf.mxu1  ;;  %v5788_v51 = vld [vmem:[#allocation3 + $0x20] sm:$0xff] }
 0x5ef   :  { %5667 = vst.msk [vmem:[#allocation3 + $0x30] sm:$0xff] %vm2396_vm2, %v5618_v23  ;;  %v6160_v17 = vadd.f32 %v10863_v38, %v5788_v51  ;;  %v6267_v32 = vld [vmem:[#allocation2 + $0x86] sm:$0xff] }
 0x5f0   :  { %v5441_v12 = vpop.f32.mrf.mxu1 }
 0x5f1   :  { %v5619_v31 = vadd.f32 %v5441_v12, %v5247_v62  ;;  %6209 = vst.msk [vmem:[#allocation3 + $0x20] sm:$0xff] %vm2396_vm2, %v6160_v17  ;;  %v6266_v17 = vld [vmem:[#allocation2 + $0x7e] sm:$0xff] }
 0x5f2   :  { %v8513_v34 = vpop.f32.mrf.mxu1  ;;  %v5789_v52 = vld [vmem:[#allocation3 + $0x28] sm:$0xff]  ;;  %v6309_v12 = vpack.c.bf16 %v6267_v32, %v6266_v17  ;;  %v11829_v17 = vld [vmem:[#allocation73_spill] sm:$0xff] }
 0x5f3   :  { %5668 = vst.msk [vmem:[#allocation3 + $0x38] sm:$0xff] %vm2396_vm2, %v5619_v31  ;;  %v6161_v22 = vadd.f32 %v10869_v57, %v5789_v52 }
 0x5f4   :  { %v5446_v11 = vpop.f32.mrf.mxu1  ;;  %8719 = vmatmul.mubr.msk.bf16.gmra.mxu1 %vm1938_vm0, %v6306_v6  ;;  %v5254_v6 = vld [vmem:[#allocation3 + $0x70] sm:$0xff] }
 0x5f5   :  { %v5620_v43 = vadd.f32 %v5446_v11, %v5248_v21  ;;  %8722 = vmatprep.mubr.msk.bf16.mxu1 %vm8937_vm1, %v11668_v59  ;;  %6210 = vst.msk [vmem:[#allocation3 + $0x28] sm:$0xff] %vm2396_vm2, %v6161_v22  ;;  %v6268_v11 = vld [vmem:[#allocation2 + $0x8e] sm:$0xff] }
 0x5f6   :  { %v8516_v38 = vpop.f32.mrf.mxu1  ;;  %v5790_v54 = vld [vmem:[#allocation3 + $0x30] sm:$0xff] }
 0x5f7   :  { %5669 = vst.msk [vmem:[#allocation3 + $0x40] sm:$0xff] %vm2396_vm2, %v5620_v43  ;;  %v6162_v16 = vadd.f32 %v10876_v3, %v5790_v54  ;;  %v6269_v43 = vld [vmem:[#allocation2 + $0x96] sm:$0xff]  ;;  %v5255_v54 = vld [vmem:[#allocation3 + $0x78] sm:$0xff] }
 0x5f8   :  { %v5449_v9 = vpop.f32.mrf.mxu1 }
 0x5f9   :  { %v5621_v57 = vadd.f32 %v5449_v9, %v5249_v60  ;;  %6211 = vst.msk [vmem:[#allocation3 + $0x30] sm:$0xff] %vm2396_vm2, %v6162_v16  ;;  %v6310_v60 = vpack.c.bf16 %v6269_v43, %v6268_v11  ;;  %v5261_v43 = vld [vmem:[#allocation3 + $0xa8] sm:$0xff] }
 0x5fa   :  { %v8517_v20 = vpop.f32.mrf.mxu1  ;;  %v5791_v61 = vld [vmem:[#allocation3 + $0x38] sm:$0xff] }
 0x5fb   :  { %5670 = vst.msk [vmem:[#allocation3 + $0x48] sm:$0xff] %vm2396_vm2, %v5621_v57  ;;  %v6163_v13 = vadd.f32 %v10882_v10, %v5791_v61 }
 0x5fc   :  { %v5454_v7 = vpop.f32.mrf.mxu1  ;;  %8723 = vmatmul.mubr.msk.bf16.gmra.mxu1 %vm1938_vm0, %v6307_v46 }
 0x5fd   :  { %v5622_v39 = vadd.f32 %v5454_v7, %v5250_v42  ;;  %8726 = vmatprep.mubr.msk.bf16.mxu1 %vm8937_vm1, %v11668_v59  ;;  %6212 = vst.msk [vmem:[#allocation3 + $0x38] sm:$0xff] %vm2396_vm2, %v6163_v13  ;;  %v6271_v13 = vld [vmem:[#allocation2 + $0xa6] sm:$0xff]  ;;  %v5257_v7 = vld [vmem:[#allocation3 + $0x88] sm:$0xff] }
 0x5fe   :  { %v8520_v3 = vpop.f32.mrf.mxu1  ;;  %v5792_v49 = vld [vmem:[#allocation3 + $0x40] sm:$0xff] }
 0x5ff   :  { %5671 = vst.msk [vmem:[#allocation3 + $0x50] sm:$0xff] %vm2396_vm2, %v5622_v39  ;;  %v6164_v44 = vadd.f32 %v10889_v41, %v5792_v49  ;;  %v6270_v3 = vld [vmem:[#allocation2 + $0x9e] sm:$0xff] }
 0x600   :  { %v5457_v10 = vpop.f32.mrf.mxu1  ;;  %v6311_v24 = vpack.c.bf16 %v6271_v13, %v6270_v3  ;;  %v5263_v3 = vld [vmem:[#allocation3 + $0xb8] sm:$0xff] }
 0x601   :  { %v5623_v45 = vadd.f32 %v5457_v10, %v5251_v55  ;;  %6213 = vst.msk [vmem:[#allocation3 + $0x40] sm:$0xff] %vm2396_vm2, %v6164_v44  ;;  %v5258_v10 = vld [vmem:[#allocation3 + $0x90] sm:$0xff] }
 0x602   :  { %v8521_v30 = vpop.f32.mrf.mxu1  ;;  %v5793_v0 = vld [vmem:[#allocation3 + $0x48] sm:$0xff] }
 0x603   :  { %5672 = vst.msk [vmem:[#allocation3 + $0x58] sm:$0xff] %vm2396_vm2, %v5623_v45  ;;  %v6165_v63 = vadd.f32 %v10895_v37, %v5793_v0 }
 0x604   :  { %v5462_v25 = vpop.f32.mrf.mxu1  ;;  %8727 = vmatmul.mubr.msk.bf16.gmra.mxu1 %vm1938_vm0, %v6308_v28 }
 0x605   :  { %v5624_v27 = vadd.f32 %v5462_v25, %v5252_v29  ;;  %8730 = vmatprep.mubr.msk.bf16.mxu1 %vm8937_vm1, %v11668_v59  ;;  %6214 = vst.msk [vmem:[#allocation3 + $0x48] sm:$0xff] %vm2396_vm2, %v6165_v63  ;;  %v6272_v29 = vld [vmem:[#allocation2 + $0xae] sm:$0xff]  ;;  %v6273_v25 = vld [vmem:[#allocation2 + $0xb6] sm:$0xff] }
 0x606   :  { %v8524_v41 = vpop.f32.mrf.mxu1  ;;  %v5794_v23 = vld [vmem:[#allocation3 + $0x50] sm:$0xff] }
 0x607   :  { %5673 = vst.msk [vmem:[#allocation3 + $0x60] sm:$0xff] %vm2396_vm2, %v5624_v27  ;;  %v6166_v51 = vadd.f32 %v10902_v4, %v5794_v23  ;;  %v5259_v27 = vld [vmem:[#allocation3 + $0x98] sm:$0xff] }
 0x608   :  { %v5465_v53 = vpop.f32.mrf.mxu1 }
 0x609   :  { %v5625_v37 = vadd.f32 %v5465_v53, %v5253_v33  ;;  %6215 = vst.msk [vmem:[#allocation3 + $0x50] sm:$0xff] %vm2396_vm2, %v6166_v51  ;;  %v6312_v33 = vpack.c.bf16 %v6273_v25, %v6272_v29 }
 0x60a   :  { %v8525_v62 = vpop.f32.mrf.mxu1  ;;  %v5795_v31 = vld [vmem:[#allocation3 + $0x58] sm:$0xff] }
 0x60b   :  { %5674 = vst.msk [vmem:[#allocation3 + $0x68] sm:$0xff] %vm2396_vm2, %v5625_v37  ;;  %v6167_v34 = vadd.f32 %v10908_v8, %v5795_v31 }
 0x60c   :  { %v5470_v52 = vpop.f32.mrf.mxu1  ;;  %8731 = vmatmul.mubr.msk.bf16.gmra.mxu1 %vm1938_vm0, %v6309_v12  ;;  %v5260_v12 = vld [vmem:[#allocation3 + $0xa0] sm:$0xff] }
 0x60d   :  { %v5626_v22 = vadd.f32 %v5470_v52, %v5254_v6  ;;  %8734 = vmatprep.mubr.msk.bf16.mxu1 %vm8937_vm1, %v11668_v59  ;;  %6216 = vst.msk [vmem:[#allocation3 + $0x58] sm:$0xff] %vm2396_vm2, %v6167_v34 }
 0x60e   :  { %v8528_v4 = vpop.f32.mrf.mxu1  ;;  %v5796_v21 = vld [vmem:[#allocation3 + $0x60] sm:$0xff] }
 0x60f   :  { %5675 = vst.msk [vmem:[#allocation3 + $0x70] sm:$0xff] %vm2396_vm2, %v5626_v22  ;;  %v6168_v38 = vadd.f32 %v10915_v1, %v5796_v21  ;;  %v6275_v4 = vld [vmem:[#allocation2 + $0xc6] sm:$0xff] }
 0x610   :  { %v5473_v8 = vpop.f32.mrf.mxu1  ;;  %v11830_v21 = vld [vmem:[#allocation46_spill] sm:$0xff] }
 0x611   :  { %v5627_v18 = vadd.f32 %v5473_v8, %v5255_v54  ;;  %6217 = vst.msk [vmem:[#allocation3 + $0x60] sm:$0xff] %vm2396_vm2, %v6168_v38 }
 0x612   :  { %v8529_v16 = vpop.f32.mrf.mxu1  ;;  %v5797_v9 = vld [vmem:[#allocation3 + $0x68] sm:$0xff] }
 0x613   :  { %5676 = vst.msk [vmem:[#allocation3 + $0x78] sm:$0xff] %vm2396_vm2, %v5627_v18  ;;  %v6169_v57 = vadd.f32 %v10921_v15, %v5797_v9  ;;  %v6274_v18 = vld [vmem:[#allocation2 + $0xbe] sm:$0xff] }
 0x614   :  { %v5478_v20 = vpop.f32.mrf.mxu1  ;;  %8735 = vmatmul.mubr.msk.bf16.gmra.mxu1 %vm1938_vm0, %v6310_v60  ;;  %v6313_v60 = vpack.c.bf16 %v6275_v4, %v6274_v18  ;;  %v6280_v4 = vld [vmem:[#allocation2 + $0xee] sm:$0xff] }
 0x615   :  { %v5628_v46 = vadd.f32 %v5478_v20, %v5256_v36  ;;  %8738 = vmatprep.mubr.msk.bf16.mxu1 %vm8937_vm1, %v11668_v59  ;;  %6218 = vst.msk [vmem:[#allocation3 + $0x68] sm:$0xff] %vm2396_vm2, %v6169_v57  ;;  %v11831_v57 = vld [vmem:[#allocation13_spill] sm:$0xff] }
 0x616   :  { %v8532_v1 = vpop.f32.mrf.mxu1  ;;  %v5798_v61 = vld [vmem:[#allocation3 + $0x70] sm:$0xff] }
 0x617   :  { %5677 = vst.msk [vmem:[#allocation3 + $0x80] sm:$0xff] %vm2396_vm2, %v5628_v46  ;;  %v6170_v42 = vadd.f32 %v10928_v56, %v5798_v61  ;;  %v11313_v2 = vpop.f32.mrf.mxu0  ;;  %v5262_v20 = vld [vmem:[#allocation3 + $0xb0] sm:$0xff] }
 0x618   :  { %v5481_v39 = vpop.f32.mrf.mxu1 }
 0x619   :  { %v5629_v15 = vadd.f32 %v5481_v39, %v5257_v7  ;;  %6219 = vst.msk [vmem:[#allocation3 + $0x70] sm:$0xff] %vm2396_vm2, %v6170_v42  ;;  %v8696_v56 = vpop.f32.mrf.mxu0  ;;  %v6276_v42 = vld [vmem:[#allocation2 + $0xce] sm:$0xff]  ;;  %v6277_v7 = vld [vmem:[#allocation2 + $0xd6] sm:$0xff] }
 0x61a   :  { %v8533_v49 = vpop.f32.mrf.mxu1  ;;  %v5799_v44 = vld [vmem:[#allocation3 + $0x78] sm:$0xff]  ;;  %v11832_v39 = vld [vmem:[#allocation79_spill] sm:$0xff] }
 0x61b   :  { %5678 = vst.msk [vmem:[#allocation3 + $0x88] sm:$0xff] %vm2396_vm2, %v5629_v15  ;;  %v6171_v55 = vadd.f32 %v10934_v5, %v5799_v44  ;;  %v11321_v0 = vpop.f32.mrf.mxu0 }
 0x61c   :  { %v5486_v45 = vpop.f32.mrf.mxu1  ;;  %8739 = vmatmul.mubr.msk.bf16.gmra.mxu1 %vm1938_vm0, %v6311_v24 }
 0x61d   :  { %v5630_v30 = vadd.f32 %v5486_v45, %v5258_v10  ;;  %8742 = vmatprep.mubr.msk.bf16.mxu1 %vm8937_vm1, %v11668_v59  ;;  %6220 = vst.msk [vmem:[#allocation3 + $0x78] sm:$0xff] %vm2396_vm2, %v6171_v55  ;;  %v8697_v23 = vpop.f32.mrf.mxu0  ;;  %v6314_v55 = vpack.c.bf16 %v6277_v7, %v6276_v42  ;;  %v11833_v45 = vld [vmem:[#allocation41_spill] sm:$0xff]  ;;  %v11838_v42 = vld [vmem:[#allocation76_spill] sm:$0xff] }
 0x61e   :  { %v8536_v28 = vpop.f32.mrf.mxu1  ;;  %v5800_v63 = vld [vmem:[#allocation3 + $0x80] sm:$0xff]  ;;  %v5265_v23 = vld [vmem:[#allocation3 + $0xc8] sm:$0xff] }
 0x61f   :  { %5679 = vst.msk [vmem:[#allocation3 + $0x90] sm:$0xff] %vm2396_vm2, %v5630_v30  ;;  %v6172_v5 = vadd.f32 %v10941_v58, %v5800_v63  ;;  %v11326_v53 = vpop.f32.mrf.mxu0  ;;  %v5264_v30 = vld [vmem:[#allocation3 + $0xc0] sm:$0xff] }
 0x620   :  { %v5489_v41 = vpop.f32.mrf.mxu1 }
 0x621   :  { %v5631_v32 = vadd.f32 %v5489_v41, %v5259_v27  ;;  %6221 = vst.msk [vmem:[#allocation3 + $0x80] sm:$0xff] %vm2396_vm2, %v6172_v5  ;;  %v8700_v58 = vpop.f32.mrf.mxu0  ;;  %v6279_v5 = vld [vmem:[#allocation2 + $0xe6] sm:$0xff] }
 0x622   :  { %v8537_v51 = vpop.f32.mrf.mxu1  ;;  %v5801_v37 = vld [vmem:[#allocation3 + $0x88] sm:$0xff]  ;;  %v11834_v27 = vld [vmem:[#allocation14_spill] sm:$0xff]  ;;  %v5266_v58 = vld [vmem:[#allocation3 + $0xd0] sm:$0xff] }
 0x623   :  { %5680 = vst.msk [vmem:[#allocation3 + $0x98] sm:$0xff] %vm2396_vm2, %v5631_v32  ;;  %v6173_v62 = vadd.f32 %v11829_v17, %v5801_v37  ;;  %v6153_v22 = vpop.f32.mrf.mxu0 }
 0x624   :  { %v5494_v31 = vpop.f32.mrf.mxu1  ;;  %8743 = vmatmul.mubr.msk.bf16.gmra.mxu1 %vm1938_vm0, %v6312_v33  ;;  %v6278_v33 = vld [vmem:[#allocation2 + $0xde] sm:$0xff] }
 0x625   :  { %v5632_v34 = vadd.f32 %v5494_v31, %v5260_v12  ;;  %8746 = vmatprep.mubr.msk.bf16.mxu1 %vm8937_vm1, %v11668_v59  ;;  %6222 = vst.msk [vmem:[#allocation3 + $0x88] sm:$0xff] %vm2396_vm2, %v6173_v62  ;;  %v8701_v54 = vpop.f32.mrf.mxu0  ;;  %v6315_v17 = vpack.c.bf16 %v6279_v5, %v6278_v33  ;;  %v11835_v12 = vld [vmem:[#allocation74_spill] sm:$0xff]  ;;  %v6285_v5 = vld [vmem:[#allocation2 + $0x116] sm:$0xff] }
 0x626   :  { %v8540_v6 = vpop.f32.mrf.mxu1  ;;  %v5802_v52 = vld [vmem:[#allocation3 + $0x90] sm:$0xff] }
 0x627   :  { %5681 = vst.msk [vmem:[#allocation3 + $0xa0] sm:$0xff] %vm2396_vm2, %v5632_v34  ;;  %v6174_v11 = vadd.f32 %v11830_v21, %v5802_v52  ;;  %v6281_v21 = vld [vmem:[#allocation2 + $0xf6] sm:$0xff] }
 0x628   :  { %v5497_v38 = vpop.f32.mrf.mxu1 }
 0x629   :  { %v5633_v8 = vadd.f32 %v5497_v38, %v5261_v43  ;;  %6223 = vst.msk [vmem:[#allocation3 + $0x90] sm:$0xff] %vm2396_vm2, %v6174_v11  ;;  %v11836_v11 = vld [vmem:[#allocation48_spill] sm:$0xff]  ;;  %v5267_v38 = vld [vmem:[#allocation3 + $0xd8] sm:$0xff] }
 0x62a   :  { %v8541_v16 = vpop.f32.mrf.mxu1  ;;  %v5803_v9 = vld [vmem:[#allocation3 + $0x98] sm:$0xff] }
 0x62b   :  { %5682 = vst.msk [vmem:[#allocation3 + $0xa8] sm:$0xff] %vm2396_vm2, %v5633_v8  ;;  %v6175_v36 = vadd.f32 %v11831_v57, %v5803_v9  ;;  %v6316_v16 = vpack.c.bf16 %v6281_v21, %v6280_v4  ;;  %v11837_v9 = vld [vmem:[#allocation16_spill] sm:$0xff]  ;;  %v11842_v4 = vld [vmem:[#allocation50_spill] sm:$0xff] }
 0x62c   :  { %v5502_v46 = vpop.f32.mrf.mxu1  ;;  %8747 = vmatmul.mubr.msk.bf16.gmra.mxu1 %vm1938_vm0, %v6313_v60 }
 0x62d   :  { %v5634_v1 = vadd.f32 %v5502_v46, %v5262_v20  ;;  %8750 = vmatprep.mubr.msk.bf16.mxu1 %vm8937_vm1, %v11668_v59  ;;  %6224 = vst.msk [vmem:[#allocation3 + $0x98] sm:$0xff] %vm2396_vm2, %v6175_v36  ;;  %v5268_v36 = vld [vmem:[#allocation3 + $0xe0] sm:$0xff] }
 0x62e   :  { %v8544_v61 = vpop.f32.mrf.mxu1  ;;  %v5804_v13 = vld [vmem:[#allocation3 + $0xa0] sm:$0xff] }
 0x62f   :  { %5683 = vst.msk [vmem:[#allocation3 + $0xb0] sm:$0xff] %vm2396_vm2, %v5634_v1  ;;  %v6176_v15 = vadd.f32 %v11832_v39, %v5804_v13  ;;  %v6283_v13 = vld [vmem:[#allocation2 + $0x106] sm:$0xff]  ;;  %v5269_v39 = vld [vmem:[#allocation3 + $0xe8] sm:$0xff] }
 0x630   :  { %v5505_v49 = vpop.f32.mrf.mxu1 }
 0x631   :  { %v5635_v24 = vadd.f32 %v5505_v49, %v5263_v3  ;;  %6225 = vst.msk [vmem:[#allocation3 + $0xa0] sm:$0xff] %vm2396_vm2, %v6176_v15  ;;  %v6282_v49 = vld [vmem:[#allocation2 + $0xfe] sm:$0xff] }
 0x632   :  { %v8545_v44 = vpop.f32.mrf.mxu1  ;;  %v5805_v10 = vld [vmem:[#allocation3 + $0xa8] sm:$0xff] }
 0x633   :  { %5684 = vst.msk [vmem:[#allocation3 + $0xb8] sm:$0xff] %vm2396_vm2, %v5635_v24  ;;  %v6177_v56 = vadd.f32 %v11833_v45, %v5805_v10  ;;  %v6317_v44 = vpack.c.bf16 %v6283_v13, %v6282_v49  ;;  %v11839_v10 = vld [vmem:[#allocation43_spill] sm:$0xff]  ;;  %v6289_v13 = vld [vmem:[#allocation2 + $0x136] sm:$0xff] }
 0x634   :  { %v5510_v28 = vpop.f32.mrf.mxu1  ;;  %8751 = vmatmul.mubr.msk.bf16.gmra.mxu1 %vm1938_vm0, %v6314_v55 }
 0x635   :  { %v5636_v63 = vadd.f32 %v5510_v28, %v5264_v30  ;;  %8754 = vmatprep.mubr.msk.bf16.mxu1 %vm8937_vm1, %v11668_v59  ;;  %6226 = vst.msk [vmem:[#allocation3 + $0xa8] sm:$0xff] %vm2396_vm2, %v6177_v56  ;;  %v5270_v56 = vld [vmem:[#allocation3 + $0xf0] sm:$0xff] }
 0x636   :  { %v8548_v29 = vpop.f32.mrf.mxu1  ;;  %v5806_v25 = vld [vmem:[#allocation3 + $0xb0] sm:$0xff] }
 0x637   :  { %5685 = vst.msk [vmem:[#allocation3 + $0xc0] sm:$0xff] %vm2396_vm2, %v5636_v63  ;;  %v6178_v41 = vadd.f32 %v11834_v27, %v5806_v25  ;;  %v6284_v25 = vld [vmem:[#allocation2 + $0x10e] sm:$0xff] }
 0x638   :  { %v5513_v32 = vpop.f32.mrf.mxu1  ;;  %v11840_v27 = vld [vmem:[#allocation11_spill] sm:$0xff] }
 0x639   :  { %v5637_v51 = vadd.f32 %v5513_v32, %v5265_v23  ;;  %6227 = vst.msk [vmem:[#allocation3 + $0xb0] sm:$0xff] %vm2396_vm2, %v6178_v41  ;;  %v5271_v23 = vld [vmem:[#allocation3 + $0xf8] sm:$0xff] }
 0x63a   :  { %v8549_v37 = vpop.f32.mrf.mxu1  ;;  %v5807_v62 = vld [vmem:[#allocation3 + $0xb8] sm:$0xff] }
 0x63b   :  { %5686 = vst.msk [vmem:[#allocation3 + $0xc8] sm:$0xff] %vm2396_vm2, %v5637_v51  ;;  %v6179_v31 = vadd.f32 %v11835_v12, %v5807_v62  ;;  %v6318_v37 = vpack.c.bf16 %v6285_v5, %v6284_v25  ;;  %v11841_v62 = vld [vmem:[#allocation77_spill] sm:$0xff]  ;;  %v11846_v25 = vld [vmem:[#allocation18_spill] sm:$0xff] }
 0x63c   :  { %v5518_v34 = vpop.f32.mrf.mxu1  ;;  %8755 = vmatmul.mubr.msk.bf16.gmra.mxu1 %vm1938_vm0, %v6315_v17 }
 0x63d   :  { %v5638_v6 = vadd.f32 %v5518_v34, %v5266_v58  ;;  %8758 = vmatprep.mubr.msk.bf16.mxu1 %vm8937_vm1, %v11668_v59  ;;  %6228 = vst.msk [vmem:[#allocation3 + $0xb8] sm:$0xff] %vm2396_vm2, %v6179_v31  ;;  %v5272_v31 = vld [vmem:[#allocation3 + $0x100] sm:$0xff] }
 0x63e   :  { %v8552_v52 = vpop.f32.mrf.mxu1  ;;  %v5808_v22 = vld [vmem:[#allocation3 + $0xc0] sm:$0xff] }
 0x63f   :  { %5687 = vst.msk [vmem:[#allocation3 + $0xd0] sm:$0xff] %vm2396_vm2, %v5638_v6  ;;  %v6180_v43 = vadd.f32 %v11836_v11, %v5808_v22  ;;  %v6287_v22 = vld [vmem:[#allocation2 + $0x126] sm:$0xff]  ;;  %v5273_v11 = vld [vmem:[#allocation3 + $0x108] sm:$0xff] }
 0x640   :  { %v5521_v54 = vpop.f32.mrf.mxu1 }
 0x641   :  { %v5639_v8 = vadd.f32 %v5521_v54, %v5267_v38  ;;  %6229 = vst.msk [vmem:[#allocation3 + $0xc0] sm:$0xff] %vm2396_vm2, %v6180_v43  ;;  %v6286_v54 = vld [vmem:[#allocation2 + $0x11e] sm:$0xff] }
 0x642   :  { %v8553_v18 = vpop.f32.mrf.mxu1  ;;  %v5809_v60 = vld [vmem:[#allocation3 + $0xc8] sm:$0xff] }
 0x643   :  { %5688 = vst.msk [vmem:[#allocation3 + $0xd8] sm:$0xff] %vm2396_vm2, %v5639_v8  ;;  %v6181_v57 = vadd.f32 %v11837_v9, %v5809_v60  ;;  %v6319_v18 = vpack.c.bf16 %v6287_v22, %v6286_v54  ;;  %v11843_v60 = vld [vmem:[#allocation17_spill] sm:$0xff] }
 0x644   :  { %v5526_v20 = vpop.f32.mrf.mxu1  ;;  %8759 = vmatmul.mubr.msk.bf16.gmra.mxu1 %vm1938_vm0, %v6316_v16  ;;  %v6293_v22 = vld [vmem:[#allocation2 + $0x156] sm:$0xff] }
 0x645   :  { %v5640_v46 = vadd.f32 %v5526_v20, %v5268_v36  ;;  %8762 = vmatprep.mubr.msk.bf16.mxu1 %vm8937_vm1, %v11668_v59  ;;  %6230 = vst.msk [vmem:[#allocation3 + $0xc8] sm:$0xff] %vm2396_vm2, %v6181_v57  ;;  %v5274_v57 = vld [vmem:[#allocation3 + $0x110] sm:$0xff] }
 0x646   :  { %v8556_v1 = vpop.f32.mrf.mxu1  ;;  %v5810_v61 = vld [vmem:[#allocation3 + $0xd0] sm:$0xff] }
 0x647   :  { %5689 = vst.msk [vmem:[#allocation3 + $0xe0] sm:$0xff] %vm2396_vm2, %v5640_v46  ;;  %v6182_v7 = vadd.f32 %v11838_v42, %v5810_v61  ;;  %v6288_v61 = vld [vmem:[#allocation2 + $0x12e] sm:$0xff] }
 0x648   :  { %v5529_v15 = vpop.f32.mrf.mxu1  ;;  %v11844_v42 = vld [vmem:[#allocation83_spill] sm:$0xff] }
 0x649   :  { %v5641_v3 = vadd.f32 %v5529_v15, %v5269_v39  ;;  %6231 = vst.msk [vmem:[#allocation3 + $0xd0] sm:$0xff] %vm2396_vm2, %v6182_v7  ;;  %v5275_v39 = vld [vmem:[#allocation3 + $0x118] sm:$0xff] }
 0x64a   :  { %v8557_v24 = vpop.f32.mrf.mxu1  ;;  %v5811_v55 = vld [vmem:[#allocation3 + $0xd8] sm:$0xff] }
 0x64b   :  { %5690 = vst.msk [vmem:[#allocation3 + $0xe8] sm:$0xff] %vm2396_vm2, %v5641_v3  ;;  %v6183_v45 = vadd.f32 %v11839_v10, %v5811_v55  ;;  %v6320_v24 = vpack.c.bf16 %v6289_v13, %v6288_v61  ;;  %v11845_v55 = vld [vmem:[#allocation45_spill] sm:$0xff]  ;;  %v5281_v61 = vld [vmem:[#allocation3 + $0x148] sm:$0xff] }
 0x64c   :  { %v5534_v30 = vpop.f32.mrf.mxu1  ;;  %8763 = vmatmul.mubr.msk.bf16.gmra.mxu1 %vm1938_vm0, %v6317_v44 }
 0x64d   :  { %v5642_v28 = vadd.f32 %v5534_v30, %v5270_v56  ;;  %8766 = vmatprep.mubr.msk.bf16.mxu1 %vm8937_vm1, %v11668_v59  ;;  %6232 = vst.msk [vmem:[#allocation3 + $0xd8] sm:$0xff] %vm2396_vm2, %v6183_v45  ;;  %v5276_v45 = vld [vmem:[#allocation3 + $0x120] sm:$0xff] }
 0x64e   :  { %v8560_v63 = vpop.f32.mrf.mxu1  ;;  %v5812_v29 = vld [vmem:[#allocation3 + $0xe0] sm:$0xff] }
 0x64f   :  { %5691 = vst.msk [vmem:[#allocation3 + $0xf0] sm:$0xff] %vm2396_vm2, %v5642_v28  ;;  %v6184_v41 = vadd.f32 %v11840_v27, %v5812_v29  ;;  %v6291_v29 = vld [vmem:[#allocation2 + $0x146] sm:$0xff]  ;;  %v5277_v27 = vld [vmem:[#allocation3 + $0x128] sm:$0xff] }
 0x650   :  { %v5537_v32 = vpop.f32.mrf.mxu1 }
 0x651   :  { %v5643_v51 = vadd.f32 %v5537_v32, %v5271_v23  ;;  %6233 = vst.msk [vmem:[#allocation3 + $0xe0] sm:$0xff] %vm2396_vm2, %v6184_v41  ;;  %v6290_v32 = vld [vmem:[#allocation2 + $0x13e] sm:$0xff] }
 0x652   :  { %v8561_v33 = vpop.f32.mrf.mxu1  ;;  %v5813_v17 = vld [vmem:[#allocation3 + $0xe8] sm:$0xff] }
 0x653   :  { %5692 = vst.msk [vmem:[#allocation3 + $0xf8] sm:$0xff] %vm2396_vm2, %v5643_v51  ;;  %v6185_v12 = vadd.f32 %v11841_v62, %v5813_v17  ;;  %v6321_v33 = vpack.c.bf16 %v6291_v29, %v6290_v32  ;;  %v11847_v17 = vld [vmem:[#allocation78_spill] sm:$0xff] }
 0x654   :  { %v5542_v58 = vpop.f32.mrf.mxu1  ;;  %8767 = vmatmul.mubr.msk.bf16.gmra.mxu1 %vm1938_vm0, %v6318_v37 }
 0x655   :  { %v5644_v34 = vadd.f32 %v5542_v58, %v5272_v31  ;;  %8770 = vmatprep.mubr.msk.bf16.mxu1 %vm8937_vm1, %v11668_v59  ;;  %6234 = vst.msk [vmem:[#allocation3 + $0xe8] sm:$0xff] %vm2396_vm2, %v6185_v12  ;;  %v5278_v12 = vld [vmem:[#allocation3 + $0x130] sm:$0xff] }
 0x656   :  { %v8564_v6 = vpop.f32.mrf.mxu1  ;;  %v5814_v52 = vld [vmem:[#allocation3 + $0xf0] sm:$0xff] }
 0x657   :  { %5693 = vst.msk [vmem:[#allocation3 + $0x100] sm:$0xff] %vm2396_vm2, %v5644_v34  ;;  %v6186_v21 = vadd.f32 %v11842_v4, %v5814_v52  ;;  %v6292_v52 = vld [vmem:[#allocation2 + $0x14e] sm:$0xff] }
 0x658   :  { %v5545_v43 = vpop.f32.mrf.mxu1  ;;  %v6322_v54 = vpack.c.bf16 %v6293_v22, %v6292_v52  ;;  %v5286_v22 = vld [vmem:[#allocation3 + $0x170] sm:$0xff] }
 0x659   :  { %v5645_v38 = vadd.f32 %v5545_v43, %v5273_v11  ;;  %6235 = vst.msk [vmem:[#allocation3 + $0xf0] sm:$0xff] %vm2396_vm2, %v6186_v21  ;;  %v5279_v21 = vld [vmem:[#allocation3 + $0x138] sm:$0xff] }
 0x65a   :  { %v8565_v8 = vpop.f32.mrf.mxu1  ;;  %v5815_v16 = vld [vmem:[#allocation3 + $0xf8] sm:$0xff] }
 0x65b   :  { %5694 = vst.msk [vmem:[#allocation3 + $0x108] sm:$0xff] %vm2396_vm2, %v5645_v38  ;;  %v6187_v9 = vadd.f32 %v11843_v60, %v5815_v16  ;;  %v5280_v60 = vld [vmem:[#allocation3 + $0x140] sm:$0xff] }
 0x65c   :  { %v5550_v36 = vpop.f32.mrf.mxu1  ;;  %8771 = vmatmul.mubr.msk.bf16.gmra.mxu1 %vm1938_vm0, %v6319_v18  ;;  %v11848_v18 = vld [vmem:[#allocation52_spill] sm:$0xff] }
 0x65d   :  { %v5646_v20 = vadd.f32 %v5550_v36, %v5274_v57  ;;  %8774 = vmatprep.mubr.msk.bf16.mxu1 %vm8937_vm1, %v11668_v59  ;;  %6236 = vst.msk [vmem:[#allocation3 + $0xf8] sm:$0xff] %vm2396_vm2, %v6187_v9 }
 0x65e   :  { %v8568_v46 = vpop.f32.mrf.mxu1  ;;  %v5816_v1 = vld [vmem:[#allocation3 + $0x100] sm:$0xff] }
 0x65f   :  { %5695 = vst.msk [vmem:[#allocation3 + $0x110] sm:$0xff] %vm2396_vm2, %v5646_v20  ;;  %v6188_v7 = vadd.f32 %v11844_v42, %v5816_v1  ;;  %v6295_v20 = vld [vmem:[#allocation2 + $0x166] sm:$0xff]  ;;  %v11849_v46 = vld [vmem:[#allocation20_spill] sm:$0xff] }
 0x660   :  { %v5553_v15 = vpop.f32.mrf.mxu1 }
 0x661   :  { %v5647_v3 = vadd.f32 %v5553_v15, %v5275_v39  ;;  %6237 = vst.msk [vmem:[#allocation3 + $0x100] sm:$0xff] %vm2396_vm2, %v6188_v7  ;;  %v6294_v7 = vld [vmem:[#allocation2 + $0x15e] sm:$0xff] }
 0x662   :  { %v8569_v49 = vpop.f32.mrf.mxu1  ;;  %v5817_v44 = vld [vmem:[#allocation3 + $0x108] sm:$0xff]  ;;  %v6323_v15 = vpack.c.bf16 %v6295_v20, %v6294_v7 }
 0x663   :  { %5696 = vst.msk [vmem:[#allocation3 + $0x118] sm:$0xff] %vm2396_vm2, %v5647_v3  ;;  %v6189_v10 = vadd.f32 %v11845_v55, %v5817_v44 }
 0x664   :  { %v5558_v56 = vpop.f32.mrf.mxu1  ;;  %8775 = vmatmul.mubr.msk.bf16.gmra.mxu1 %vm1938_vm0, %v6320_v24  ;;  %v5282_v24 = vld [vmem:[#allocation3 + $0x150] sm:$0xff] }
 0x665   :  { %v5648_v30 = vadd.f32 %v5558_v56, %v5276_v45  ;;  %8778 = vmatprep.mubr.msk.bf16.mxu1 %vm8937_vm1, %v11668_v59  ;;  %6238 = vst.msk [vmem:[#allocation3 + $0x108] sm:$0xff] %vm2396_vm2, %v6189_v10  ;;  %v6296_v56 = vld [vmem:[#allocation2 + $0x16e] sm:$0xff] }
 0x666   :  { %v8572_v28 = vpop.f32.mrf.mxu1  ;;  %v5818_v63 = vld [vmem:[#allocation3 + $0x110] sm:$0xff] }
 0x667   :  { %5697 = vst.msk [vmem:[#allocation3 + $0x120] sm:$0xff] %vm2396_vm2, %v5648_v30  ;;  %v6190_v5 = vadd.f32 %v11846_v25, %v5818_v63  ;;  %v6297_v30 = vld [vmem:[#allocation2 + $0x176] sm:$0xff]  ;;  %v5283_v63 = vld [vmem:[#allocation3 + $0x158] sm:$0xff] }
 0x668   :  { %v5561_v41 = vpop.f32.mrf.mxu1 }
 0x669   :  { %v5649_v23 = vadd.f32 %v5561_v41, %v5277_v27  ;;  %6239 = vst.msk [vmem:[#allocation3 + $0x110] sm:$0xff] %vm2396_vm2, %v6190_v5  ;;  %v6324_v5 = vpack.c.bf16 %v6297_v30, %v6296_v56 }
 0x66a   :  { %v8573_v51 = vpop.f32.mrf.mxu1  ;;  %v5819_v37 = vld [vmem:[#allocation3 + $0x118] sm:$0xff] }
 0x66b   :  { %5698 = vst.msk [vmem:[#allocation3 + $0x128] sm:$0xff] %vm2396_vm2, %v5649_v23  ;;  %v6191_v62 = vadd.f32 %v11847_v17, %v5819_v37  ;;  %v5284_v23 = vld [vmem:[#allocation3 + $0x160] sm:$0xff]  ;;  %v6298_v37 = vld [vmem:[#allocation2 + $0x17e] sm:$0xff] }
 0x66c   :  { %v5566_v31 = vpop.f32.mrf.mxu1  ;;  %8779 = vmatmul.mubr.msk.bf16.gmra.mxu1 %vm1938_vm0, %v6321_v33  ;;  %v6299_v17 = vld [vmem:[#allocation2 + $0x186] sm:$0xff] }
 0x66d   :  { %v5650_v58 = vadd.f32 %v5566_v31, %v5278_v12  ;;  %8782 = vmatprep.mubr.msk.bf16.mxu1 %vm8937_vm1, %v11668_v59  ;;  %6240 = vst.msk [vmem:[#allocation3 + $0x118] sm:$0xff] %vm2396_vm2, %v6191_v62  ;;  %v5285_v12 = vld [vmem:[#allocation3 + $0x168] sm:$0xff] }
 0x66e   :  { %v8576_v34 = vpop.f32.mrf.mxu1  ;;  %v5820_v6 = vld [vmem:[#allocation3 + $0x120] sm:$0xff] }
 0x66f   :  { %5699 = vst.msk [vmem:[#allocation3 + $0x130] sm:$0xff] %vm2396_vm2, %v5650_v58  ;;  %v6192_v4 = vadd.f32 %v11075_v35, %v5820_v6  ;;  %v6325_v34 = vpack.c.bf16 %v6299_v17, %v6298_v37 }
 0x670   :  { %v5569_v11 = vpop.f32.mrf.mxu1 }
 0x671   :  { %v5651_v43 = vadd.f32 %v5569_v11, %v5279_v21  ;;  %6241 = vst.msk [vmem:[#allocation3 + $0x120] sm:$0xff] %vm2396_vm2, %v6192_v4  ;;  %v6301_v11 = vld [vmem:[#allocation2 + $0x196] sm:$0xff] }
 0x672   :  { %v8577_v38 = vpop.f32.mrf.mxu1  ;;  %v5821_v8 = vld [vmem:[#allocation3 + $0x128] sm:$0xff] }
 0x673   :  { %5700 = vst.msk [vmem:[#allocation3 + $0x138] sm:$0xff] %vm2396_vm2, %v5651_v43  ;;  %v6193_v16 = vadd.f32 %v11848_v18, %v5821_v8  ;;  %v5287_v8 = vld [vmem:[#allocation3 + $0x178] sm:$0xff] }
 0x674   :  { %v5574_v9 = vpop.f32.mrf.mxu1  ;;  %8783 = vmatmul.mubr.msk.bf16.gmra.mxu1 %vm1938_vm0, %v6322_v54 }
 0x675   :  { %v5652_v57 = vadd.f32 %v5574_v9, %v5280_v60  ;;  %8786 = vmatprep.mubr.msk.bf16.mxu1 %vm8937_vm1, %v11668_v59  ;;  %6242 = vst.msk [vmem:[#allocation3 + $0x128] sm:$0xff] %vm2396_vm2, %v6193_v16 }
 0x676   :  { %v8580_v35 = vpop.f32.mrf.mxu1  ;;  %v5822_v36 = vld [vmem:[#allocation3 + $0x130] sm:$0xff] }
 0x677   :  { %5701 = vst.msk [vmem:[#allocation3 + $0x140] sm:$0xff] %vm2396_vm2, %v5652_v57  ;;  %v6194_v1 = vadd.f32 %v11849_v46, %v5822_v36  ;;  %v5288_v35 = vld [vmem:[#allocation3 + $0x180] sm:$0xff] }
 0x678   :  { %v5577_v13 = vpop.f32.mrf.mxu1 }
 0x679   :  { %v5653_v42 = vadd.f32 %v5577_v13, %v5281_v61  ;;  %6243 = vst.msk [vmem:[#allocation3 + $0x130] sm:$0xff] %vm2396_vm2, %v6194_v1 }
 0x67a   :  { %v8581_v39 = vpop.f32.mrf.mxu1  ;;  %v5823_v3 = vld [vmem:[#allocation3 + $0x138] sm:$0xff] }
 0x67b   :  { %5702 = vst.msk [vmem:[#allocation3 + $0x148] sm:$0xff] %vm2396_vm2, %v5653_v42  ;;  %v6195_v49 = vadd.f32 %v11098_v47, %v5823_v3 }
 0x67c   :  { %v5582_v44 = vpop.f32.mrf.mxu1  ;;  %8787 = vmatmul.mubr.msk.bf16.gmra.mxu1 %vm1938_vm0, %v6323_v15  ;;  %v6328_v15 = vld [vmem:[#allocation3] sm:$0xff] }
 0x67d   :  { %v5654_v55 = vadd.f32 %v5582_v44, %v5282_v24  ;;  %8790 = vmatprep.mubr.msk.bf16.mxu1 %vm8937_vm1, %v11668_v59  ;;  %6244 = vst.msk [vmem:[#allocation3 + $0x138] sm:$0xff] %vm2396_vm2, %v6195_v49  ;;  %v6329_v44 = vld [vmem:[#allocation3 + $0x8] sm:$0xff] }
 0x67e   :  { %v8584_v10 = vpop.f32.mrf.mxu1  ;;  %v5824_v45 = vld [vmem:[#allocation3 + $0x140] sm:$0xff] }
 0x67f   :  { %5703 = vst.msk [vmem:[#allocation3 + $0x150] sm:$0xff] %vm2396_vm2, %v5654_v55  ;;  %v6196_v28 = vadd.f32 %v11105_v14, %v5824_v45 }
 0x680   :  { %v5585_v47 = vpop.f32.mrf.mxu1 }
 0x681   :  { %v5655_v29 = vadd.f32 %v5585_v47, %v5283_v63  ;;  %6245 = vst.msk [vmem:[#allocation3 + $0x140] sm:$0xff] %vm2396_vm2, %v6196_v28  ;;  %v6331_v63 = vld [vmem:[#allocation3 + $0x18] sm:$0xff] }
 0x682   :  { %v8585_v25 = vpop.f32.mrf.mxu1  ;;  %v5825_v27 = vld [vmem:[#allocation3 + $0x148] sm:$0xff] }
 0x683   :  { %5704 = vst.msk [vmem:[#allocation3 + $0x158] sm:$0xff] %vm2396_vm2, %v5655_v29  ;;  %v6197_v41 = vadd.f32 %v11111_v26, %v5825_v27 }
 0x684   :  { %v5590_v32 = vpop.f32.mrf.mxu1  ;;  %8791 = vmatmul.mubr.msk.bf16.gmra.mxu1 %vm1938_vm0, %v6324_v5 }
 0x685   :  { %v5656_v51 = vadd.f32 %v5590_v32, %v5284_v23  ;;  %8794 = vmatprep.mubr.msk.bf16.mxu1 %vm8937_vm1, %v11668_v59  ;;  %6246 = vst.msk [vmem:[#allocation3 + $0x148] sm:$0xff] %vm2396_vm2, %v6197_v41  ;;  %v6333_v23 = vld [vmem:[#allocation3 + $0x28] sm:$0xff] }
 0x686   :  { %v8588_v14 = vpop.f32.mrf.mxu1  ;;  %v5826_v33 = vld [vmem:[#allocation3 + $0x150] sm:$0xff] }
 0x687   :  { %5705 = vst.msk [vmem:[#allocation3 + $0x160] sm:$0xff] %vm2396_vm2, %v5656_v51  ;;  %v6198_v62 = vadd.f32 %v11118_v19, %v5826_v33  ;;  %v6300_v19 = vld [vmem:[#allocation2 + $0x18e] sm:$0xff] }
 0x688   :  { %v5593_v26 = vpop.f32.mrf.mxu1  ;;  %v6326_v18 = vpack.c.bf16 %v6301_v11, %v6300_v19 }
 0x689   :  { %v5657_v31 = vadd.f32 %v5593_v26, %v5285_v12  ;;  %6247 = vst.msk [vmem:[#allocation3 + $0x150] sm:$0xff] %vm2396_vm2, %v6198_v62 }
 0x68a   :  { %v8589_v58 = vpop.f32.mrf.mxu1  ;;  %v5827_v6 = vld [vmem:[#allocation3 + $0x158] sm:$0xff] }
 0x68b   :  { %5706 = vst.msk [vmem:[#allocation3 + $0x168] sm:$0xff] %vm2396_vm2, %v5657_v31  ;;  %v6199_v52 = vadd.f32 %v11124_v50, %v5827_v6  ;;  %v6334_v31 = vld [vmem:[#allocation3 + $0x30] sm:$0xff] }
 0x68c   :  { %v5598_v4 = vpop.f32.mrf.mxu1  ;;  %8795 = vmatmul.mubr.msk.bf16.gmra.mxu1 %vm1938_vm0, %v6325_v34 }
 0x68d   :  { %v5658_v21 = vadd.f32 %v5598_v4, %v5286_v22  ;;  %8798 = vmatprep.mubr.msk.bf16.mxu1 %vm8937_vm1, %v11668_v59  ;;  %6248 = vst.msk [vmem:[#allocation3 + $0x158] sm:$0xff] %vm2396_vm2, %v6199_v52  ;;  %v6335_v4 = vld [vmem:[#allocation3 + $0x38] sm:$0xff] }
 0x68e   :  { %v8592_v43 = vpop.f32.mrf.mxu1  ;;  %v5828_v38 = vld [vmem:[#allocation3 + $0x160] sm:$0xff] }
 0x68f   :  { %5707 = vst.msk [vmem:[#allocation3 + $0x170] sm:$0xff] %vm2396_vm2, %v5658_v21  ;;  %v6200_v54 = vadd.f32 %v11131_v48, %v5828_v38  ;;  %v6302_v48 = vld [vmem:[#allocation2 + $0x19e] sm:$0xff]  ;;  %v6336_v43 = vld [vmem:[#allocation3 + $0x40] sm:$0xff] }
 0x690   :  { %v5601_v50 = vpop.f32.mrf.mxu1  ;;  %v6327_v42 = vpack.c.bf16 %v6302_v48, %v6302_v48 }
 0x691   :  { %v5659_v16 = vadd.f32 %v5601_v50, %v5287_v8  ;;  %6249 = vst.msk [vmem:[#allocation3 + $0x160] sm:$0xff] %vm2396_vm2, %v6200_v54 }
 0x692   :  { %v8593_v60 = vpop.f32.mrf.mxu1  ;;  %v5829_v9 = vld [vmem:[#allocation3 + $0x168] sm:$0xff] }
 0x693   :  { %5708 = vst.msk [vmem:[#allocation3 + $0x178] sm:$0xff] %vm2396_vm2, %v5659_v16  ;;  %v6201_v57 = vadd.f32 %v11137_v40, %v5829_v9 }
 0x694   :  { %v5606_v36 = vpop.f32.mrf.mxu1  ;;  %8799 = vmatmul.mubr.msk.bf16.gmra.mxu1 %vm1938_vm0, %v6326_v18 }
 0x695   :  { %v5660_v20 = vadd.f32 %v5606_v36, %v5288_v35  ;;  %8802 = vmatprep.mubr.msk.bf16.mxu1 %vm8937_vm1, %v11668_v59  ;;  %6250 = vst.msk [vmem:[#allocation3 + $0x168] sm:$0xff] %vm2396_vm2, %v6201_v57  ;;  %v6337_v35 = vld [vmem:[#allocation3 + $0x48] sm:$0xff] }
 0x696   :  { %v8596_v46 = vpop.f32.mrf.mxu1  ;;  %v5830_v1 = vld [vmem:[#allocation3 + $0x170] sm:$0xff] }
 0x697   :  { %5709 = vst.msk [vmem:[#allocation3 + $0x180] sm:$0xff] %vm2396_vm2, %v5660_v20  ;;  %v6202_v61 = vadd.f32 %v11313_v2, %v5830_v1 }
 0x698   :  { %v5609_v13 = vpop.f32.mrf.mxu1 }
 0x699   :  { %6251 = vst.msk [vmem:[#allocation3 + $0x170] sm:$0xff] %vm2396_vm2, %v6202_v61  ;;  %v6338_v61 = vld [vmem:[#allocation3 + $0x50] sm:$0xff] }
 0x69a   :  { %v8597_v40 = vpop.f32.mrf.mxu1  ;;  %v5831_v7 = vld [vmem:[#allocation3 + $0x178] sm:$0xff] }
 0x69b   :  { %v6203_v39 = vadd.f32 %v11321_v0, %v5831_v7  ;;  %v6330_v0 = vld [vmem:[#allocation3 + $0x10] sm:$0xff]  ;;  %v6339_v7 = vld [vmem:[#allocation3 + $0x58] sm:$0xff] }
 0x69c   :  { %v6502_v3 = vpop.f32.mrf.mxu1  ;;  %8803 = vmatmul.mubr.msk.bf16.gmra.mxu1 %vm1938_vm0, %v6327_v42 }
 0x69d   :  { %6252 = vst.msk [vmem:[#allocation3 + $0x178] sm:$0xff] %vm2396_vm2, %v6203_v39  ;;  %v6700_v59 = vadd.f32 %v6502_v3, %v6328_v15 }
 0x69e   :  { %v5832_v49 = vld [vmem:[#allocation3 + $0x180] sm:$0xff]  ;;  %v8708_v24 = vpop.f32.mrf.mxu1 }
 0x69f   :  { %6749 = vst.msk [vmem:[#allocation3] sm:$0xff] %vm2396_vm2, %v6700_v59  ;;  %v6204_v2 = vadd.f32 %v11326_v53, %v5832_v49  ;;  %v6332_v53 = vld [vmem:[#allocation3 + $0x20] sm:$0xff] }
 0x6a0   :  { %v6505_v55 = vpop.f32.mrf.mxu1  ;;  %v6340_v59 = vld [vmem:[#allocation3 + $0x60] sm:$0xff] }
 0x6a1   :  { %6253 = vst.msk [vmem:[#allocation3 + $0x180] sm:$0xff] %vm2396_vm2, %v6204_v2  ;;  %v6701_v10 = vadd.f32 %v6505_v55, %v6329_v44 }
 0x6a2   :  { %v8709_v45 = vpop.f32.mrf.mxu1 }
 0x6a3   :  { %6750 = vst.msk [vmem:[#allocation3 + $0x8] sm:$0xff] %vm2396_vm2, %v6701_v10 }
 0x6a4   :  { %v6510_v56 = vpop.f32.mrf.mxu1 }
 0x6a5   :  { %v6702_v30 = vadd.f32 %v6510_v56, %v6330_v0 }
 0x6a6   :  { %v8712_v28 = vpop.f32.mrf.mxu1 }
 0x6a7   :  { %6751 = vst.msk [vmem:[#allocation3 + $0x10] sm:$0xff] %vm2396_vm2, %v6702_v30  ;;  %v6341_v30 = vld [vmem:[#allocation3 + $0x68] sm:$0xff] }
 0x6a8   :  { %v6513_v47 = vpop.f32.mrf.mxu1 }
 0x6a9   :  { %v6703_v29 = vadd.f32 %v6513_v47, %v6331_v63 }
 0x6aa   :  { %v8713_v25 = vpop.f32.mrf.mxu1  ;;  %v6798_v32 = vld [vmem:[#allocation3] ss:$2 sm:$0x3f]  ;;  %v6800_v51 = vld [vmem:[#allocation3 + $0x1] ss:$2 sm:$0x3f] }
 0x6ab   :  { %6752 = vst.msk [vmem:[#allocation3 + $0x18] sm:$0xff] %vm2396_vm2, %v6703_v29  ;;  %v6805_v12 = vmax.f32 %v6798_v32, %v6800_v51 }
 0x6ac   :  { %v6518_v5 = vpop.f32.mrf.mxu1 }
 0x6ad   :  { %v6704_v27 = vadd.f32 %v6518_v5, %v6332_v53  ;;  %v6342_v53 = vld [vmem:[#allocation3 + $0x70] sm:$0xff] }
 0x6ae   :  { %v8716_v41 = vpop.f32.mrf.mxu1 }
 0x6af   :  { %6753 = vst.msk [vmem:[#allocation3 + $0x20] sm:$0xff] %vm2396_vm2, %v6704_v27 }
 0x6b0   :  { %v6521_v14 = vpop.f32.mrf.mxu1 }
 0x6b1   :  { %v6705_v33 = vadd.f32 %v6521_v14, %v6333_v23  ;;  %v6343_v23 = vld [vmem:[#allocation3 + $0x78] sm:$0xff] }
 0x6b2   :  { %v6802_v37 = vld [vmem:[#allocation3 + $0xe] ss:$2 sm:$0x3f]  ;;  %v6804_v17 = vld [vmem:[#allocation3 + $0xf] ss:$2 sm:$0x3f]  ;;  %v8717_v62 = vpop.f32.mrf.mxu1 }
 0x6b3   :  { %v6806_v26 = vmax.f32 %v6802_v37, %v6804_v17  ;;  %6754 = vst.msk [vmem:[#allocation3 + $0x28] sm:$0xff] %vm2396_vm2, %v6705_v33 }
 0x6b4   :  { %v6526_v58 = vpop.f32.mrf.mxu1 }
 0x6b5   :  { %v6807_v34 = vmax.f32 %v6805_v12, %v6806_v26  ;;  %v6706_v6 = vadd.f32 %v6526_v58, %v6334_v31  ;;  %v6344_v31 = vld [vmem:[#allocation3 + $0x80] sm:$0xff] }
 0x6b6   :  { %v8720_v52 = vpop.f32.mrf.mxu1  ;;  %v6812_v38 = vld [vmem:[#allocation3 + $0x1c] ss:$2 sm:$0x3f]  ;;  %v6814_v54 = vld [vmem:[#allocation3 + $0x1d] ss:$2 sm:$0x3f] }
 0x6b7   :  { %v6808_v22 = vmax.f32 %v6807_v34, 0.0  ;;  %6755 = vst.msk [vmem:[#allocation3 + $0x30] sm:$0xff] %vm2396_vm2, %v6706_v6  ;;  %v6819_v9 = vmax.f32 %v6812_v38, %v6814_v54 }
 0x6b8   :  { %v6529_v21 = vpop.f32.mrf.mxu1 }
 0x6b9   :  { %6810 = vst.msk [vmem:[%s11570_s5] sm:$0x3f] %vm6809_vm3, %v6808_v22  ;;  %v6707_v19 = vadd.f32 %v6529_v21, %v6335_v4  ;;  %v6345_v4 = vld [vmem:[#allocation3 + $0x88] sm:$0xff] }
 0x6ba   :  { %v8721_v11 = vpop.f32.mrf.mxu1 }
 0x6bb   :  { %6756 = vst.msk [vmem:[#allocation3 + $0x38] sm:$0xff] %vm2396_vm2, %v6707_v19 }
 0x6bc   :  { %v6534_v8 = vpop.f32.mrf.mxu1 }
 0x6bd   :  { %v6708_v50 = vadd.f32 %v6534_v8, %v6336_v43  ;;  %v6346_v43 = vld [vmem:[#allocation3 + $0x90] sm:$0xff] }
 0x6be   :  { %v6816_v18 = vld [vmem:[#allocation3 + $0x2a] ss:$2 sm:$0x3f]  ;;  %v6818_v16 = vld [vmem:[#allocation3 + $0x2b] ss:$2 sm:$0x3f]  ;;  %v8724_v60 = vpop.f32.mrf.mxu1 }
 0x6bf   :  { %v6820_v57 = vmax.f32 %v6816_v18, %v6818_v16  ;;  %6757 = vst.msk [vmem:[#allocation3 + $0x40] sm:$0xff] %vm2396_vm2, %v6708_v50  ;;  %v6347_v50 = vld [vmem:[#allocation3 + $0x98] sm:$0xff] }
 0x6c0   :  { %v6537_v36 = vpop.f32.mrf.mxu1 }
 0x6c1   :  { %v6821_v20 = vmax.f32 %v6819_v9, %v6820_v57  ;;  %v6709_v48 = vadd.f32 %v6537_v36, %v6337_v35 }
 0x6c2   :  { %v8725_v46 = vpop.f32.mrf.mxu1 }
 0x6c3   :  { %v6822_v1 = vmax.f32 %v6821_v20, 0.0  ;;  %6758 = vst.msk [vmem:[#allocation3 + $0x48] sm:$0xff] %vm2396_vm2, %v6709_v48  ;;  %v6348_v46 = vld [vmem:[#allocation3 + $0xa0] sm:$0xff] }
 0x6c4   :  { %v6542_v13 = vpop.f32.mrf.mxu1 }
 0x6c5   :  { %6823 = vst.msk [vmem:[%s11570_s5 + $0x6] sm:$0x3f] %vm6809_vm3, %v6822_v1  ;;  %v6710_v42 = vadd.f32 %v6542_v13, %v6338_v61 }
 0x6c6   :  { %v8728_v40 = vpop.f32.mrf.mxu1  ;;  %v6825_v49 = vld [vmem:[#allocation3 + $0x38] ss:$2 sm:$0x3f]  ;;  %v6827_v24 = vld [vmem:[#allocation3 + $0x39] ss:$2 sm:$0x3f] }
 0x6c7   :  { %6759 = vst.msk [vmem:[#allocation3 + $0x50] sm:$0xff] %vm2396_vm2, %v6710_v42  ;;  %v6832_v0 = vmax.f32 %v6825_v49, %v6827_v24 }
 0x6c8   :  { %v6545_v39 = vpop.f32.mrf.mxu1 }
 0x6c9   :  { %v6711_v15 = vadd.f32 %v6545_v39, %v6339_v7  ;;  %v6349_v7 = vld [vmem:[#allocation3 + $0xa8] sm:$0xff] }
 0x6ca   :  { %v8729_v3 = vpop.f32.mrf.mxu1 }
 0x6cb   :  { %6760 = vst.msk [vmem:[#allocation3 + $0x58] sm:$0xff] %vm2396_vm2, %v6711_v15 }
 0x6cc   :  { %v6550_v2 = vpop.f32.mrf.mxu1 }
 0x6cd   :  { %v6712_v44 = vadd.f32 %v6550_v2, %v6340_v59  ;;  %v6350_v59 = vld [vmem:[#allocation3 + $0xb0] sm:$0xff] }
 0x6ce   :  { %v6829_v55 = vld [vmem:[#allocation3 + $0x46] ss:$2 sm:$0x3f]  ;;  %v6831_v10 = vld [vmem:[#allocation3 + $0x47] ss:$2 sm:$0x3f]  ;;  %v8732_v45 = vpop.f32.mrf.mxu1 }
 0x6cf   :  { %v6833_v56 = vmax.f32 %v6829_v55, %v6831_v10  ;;  %6761 = vst.msk [vmem:[#allocation3 + $0x60] sm:$0xff] %vm2396_vm2, %v6712_v44 }
 0x6d0   :  { %v6553_v28 = vpop.f32.mrf.mxu1 }
 0x6d1   :  { %v6834_v63 = vmax.f32 %v6832_v0, %v6833_v56  ;;  %v6713_v47 = vadd.f32 %v6553_v28, %v6341_v30  ;;  %v6351_v30 = vld [vmem:[#allocation3 + $0xb8] sm:$0xff] }
 0x6d2   :  { %v8733_v29 = vpop.f32.mrf.mxu1  ;;  %v6838_v32 = vld [vmem:[#allocation3 + $0x54] ss:$2 sm:$0x3f]  ;;  %v6840_v51 = vld [vmem:[#allocation3 + $0x55] ss:$2 sm:$0x3f] }
 0x6d3   :  { %v6835_v25 = vmax.f32 %v6834_v63, 0.0  ;;  %6762 = vst.msk [vmem:[#allocation3 + $0x68] sm:$0xff] %vm2396_vm2, %v6713_v47  ;;  %v6845_v12 = vmax.f32 %v6838_v32, %v6840_v51 }
 0x6d4   :  { %v6558_v5 = vpop.f32.mrf.mxu1 }
 0x6d5   :  { %6836 = vst.msk [vmem:[%s11570_s5 + $0xc] sm:$0x3f] %vm6809_vm3, %v6835_v25  ;;  %v6714_v27 = vadd.f32 %v6558_v5, %v6342_v53  ;;  %v6352_v53 = vld [vmem:[#allocation3 + $0xc0] sm:$0xff] }
 0x6d6   :  { %v8736_v41 = vpop.f32.mrf.mxu1 }
 0x6d7   :  { %6763 = vst.msk [vmem:[#allocation3 + $0x70] sm:$0xff] %vm2396_vm2, %v6714_v27 }
 0x6d8   :  { %v6561_v14 = vpop.f32.mrf.mxu1 }
 0x6d9   :  { %v6715_v33 = vadd.f32 %v6561_v14, %v6343_v23  ;;  %v6353_v23 = vld [vmem:[#allocation3 + $0xc8] sm:$0xff] }
 0x6da   :  { %v6842_v37 = vld [vmem:[#allocation3 + $0x62] ss:$2 sm:$0x3f]  ;;  %v6844_v17 = vld [vmem:[#allocation3 + $0x63] ss:$2 sm:$0x3f]  ;;  %v8737_v62 = vpop.f32.mrf.mxu1 }
 0x6db   :  { %v6846_v26 = vmax.f32 %v6842_v37, %v6844_v17  ;;  %6764 = vst.msk [vmem:[#allocation3 + $0x78] sm:$0xff] %vm2396_vm2, %v6715_v33  ;;  %v6354_v33 = vld [vmem:[#allocation3 + $0xd0] sm:$0xff] }
 0x6dc   :  { %v6566_v58 = vpop.f32.mrf.mxu1 }
 0x6dd   :  { %v6847_v34 = vmax.f32 %v6845_v12, %v6846_v26  ;;  %v6716_v6 = vadd.f32 %v6566_v58, %v6344_v31  ;;  %v6355_v12 = vld [vmem:[#allocation3 + $0xd8] sm:$0xff] }
 0x6de   :  { %v8740_v52 = vpop.f32.mrf.mxu1 }
 0x6df   :  { %v6848_v22 = vmax.f32 %v6847_v34, 0.0  ;;  %6765 = vst.msk [vmem:[#allocation3 + $0x80] sm:$0xff] %vm2396_vm2, %v6716_v6  ;;  %v6356_v34 = vld [vmem:[#allocation3 + $0xe0] sm:$0xff] }
 0x6e0   :  { %v6569_v21 = vpop.f32.mrf.mxu1 }
 0x6e1   :  { %6849 = vst.msk [vmem:[%s11570_s5 + $0x12] sm:$0x3f] %vm6809_vm3, %v6848_v22  ;;  %v6717_v19 = vadd.f32 %v6569_v21, %v6345_v4  ;;  %v6357_v4 = vld [vmem:[#allocation3 + $0xe8] sm:$0xff] }
 0x6e2   :  { %v8741_v11 = vpop.f32.mrf.mxu1  ;;  %v6851_v18 = vld [vmem:[#allocation3 + $0x70] ss:$2 sm:$0x3f]  ;;  %v6853_v16 = vld [vmem:[#allocation3 + $0x71] ss:$2 sm:$0x3f] }
 0x6e3   :  { %6766 = vst.msk [vmem:[#allocation3 + $0x88] sm:$0xff] %vm2396_vm2, %v6717_v19  ;;  %v6858_v20 = vmax.f32 %v6851_v18, %v6853_v16  ;;  %v6358_v16 = vld [vmem:[#allocation3 + $0xf0] sm:$0xff] }
 0x6e4   :  { %v6574_v38 = vpop.f32.mrf.mxu1 }
 0x6e5   :  { %v6718_v54 = vadd.f32 %v6574_v38, %v6346_v43 }
 0x6e6   :  { %v8744_v8 = vpop.f32.mrf.mxu1 }
 0x6e7   :  { %6767 = vst.msk [vmem:[#allocation3 + $0x90] sm:$0xff] %vm2396_vm2, %v6718_v54 }
 0x6e8   :  { %v6577_v60 = vpop.f32.mrf.mxu1 }
 0x6e9   :  { %v6719_v9 = vadd.f32 %v6577_v60, %v6347_v50 }
 0x6ea   :  { %v6855_v57 = vld [vmem:[#allocation3 + $0x7e] ss:$2 sm:$0x3f]  ;;  %v6857_v35 = vld [vmem:[#allocation3 + $0x7f] ss:$2 sm:$0x3f]  ;;  %v8745_v36 = vpop.f32.mrf.mxu1 }
 0x6eb   :  { %v6859_v48 = vmax.f32 %v6855_v57, %v6857_v35  ;;  %6768 = vst.msk [vmem:[#allocation3 + $0x98] sm:$0xff] %vm2396_vm2, %v6719_v9 }
 0x6ec   :  { %v6582_v1 = vpop.f32.mrf.mxu1 }
 0x6ed   :  { %v6860_v61 = vmax.f32 %v6858_v20, %v6859_v48  ;;  %v6720_v13 = vadd.f32 %v6582_v1, %v6348_v46  ;;  %v6359_v20 = vld [vmem:[#allocation3 + $0xf8] sm:$0xff] }
 0x6ee   :  { %v8748_v42 = vpop.f32.mrf.mxu1  ;;  %v6864_v49 = vld [vmem:[#allocation3 + $0x8c] ss:$2 sm:$0x3f]  ;;  %v6866_v24 = vld [vmem:[#allocation3 + $0x8d] ss:$2 sm:$0x3f] }
 0x6ef   :  { %v6861_v40 = vmax.f32 %v6860_v61, 0.0  ;;  %6769 = vst.msk [vmem:[#allocation3 + $0xa0] sm:$0xff] %vm2396_vm2, %v6720_v13  ;;  %v6871_v0 = vmax.f32 %v6864_v49, %v6866_v24  ;;  %v6360_v61 = vld [vmem:[#allocation3 + $0x100] sm:$0xff] }
 0x6f0   :  { %v6585_v39 = vpop.f32.mrf.mxu1 }
 0x6f1   :  { %6862 = vst.msk [vmem:[%s11570_s5 + $0x18] sm:$0x3f] %vm6809_vm3, %v6861_v40  ;;  %v6721_v15 = vadd.f32 %v6585_v39, %v6349_v7  ;;  %v6361_v7 = vld [vmem:[#allocation3 + $0x108] sm:$0xff] }
 0x6f2   :  { %v8749_v3 = vpop.f32.mrf.mxu1 }
 0x6f3   :  { %6770 = vst.msk [vmem:[#allocation3 + $0xa8] sm:$0xff] %vm2396_vm2, %v6721_v15 }
 0x6f4   :  { %v6590_v2 = vpop.f32.mrf.mxu1 }
 0x6f5   :  { %v6722_v44 = vadd.f32 %v6590_v2, %v6350_v59 }
 0x6f6   :  { %v6868_v55 = vld [vmem:[#allocation3 + $0x9a] ss:$2 sm:$0x3f]  ;;  %v6870_v10 = vld [vmem:[#allocation3 + $0x9b] ss:$2 sm:$0x3f]  ;;  %v8752_v45 = vpop.f32.mrf.mxu1 }
 0x6f7   :  { %v6872_v56 = vmax.f32 %v6868_v55, %v6870_v10  ;;  %6771 = vst.msk [vmem:[#allocation3 + $0xb0] sm:$0xff] %vm2396_vm2, %v6722_v44  ;;  %v6362_v10 = vld [vmem:[#allocation3 + $0x110] sm:$0xff] }
 0x6f8   :  { %v6593_v28 = vpop.f32.mrf.mxu1 }
 0x6f9   :  { %v6873_v63 = vmax.f32 %v6871_v0, %v6872_v56  ;;  %v6723_v47 = vadd.f32 %v6593_v28, %v6351_v30 }
 0x6fa   :  { %v8753_v29 = vpop.f32.mrf.mxu1 }
 0x6fb   :  { %v6874_v25 = vmax.f32 %v6873_v63, 0.0  ;;  %6772 = vst.msk [vmem:[#allocation3 + $0xb8] sm:$0xff] %vm2396_vm2, %v6723_v47  ;;  %v6363_v63 = vld [vmem:[#allocation3 + $0x118] sm:$0xff] }
 0x6fc   :  { %v6598_v5 = vpop.f32.mrf.mxu1 }
 0x6fd   :  { %6875 = vst.msk [vmem:[%s11570_s5 + $0x1e] sm:$0x3f] %vm6809_vm3, %v6874_v25  ;;  %v6724_v27 = vadd.f32 %v6598_v5, %v6352_v53  ;;  %v6364_v53 = vld [vmem:[#allocation3 + $0x120] sm:$0xff] }
 0x6fe   :  { %v8756_v41 = vpop.f32.mrf.mxu1 }
 0x6ff   :  { %6773 = vst.msk [vmem:[#allocation3 + $0xc0] sm:$0xff] %vm2396_vm2, %v6724_v27 }
 0x700   :  { %v6601_v32 = vpop.f32.mrf.mxu1 }
 0x701   :  { %v6725_v51 = vadd.f32 %v6601_v32, %v6353_v23 }
 0x702   :  { %v8757_v14 = vpop.f32.mrf.mxu1 }
 0x703   :  { %6774 = vst.msk [vmem:[#allocation3 + $0xc8] sm:$0xff] %vm2396_vm2, %v6725_v51 }
 0x704   :  { %v6606_v37 = vpop.f32.mrf.mxu1 }
 0x705   :  { %v6726_v17 = vadd.f32 %v6606_v37, %v6354_v33 }
 0x706   :  { %v8760_v62 = vpop.f32.mrf.mxu1 }
 0x707   :  { %6775 = vst.msk [vmem:[#allocation3 + $0xd0] sm:$0xff] %vm2396_vm2, %v6726_v17  ;;  %v6365_v17 = vld [vmem:[#allocation3 + $0x128] sm:$0xff] }
 0x708   :  { %v6609_v26 = vpop.f32.mrf.mxu1 }
 0x709   :  { %v6727_v31 = vadd.f32 %v6609_v26, %v6355_v12 }
 0x70a   :  { %v8761_v58 = vpop.f32.mrf.mxu1  ;;  %v6877_v21 = vld [vmem:[#allocation3 + $0xc4] ss:$2 sm:$0x3f]  ;;  %v6879_v19 = vld [vmem:[#allocation3 + $0xc5] ss:$2 sm:$0x3f] }
 0x70b   :  { %6776 = vst.msk [vmem:[#allocation3 + $0xd8] sm:$0xff] %vm2396_vm2, %v6727_v31  ;;  %v6884_v50 = vmax.f32 %v6877_v21, %v6879_v19 }
 0x70c   :  { %v6614_v6 = vpop.f32.mrf.mxu1 }
 0x70d   :  { %v6728_v52 = vadd.f32 %v6614_v6, %v6356_v34  ;;  %v6366_v34 = vld [vmem:[#allocation3 + $0x130] sm:$0xff] }
 0x70e   :  { %v8764_v22 = vpop.f32.mrf.mxu1 }
 0x70f   :  { %6777 = vst.msk [vmem:[#allocation3 + $0xe0] sm:$0xff] %vm2396_vm2, %v6728_v52 }
 0x710   :  { %v6617_v11 = vpop.f32.mrf.mxu1 }
 0x711   :  { %v6729_v43 = vadd.f32 %v6617_v11, %v6357_v4  ;;  %v6367_v4 = vld [vmem:[#allocation3 + $0x138] sm:$0xff] }
 0x712   :  { %v6881_v38 = vld [vmem:[#allocation3 + $0xd2] ss:$2 sm:$0x3f]  ;;  %v6883_v54 = vld [vmem:[#allocation3 + $0xd3] ss:$2 sm:$0x3f]  ;;  %v8765_v8 = vpop.f32.mrf.mxu1 }
 0x713   :  { %v6885_v18 = vmax.f32 %v6881_v38, %v6883_v54  ;;  %6778 = vst.msk [vmem:[#allocation3 + $0xe8] sm:$0xff] %vm2396_vm2, %v6729_v43  ;;  %v6368_v43 = vld [vmem:[#allocation3 + $0x140] sm:$0xff] }
 0x714   :  { %v6622_v60 = vpop.f32.mrf.mxu1 }
 0x715   :  { %v6886_v9 = vmax.f32 %v6884_v50, %v6885_v18  ;;  %v6730_v57 = vadd.f32 %v6622_v60, %v6358_v16 }
 0x716   :  { %v8768_v35 = vpop.f32.mrf.mxu1 }
 0x717   :  { %v6887_v36 = vmax.f32 %v6886_v9, 0.0  ;;  %6779 = vst.msk [vmem:[#allocation3 + $0xf0] sm:$0xff] %vm2396_vm2, %v6730_v57  ;;  %v6369_v35 = vld [vmem:[#allocation3 + $0x148] sm:$0xff] }
 0x718   :  { %v6625_v48 = vpop.f32.mrf.mxu1 }
 0x719   :  { %6888 = vst.msk [vmem:[%s11570_s5 + $0x24] sm:$0x3f] %vm6809_vm3, %v6887_v36  ;;  %v6731_v46 = vadd.f32 %v6625_v48, %v6359_v20 }
 0x71a   :  { %v8769_v1 = vpop.f32.mrf.mxu1  ;;  %v6890_v39 = vld [vmem:[#allocation3 + $0xe0] ss:$2 sm:$0x3f]  ;;  %v6892_v15 = vld [vmem:[#allocation3 + $0xe1] ss:$2 sm:$0x3f] }
 0x71b   :  { %6780 = vst.msk [vmem:[#allocation3 + $0xf8] sm:$0xff] %vm2396_vm2, %v6731_v46  ;;  %v6897_v44 = vmax.f32 %v6890_v39, %v6892_v15 }
 0x71c   :  { %v6630_v13 = vpop.f32.mrf.mxu1 }
 0x71d   :  { %v6732_v42 = vadd.f32 %v6630_v13, %v6360_v61  ;;  %v6370_v61 = vld [vmem:[#allocation3 + $0x150] sm:$0xff] }
 0x71e   :  { %v8772_v40 = vpop.f32.mrf.mxu1 }
 0x71f   :  { %6781 = vst.msk [vmem:[#allocation3 + $0x100] sm:$0xff] %vm2396_vm2, %v6732_v42 }
 0x720   :  { %v6633_v3 = vpop.f32.mrf.mxu1 }
 0x721   :  { %v6733_v59 = vadd.f32 %v6633_v3, %v6361_v7  ;;  %v6371_v7 = vld [vmem:[#allocation3 + $0x158] sm:$0xff] }
 0x722   :  { %v6894_v49 = vld [vmem:[#allocation3 + $0xee] ss:$2 sm:$0x3f]  ;;  %v6896_v24 = vld [vmem:[#allocation3 + $0xef] ss:$2 sm:$0x3f]  ;;  %v8773_v2 = vpop.f32.mrf.mxu1 }
 0x723   :  { %v6898_v55 = vmax.f32 %v6894_v49, %v6896_v24  ;;  %6782 = vst.msk [vmem:[#allocation3 + $0x108] sm:$0xff] %vm2396_vm2, %v6733_v59 }
 0x724   :  { %v6638_v45 = vpop.f32.mrf.mxu1 }
 0x725   :  { %v6899_v0 = vmax.f32 %v6897_v44, %v6898_v55  ;;  %v6734_v56 = vadd.f32 %v6638_v45, %v6362_v10  ;;  %v6372_v10 = vld [vmem:[#allocation3 + $0x160] sm:$0xff] }
 0x726   :  { %v8776_v30 = vpop.f32.mrf.mxu1  ;;  %v6903_v5 = vld [vmem:[#allocation3 + $0xfc] ss:$2 sm:$0x3f]  ;;  %v6905_v27 = vld [vmem:[#allocation3 + $0xfd] ss:$2 sm:$0x3f] }
 0x727   :  { %v6900_v28 = vmax.f32 %v6899_v0, 0.0  ;;  %6783 = vst.msk [vmem:[#allocation3 + $0x110] sm:$0xff] %vm2396_vm2, %v6734_v56  ;;  %v6910_v33 = vmax.f32 %v6903_v5, %v6905_v27 }
 0x728   :  { %v6641_v47 = vpop.f32.mrf.mxu1 }
 0x729   :  { %6901 = vst.msk [vmem:[%s11570_s5 + $0x2a] sm:$0x3f] %vm6809_vm3, %v6900_v28  ;;  %v6735_v29 = vadd.f32 %v6641_v47, %v6363_v63  ;;  %v6373_v63 = vld [vmem:[#allocation3 + $0x168] sm:$0xff] }
 0x72a   :  { %v8777_v25 = vpop.f32.mrf.mxu1 }
 0x72b   :  { %6784 = vst.msk [vmem:[#allocation3 + $0x118] sm:$0xff] %vm2396_vm2, %v6735_v29 }
 0x72c   :  { %v6646_v41 = vpop.f32.mrf.mxu1 }
 0x72d   :  { %v6736_v23 = vadd.f32 %v6646_v41, %v6364_v53  ;;  %v6374_v53 = vld [vmem:[#allocation3 + $0x170] sm:$0xff] }
 0x72e   :  { %v6907_v32 = vld [vmem:[#allocation3 + $0x10a] ss:$2 sm:$0x3f]  ;;  %v6909_v51 = vld [vmem:[#allocation3 + $0x10b] ss:$2 sm:$0x3f]  ;;  %v8780_v14 = vpop.f32.mrf.mxu1 }
 0x72f   :  { %v6911_v37 = vmax.f32 %v6907_v32, %v6909_v51  ;;  %6785 = vst.msk [vmem:[#allocation3 + $0x120] sm:$0xff] %vm2396_vm2, %v6736_v23  ;;  %v6375_v23 = vld [vmem:[#allocation3 + $0x178] sm:$0xff] }
 0x730   :  { %v6649_v62 = vpop.f32.mrf.mxu1 }
 0x731   :  { %v6912_v12 = vmax.f32 %v6910_v33, %v6911_v37  ;;  %v6737_v26 = vadd.f32 %v6649_v62, %v6365_v17 }
 0x732   :  { %v8781_v31 = vpop.f32.mrf.mxu1 }
 0x733   :  { %v6913_v58 = vmax.f32 %v6912_v12, 0.0  ;;  %6786 = vst.msk [vmem:[#allocation3 + $0x128] sm:$0xff] %vm2396_vm2, %v6737_v26  ;;  %v6376_v31 = vld [vmem:[#allocation3 + $0x180] sm:$0xff] }
 0x734   :  { %v6654_v6 = vpop.f32.mrf.mxu1 }
 0x735   :  { %6914 = vst.msk [vmem:[%s11570_s5 + $0x30] sm:$0x3f] %vm6809_vm3, %v6913_v58  ;;  %v6738_v52 = vadd.f32 %v6654_v6, %v6366_v34 }
 0x736   :  { %v8784_v22 = vpop.f32.mrf.mxu1  ;;  %v6916_v38 = vld [vmem:[#allocation3 + $0x118] ss:$2 sm:$0x3f]  ;;  %v6918_v54 = vld [vmem:[#allocation3 + $0x119] ss:$2 sm:$0x3f] }
 0x737   :  { %6787 = vst.msk [vmem:[#allocation3 + $0x130] sm:$0xff] %vm2396_vm2, %v6738_v52  ;;  %v6923_v9 = vmax.f32 %v6916_v38, %v6918_v54 }
 0x738   :  { %v6657_v21 = vpop.f32.mrf.mxu1 }
 0x739   :  { %v6739_v19 = vadd.f32 %v6657_v21, %v6367_v4 }
 0x73a   :  { %v8785_v11 = vpop.f32.mrf.mxu1 }
 0x73b   :  { %6788 = vst.msk [vmem:[#allocation3 + $0x138] sm:$0xff] %vm2396_vm2, %v6739_v19 }
 0x73c   :  { %v6662_v8 = vpop.f32.mrf.mxu1 }
 0x73d   :  { %v6740_v50 = vadd.f32 %v6662_v8, %v6368_v43 }
 0x73e   :  { %v6920_v18 = vld [vmem:[#allocation3 + $0x126] ss:$2 sm:$0x3f]  ;;  %v6922_v16 = vld [vmem:[#allocation3 + $0x127] ss:$2 sm:$0x3f]  ;;  %v8788_v60 = vpop.f32.mrf.mxu1 }
 0x73f   :  { %v6924_v57 = vmax.f32 %v6920_v18, %v6922_v16  ;;  %6789 = vst.msk [vmem:[#allocation3 + $0x140] sm:$0xff] %vm2396_vm2, %v6740_v50 }
 0x740   :  { %v6665_v36 = vpop.f32.mrf.mxu1 }
 0x741   :  { %v6925_v20 = vmax.f32 %v6923_v9, %v6924_v57  ;;  %v6741_v48 = vadd.f32 %v6665_v36, %v6369_v35 }
 0x742   :  { %v8789_v46 = vpop.f32.mrf.mxu1  ;;  %v6929_v39 = vld [vmem:[#allocation3 + $0x134] ss:$2 sm:$0x3f]  ;;  %v6931_v15 = vld [vmem:[#allocation3 + $0x135] ss:$2 sm:$0x3f] }
 0x743   :  { %v6926_v1 = vmax.f32 %v6925_v20, 0.0  ;;  %6790 = vst.msk [vmem:[#allocation3 + $0x148] sm:$0xff] %vm2396_vm2, %v6741_v48  ;;  %v6936_v44 = vmax.f32 %v6929_v39, %v6931_v15 }
 0x744   :  { %v6670_v13 = vpop.f32.mrf.mxu1 }
 0x745   :  { %6927 = vst.msk [vmem:[%s11570_s5 + $0x36] sm:$0x3f] %vm6809_vm3, %v6926_v1  ;;  %v6742_v42 = vadd.f32 %v6670_v13, %v6370_v61 }
 0x746   :  { %v8792_v40 = vpop.f32.mrf.mxu1 }
 0x747   :  { %6791 = vst.msk [vmem:[#allocation3 + $0x150] sm:$0xff] %vm2396_vm2, %v6742_v42 }
 0x748   :  { %v6673_v3 = vpop.f32.mrf.mxu1 }
 0x749   :  { %v6743_v59 = vadd.f32 %v6673_v3, %v6371_v7 }
 0x74a   :  { %v6933_v49 = vld [vmem:[#allocation3 + $0x142] ss:$2 sm:$0x3f]  ;;  %v6935_v24 = vld [vmem:[#allocation3 + $0x143] ss:$2 sm:$0x3f]  ;;  %v8793_v2 = vpop.f32.mrf.mxu1 }
 0x74b   :  { %v6937_v55 = vmax.f32 %v6933_v49, %v6935_v24  ;;  %6792 = vst.msk [vmem:[#allocation3 + $0x158] sm:$0xff] %vm2396_vm2, %v6743_v59 }
 0x74c   :  { %v6678_v45 = vpop.f32.mrf.mxu1 }
 0x74d   :  { %v6938_v0 = vmax.f32 %v6936_v44, %v6937_v55  ;;  %v6744_v56 = vadd.f32 %v6678_v45, %v6372_v10 }
 0x74e   :  { %v8796_v30 = vpop.f32.mrf.mxu1 }
 0x74f   :  { %v6939_v28 = vmax.f32 %v6938_v0, 0.0  ;;  %6793 = vst.msk [vmem:[#allocation3 + $0x160] sm:$0xff] %vm2396_vm2, %v6744_v56 }
 0x750   :  { %v6681_v47 = vpop.f32.mrf.mxu1 }
 0x751   :  { %6940 = vst.msk [vmem:[%s11570_s5 + $0x3c] sm:$0x3f] %vm6809_vm3, %v6939_v28  ;;  %v6745_v29 = vadd.f32 %v6681_v47, %v6373_v63 }
 0x752   :  { %v8797_v25 = vpop.f32.mrf.mxu1  ;;  %v6942_v32 = vld [vmem:[#allocation3 + $0x150] ss:$2 sm:$0x3f]  ;;  %v6944_v51 = vld [vmem:[#allocation3 + $0x151] ss:$2 sm:$0x3f] }
 0x753   :  { %6794 = vst.msk [vmem:[#allocation3 + $0x168] sm:$0xff] %vm2396_vm2, %v6745_v29  ;;  %v6949_v12 = vmax.f32 %v6942_v32, %v6944_v51 }
 0x754   :  { %v6686_v5 = vpop.f32.mrf.mxu1 }
 0x755   :  { %v6746_v27 = vadd.f32 %v6686_v5, %v6374_v53 }
 0x756   :  { %v8800_v41 = vpop.f32.mrf.mxu1 }
 0x757   :  { %6795 = vst.msk [vmem:[#allocation3 + $0x170] sm:$0xff] %vm2396_vm2, %v6746_v27 }
 0x758   :  { %v6689_v14 = vpop.f32.mrf.mxu1 }
 0x759   :  { %v6747_v33 = vadd.f32 %v6689_v14, %v6375_v23 }
 0x75a   :  { %v6946_v37 = vld [vmem:[#allocation3 + $0x15e] ss:$2 sm:$0x3f]  ;;  %v6948_v17 = vld [vmem:[#allocation3 + $0x15f] ss:$2 sm:$0x3f]  ;;  %v8801_v62 = vpop.f32.mrf.mxu1 }
 0x75b   :  { %v6950_v26 = vmax.f32 %v6946_v37, %v6948_v17  ;;  %6796 = vst.msk [vmem:[#allocation3 + $0x178] sm:$0xff] %vm2396_vm2, %v6747_v33 }
 0x75c   :  { %v6694_v58 = vpop.f32.mrf.mxu1 }
 0x75d   :  { %v6951_v34 = vmax.f32 %v6949_v12, %v6950_v26  ;;  %v6748_v6 = vadd.f32 %v6694_v58, %v6376_v31 }
 0x75e   :  { %v8804_v52 = vpop.f32.mrf.mxu1 }
 0x75f   :  { %v6952_v22 = vmax.f32 %v6951_v34, 0.0  ;;  %6797 = vst.msk [vmem:[#allocation3 + $0x180] sm:$0xff] %vm2396_vm2, %v6748_v6 }
 0x760   :  { %v6697_v4 = vpop.f32.mrf.mxu1 }
 0x761   :  { %6953 = vst.msk [vmem:[%s11570_s5 + $0x42] sm:$0x3f] %vm6809_vm3, %v6952_v22 }
 0x762   :  { %v8805_v21 = vpop.f32.mrf.mxu1 }

</bundles_post_ra>
